<compile_context>
chip_gen: v5e
topology: v5e:2x2
jax: 0.10.0
libtpu: 0.0.40
codegen_flags: <defaults>
</compile_context>

<pallas_src>
import functools

import jax
import jax.numpy as jnp
from jax.experimental import pallas as pl
from jax.experimental.pallas import tpu as pltpu

LANE = 128


def _round_up(x, m):
    return (x + m - 1) // m * m


# ------------------------------ fused kernel ---------------------------------

def _fused_lstm_kernel(*refs, num_layers, hp):
    """refs = [x, (wih_t, whh_t, b) * num_layers, fc_w_t, fc_b, out]."""
    x_ref = refs[0]
    layer_refs = refs[1:1 + 3 * num_layers]
    fcw_ref = refs[1 + 3 * num_layers]   # (hp, C)
    fcb_ref = refs[2 + 3 * num_layers]   # (1, C)
    out_ref = refs[3 + 3 * num_layers]   # (num_layers*B, C)

    B, T, In = x_ref.shape
    # Layer input, batch-major flatten (no transpose of x needed).
    cur = x_ref[...].reshape(B * T, In)

    h_finals = []
    for l in range(num_layers):
        wih_ref = layer_refs[3 * l + 0]  # (in_dim, 4*hp)
        whh_ref = layer_refs[3 * l + 1]  # (hp, 4*hp)
        b_ref = layer_refs[3 * l + 2]    # (1, 4*hp)

        # Hoisted input projection: one MXU matmul over all timesteps.
        gx = (jnp.dot(cur, wih_ref[...], preferred_element_type=jnp.float32)
              + b_ref[...])              # (B*T, 4*hp)
        gx = gx.reshape(B, T, 4 * hp)

        h = jnp.zeros((B, hp), jnp.float32)
        c = jnp.zeros((B, hp), jnp.float32)
        ys = []
        for t in range(T):               # fully unrolled in-kernel time loop
            # Only h @ W_hh^T on the serial path per step.
            g = gx[:, t, :] + jnp.dot(h, whh_ref[...],
                                      preferred_element_type=jnp.float32)
            # PyTorch gate order i, f, g, o; each slice is a full 128-lane tile.
            i_g = jax.nn.sigmoid(g[:, 0 * hp:1 * hp])
            f_g = jax.nn.sigmoid(g[:, 1 * hp:2 * hp])
            g_g = jnp.tanh(g[:, 2 * hp:3 * hp])
            o_g = jax.nn.sigmoid(g[:, 3 * hp:4 * hp])
            c = f_g * c + i_g * g_g
            h = o_g * jnp.tanh(c)
            ys.append(h)
        h_finals.append(h)

        if l + 1 < num_layers:
            # Next layer input stays in VMEM: (B, T, hp) -> (B*T, hp).
            cur = jnp.stack(ys, axis=1).reshape(B * T, hp)

    # Fused FC head: h_out.view(-1, H) @ W_fc^T + b_fc (layer-major rows).
    h_flat = jnp.concatenate(h_finals, axis=0)            # (num_layers*B, hp)
    out_ref[...] = (jnp.dot(h_flat, fcw_ref[...],
                            preferred_element_type=jnp.float32)
                    + fcb_ref[...]).astype(out_ref.dtype)


# ------------------------------ wrappers --------------------------------------

def _pad_gate_mat(w, H, HP, in_dim, in_pad):
    """PyTorch gate weights (4H, in_dim) -> transposed, per-gate zero-padded (in_pad, 4*HP)."""
    w4 = w.reshape(4, H, in_dim)
    w4 = jnp.pad(w4, ((0, 0), (0, HP - H), (0, in_pad - in_dim)))
    return jnp.transpose(w4.reshape(4 * HP, in_pad)).astype(jnp.float32)


def _pad_gate_vec(b, H, HP):
    """(4H,) -> (1, 4*HP) with per-gate zero padding."""
    return jnp.pad(b.reshape(4, H), ((0, 0), (0, HP - H))).reshape(1, 4 * HP).astype(jnp.float32)


def lstm_model(x, params):
    """x: (B, T, input_size) batch_first.  Returns (num_layers * B, num_classes)."""
    B, T, In = x.shape
    num_layers = len(params["lstm"])
    H = params["lstm"][0][1].shape[1]
    C = params["fc_w"].shape[0]
    HP = _round_up(H, LANE)              # pad hidden to full 128-lane tiles

    inputs = [x.astype(jnp.float32)]
    for l, (w_ih, w_hh, b_ih, b_hh) in enumerate(params["lstm"]):
        in_dim = In if l == 0 else H
        in_pad = In if l == 0 else HP
        inputs.append(_pad_gate_mat(w_ih, H, HP, in_dim, in_pad))   # (in_pad, 4HP)
        inputs.append(_pad_gate_mat(w_hh, H, HP, H, HP))            # (HP, 4HP)
        inputs.append(_pad_gate_vec(b_ih + b_hh, H, HP))            # (1, 4HP)
    fc_w_pad = jnp.pad(params["fc_w"], ((0, 0), (0, HP - H)))       # (C, HP)
    inputs.append(jnp.transpose(fc_w_pad).astype(jnp.float32))      # (HP, C)
    inputs.append(params["fc_b"].reshape(1, C).astype(jnp.float32)) # (1, C)

    kernel = functools.partial(_fused_lstm_kernel, num_layers=num_layers, hp=HP)
    vmem_spec = pl.BlockSpec(memory_space=pltpu.MemorySpace.VMEM)
    return pl.pallas_call(
        kernel,
        out_shape=jax.ShapeDtypeStruct((num_layers * B, C), jnp.float32),
        in_specs=[vmem_spec] * len(inputs),
        out_specs=vmem_spec,
    )(*inputs)


def init_params(key, num_classes, num_layers, input_size, hidden_size):
    """Deterministic init matching PyTorch shapes (uniform(-1/sqrt(H), 1/sqrt(H)))."""
    bound = 1.0 / jnp.sqrt(jnp.float32(hidden_size))
    lstm_params = []
    for layer in range(num_layers):
        in_sz = input_size if layer == 0 else hidden_size
        key, k1, k2, k3, k4 = jax.random.split(key, 5)
        w_ih = jax.random.uniform(k1, (4 * hidden_size, in_sz),
                                  jnp.float32, -bound, bound)
        w_hh = jax.random.uniform(k2, (4 * hidden_size, hidden_size),
                                  jnp.float32, -bound, bound)
        b_ih = jax.random.uniform(k3, (4 * hidden_size,), jnp.float32, -bound, bound)
        b_hh = jax.random.uniform(k4, (4 * hidden_size,), jnp.float32, -bound, bound)
        lstm_params.append((w_ih, w_hh, b_ih, b_hh))
    key, k5, k6 = jax.random.split(key, 3)
    fc_bound = 1.0 / jnp.sqrt(jnp.float32(hidden_size))
    fc_w = jax.random.uniform(k5, (num_classes, hidden_size),
                              jnp.float32, -fc_bound, fc_bound)
    fc_b = jax.random.uniform(k6, (num_classes,), jnp.float32, -fc_bound, fc_bound)
    return {"lstm": lstm_params, "fc_w": fc_w, "fc_b": fc_b}


# --------------------------- pure-JAX reference --------------------------------

def _reference(x, params):
    B = x.shape[0]
    H = params["lstm"][0][1].shape[1]
    layer_in = x
    h_finals = []
    for (w_ih, w_hh, b_ih, b_hh) in params["lstm"]:
        h = jnp.zeros((B, H), jnp.float32)
        c = jnp.zeros((B, H), jnp.float32)
        ys = []
        for t in range(layer_in.shape[1]):
            g = layer_in[:, t, :] @ w_ih.T + h @ w_hh.T + b_ih + b_hh
            i_g = jax.nn.sigmoid(g[:, 0 * H:1 * H])
            f_g = jax.nn.sigmoid(g[:, 1 * H:2 * H])
            g_g = jnp.tanh(g[:, 2 * H:3 * H])
            o_g = jax.nn.sigmoid(g[:, 3 * H:4 * H])
            c = f_g * c + i_g * g_g
            h = o_g * jnp.tanh(c)
            ys.append(h)
        layer_in = jnp.stack(ys, axis=1)
        h_finals.append(h)
    h_out = jnp.stack(h_finals, axis=0).reshape(-1, H)
    return h_out @ params["fc_w"].T + params["fc_b"]


if __name__ == "__main__":
    num_classes = 4
    num_layers = 2
    input_size = 8
    hidden_size = 32
    seq_length = 8
    batch = 2

    key = jax.random.PRNGKey(0)
    key, xkey = jax.random.split(key)
    x = jax.random.normal(xkey, (batch, seq_length, input_size), jnp.float32)

    params = init_params(key, num_classes, num_layers, input_size, hidden_size)

    out = jax.jit(lstm_model)(x, params)
    out = jax.block_until_ready(out)

    ref = _reference(x, params)
    assert out.shape == (num_layers * batch, num_classes)
    assert jnp.allclose(out, ref, rtol=1e-4, atol=1e-4)

    print("KERNEL_OK")
</pallas_src>

<mosaic_0001>
module attributes {stable_mosaic.version = 11 : i64} {
  func.func @_fused_lstm_kernel(%arg0: memref<2x8x8xf32, #tpu.memory_space<vmem>>, %arg1: memref<8x512xf32, #tpu.memory_space<vmem>>, %arg2: memref<128x512xf32, #tpu.memory_space<vmem>>, %arg3: memref<1x512xf32, #tpu.memory_space<vmem>>, %arg4: memref<128x512xf32, #tpu.memory_space<vmem>>, %arg5: memref<128x512xf32, #tpu.memory_space<vmem>>, %arg6: memref<1x512xf32, #tpu.memory_space<vmem>>, %arg7: memref<128x4xf32, #tpu.memory_space<vmem>>, %arg8: memref<1x4xf32, #tpu.memory_space<vmem>>, %arg9: memref<4x4xf32, #tpu.memory_space<vmem>>) attributes {dimension_semantics = [], scalar_prefetch = 0 : i64, scratch_operands = 0 : i64, tpu.core_type = #tpu.core_type<tc>} {
    %c0 = arith.constant 0 : index
    %c0_0 = arith.constant 0 : index
    %c0_1 = arith.constant 0 : index
    %0 = vector.load %arg0[%c0, %c0_0, %c0_1] : memref<2x8x8xf32, #tpu.memory_space<vmem>>, vector<2x8x8xf32>
    %1 = vector.shape_cast %0 : vector<2x8x8xf32> to vector<16x8xf32>
    %c0_2 = arith.constant 0 : index
    %c0_3 = arith.constant 0 : index
    %2 = vector.load %arg1[%c0_2, %c0_3] : memref<8x512xf32, #tpu.memory_space<vmem>>, vector<8x512xf32>
    %cst = arith.constant dense<0.000000e+00> : vector<16x512xf32>
    %3 = tpu.matmul %1, %2, %cst {dimension_numbers = #tpu.dot_dimension_numbers<[1], [0], [0], [1], [0, 0, 1, 1], [], []>} : vector<16x8xf32>, vector<8x512xf32>, vector<16x512xf32> -> vector<16x512xf32>
    %c0_4 = arith.constant 0 : index
    %c0_5 = arith.constant 0 : index
    %4 = vector.load %arg3[%c0_4, %c0_5] : memref<1x512xf32, #tpu.memory_space<vmem>>, vector<1x512xf32>
    %5 = vector.broadcast %4 : vector<1x512xf32> to vector<16x512xf32>
    %6 = arith.addf %3, %5 : vector<16x512xf32>
    %7 = vector.shape_cast %6 : vector<16x512xf32> to vector<2x8x512xf32>
    %cst_6 = arith.constant 0.000000e+00 : f32
    %8 = vector.broadcast %cst_6 : f32 to vector<2x128xf32>
    %cst_7 = arith.constant 0.000000e+00 : f32
    %9 = vector.broadcast %cst_7 : f32 to vector<2x128xf32>
    %10 = vector.extract_strided_slice %7 {offsets = [0, 0, 0], sizes = [2, 1, 512], strides = [1, 1, 1]} : vector<2x8x512xf32> to vector<2x1x512xf32>
    %11 = vector.shape_cast %10 : vector<2x1x512xf32> to vector<2x512xf32>
    %c0_8 = arith.constant 0 : index
    %c0_9 = arith.constant 0 : index
    %12 = vector.load %arg2[%c0_8, %c0_9] : memref<128x512xf32, #tpu.memory_space<vmem>>, vector<128x512xf32>
    %cst_10 = arith.constant dense<0.000000e+00> : vector<2x512xf32>
    %13 = tpu.matmul %8, %12, %cst_10 {dimension_numbers = #tpu.dot_dimension_numbers<[1], [0], [0], [1], [0, 0, 1, 1], [], []>} : vector<2x128xf32>, vector<128x512xf32>, vector<2x512xf32> -> vector<2x512xf32>
    %14 = arith.addf %11, %13 : vector<2x512xf32>
    %15 = vector.extract_strided_slice %14 {offsets = [0, 0], sizes = [2, 128], strides = [1, 1]} : vector<2x512xf32> to vector<2x128xf32>
    %16 = arith.negf %15 : vector<2x128xf32>
    %17 = math.exp %16 : vector<2x128xf32>
    %cst_11 = arith.constant 1.000000e+00 : f32
    %18 = vector.broadcast %cst_11 : f32 to vector<2x128xf32>
    %19 = arith.addf %18, %17 : vector<2x128xf32>
    %20 = arith.divf %18, %19 : vector<2x128xf32>
    %21 = vector.extract_strided_slice %14 {offsets = [0, 128], sizes = [2, 128], strides = [1, 1]} : vector<2x512xf32> to vector<2x128xf32>
    %22 = arith.negf %21 : vector<2x128xf32>
    %23 = math.exp %22 : vector<2x128xf32>
    %cst_12 = arith.constant 1.000000e+00 : f32
    %24 = vector.broadcast %cst_12 : f32 to vector<2x128xf32>
    %25 = arith.addf %24, %23 : vector<2x128xf32>
    %26 = arith.divf %24, %25 : vector<2x128xf32>
    %27 = vector.extract_strided_slice %14 {offsets = [0, 256], sizes = [2, 128], strides = [1, 1]} : vector<2x512xf32> to vector<2x128xf32>
    %28 = math.tanh %27 : vector<2x128xf32>
    %29 = vector.extract_strided_slice %14 {offsets = [0, 384], sizes = [2, 128], strides = [1, 1]} : vector<2x512xf32> to vector<2x128xf32>
    %30 = arith.negf %29 : vector<2x128xf32>
    %31 = math.exp %30 : vector<2x128xf32>
    %cst_13 = arith.constant 1.000000e+00 : f32
    %32 = vector.broadcast %cst_13 : f32 to vector<2x128xf32>
    %33 = arith.addf %32, %31 : vector<2x128xf32>
    %34 = arith.divf %32, %33 : vector<2x128xf32>
    %35 = arith.mulf %26, %9 : vector<2x128xf32>
    %36 = arith.mulf %20, %28 : vector<2x128xf32>
    %37 = arith.addf %35, %36 : vector<2x128xf32>
    %38 = math.tanh %37 : vector<2x128xf32>
    %39 = arith.mulf %34, %38 : vector<2x128xf32>
    %40 = vector.extract_strided_slice %7 {offsets = [0, 1, 0], sizes = [2, 1, 512], strides = [1, 1, 1]} : vector<2x8x512xf32> to vector<2x1x512xf32>
    %41 = vector.shape_cast %40 : vector<2x1x512xf32> to vector<2x512xf32>
    %c0_14 = arith.constant 0 : index
    %c0_15 = arith.constant 0 : index
    %42 = vector.load %arg2[%c0_14, %c0_15] : memref<128x512xf32, #tpu.memory_space<vmem>>, vector<128x512xf32>
    %cst_16 = arith.constant dense<0.000000e+00> : vector<2x512xf32>
    %43 = tpu.matmul %39, %42, %cst_16 {dimension_numbers = #tpu.dot_dimension_numbers<[1], [0], [0], [1], [0, 0, 1, 1], [], []>} : vector<2x128xf32>, vector<128x512xf32>, vector<2x512xf32> -> vector<2x512xf32>
    %44 = arith.addf %41, %43 : vector<2x512xf32>
    %45 = vector.extract_strided_slice %44 {offsets = [0, 0], sizes = [2, 128], strides = [1, 1]} : vector<2x512xf32> to vector<2x128xf32>
    %46 = arith.negf %45 : vector<2x128xf32>
    %47 = math.exp %46 : vector<2x128xf32>
    %cst_17 = arith.constant 1.000000e+00 : f32
    %48 = vector.broadcast %cst_17 : f32 to vector<2x128xf32>
    %49 = arith.addf %48, %47 : vector<2x128xf32>
    %50 = arith.divf %48, %49 : vector<2x128xf32>
    %51 = vector.extract_strided_slice %44 {offsets = [0, 128], sizes = [2, 128], strides = [1, 1]} : vector<2x512xf32> to vector<2x128xf32>
    %52 = arith.negf %51 : vector<2x128xf32>
    %53 = math.exp %52 : vector<2x128xf32>
    %cst_18 = arith.constant 1.000000e+00 : f32
    %54 = vector.broadcast %cst_18 : f32 to vector<2x128xf32>
    %55 = arith.addf %54, %53 : vector<2x128xf32>
    %56 = arith.divf %54, %55 : vector<2x128xf32>
    %57 = vector.extract_strided_slice %44 {offsets = [0, 256], sizes = [2, 128], strides = [1, 1]} : vector<2x512xf32> to vector<2x128xf32>
    %58 = math.tanh %57 : vector<2x128xf32>
    %59 = vector.extract_strided_slice %44 {offsets = [0, 384], sizes = [2, 128], strides = [1, 1]} : vector<2x512xf32> to vector<2x128xf32>
    %60 = arith.negf %59 : vector<2x128xf32>
    %61 = math.exp %60 : vector<2x128xf32>
    %cst_19 = arith.constant 1.000000e+00 : f32
    %62 = vector.broadcast %cst_19 : f32 to vector<2x128xf32>
    %63 = arith.addf %62, %61 : vector<2x128xf32>
    %64 = arith.divf %62, %63 : vector<2x128xf32>
    %65 = arith.mulf %56, %37 : vector<2x128xf32>
    %66 = arith.mulf %50, %58 : vector<2x128xf32>
    %67 = arith.addf %65, %66 : vector<2x128xf32>
    %68 = math.tanh %67 : vector<2x128xf32>
    %69 = arith.mulf %64, %68 : vector<2x128xf32>
    %70 = vector.extract_strided_slice %7 {offsets = [0, 2, 0], sizes = [2, 1, 512], strides = [1, 1, 1]} : vector<2x8x512xf32> to vector<2x1x512xf32>
    %71 = vector.shape_cast %70 : vector<2x1x512xf32> to vector<2x512xf32>
    %c0_20 = arith.constant 0 : index
    %c0_21 = arith.constant 0 : index
    %72 = vector.load %arg2[%c0_20, %c0_21] : memref<128x512xf32, #tpu.memory_space<vmem>>, vector<128x512xf32>
    %cst_22 = arith.constant dense<0.000000e+00> : vector<2x512xf32>
    %73 = tpu.matmul %69, %72, %cst_22 {dimension_numbers = #tpu.dot_dimension_numbers<[1], [0], [0], [1], [0, 0, 1, 1], [], []>} : vector<2x128xf32>, vector<128x512xf32>, vector<2x512xf32> -> vector<2x512xf32>
    %74 = arith.addf %71, %73 : vector<2x512xf32>
    %75 = vector.extract_strided_slice %74 {offsets = [0, 0], sizes = [2, 128], strides = [1, 1]} : vector<2x512xf32> to vector<2x128xf32>
    %76 = arith.negf %75 : vector<2x128xf32>
    %77 = math.exp %76 : vector<2x128xf32>
    %cst_23 = arith.constant 1.000000e+00 : f32
    %78 = vector.broadcast %cst_23 : f32 to vector<2x128xf32>
    %79 = arith.addf %78, %77 : vector<2x128xf32>
    %80 = arith.divf %78, %79 : vector<2x128xf32>
    %81 = vector.extract_strided_slice %74 {offsets = [0, 128], sizes = [2, 128], strides = [1, 1]} : vector<2x512xf32> to vector<2x128xf32>
    %82 = arith.negf %81 : vector<2x128xf32>
    %83 = math.exp %82 : vector<2x128xf32>
    %cst_24 = arith.constant 1.000000e+00 : f32
    %84 = vector.broadcast %cst_24 : f32 to vector<2x128xf32>
    %85 = arith.addf %84, %83 : vector<2x128xf32>
    %86 = arith.divf %84, %85 : vector<2x128xf32>
    %87 = vector.extract_strided_slice %74 {offsets = [0, 256], sizes = [2, 128], strides = [1, 1]} : vector<2x512xf32> to vector<2x128xf32>
    %88 = math.tanh %87 : vector<2x128xf32>
    %89 = vector.extract_strided_slice %74 {offsets = [0, 384], sizes = [2, 128], strides = [1, 1]} : vector<2x512xf32> to vector<2x128xf32>
    %90 = arith.negf %89 : vector<2x128xf32>
    %91 = math.exp %90 : vector<2x128xf32>
    %cst_25 = arith.constant 1.000000e+00 : f32
    %92 = vector.broadcast %cst_25 : f32 to vector<2x128xf32>
    %93 = arith.addf %92, %91 : vector<2x128xf32>
    %94 = arith.divf %92, %93 : vector<2x128xf32>
    %95 = arith.mulf %86, %67 : vector<2x128xf32>
    %96 = arith.mulf %80, %88 : vector<2x128xf32>
    %97 = arith.addf %95, %96 : vector<2x128xf32>
    %98 = math.tanh %97 : vector<2x128xf32>
    %99 = arith.mulf %94, %98 : vector<2x128xf32>
    %100 = vector.extract_strided_slice %7 {offsets = [0, 3, 0], sizes = [2, 1, 512], strides = [1, 1, 1]} : vector<2x8x512xf32> to vector<2x1x512xf32>
    %101 = vector.shape_cast %100 : vector<2x1x512xf32> to vector<2x512xf32>
    %c0_26 = arith.constant 0 : index
    %c0_27 = arith.constant 0 : index
    %102 = vector.load %arg2[%c0_26, %c0_27] : memref<128x512xf32, #tpu.memory_space<vmem>>, vector<128x512xf32>
    %cst_28 = arith.constant dense<0.000000e+00> : vector<2x512xf32>
    %103 = tpu.matmul %99, %102, %cst_28 {dimension_numbers = #tpu.dot_dimension_numbers<[1], [0], [0], [1], [0, 0, 1, 1], [], []>} : vector<2x128xf32>, vector<128x512xf32>, vector<2x512xf32> -> vector<2x512xf32>
    %104 = arith.addf %101, %103 : vector<2x512xf32>
    %105 = vector.extract_strided_slice %104 {offsets = [0, 0], sizes = [2, 128], strides = [1, 1]} : vector<2x512xf32> to vector<2x128xf32>
    %106 = arith.negf %105 : vector<2x128xf32>
    %107 = math.exp %106 : vector<2x128xf32>
    %cst_29 = arith.constant 1.000000e+00 : f32
    %108 = vector.broadcast %cst_29 : f32 to vector<2x128xf32>
    %109 = arith.addf %108, %107 : vector<2x128xf32>
    %110 = arith.divf %108, %109 : vector<2x128xf32>
    %111 = vector.extract_strided_slice %104 {offsets = [0, 128], sizes = [2, 128], strides = [1, 1]} : vector<2x512xf32> to vector<2x128xf32>
    %112 = arith.negf %111 : vector<2x128xf32>
    %113 = math.exp %112 : vector<2x128xf32>
    %cst_30 = arith.constant 1.000000e+00 : f32
    %114 = vector.broadcast %cst_30 : f32 to vector<2x128xf32>
    %115 = arith.addf %114, %113 : vector<2x128xf32>
    %116 = arith.divf %114, %115 : vector<2x128xf32>
    %117 = vector.extract_strided_slice %104 {offsets = [0, 256], sizes = [2, 128], strides = [1, 1]} : vector<2x512xf32> to vector<2x128xf32>
    %118 = math.tanh %117 : vector<2x128xf32>
    %119 = vector.extract_strided_slice %104 {offsets = [0, 384], sizes = [2, 128], strides = [1, 1]} : vector<2x512xf32> to vector<2x128xf32>
    %120 = arith.negf %119 : vector<2x128xf32>
    %121 = math.exp %120 : vector<2x128xf32>
    %cst_31 = arith.constant 1.000000e+00 : f32
    %122 = vector.broadcast %cst_31 : f32 to vector<2x128xf32>
    %123 = arith.addf %122, %121 : vector<2x128xf32>
    %124 = arith.divf %122, %123 : vector<2x128xf32>
    %125 = arith.mulf %116, %97 : vector<2x128xf32>
    %126 = arith.mulf %110, %118 : vector<2x128xf32>
    %127 = arith.addf %125, %126 : vector<2x128xf32>
    %128 = math.tanh %127 : vector<2x128xf32>
    %129 = arith.mulf %124, %128 : vector<2x128xf32>
    %130 = vector.extract_strided_slice %7 {offsets = [0, 4, 0], sizes = [2, 1, 512], strides = [1, 1, 1]} : vector<2x8x512xf32> to vector<2x1x512xf32>
    %131 = vector.shape_cast %130 : vector<2x1x512xf32> to vector<2x512xf32>
    %c0_32 = arith.constant 0 : index
    %c0_33 = arith.constant 0 : index
    %132 = vector.load %arg2[%c0_32, %c0_33] : memref<128x512xf32, #tpu.memory_space<vmem>>, vector<128x512xf32>
    %cst_34 = arith.constant dense<0.000000e+00> : vector<2x512xf32>
    %133 = tpu.matmul %129, %132, %cst_34 {dimension_numbers = #tpu.dot_dimension_numbers<[1], [0], [0], [1], [0, 0, 1, 1], [], []>} : vector<2x128xf32>, vector<128x512xf32>, vector<2x512xf32> -> vector<2x512xf32>
    %134 = arith.addf %131, %133 : vector<2x512xf32>
    %135 = vector.extract_strided_slice %134 {offsets = [0, 0], sizes = [2, 128], strides = [1, 1]} : vector<2x512xf32> to vector<2x128xf32>
    %136 = arith.negf %135 : vector<2x128xf32>
    %137 = math.exp %136 : vector<2x128xf32>
    %cst_35 = arith.constant 1.000000e+00 : f32
    %138 = vector.broadcast %cst_35 : f32 to vector<2x128xf32>
    %139 = arith.addf %138, %137 : vector<2x128xf32>
    %140 = arith.divf %138, %139 : vector<2x128xf32>
    %141 = vector.extract_strided_slice %134 {offsets = [0, 128], sizes = [2, 128], strides = [1, 1]} : vector<2x512xf32> to vector<2x128xf32>
    %142 = arith.negf %141 : vector<2x128xf32>
    %143 = math.exp %142 : vector<2x128xf32>
    %cst_36 = arith.constant 1.000000e+00 : f32
    %144 = vector.broadcast %cst_36 : f32 to vector<2x128xf32>
    %145 = arith.addf %144, %143 : vector<2x128xf32>
    %146 = arith.divf %144, %145 : vector<2x128xf32>
    %147 = vector.extract_strided_slice %134 {offsets = [0, 256], sizes = [2, 128], strides = [1, 1]} : vector<2x512xf32> to vector<2x128xf32>
    %148 = math.tanh %147 : vector<2x128xf32>
    %149 = vector.extract_strided_slice %134 {offsets = [0, 384], sizes = [2, 128], strides = [1, 1]} : vector<2x512xf32> to vector<2x128xf32>
    %150 = arith.negf %149 : vector<2x128xf32>
    %151 = math.exp %150 : vector<2x128xf32>
    %cst_37 = arith.constant 1.000000e+00 : f32
    %152 = vector.broadcast %cst_37 : f32 to vector<2x128xf32>
    %153 = arith.addf %152, %151 : vector<2x128xf32>
    %154 = arith.divf %152, %153 : vector<2x128xf32>
    %155 = arith.mulf %146, %127 : vector<2x128xf32>
    %156 = arith.mulf %140, %148 : vector<2x128xf32>
    %157 = arith.addf %155, %156 : vector<2x128xf32>
    %158 = math.tanh %157 : vector<2x128xf32>
    %159 = arith.mulf %154, %158 : vector<2x128xf32>
    %160 = vector.extract_strided_slice %7 {offsets = [0, 5, 0], sizes = [2, 1, 512], strides = [1, 1, 1]} : vector<2x8x512xf32> to vector<2x1x512xf32>
    %161 = vector.shape_cast %160 : vector<2x1x512xf32> to vector<2x512xf32>
    %c0_38 = arith.constant 0 : index
    %c0_39 = arith.constant 0 : index
    %162 = vector.load %arg2[%c0_38, %c0_39] : memref<128x512xf32, #tpu.memory_space<vmem>>, vector<128x512xf32>
    %cst_40 = arith.constant dense<0.000000e+00> : vector<2x512xf32>
    %163 = tpu.matmul %159, %162, %cst_40 {dimension_numbers = #tpu.dot_dimension_numbers<[1], [0], [0], [1], [0, 0, 1, 1], [], []>} : vector<2x128xf32>, vector<128x512xf32>, vector<2x512xf32> -> vector<2x512xf32>
    %164 = arith.addf %161, %163 : vector<2x512xf32>
    %165 = vector.extract_strided_slice %164 {offsets = [0, 0], sizes = [2, 128], strides = [1, 1]} : vector<2x512xf32> to vector<2x128xf32>
    %166 = arith.negf %165 : vector<2x128xf32>
    %167 = math.exp %166 : vector<2x128xf32>
    %cst_41 = arith.constant 1.000000e+00 : f32
    %168 = vector.broadcast %cst_41 : f32 to vector<2x128xf32>
    %169 = arith.addf %168, %167 : vector<2x128xf32>
    %170 = arith.divf %168, %169 : vector<2x128xf32>
    %171 = vector.extract_strided_slice %164 {offsets = [0, 128], sizes = [2, 128], strides = [1, 1]} : vector<2x512xf32> to vector<2x128xf32>
    %172 = arith.negf %171 : vector<2x128xf32>
    %173 = math.exp %172 : vector<2x128xf32>
    %cst_42 = arith.constant 1.000000e+00 : f32
    %174 = vector.broadcast %cst_42 : f32 to vector<2x128xf32>
    %175 = arith.addf %174, %173 : vector<2x128xf32>
    %176 = arith.divf %174, %175 : vector<2x128xf32>
    %177 = vector.extract_strided_slice %164 {offsets = [0, 256], sizes = [2, 128], strides = [1, 1]} : vector<2x512xf32> to vector<2x128xf32>
    %178 = math.tanh %177 : vector<2x128xf32>
    %179 = vector.extract_strided_slice %164 {offsets = [0, 384], sizes = [2, 128], strides = [1, 1]} : vector<2x512xf32> to vector<2x128xf32>
    %180 = arith.negf %179 : vector<2x128xf32>
    %181 = math.exp %180 : vector<2x128xf32>
    %cst_43 = arith.constant 1.000000e+00 : f32
    %182 = vector.broadcast %cst_43 : f32 to vector<2x128xf32>
    %183 = arith.addf %182, %181 : vector<2x128xf32>
    %184 = arith.divf %182, %183 : vector<2x128xf32>
    %185 = arith.mulf %176, %157 : vector<2x128xf32>
    %186 = arith.mulf %170, %178 : vector<2x128xf32>
    %187 = arith.addf %185, %186 : vector<2x128xf32>
    %188 = math.tanh %187 : vector<2x128xf32>
    %189 = arith.mulf %184, %188 : vector<2x128xf32>
    %190 = vector.extract_strided_slice %7 {offsets = [0, 6, 0], sizes = [2, 1, 512], strides = [1, 1, 1]} : vector<2x8x512xf32> to vector<2x1x512xf32>
    %191 = vector.shape_cast %190 : vector<2x1x512xf32> to vector<2x512xf32>
    %c0_44 = arith.constant 0 : index
    %c0_45 = arith.constant 0 : index
    %192 = vector.load %arg2[%c0_44, %c0_45] : memref<128x512xf32, #tpu.memory_space<vmem>>, vector<128x512xf32>
    %cst_46 = arith.constant dense<0.000000e+00> : vector<2x512xf32>
    %193 = tpu.matmul %189, %192, %cst_46 {dimension_numbers = #tpu.dot_dimension_numbers<[1], [0], [0], [1], [0, 0, 1, 1], [], []>} : vector<2x128xf32>, vector<128x512xf32>, vector<2x512xf32> -> vector<2x512xf32>
    %194 = arith.addf %191, %193 : vector<2x512xf32>
    %195 = vector.extract_strided_slice %194 {offsets = [0, 0], sizes = [2, 128], strides = [1, 1]} : vector<2x512xf32> to vector<2x128xf32>
    %196 = arith.negf %195 : vector<2x128xf32>
    %197 = math.exp %196 : vector<2x128xf32>
    %cst_47 = arith.constant 1.000000e+00 : f32
    %198 = vector.broadcast %cst_47 : f32 to vector<2x128xf32>
    %199 = arith.addf %198, %197 : vector<2x128xf32>
    %200 = arith.divf %198, %199 : vector<2x128xf32>
    %201 = vector.extract_strided_slice %194 {offsets = [0, 128], sizes = [2, 128], strides = [1, 1]} : vector<2x512xf32> to vector<2x128xf32>
    %202 = arith.negf %201 : vector<2x128xf32>
    %203 = math.exp %202 : vector<2x128xf32>
    %cst_48 = arith.constant 1.000000e+00 : f32
    %204 = vector.broadcast %cst_48 : f32 to vector<2x128xf32>
    %205 = arith.addf %204, %203 : vector<2x128xf32>
    %206 = arith.divf %204, %205 : vector<2x128xf32>
    %207 = vector.extract_strided_slice %194 {offsets = [0, 256], sizes = [2, 128], strides = [1, 1]} : vector<2x512xf32> to vector<2x128xf32>
    %208 = math.tanh %207 : vector<2x128xf32>
    %209 = vector.extract_strided_slice %194 {offsets = [0, 384], sizes = [2, 128], strides = [1, 1]} : vector<2x512xf32> to vector<2x128xf32>
    %210 = arith.negf %209 : vector<2x128xf32>
    %211 = math.exp %210 : vector<2x128xf32>
    %cst_49 = arith.constant 1.000000e+00 : f32
    %212 = vector.broadcast %cst_49 : f32 to vector<2x128xf32>
    %213 = arith.addf %212, %211 : vector<2x128xf32>
    %214 = arith.divf %212, %213 : vector<2x128xf32>
    %215 = arith.mulf %206, %187 : vector<2x128xf32>
    %216 = arith.mulf %200, %208 : vector<2x128xf32>
    %217 = arith.addf %215, %216 : vector<2x128xf32>
    %218 = math.tanh %217 : vector<2x128xf32>
    %219 = arith.mulf %214, %218 : vector<2x128xf32>
    %220 = vector.extract_strided_slice %7 {offsets = [0, 7, 0], sizes = [2, 1, 512], strides = [1, 1, 1]} : vector<2x8x512xf32> to vector<2x1x512xf32>
    %221 = vector.shape_cast %220 : vector<2x1x512xf32> to vector<2x512xf32>
    %c0_50 = arith.constant 0 : index
    %c0_51 = arith.constant 0 : index
    %222 = vector.load %arg2[%c0_50, %c0_51] : memref<128x512xf32, #tpu.memory_space<vmem>>, vector<128x512xf32>
    %cst_52 = arith.constant dense<0.000000e+00> : vector<2x512xf32>
    %223 = tpu.matmul %219, %222, %cst_52 {dimension_numbers = #tpu.dot_dimension_numbers<[1], [0], [0], [1], [0, 0, 1, 1], [], []>} : vector<2x128xf32>, vector<128x512xf32>, vector<2x512xf32> -> vector<2x512xf32>
    %224 = arith.addf %221, %223 : vector<2x512xf32>
    %225 = vector.extract_strided_slice %224 {offsets = [0, 0], sizes = [2, 128], strides = [1, 1]} : vector<2x512xf32> to vector<2x128xf32>
    %226 = arith.negf %225 : vector<2x128xf32>
    %227 = math.exp %226 : vector<2x128xf32>
    %cst_53 = arith.constant 1.000000e+00 : f32
    %228 = vector.broadcast %cst_53 : f32 to vector<2x128xf32>
    %229 = arith.addf %228, %227 : vector<2x128xf32>
    %230 = arith.divf %228, %229 : vector<2x128xf32>
    %231 = vector.extract_strided_slice %224 {offsets = [0, 128], sizes = [2, 128], strides = [1, 1]} : vector<2x512xf32> to vector<2x128xf32>
    %232 = arith.negf %231 : vector<2x128xf32>
    %233 = math.exp %232 : vector<2x128xf32>
    %cst_54 = arith.constant 1.000000e+00 : f32
    %234 = vector.broadcast %cst_54 : f32 to vector<2x128xf32>
    %235 = arith.addf %234, %233 : vector<2x128xf32>
    %236 = arith.divf %234, %235 : vector<2x128xf32>
    %237 = vector.extract_strided_slice %224 {offsets = [0, 256], sizes = [2, 128], strides = [1, 1]} : vector<2x512xf32> to vector<2x128xf32>
    %238 = math.tanh %237 : vector<2x128xf32>
    %239 = vector.extract_strided_slice %224 {offsets = [0, 384], sizes = [2, 128], strides = [1, 1]} : vector<2x512xf32> to vector<2x128xf32>
    %240 = arith.negf %239 : vector<2x128xf32>
    %241 = math.exp %240 : vector<2x128xf32>
    %cst_55 = arith.constant 1.000000e+00 : f32
    %242 = vector.broadcast %cst_55 : f32 to vector<2x128xf32>
    %243 = arith.addf %242, %241 : vector<2x128xf32>
    %244 = arith.divf %242, %243 : vector<2x128xf32>
    %245 = arith.mulf %236, %217 : vector<2x128xf32>
    %246 = arith.mulf %230, %238 : vector<2x128xf32>
    %247 = arith.addf %245, %246 : vector<2x128xf32>
    %248 = math.tanh %247 : vector<2x128xf32>
    %249 = arith.mulf %244, %248 : vector<2x128xf32>
    %250 = vector.shape_cast %39 : vector<2x128xf32> to vector<2x1x128xf32>
    %251 = vector.shape_cast %69 : vector<2x128xf32> to vector<2x1x128xf32>
    %252 = vector.shape_cast %99 : vector<2x128xf32> to vector<2x1x128xf32>
    %253 = vector.shape_cast %129 : vector<2x128xf32> to vector<2x1x128xf32>
    %254 = vector.shape_cast %159 : vector<2x128xf32> to vector<2x1x128xf32>
    %255 = vector.shape_cast %189 : vector<2x128xf32> to vector<2x1x128xf32>
    %256 = vector.shape_cast %219 : vector<2x128xf32> to vector<2x1x128xf32>
    %257 = vector.shape_cast %249 : vector<2x128xf32> to vector<2x1x128xf32>
    %258 = tpu.concatenate %250, %251, %252, %253, %254, %255, %256, %257 in 1 : vector<2x1x128xf32>, vector<2x1x128xf32>, vector<2x1x128xf32>, vector<2x1x128xf32>, vector<2x1x128xf32>, vector<2x1x128xf32>, vector<2x1x128xf32>, vector<2x1x128xf32> -> vector<2x8x128xf32>
    %259 = vector.shape_cast %258 : vector<2x8x128xf32> to vector<16x128xf32>
    %c0_56 = arith.constant 0 : index
    %c0_57 = arith.constant 0 : index
    %260 = vector.load %arg4[%c0_56, %c0_57] : memref<128x512xf32, #tpu.memory_space<vmem>>, vector<128x512xf32>
    %cst_58 = arith.constant dense<0.000000e+00> : vector<16x512xf32>
    %261 = tpu.matmul %259, %260, %cst_58 {dimension_numbers = #tpu.dot_dimension_numbers<[1], [0], [0], [1], [0, 0, 1, 1], [], []>} : vector<16x128xf32>, vector<128x512xf32>, vector<16x512xf32> -> vector<16x512xf32>
    %c0_59 = arith.constant 0 : index
    %c0_60 = arith.constant 0 : index
    %262 = vector.load %arg6[%c0_59, %c0_60] : memref<1x512xf32, #tpu.memory_space<vmem>>, vector<1x512xf32>
    %263 = vector.broadcast %262 : vector<1x512xf32> to vector<16x512xf32>
    %264 = arith.addf %261, %263 : vector<16x512xf32>
    %265 = vector.shape_cast %264 : vector<16x512xf32> to vector<2x8x512xf32>
    %cst_61 = arith.constant 0.000000e+00 : f32
    %266 = vector.broadcast %cst_61 : f32 to vector<2x128xf32>
    %cst_62 = arith.constant 0.000000e+00 : f32
    %267 = vector.broadcast %cst_62 : f32 to vector<2x128xf32>
    %268 = vector.extract_strided_slice %265 {offsets = [0, 0, 0], sizes = [2, 1, 512], strides = [1, 1, 1]} : vector<2x8x512xf32> to vector<2x1x512xf32>
    %269 = vector.shape_cast %268 : vector<2x1x512xf32> to vector<2x512xf32>
    %c0_63 = arith.constant 0 : index
    %c0_64 = arith.constant 0 : index
    %270 = vector.load %arg5[%c0_63, %c0_64] : memref<128x512xf32, #tpu.memory_space<vmem>>, vector<128x512xf32>
    %cst_65 = arith.constant dense<0.000000e+00> : vector<2x512xf32>
    %271 = tpu.matmul %266, %270, %cst_65 {dimension_numbers = #tpu.dot_dimension_numbers<[1], [0], [0], [1], [0, 0, 1, 1], [], []>} : vector<2x128xf32>, vector<128x512xf32>, vector<2x512xf32> -> vector<2x512xf32>
    %272 = arith.addf %269, %271 : vector<2x512xf32>
    %273 = vector.extract_strided_slice %272 {offsets = [0, 0], sizes = [2, 128], strides = [1, 1]} : vector<2x512xf32> to vector<2x128xf32>
    %274 = arith.negf %273 : vector<2x128xf32>
    %275 = math.exp %274 : vector<2x128xf32>
    %cst_66 = arith.constant 1.000000e+00 : f32
    %276 = vector.broadcast %cst_66 : f32 to vector<2x128xf32>
    %277 = arith.addf %276, %275 : vector<2x128xf32>
    %278 = arith.divf %276, %277 : vector<2x128xf32>
    %279 = vector.extract_strided_slice %272 {offsets = [0, 128], sizes = [2, 128], strides = [1, 1]} : vector<2x512xf32> to vector<2x128xf32>
    %280 = arith.negf %279 : vector<2x128xf32>
    %281 = math.exp %280 : vector<2x128xf32>
    %cst_67 = arith.constant 1.000000e+00 : f32
    %282 = vector.broadcast %cst_67 : f32 to vector<2x128xf32>
    %283 = arith.addf %282, %281 : vector<2x128xf32>
    %284 = arith.divf %282, %283 : vector<2x128xf32>
    %285 = vector.extract_strided_slice %272 {offsets = [0, 256], sizes = [2, 128], strides = [1, 1]} : vector<2x512xf32> to vector<2x128xf32>
    %286 = math.tanh %285 : vector<2x128xf32>
    %287 = vector.extract_strided_slice %272 {offsets = [0, 384], sizes = [2, 128], strides = [1, 1]} : vector<2x512xf32> to vector<2x128xf32>
    %288 = arith.negf %287 : vector<2x128xf32>
    %289 = math.exp %288 : vector<2x128xf32>
    %cst_68 = arith.constant 1.000000e+00 : f32
    %290 = vector.broadcast %cst_68 : f32 to vector<2x128xf32>
    %291 = arith.addf %290, %289 : vector<2x128xf32>
    %292 = arith.divf %290, %291 : vector<2x128xf32>
    %293 = arith.mulf %284, %267 : vector<2x128xf32>
    %294 = arith.mulf %278, %286 : vector<2x128xf32>
    %295 = arith.addf %293, %294 : vector<2x128xf32>
    %296 = math.tanh %295 : vector<2x128xf32>
    %297 = arith.mulf %292, %296 : vector<2x128xf32>
    %298 = vector.extract_strided_slice %265 {offsets = [0, 1, 0], sizes = [2, 1, 512], strides = [1, 1, 1]} : vector<2x8x512xf32> to vector<2x1x512xf32>
    %299 = vector.shape_cast %298 : vector<2x1x512xf32> to vector<2x512xf32>
    %c0_69 = arith.constant 0 : index
    %c0_70 = arith.constant 0 : index
    %300 = vector.load %arg5[%c0_69, %c0_70] : memref<128x512xf32, #tpu.memory_space<vmem>>, vector<128x512xf32>
    %cst_71 = arith.constant dense<0.000000e+00> : vector<2x512xf32>
    %301 = tpu.matmul %297, %300, %cst_71 {dimension_numbers = #tpu.dot_dimension_numbers<[1], [0], [0], [1], [0, 0, 1, 1], [], []>} : vector<2x128xf32>, vector<128x512xf32>, vector<2x512xf32> -> vector<2x512xf32>
    %302 = arith.addf %299, %301 : vector<2x512xf32>
    %303 = vector.extract_strided_slice %302 {offsets = [0, 0], sizes = [2, 128], strides = [1, 1]} : vector<2x512xf32> to vector<2x128xf32>
    %304 = arith.negf %303 : vector<2x128xf32>
    %305 = math.exp %304 : vector<2x128xf32>
    %cst_72 = arith.constant 1.000000e+00 : f32
    %306 = vector.broadcast %cst_72 : f32 to vector<2x128xf32>
    %307 = arith.addf %306, %305 : vector<2x128xf32>
    %308 = arith.divf %306, %307 : vector<2x128xf32>
    %309 = vector.extract_strided_slice %302 {offsets = [0, 128], sizes = [2, 128], strides = [1, 1]} : vector<2x512xf32> to vector<2x128xf32>
    %310 = arith.negf %309 : vector<2x128xf32>
    %311 = math.exp %310 : vector<2x128xf32>
    %cst_73 = arith.constant 1.000000e+00 : f32
    %312 = vector.broadcast %cst_73 : f32 to vector<2x128xf32>
    %313 = arith.addf %312, %311 : vector<2x128xf32>
    %314 = arith.divf %312, %313 : vector<2x128xf32>
    %315 = vector.extract_strided_slice %302 {offsets = [0, 256], sizes = [2, 128], strides = [1, 1]} : vector<2x512xf32> to vector<2x128xf32>
    %316 = math.tanh %315 : vector<2x128xf32>
    %317 = vector.extract_strided_slice %302 {offsets = [0, 384], sizes = [2, 128], strides = [1, 1]} : vector<2x512xf32> to vector<2x128xf32>
    %318 = arith.negf %317 : vector<2x128xf32>
    %319 = math.exp %318 : vector<2x128xf32>
    %cst_74 = arith.constant 1.000000e+00 : f32
    %320 = vector.broadcast %cst_74 : f32 to vector<2x128xf32>
    %321 = arith.addf %320, %319 : vector<2x128xf32>
    %322 = arith.divf %320, %321 : vector<2x128xf32>
    %323 = arith.mulf %314, %295 : vector<2x128xf32>
    %324 = arith.mulf %308, %316 : vector<2x128xf32>
    %325 = arith.addf %323, %324 : vector<2x128xf32>
    %326 = math.tanh %325 : vector<2x128xf32>
    %327 = arith.mulf %322, %326 : vector<2x128xf32>
    %328 = vector.extract_strided_slice %265 {offsets = [0, 2, 0], sizes = [2, 1, 512], strides = [1, 1, 1]} : vector<2x8x512xf32> to vector<2x1x512xf32>
    %329 = vector.shape_cast %328 : vector<2x1x512xf32> to vector<2x512xf32>
    %c0_75 = arith.constant 0 : index
    %c0_76 = arith.constant 0 : index
    %330 = vector.load %arg5[%c0_75, %c0_76] : memref<128x512xf32, #tpu.memory_space<vmem>>, vector<128x512xf32>
    %cst_77 = arith.constant dense<0.000000e+00> : vector<2x512xf32>
    %331 = tpu.matmul %327, %330, %cst_77 {dimension_numbers = #tpu.dot_dimension_numbers<[1], [0], [0], [1], [0, 0, 1, 1], [], []>} : vector<2x128xf32>, vector<128x512xf32>, vector<2x512xf32> -> vector<2x512xf32>
    %332 = arith.addf %329, %331 : vector<2x512xf32>
    %333 = vector.extract_strided_slice %332 {offsets = [0, 0], sizes = [2, 128], strides = [1, 1]} : vector<2x512xf32> to vector<2x128xf32>
    %334 = arith.negf %333 : vector<2x128xf32>
    %335 = math.exp %334 : vector<2x128xf32>
    %cst_78 = arith.constant 1.000000e+00 : f32
    %336 = vector.broadcast %cst_78 : f32 to vector<2x128xf32>
    %337 = arith.addf %336, %335 : vector<2x128xf32>
    %338 = arith.divf %336, %337 : vector<2x128xf32>
    %339 = vector.extract_strided_slice %332 {offsets = [0, 128], sizes = [2, 128], strides = [1, 1]} : vector<2x512xf32> to vector<2x128xf32>
    %340 = arith.negf %339 : vector<2x128xf32>
    %341 = math.exp %340 : vector<2x128xf32>
    %cst_79 = arith.constant 1.000000e+00 : f32
    %342 = vector.broadcast %cst_79 : f32 to vector<2x128xf32>
    %343 = arith.addf %342, %341 : vector<2x128xf32>
    %344 = arith.divf %342, %343 : vector<2x128xf32>
    %345 = vector.extract_strided_slice %332 {offsets = [0, 256], sizes = [2, 128], strides = [1, 1]} : vector<2x512xf32> to vector<2x128xf32>
    %346 = math.tanh %345 : vector<2x128xf32>
    %347 = vector.extract_strided_slice %332 {offsets = [0, 384], sizes = [2, 128], strides = [1, 1]} : vector<2x512xf32> to vector<2x128xf32>
    %348 = arith.negf %347 : vector<2x128xf32>
    %349 = math.exp %348 : vector<2x128xf32>
    %cst_80 = arith.constant 1.000000e+00 : f32
    %350 = vector.broadcast %cst_80 : f32 to vector<2x128xf32>
    %351 = arith.addf %350, %349 : vector<2x128xf32>
    %352 = arith.divf %350, %351 : vector<2x128xf32>
    %353 = arith.mulf %344, %325 : vector<2x128xf32>
    %354 = arith.mulf %338, %346 : vector<2x128xf32>
    %355 = arith.addf %353, %354 : vector<2x128xf32>
    %356 = math.tanh %355 : vector<2x128xf32>
    %357 = arith.mulf %352, %356 : vector<2x128xf32>
    %358 = vector.extract_strided_slice %265 {offsets = [0, 3, 0], sizes = [2, 1, 512], strides = [1, 1, 1]} : vector<2x8x512xf32> to vector<2x1x512xf32>
    %359 = vector.shape_cast %358 : vector<2x1x512xf32> to vector<2x512xf32>
    %c0_81 = arith.constant 0 : index
    %c0_82 = arith.constant 0 : index
    %360 = vector.load %arg5[%c0_81, %c0_82] : memref<128x512xf32, #tpu.memory_space<vmem>>, vector<128x512xf32>
    %cst_83 = arith.constant dense<0.000000e+00> : vector<2x512xf32>
    %361 = tpu.matmul %357, %360, %cst_83 {dimension_numbers = #tpu.dot_dimension_numbers<[1], [0], [0], [1], [0, 0, 1, 1], [], []>} : vector<2x128xf32>, vector<128x512xf32>, vector<2x512xf32> -> vector<2x512xf32>
    %362 = arith.addf %359, %361 : vector<2x512xf32>
    %363 = vector.extract_strided_slice %362 {offsets = [0, 0], sizes = [2, 128], strides = [1, 1]} : vector<2x512xf32> to vector<2x128xf32>
    %364 = arith.negf %363 : vector<2x128xf32>
    %365 = math.exp %364 : vector<2x128xf32>
    %cst_84 = arith.constant 1.000000e+00 : f32
    %366 = vector.broadcast %cst_84 : f32 to vector<2x128xf32>
    %367 = arith.addf %366, %365 : vector<2x128xf32>
    %368 = arith.divf %366, %367 : vector<2x128xf32>
    %369 = vector.extract_strided_slice %362 {offsets = [0, 128], sizes = [2, 128], strides = [1, 1]} : vector<2x512xf32> to vector<2x128xf32>
    %370 = arith.negf %369 : vector<2x128xf32>
    %371 = math.exp %370 : vector<2x128xf32>
    %cst_85 = arith.constant 1.000000e+00 : f32
    %372 = vector.broadcast %cst_85 : f32 to vector<2x128xf32>
    %373 = arith.addf %372, %371 : vector<2x128xf32>
    %374 = arith.divf %372, %373 : vector<2x128xf32>
    %375 = vector.extract_strided_slice %362 {offsets = [0, 256], sizes = [2, 128], strides = [1, 1]} : vector<2x512xf32> to vector<2x128xf32>
    %376 = math.tanh %375 : vector<2x128xf32>
    %377 = vector.extract_strided_slice %362 {offsets = [0, 384], sizes = [2, 128], strides = [1, 1]} : vector<2x512xf32> to vector<2x128xf32>
    %378 = arith.negf %377 : vector<2x128xf32>
    %379 = math.exp %378 : vector<2x128xf32>
    %cst_86 = arith.constant 1.000000e+00 : f32
    %380 = vector.broadcast %cst_86 : f32 to vector<2x128xf32>
    %381 = arith.addf %380, %379 : vector<2x128xf32>
    %382 = arith.divf %380, %381 : vector<2x128xf32>
    %383 = arith.mulf %374, %355 : vector<2x128xf32>
    %384 = arith.mulf %368, %376 : vector<2x128xf32>
    %385 = arith.addf %383, %384 : vector<2x128xf32>
    %386 = math.tanh %385 : vector<2x128xf32>
    %387 = arith.mulf %382, %386 : vector<2x128xf32>
    %388 = vector.extract_strided_slice %265 {offsets = [0, 4, 0], sizes = [2, 1, 512], strides = [1, 1, 1]} : vector<2x8x512xf32> to vector<2x1x512xf32>
    %389 = vector.shape_cast %388 : vector<2x1x512xf32> to vector<2x512xf32>
    %c0_87 = arith.constant 0 : index
    %c0_88 = arith.constant 0 : index
    %390 = vector.load %arg5[%c0_87, %c0_88] : memref<128x512xf32, #tpu.memory_space<vmem>>, vector<128x512xf32>
    %cst_89 = arith.constant dense<0.000000e+00> : vector<2x512xf32>
    %391 = tpu.matmul %387, %390, %cst_89 {dimension_numbers = #tpu.dot_dimension_numbers<[1], [0], [0], [1], [0, 0, 1, 1], [], []>} : vector<2x128xf32>, vector<128x512xf32>, vector<2x512xf32> -> vector<2x512xf32>
    %392 = arith.addf %389, %391 : vector<2x512xf32>
    %393 = vector.extract_strided_slice %392 {offsets = [0, 0], sizes = [2, 128], strides = [1, 1]} : vector<2x512xf32> to vector<2x128xf32>
    %394 = arith.negf %393 : vector<2x128xf32>
    %395 = math.exp %394 : vector<2x128xf32>
    %cst_90 = arith.constant 1.000000e+00 : f32
    %396 = vector.broadcast %cst_90 : f32 to vector<2x128xf32>
    %397 = arith.addf %396, %395 : vector<2x128xf32>
    %398 = arith.divf %396, %397 : vector<2x128xf32>
    %399 = vector.extract_strided_slice %392 {offsets = [0, 128], sizes = [2, 128], strides = [1, 1]} : vector<2x512xf32> to vector<2x128xf32>
    %400 = arith.negf %399 : vector<2x128xf32>
    %401 = math.exp %400 : vector<2x128xf32>
    %cst_91 = arith.constant 1.000000e+00 : f32
    %402 = vector.broadcast %cst_91 : f32 to vector<2x128xf32>
    %403 = arith.addf %402, %401 : vector<2x128xf32>
    %404 = arith.divf %402, %403 : vector<2x128xf32>
    %405 = vector.extract_strided_slice %392 {offsets = [0, 256], sizes = [2, 128], strides = [1, 1]} : vector<2x512xf32> to vector<2x128xf32>
    %406 = math.tanh %405 : vector<2x128xf32>
    %407 = vector.extract_strided_slice %392 {offsets = [0, 384], sizes = [2, 128], strides = [1, 1]} : vector<2x512xf32> to vector<2x128xf32>
    %408 = arith.negf %407 : vector<2x128xf32>
    %409 = math.exp %408 : vector<2x128xf32>
    %cst_92 = arith.constant 1.000000e+00 : f32
    %410 = vector.broadcast %cst_92 : f32 to vector<2x128xf32>
    %411 = arith.addf %410, %409 : vector<2x128xf32>
    %412 = arith.divf %410, %411 : vector<2x128xf32>
    %413 = arith.mulf %404, %385 : vector<2x128xf32>
    %414 = arith.mulf %398, %406 : vector<2x128xf32>
    %415 = arith.addf %413, %414 : vector<2x128xf32>
    %416 = math.tanh %415 : vector<2x128xf32>
    %417 = arith.mulf %412, %416 : vector<2x128xf32>
    %418 = vector.extract_strided_slice %265 {offsets = [0, 5, 0], sizes = [2, 1, 512], strides = [1, 1, 1]} : vector<2x8x512xf32> to vector<2x1x512xf32>
    %419 = vector.shape_cast %418 : vector<2x1x512xf32> to vector<2x512xf32>
    %c0_93 = arith.constant 0 : index
    %c0_94 = arith.constant 0 : index
    %420 = vector.load %arg5[%c0_93, %c0_94] : memref<128x512xf32, #tpu.memory_space<vmem>>, vector<128x512xf32>
    %cst_95 = arith.constant dense<0.000000e+00> : vector<2x512xf32>
    %421 = tpu.matmul %417, %420, %cst_95 {dimension_numbers = #tpu.dot_dimension_numbers<[1], [0], [0], [1], [0, 0, 1, 1], [], []>} : vector<2x128xf32>, vector<128x512xf32>, vector<2x512xf32> -> vector<2x512xf32>
    %422 = arith.addf %419, %421 : vector<2x512xf32>
    %423 = vector.extract_strided_slice %422 {offsets = [0, 0], sizes = [2, 128], strides = [1, 1]} : vector<2x512xf32> to vector<2x128xf32>
    %424 = arith.negf %423 : vector<2x128xf32>
    %425 = math.exp %424 : vector<2x128xf32>
    %cst_96 = arith.constant 1.000000e+00 : f32
    %426 = vector.broadcast %cst_96 : f32 to vector<2x128xf32>
    %427 = arith.addf %426, %425 : vector<2x128xf32>
    %428 = arith.divf %426, %427 : vector<2x128xf32>
    %429 = vector.extract_strided_slice %422 {offsets = [0, 128], sizes = [2, 128], strides = [1, 1]} : vector<2x512xf32> to vector<2x128xf32>
    %430 = arith.negf %429 : vector<2x128xf32>
    %431 = math.exp %430 : vector<2x128xf32>
    %cst_97 = arith.constant 1.000000e+00 : f32
    %432 = vector.broadcast %cst_97 : f32 to vector<2x128xf32>
    %433 = arith.addf %432, %431 : vector<2x128xf32>
    %434 = arith.divf %432, %433 : vector<2x128xf32>
    %435 = vector.extract_strided_slice %422 {offsets = [0, 256], sizes = [2, 128], strides = [1, 1]} : vector<2x512xf32> to vector<2x128xf32>
    %436 = math.tanh %435 : vector<2x128xf32>
    %437 = vector.extract_strided_slice %422 {offsets = [0, 384], sizes = [2, 128], strides = [1, 1]} : vector<2x512xf32> to vector<2x128xf32>
    %438 = arith.negf %437 : vector<2x128xf32>
    %439 = math.exp %438 : vector<2x128xf32>
    %cst_98 = arith.constant 1.000000e+00 : f32
    %440 = vector.broadcast %cst_98 : f32 to vector<2x128xf32>
    %441 = arith.addf %440, %439 : vector<2x128xf32>
    %442 = arith.divf %440, %441 : vector<2x128xf32>
    %443 = arith.mulf %434, %415 : vector<2x128xf32>
    %444 = arith.mulf %428, %436 : vector<2x128xf32>
    %445 = arith.addf %443, %444 : vector<2x128xf32>
    %446 = math.tanh %445 : vector<2x128xf32>
    %447 = arith.mulf %442, %446 : vector<2x128xf32>
    %448 = vector.extract_strided_slice %265 {offsets = [0, 6, 0], sizes = [2, 1, 512], strides = [1, 1, 1]} : vector<2x8x512xf32> to vector<2x1x512xf32>
    %449 = vector.shape_cast %448 : vector<2x1x512xf32> to vector<2x512xf32>
    %c0_99 = arith.constant 0 : index
    %c0_100 = arith.constant 0 : index
    %450 = vector.load %arg5[%c0_99, %c0_100] : memref<128x512xf32, #tpu.memory_space<vmem>>, vector<128x512xf32>
    %cst_101 = arith.constant dense<0.000000e+00> : vector<2x512xf32>
    %451 = tpu.matmul %447, %450, %cst_101 {dimension_numbers = #tpu.dot_dimension_numbers<[1], [0], [0], [1], [0, 0, 1, 1], [], []>} : vector<2x128xf32>, vector<128x512xf32>, vector<2x512xf32> -> vector<2x512xf32>
    %452 = arith.addf %449, %451 : vector<2x512xf32>
    %453 = vector.extract_strided_slice %452 {offsets = [0, 0], sizes = [2, 128], strides = [1, 1]} : vector<2x512xf32> to vector<2x128xf32>
    %454 = arith.negf %453 : vector<2x128xf32>
    %455 = math.exp %454 : vector<2x128xf32>
    %cst_102 = arith.constant 1.000000e+00 : f32
    %456 = vector.broadcast %cst_102 : f32 to vector<2x128xf32>
    %457 = arith.addf %456, %455 : vector<2x128xf32>
    %458 = arith.divf %456, %457 : vector<2x128xf32>
    %459 = vector.extract_strided_slice %452 {offsets = [0, 128], sizes = [2, 128], strides = [1, 1]} : vector<2x512xf32> to vector<2x128xf32>
    %460 = arith.negf %459 : vector<2x128xf32>
    %461 = math.exp %460 : vector<2x128xf32>
    %cst_103 = arith.constant 1.000000e+00 : f32
    %462 = vector.broadcast %cst_103 : f32 to vector<2x128xf32>
    %463 = arith.addf %462, %461 : vector<2x128xf32>
    %464 = arith.divf %462, %463 : vector<2x128xf32>
    %465 = vector.extract_strided_slice %452 {offsets = [0, 256], sizes = [2, 128], strides = [1, 1]} : vector<2x512xf32> to vector<2x128xf32>
    %466 = math.tanh %465 : vector<2x128xf32>
    %467 = vector.extract_strided_slice %452 {offsets = [0, 384], sizes = [2, 128], strides = [1, 1]} : vector<2x512xf32> to vector<2x128xf32>
    %468 = arith.negf %467 : vector<2x128xf32>
    %469 = math.exp %468 : vector<2x128xf32>
    %cst_104 = arith.constant 1.000000e+00 : f32
    %470 = vector.broadcast %cst_104 : f32 to vector<2x128xf32>
    %471 = arith.addf %470, %469 : vector<2x128xf32>
    %472 = arith.divf %470, %471 : vector<2x128xf32>
    %473 = arith.mulf %464, %445 : vector<2x128xf32>
    %474 = arith.mulf %458, %466 : vector<2x128xf32>
    %475 = arith.addf %473, %474 : vector<2x128xf32>
    %476 = math.tanh %475 : vector<2x128xf32>
    %477 = arith.mulf %472, %476 : vector<2x128xf32>
    %478 = vector.extract_strided_slice %265 {offsets = [0, 7, 0], sizes = [2, 1, 512], strides = [1, 1, 1]} : vector<2x8x512xf32> to vector<2x1x512xf32>
    %479 = vector.shape_cast %478 : vector<2x1x512xf32> to vector<2x512xf32>
    %c0_105 = arith.constant 0 : index
    %c0_106 = arith.constant 0 : index
    %480 = vector.load %arg5[%c0_105, %c0_106] : memref<128x512xf32, #tpu.memory_space<vmem>>, vector<128x512xf32>
    %cst_107 = arith.constant dense<0.000000e+00> : vector<2x512xf32>
    %481 = tpu.matmul %477, %480, %cst_107 {dimension_numbers = #tpu.dot_dimension_numbers<[1], [0], [0], [1], [0, 0, 1, 1], [], []>} : vector<2x128xf32>, vector<128x512xf32>, vector<2x512xf32> -> vector<2x512xf32>
    %482 = arith.addf %479, %481 : vector<2x512xf32>
    %483 = vector.extract_strided_slice %482 {offsets = [0, 0], sizes = [2, 128], strides = [1, 1]} : vector<2x512xf32> to vector<2x128xf32>
    %484 = arith.negf %483 : vector<2x128xf32>
    %485 = math.exp %484 : vector<2x128xf32>
    %cst_108 = arith.constant 1.000000e+00 : f32
    %486 = vector.broadcast %cst_108 : f32 to vector<2x128xf32>
    %487 = arith.addf %486, %485 : vector<2x128xf32>
    %488 = arith.divf %486, %487 : vector<2x128xf32>
    %489 = vector.extract_strided_slice %482 {offsets = [0, 128], sizes = [2, 128], strides = [1, 1]} : vector<2x512xf32> to vector<2x128xf32>
    %490 = arith.negf %489 : vector<2x128xf32>
    %491 = math.exp %490 : vector<2x128xf32>
    %cst_109 = arith.constant 1.000000e+00 : f32
    %492 = vector.broadcast %cst_109 : f32 to vector<2x128xf32>
    %493 = arith.addf %492, %491 : vector<2x128xf32>
    %494 = arith.divf %492, %493 : vector<2x128xf32>
    %495 = vector.extract_strided_slice %482 {offsets = [0, 256], sizes = [2, 128], strides = [1, 1]} : vector<2x512xf32> to vector<2x128xf32>
    %496 = math.tanh %495 : vector<2x128xf32>
    %497 = vector.extract_strided_slice %482 {offsets = [0, 384], sizes = [2, 128], strides = [1, 1]} : vector<2x512xf32> to vector<2x128xf32>
    %498 = arith.negf %497 : vector<2x128xf32>
    %499 = math.exp %498 : vector<2x128xf32>
    %cst_110 = arith.constant 1.000000e+00 : f32
    %500 = vector.broadcast %cst_110 : f32 to vector<2x128xf32>
    %501 = arith.addf %500, %499 : vector<2x128xf32>
    %502 = arith.divf %500, %501 : vector<2x128xf32>
    %503 = arith.mulf %494, %475 : vector<2x128xf32>
    %504 = arith.mulf %488, %496 : vector<2x128xf32>
    %505 = arith.addf %503, %504 : vector<2x128xf32>
    %506 = math.tanh %505 : vector<2x128xf32>
    %507 = arith.mulf %502, %506 : vector<2x128xf32>
    %508 = tpu.concatenate %249, %507 in 0 : vector<2x128xf32>, vector<2x128xf32> -> vector<4x128xf32>
    %c0_111 = arith.constant 0 : index
    %c0_112 = arith.constant 0 : index
    %509 = vector.load %arg7[%c0_111, %c0_112] : memref<128x4xf32, #tpu.memory_space<vmem>>, vector<128x4xf32>
    %cst_113 = arith.constant dense<0.000000e+00> : vector<4x4xf32>
    %510 = tpu.matmul %508, %509, %cst_113 {dimension_numbers = #tpu.dot_dimension_numbers<[1], [0], [0], [1], [0, 0, 1, 1], [], []>} : vector<4x128xf32>, vector<128x4xf32>, vector<4x4xf32> -> vector<4x4xf32>
    %c0_114 = arith.constant 0 : index
    %c0_115 = arith.constant 0 : index
    %511 = vector.load %arg8[%c0_114, %c0_115] : memref<1x4xf32, #tpu.memory_space<vmem>>, vector<1x4xf32>
    %512 = vector.broadcast %511 : vector<1x4xf32> to vector<4x4xf32>
    %513 = arith.addf %510, %512 : vector<4x4xf32>
    %c0_116 = arith.constant 0 : index
    %c0_117 = arith.constant 0 : index
    %514 = vector.load %arg9[%c0_116, %c0_117] : memref<4x4xf32, #tpu.memory_space<vmem>>, vector<4x4xf32>
    tpu.vector_store %arg9[%c0_116, %c0_117], %513 {strides = array<i32>} : memref<4x4xf32, #tpu.memory_space<vmem>>, vector<4x4xf32>,
    return
  }
}

</mosaic_0001>

<bundles_post_ra>
// kernel: lstm_model.1
= control target key start
LH: loop header
LB: loop body
LE: loop exit
PB: predicated region body
PF: predicated region fallthrough
CT: control target
= control target key end

     0   :  { %vm49_vm0 = vcmask 64512   ;;  %s9935_s0 = inlined_call_operand.vmem [shape: f32[2,8,8], index: 0, kind: input, shape index: {}]   ;;  %s9936_s1 = inlined_call_operand.vmem [shape: f32[8,512], index: 1, kind: input, shape index: {}]   ;;  %s9937_s2 = inlined_call_operand.vmem [shape: f32[128,512], index: 2, kind: input, shape index: {}]   ;;  %s9938_s3 = inlined_call_operand.vmem [shape: f32[1,512], index: 3, kind: input, shape index: {}]   ;;  %s9939_s4 = inlined_call_operand.vmem [shape: f32[128,512], index: 4, kind: input, shape index: {}]   ;;  %s9940_s5 = inlined_call_operand.vmem [shape: f32[128,512], index: 5, kind: input, shape index: {}]   ;;  %s9941_s6 = inlined_call_operand.vmem [shape: f32[1,512], index: 6, kind: input, shape index: {}]   ;;  %s9942_s7 = inlined_call_operand.vmem [shape: f32[128,4], index: 7, kind: input, shape index: {}]   ;;  %s9943_s8 = inlined_call_operand.vmem [shape: f32[1,4], index: 8, kind: input, shape index: {}]   ;;  %s9944_s9 = inlined_call_operand.hbm [shape: f32[4,4], index: 9, kind: output, shape index: {}]  }
   0x1   :  { %v35_v0 = vld [vmem:[%s9936_s1] sm:$0xff]  ;;  %v38_v1 = vld [vmem:[%s9936_s1 + $0x18] sm:$0xff]  ;;  %v36_v4 = vld [vmem:[%s9936_s1 + $0x8] sm:$0xff] }
   0x2   :  { %v5390_v2 = vld [vmem:[%s9937_s2 + $0x1e0] sm:$0xff]  ;;  %71 = vmatpush.msra.mxu1 %v35_v0  ;;  %140 = vmatpush.msra.mxu3 %v38_v1  ;;  %v5403_v5 = vld [vmem:[%s9937_s2 + $0x1f8] sm:$0xff]  ;;  %v37_v6 = vld [vmem:[%s9936_s1 + $0x10] sm:$0xff] }
   0x3   :  { %v5395_v3 = vld [vmem:[%s9935_s0] sm:$0xff]  ;;  %212 = vmatpush.msra.mxu0 %v5390_v2  ;;  %v5419_v8 = vld [vmem:[%s9937_s2 + $0x1e8] sm:$0xff]  ;;  %v5425_v9 = vld [vmem:[%s9937_s2 + $0x1f0] sm:$0xff]  ;;  %117 = vmatpush.msra.mxu2 %v37_v6 }
   0x4   :  { %4428 = vmatmul.msk.f32.vlgmr.msra.gmra.mxu1 %vm49_vm0, %v5395_v3  ;;  %v5414_v7 = vld [vmem:[%s9937_s2 + $0x1c0] sm:$0xff]  ;;  %272 = vmatpush.msrb.mxu3 %v5403_v5  ;;  %v5430_v10 = vld [vmem:[%s9937_s2 + $0x1d8] sm:$0xff]  ;;  %v5441_v12 = vld [vmem:[%s9937_s2 + $0x1c8] sm:$0xff] }
   0x5   :  { %94 = vmatpush.msrb.mxu1 %v36_v4  ;;  %v5435_v11 = vld [vmem:[%s9937_s2 + $0x1a0] sm:$0xff]  ;;  %213 = vmatpush.msra.mxu0 %v5414_v7  ;;  %v5446_v13 = vld [vmem:[%s9937_s2 + $0x1d0] sm:$0xff]  ;;  %v5453_v14 = vld [vmem:[%s9937_s2 + $0x1b8] sm:$0xff] }
   0x6   :  { %252 = vmatpush.msrb.mxu2 %v5425_v9  ;;  %v5458_v15 = vld [vmem:[%s9937_s2 + $0x180] sm:$0xff]  ;;  %273 = vmatpush.msrb.mxu3 %v5430_v10  ;;  %v5465_v16 = vld [vmem:[%s9937_s2 + $0x1a8] sm:$0xff]  ;;  %v5470_v17 = vld [vmem:[%s9937_s2 + $0x1b0] sm:$0xff] }
   0x7   :  { %232 = vmatpush.msra.mxu1 %v5419_v8  ;;  %214 = vmatpush.msra.mxu0 %v5435_v11  ;;  %v5477_v18 = vld [vmem:[%s9937_s2 + $0x198] sm:$0xff]  ;;  %v5482_v19 = vld [vmem:[%s9937_s2 + $0x160] sm:$0xff]  ;;  %v5489_v20 = vld [vmem:[%s9937_s2 + $0x188] sm:$0xff] }
   0x8   :  { %253 = vmatpush.msrb.mxu2 %v5446_v13  ;;  %274 = vmatpush.msrb.mxu3 %v5453_v14  ;;  %v5494_v21 = vld [vmem:[%s9937_s2 + $0x190] sm:$0xff]  ;;  %v5501_v22 = vld [vmem:[%s9935_s0 + $0x8] sm:$0xff]  ;;  %v5506_v23 = vld [vmem:[%s9937_s2 + $0x178] sm:$0xff] }
   0x9   :  { %233 = vmatpush.msra.mxu1 %v5441_v12  ;;  %215 = vmatpush.msra.mxu0 %v5458_v15  ;;  %v5513_v24 = vld [vmem:[%s9937_s2 + $0x140] sm:$0xff]  ;;  %v5518_v25 = vld [vmem:[%s9937_s2 + $0x168] sm:$0xff]  ;;  %v5525_v26 = vld [vmem:[%s9937_s2 + $0x170] sm:$0xff] }
   0xa   :  { %254 = vmatpush.msrb.mxu2 %v5470_v17  ;;  %275 = vmatpush.msrb.mxu3 %v5477_v18  ;;  %v5530_v27 = vld [vmem:[%s9937_s2 + $0x158] sm:$0xff]  ;;  %v5538_v28 = vld [vmem:[%s9937_s2 + $0x120] sm:$0xff]  ;;  %v5543_v29 = vld [vmem:[%s9937_s2 + $0x148] sm:$0xff] }
   0xb   :  { %234 = vmatpush.msra.mxu1 %v5465_v16  ;;  %216 = vmatpush.msra.mxu0 %v5482_v19  ;;  %v5550_v30 = vld [vmem:[%s9937_s2 + $0x150] sm:$0xff]  ;;  %v5555_v31 = vld [vmem:[%s9937_s2 + $0x138] sm:$0xff]  ;;  %v5562_v32 = vld [vmem:[%s9937_s2 + $0x100] sm:$0xff] }
   0xc   :  { %255 = vmatpush.msrb.mxu2 %v5494_v21  ;;  %4429 = vmatmul.msk.f32.gmra.mxu1 %vm49_vm0, %v5501_v22  ;;  %v5567_v33 = vld [vmem:[%s9937_s2 + $0x128] sm:$0xff]  ;;  %v5574_v34 = vld [vmem:[%s9937_s2 + $0x130] sm:$0xff]  ;;  %v5579_v35 = vld [vmem:[%s9937_s2 + $0x118] sm:$0xff] }
   0xd   :  { %235 = vmatpush.msra.mxu1 %v5489_v20  ;;  %276 = vmatpush.msrb.mxu3 %v5506_v23  ;;  %10230 = vst [vmem:[#allocation5_spill] sm:$0xff] %v5579_v35  ;;  %v5586_v36 = vld [vmem:[%s9937_s2 + $0xe0] sm:$0xff]  ;;  %v5593_v37 = vld [vmem:[%s9937_s2 + $0x108] sm:$0xff]  ;;  %v5598_v38 = vld [vmem:[%s9937_s2 + $0x110] sm:$0xff] }
   0xe   :  { %217 = vmatpush.msra.mxu0 %v5513_v24  ;;  %256 = vmatpush.msrb.mxu2 %v5525_v26  ;;  %10231 = vst [vmem:[#allocation6_spill] sm:$0xff] %v5586_v36  ;;  %v5605_v39 = vld [vmem:[%s9937_s2 + $0xf8] sm:$0xff]  ;;  %v5613_v40 = vld [vmem:[%s9937_s2 + $0xc0] sm:$0xff]  ;;  %v5620_v41 = vld [vmem:[%s9937_s2 + $0xe8] sm:$0xff] }
   0xf   :  { %236 = vmatpush.msra.mxu1 %v5518_v25  ;;  %277 = vmatpush.msrb.mxu3 %v5530_v27  ;;  %10232 = vst [vmem:[#allocation7_spill] sm:$0xff] %v5605_v39  ;;  %v5625_v42 = vld [vmem:[%s9937_s2 + $0xf0] sm:$0xff]  ;;  %v5633_v43 = vld [vmem:[%s9937_s2 + $0xd8] sm:$0xff]  ;;  %v5638_v44 = vld [vmem:[%s9937_s2 + $0xa0] sm:$0xff] }
  0x10   :  { %218 = vmatpush.msra.mxu0 %v5538_v28  ;;  %257 = vmatpush.msrb.mxu2 %v5550_v30  ;;  %10233 = vst [vmem:[#allocation8_spill] sm:$0xff] %v5613_v40  ;;  %v5646_v45 = vld [vmem:[%s9937_s2 + $0xc8] sm:$0xff]  ;;  %v5651_v46 = vld [vmem:[%s9937_s2 + $0xd0] sm:$0xff]  ;;  %v5658_v47 = vld [vmem:[%s9937_s2 + $0xb8] sm:$0xff] }
  0x11   :  { %237 = vmatpush.msra.mxu1 %v5543_v29  ;;  %278 = vmatpush.msrb.mxu3 %v5555_v31  ;;  %10234 = vst [vmem:[#allocation9_spill] sm:$0xff] %v5620_v41  ;;  %v5663_v48 = vld [vmem:[%s9937_s2 + $0x80] sm:$0xff]  ;;  %v5670_v49 = vld [vmem:[%s9937_s2 + $0xa8] sm:$0xff]  ;;  %v5675_v50 = vld [vmem:[%s9937_s2 + $0xb0] sm:$0xff] }
  0x12   :  { %219 = vmatpush.msra.mxu0 %v5562_v32  ;;  %258 = vmatpush.msrb.mxu2 %v5574_v34  ;;  %10235 = vst [vmem:[#allocation10_spill] sm:$0xff] %v5625_v42 }
  0x13   :  { %238 = vmatpush.msra.mxu1 %v5567_v33  ;;  %279 = vmatpush.msrb.mxu3 %v5579_v35  ;;  %10236 = vst [vmem:[#allocation11_spill] sm:$0xff] %v5633_v43 }
  0x14   :  { %4434 = vmatmul.msk.f32.vlgmr.msra.gmra.mxu3 %vm49_vm0, %v5395_v3  ;;  %220 = vmatpush.msra.mxu0 %v5586_v36  ;;  %10237 = vst [vmem:[#allocation12_spill] sm:$0xff] %v5638_v44 }
  0x15   :  { %239 = vmatpush.msra.mxu1 %v5593_v37  ;;  %259 = vmatpush.msrb.mxu2 %v5598_v38  ;;  %10238 = vst [vmem:[#allocation13_spill] sm:$0xff] %v5646_v45 }
  0x16   :  { %4430 = vmatmul.msk.f32.vlgmr.msrb.gmra.mxu1 %vm49_vm0, %v5395_v3  ;;  %280 = vmatpush.msrb.mxu3 %v5605_v39  ;;  %10239 = vst [vmem:[#allocation14_spill] sm:$0xff] %v5651_v46 }
  0x17   :  { %4432 = vmatmul.msk.f32.vlgmr.msra.gmra.mxu2 %vm49_vm0, %v5395_v3  ;;  %221 = vmatpush.msra.mxu0 %v5613_v40  ;;  %10240 = vst [vmem:[#allocation15_spill] sm:$0xff] %v5658_v47 }
  0x18   :  { %240 = vmatpush.msra.mxu1 %v5620_v41  ;;  %260 = vmatpush.msrb.mxu2 %v5625_v42  ;;  %10241 = vst [vmem:[#allocation16_spill] sm:$0xff] %v5663_v48 }
  0x19   :  { %281 = vmatpush.msrb.mxu3 %v5633_v43  ;;  %222 = vmatpush.msra.mxu0 %v5638_v44  ;;  %10242 = vst [vmem:[#allocation17_spill] sm:$0xff] %v5670_v49 }
  0x1a   :  { %10243 = vst [vmem:[#allocation18_spill] sm:$0xff] %v5675_v50 }
  0x1b   :  { %14 = vsyncpa [#allocation3], 0  ;;  %241 = vmatpush.msra.mxu1 %v5646_v45  ;;  %261 = vmatpush.msrb.mxu2 %v5651_v46  ;;  %v5682_v51 = vld [vmem:[%s9937_s2 + $0x98] sm:$0xff]  ;;  %v5687_v52 = vld [vmem:[%s9937_s2 + $0x60] sm:$0xff]  ;;  %s5330_s22 = smov [#allocation2]   ;;  %s4419_s26 = sshll.u32 %s9944_s9, 4  ;;  %s4420_s26 = int_to_ptr.hbm [resolvable:$true] %s4419_s26 }
  0x1c   :  { %10244 = vst [vmem:[#allocation19_spill] sm:$0xff] %v5682_v51  ;;  %282 = vmatpush.msrb.mxu3 %v5658_v47  ;;  %223 = vmatpush.msra.mxu0 %v5663_v48  ;;  %v5694_v53 = vld [vmem:[%s9937_s2 + $0x88] sm:$0xff]  ;;  %v5701_v54 = vld [vmem:[%s9937_s2 + $0x90] sm:$0xff]  ;;  %v5708_v55 = vld [vmem:[%s9937_s2 + $0x78] sm:$0xff]  ;;  %s4417_s23 = sshll.u32 %s5330_s22, 4  ;;  %s4418_s23 = int_to_ptr.vmem [resolvable:$true] %s4417_s23 }
  0x1d   :  { %10245 = vst [vmem:[#allocation20_spill] sm:$0xff] %v5687_v52  ;;  %242 = vmatpush.msra.mxu1 %v5670_v49  ;;  %262 = vmatpush.msrb.mxu2 %v5675_v50  ;;  %v5716_v56 = vld [vmem:[%s9937_s2 + $0x40] sm:$0xff]  ;;  %v5721_v57 = vld [vmem:[%s9937_s2 + $0x68] sm:$0xff]  ;;  %v5729_v58 = vld [vmem:[%s9937_s2 + $0x70] sm:$0xff] }
  0x1e   :  { %10246 = vst [vmem:[#allocation21_spill] sm:$0xff] %v5694_v53  ;;  %283 = vmatpush.msrb.mxu3 %v5682_v51  ;;  %224 = vmatpush.msra.mxu0 %v5687_v52  ;;  %v5734_v59 = vld [vmem:[%s9937_s2 + $0x58] sm:$0xff]  ;;  %v5742_v60 = vld [vmem:[%s9937_s2 + $0x20] sm:$0xff]  ;;  %v5747_v61 = vld [vmem:[%s9937_s2 + $0x48] sm:$0xff] }
  0x1f   :  { %10247 = vst [vmem:[#allocation22_spill] sm:$0xff] %v5701_v54  ;;  %4435 = vmatmul.msk.f32.gmra.mxu3 %vm49_vm0, %v5501_v22  ;;  %243 = vmatpush.msra.mxu1 %v5694_v53  ;;  %v5754_v62 = vld [vmem:[%s9937_s2 + $0x50] sm:$0xff]  ;;  %v5759_v63 = vld [vmem:[%s9937_s2 + $0x38] sm:$0xff]  ;;  %v5766_v0 = vld [vmem:[%s9937_s2] sm:$0xff] }
  0x20   :  { %10248 = vst [vmem:[#allocation23_spill] sm:$0xff] %v5708_v55  ;;  %4431 = vmatmul.msk.f32.gmra.mxu1 %vm49_vm0, %v5501_v22  ;;  %263 = vmatpush.msrb.mxu2 %v5701_v54  ;;  %v5771_v1 = vld [vmem:[%s9937_s2 + $0x28] sm:$0xff]  ;;  %v5778_v3 = vld [vmem:[%s9937_s2 + $0x30] sm:$0xff]  ;;  %v5785_v4 = vld [vmem:[%s9937_s2 + $0x18] sm:$0xff] }
  0x21   :  { %10249 = vst [vmem:[#allocation24_spill] sm:$0xff] %v5716_v56  ;;  %284 = vmatpush.msrb.mxu3 %v5708_v55  ;;  %4433 = vmatmul.msk.f32.gmra.mxu2 %vm49_vm0, %v5501_v22  ;;  %v5790_v6 = vld [vmem:[%s9937_s2 + $0x8] sm:$0xff]  ;;  %v9947_v22 = vmov 0.0  }
  0x22   :  { %10250 = vst [vmem:[#allocation25_spill] sm:$0xff] %v5721_v57  ;;  %225 = vmatpush.msra.mxu0 %v5716_v56  ;;  %244 = vmatpush.msra.mxu1 %v5721_v57 }
  0x23   :  { %10251 = vst [vmem:[#allocation26_spill] sm:$0xff] %v5729_v58  ;;  %264 = vmatpush.msrb.mxu2 %v5729_v58  ;;  %285 = vmatpush.msrb.mxu3 %v5734_v59 }
  0x24   :  { %10252 = vst [vmem:[#allocation27_spill] sm:$0xff] %v5734_v59  ;;  %226 = vmatpush.msra.mxu0 %v5742_v60  ;;  %245 = vmatpush.msra.mxu1 %v5747_v61 }
  0x25   :  { %10253 = vst [vmem:[#allocation28_spill] sm:$0xff] %v5742_v60  ;;  %265 = vmatpush.msrb.mxu2 %v5754_v62  ;;  %286 = vmatpush.msrb.mxu3 %v5759_v63 }
  0x26   :  { %10254 = vst [vmem:[#allocation29_spill] sm:$0xff] %v5747_v61  ;;  %227 = vmatpush.msra.mxu0 %v5766_v0  ;;  %246 = vmatpush.msra.mxu1 %v5771_v1 }
  0x27   :  { %10255 = vst [vmem:[#allocation30_spill] sm:$0xff] %v5754_v62  ;;  %228 = vmatmul.f32.vlgmr.msra.gmra.mxu0 %v9947_v22  ;;  %266 = vmatpush.msrb.mxu2 %v5778_v3 }
  0x28   :  { %10256 = vst [vmem:[#allocation31_spill] sm:$0xff] %v5759_v63  ;;  %v5799_v63 = vld [vmem:[%s9937_s2 + $0x10] sm:$0xff]  ;;  %287 = vmatpush.msrb.mxu3 %v5785_v4  ;;  %247 = vmatpush.msra.mxu1 %v5790_v6 }
  0x29   :  { %10257 = vst [vmem:[#allocation32_spill] sm:$0xff] %v5766_v0  ;;  %288 = vmatmul.f32.vlgmr.msrb.gmra.mxu3 %v9947_v22  ;;  %248 = vmatmul.f32.vlgmr.msra.gmra.mxu1 %v9947_v22 }
  0x2a   :  { %10258 = vst [vmem:[#allocation33_spill] sm:$0xff] %v5771_v1  ;;  %267 = vmatpush.msrb.mxu2 %v5799_v63  ;;  %448 = vmatpush.msrb.mxu0 %v5390_v2 }
  0x2b   :  { %10259 = vst [vmem:[#allocation34_spill] sm:$0xff] %v5778_v3  ;;  %268 = vmatmul.f32.vlgmr.msrb.gmra.mxu2 %v9947_v22  ;;  %468 = vmatpush.msrb.mxu1 %v5419_v8 }
  0x2c   :  { %10260 = vst [vmem:[#allocation35_spill] sm:$0xff] %v5785_v4  ;;  %488 = vmatpush.msra.mxu2 %v5425_v9  ;;  %508 = vmatpush.msra.mxu3 %v5403_v5 }
  0x2d   :  { %10261 = vst [vmem:[#allocation36_spill] sm:$0xff] %v5790_v6  ;;  %449 = vmatpush.msrb.mxu0 %v5414_v7  ;;  %469 = vmatpush.msrb.mxu1 %v5441_v12 }
  0x2e   :  { %10262 = vst [vmem:[#allocation37_spill] sm:$0xff] %v5799_v63  ;;  %489 = vmatpush.msra.mxu2 %v5446_v13  ;;  %509 = vmatpush.msra.mxu3 %v5430_v10 }
  0x2f   :  { %450 = vmatpush.msrb.mxu0 %v5435_v11  ;;  %470 = vmatpush.msrb.mxu1 %v5465_v16  ;;  %v10263_v22 = vld [vmem:[#allocation31_spill] sm:$0xff] }
  0x30   :  { %490 = vmatpush.msra.mxu2 %v5470_v17  ;;  %510 = vmatpush.msra.mxu3 %v5453_v14 }
  0x31   :  { %451 = vmatpush.msrb.mxu0 %v5458_v15  ;;  %471 = vmatpush.msrb.mxu1 %v5489_v20 }
  0x32   :  { %491 = vmatpush.msra.mxu2 %v5494_v21  ;;  %511 = vmatpush.msra.mxu3 %v5477_v18 }
  0x33   :  { %452 = vmatpush.msrb.mxu0 %v5482_v19  ;;  %472 = vmatpush.msrb.mxu1 %v5518_v25 }
  0x34   :  { %492 = vmatpush.msra.mxu2 %v5525_v26  ;;  %512 = vmatpush.msra.mxu3 %v5506_v23 }
  0x35   :  { %453 = vmatpush.msrb.mxu0 %v5513_v24  ;;  %473 = vmatpush.msrb.mxu1 %v5543_v29 }
  0x36   :  { %493 = vmatpush.msra.mxu2 %v5550_v30  ;;  %513 = vmatpush.msra.mxu3 %v5530_v27 }
  0x37   :  { %454 = vmatpush.msrb.mxu0 %v5538_v28  ;;  %474 = vmatpush.msrb.mxu1 %v5567_v33 }
  0x38   :  { %494 = vmatpush.msra.mxu2 %v5574_v34  ;;  %514 = vmatpush.msra.mxu3 %v5555_v31 }
  0x39   :  { %455 = vmatpush.msrb.mxu0 %v5562_v32  ;;  %475 = vmatpush.msrb.mxu1 %v5593_v37 }
  0x3a   :  { %495 = vmatpush.msra.mxu2 %v5598_v38  ;;  %515 = vmatpush.msra.mxu3 %v5579_v35 }
  0x3b   :  { %456 = vmatpush.msrb.mxu0 %v5586_v36  ;;  %476 = vmatpush.msrb.mxu1 %v5620_v41 }
  0x3c   :  { %496 = vmatpush.msra.mxu2 %v5625_v42  ;;  %516 = vmatpush.msra.mxu3 %v5605_v39 }
  0x3d   :  { %457 = vmatpush.msrb.mxu0 %v5613_v40  ;;  %477 = vmatpush.msrb.mxu1 %v5646_v45 }
  0x3e   :  { %497 = vmatpush.msra.mxu2 %v5651_v46  ;;  %517 = vmatpush.msra.mxu3 %v5633_v43 }
  0x3f   :  { %458 = vmatpush.msrb.mxu0 %v5638_v44  ;;  %478 = vmatpush.msrb.mxu1 %v5670_v49 }
  0x40   :  { %498 = vmatpush.msra.mxu2 %v5675_v50  ;;  %518 = vmatpush.msra.mxu3 %v5658_v47 }
  0x41   :  { %459 = vmatpush.msrb.mxu0 %v5663_v48  ;;  %479 = vmatpush.msrb.mxu1 %v5694_v53 }
  0x42   :  { %499 = vmatpush.msra.mxu2 %v5701_v54  ;;  %519 = vmatpush.msra.mxu3 %v5682_v51 }
  0x43   :  { %460 = vmatpush.msrb.mxu0 %v5687_v52  ;;  %480 = vmatpush.msrb.mxu1 %v5721_v57 }
  0x44   :  { %500 = vmatpush.msra.mxu2 %v5729_v58  ;;  %520 = vmatpush.msra.mxu3 %v5708_v55 }
  0x45   :  { %461 = vmatpush.msrb.mxu0 %v5716_v56  ;;  %481 = vmatpush.msrb.mxu1 %v5747_v61 }
  0x46   :  { %501 = vmatpush.msra.mxu2 %v5754_v62  ;;  %521 = vmatpush.msra.mxu3 %v5734_v59 }
  0x47   :  { %462 = vmatpush.msrb.mxu0 %v5742_v60  ;;  %482 = vmatpush.msrb.mxu1 %v5771_v1 }
  0x48   :  { %502 = vmatpush.msra.mxu2 %v5778_v3  ;;  %522 = vmatpush.msra.mxu3 %v10263_v22 }
  0x49   :  { %463 = vmatpush.msrb.mxu0 %v5766_v0  ;;  %483 = vmatpush.msrb.mxu1 %v5790_v6 }
  0x4a   :  { %503 = vmatpush.msra.mxu2 %v5799_v63  ;;  %523 = vmatpush.msra.mxu3 %v5785_v4 }
  0x4b   :  { %689 = vmatpush.msra.mxu0 %v5390_v2  ;;  %709 = vmatpush.msra.mxu1 %v5419_v8 }
  0x4c   :  { %729 = vmatpush.msrb.mxu2 %v5425_v9  ;;  %749 = vmatpush.msrb.mxu3 %v5403_v5 }
  0x4d   :  { %690 = vmatpush.msra.mxu0 %v5414_v7  ;;  %710 = vmatpush.msra.mxu1 %v5441_v12 }
  0x4e   :  { %730 = vmatpush.msrb.mxu2 %v5446_v13  ;;  %750 = vmatpush.msrb.mxu3 %v5430_v10 }
  0x4f   :  { %691 = vmatpush.msra.mxu0 %v5435_v11  ;;  %711 = vmatpush.msra.mxu1 %v5465_v16 }
  0x50   :  { %731 = vmatpush.msrb.mxu2 %v5470_v17  ;;  %751 = vmatpush.msrb.mxu3 %v5453_v14 }
  0x51   :  { %692 = vmatpush.msra.mxu0 %v5458_v15  ;;  %712 = vmatpush.msra.mxu1 %v5489_v20 }
  0x52   :  { %732 = vmatpush.msrb.mxu2 %v5494_v21  ;;  %752 = vmatpush.msrb.mxu3 %v5477_v18 }
  0x53   :  { %693 = vmatpush.msra.mxu0 %v5482_v19  ;;  %713 = vmatpush.msra.mxu1 %v5518_v25 }
  0x54   :  { %733 = vmatpush.msrb.mxu2 %v5525_v26  ;;  %753 = vmatpush.msrb.mxu3 %v5506_v23 }
  0x55   :  { %694 = vmatpush.msra.mxu0 %v5513_v24  ;;  %714 = vmatpush.msra.mxu1 %v5543_v29 }
  0x56   :  { %734 = vmatpush.msrb.mxu2 %v5550_v30  ;;  %754 = vmatpush.msrb.mxu3 %v5530_v27 }
  0x57   :  { %695 = vmatpush.msra.mxu0 %v5538_v28  ;;  %715 = vmatpush.msra.mxu1 %v5567_v33 }
  0x58   :  { %735 = vmatpush.msrb.mxu2 %v5574_v34  ;;  %755 = vmatpush.msrb.mxu3 %v5555_v31 }
  0x59   :  { %696 = vmatpush.msra.mxu0 %v5562_v32  ;;  %716 = vmatpush.msra.mxu1 %v5593_v37 }
  0x5a   :  { %736 = vmatpush.msrb.mxu2 %v5598_v38  ;;  %756 = vmatpush.msrb.mxu3 %v5579_v35 }
  0x5b   :  { %697 = vmatpush.msra.mxu0 %v5586_v36  ;;  %717 = vmatpush.msra.mxu1 %v5620_v41 }
  0x5c   :  { %737 = vmatpush.msrb.mxu2 %v5625_v42  ;;  %757 = vmatpush.msrb.mxu3 %v5605_v39 }
  0x5d   :  { %698 = vmatpush.msra.mxu0 %v5613_v40  ;;  %718 = vmatpush.msra.mxu1 %v5646_v45 }
  0x5e   :  { %738 = vmatpush.msrb.mxu2 %v5651_v46  ;;  %758 = vmatpush.msrb.mxu3 %v5633_v43 }
  0x5f   :  { %699 = vmatpush.msra.mxu0 %v5638_v44  ;;  %719 = vmatpush.msra.mxu1 %v5670_v49 }
  0x60   :  { %739 = vmatpush.msrb.mxu2 %v5675_v50  ;;  %759 = vmatpush.msrb.mxu3 %v5658_v47 }
  0x61   :  { %700 = vmatpush.msra.mxu0 %v5663_v48  ;;  %720 = vmatpush.msra.mxu1 %v5694_v53 }
  0x62   :  { %740 = vmatpush.msrb.mxu2 %v5701_v54  ;;  %760 = vmatpush.msrb.mxu3 %v5682_v51 }
  0x63   :  { %701 = vmatpush.msra.mxu0 %v5687_v52  ;;  %721 = vmatpush.msra.mxu1 %v5721_v57 }
  0x64   :  { %741 = vmatpush.msrb.mxu2 %v5729_v58  ;;  %761 = vmatpush.msrb.mxu3 %v5708_v55 }
  0x65   :  { %702 = vmatpush.msra.mxu0 %v5716_v56  ;;  %722 = vmatpush.msra.mxu1 %v5747_v61 }
  0x66   :  { %742 = vmatpush.msrb.mxu2 %v5754_v62  ;;  %762 = vmatpush.msrb.mxu3 %v5734_v59 }
  0x67   :  { %703 = vmatpush.msra.mxu0 %v5742_v60  ;;  %723 = vmatpush.msra.mxu1 %v5771_v1  ;;  %v39_v1 = vld [vmem:[%s9938_s3] sm:$0xf] }
  0x68   :  { %743 = vmatpush.msrb.mxu2 %v5778_v3  ;;  %763 = vmatpush.msrb.mxu3 %v10263_v22  ;;  %v41_v3 = vperm.slane %v39_v1, 0  ;;  %v42_v22 = vperm.slane %v39_v1, 1  ;;  %v44_v51 = vperm.slane %v39_v1, 3 }
  0x69   :  { %704 = vmatpush.msra.mxu0 %v5766_v0  ;;  %724 = vmatpush.msra.mxu1 %v5790_v6 }
  0x6a   :  { %744 = vmatpush.msrb.mxu2 %v5799_v63  ;;  %764 = vmatpush.msrb.mxu3 %v5785_v4 }
  0x81   :  { %v73_v61 = vpop.f32.mrf.mxu1 }
  0x82   :  { %v5938_v0 = vadd.f32 %v73_v61, %v41_v3 }
  0x84   :  { %10264 = vst [vmem:[#allocation38_spill] sm:$0xff] %v5938_v0 }
  0x89   :  { %v76_v62 = vpop.f32.mrf.mxu1 }
  0x8a   :  { %v5940_v57 = vadd.f32 %v76_v62, %v41_v3 }
  0x8c   :  { %10265 = vst [vmem:[#allocation39_spill] sm:$0xff] %v5940_v57 }
  0x93   :  { %v96_v56 = vpop.f32.mrf.mxu1 }
  0x94   :  { %v5942_v63 = vadd.f32 %v96_v56, %v42_v22 }
  0x96   :  { %10266 = vst [vmem:[#allocation40_spill] sm:$0xff] %v5942_v63 }
  0x97   :  { %v142_v59 = vpop.f32.mrf.mxu3 }
  0x98   :  { %v5950_v44 = vadd.f32 %v142_v59, %v44_v51 }
  0x9a   :  { %v119_v55 = vpop.f32.mrf.mxu2  ;;  %10268 = vst [vmem:[#allocation42_spill] sm:$0xff] %v5950_v44 }
  0x9d   :  { %v99_v60 = vpop.f32.mrf.mxu1 }
  0x9e   :  { %v5945_v54 = vadd.f32 %v99_v60, %v42_v22 }
  0xa0   :  { %10267 = vst [vmem:[#allocation41_spill] sm:$0xff] %v5945_v54 }
  0xa2   :  { %v145_v58 = vpop.f32.mrf.mxu3 }
  0xa3   :  { %v5952_v22 = vadd.f32 %v145_v58, %v44_v51 }
  0xa4   :  { %v229_v6 = vpop.f32.mrf.mxu0  ;;  %v122_v56 = vpop.f32.mrf.mxu2 }
  0xa5   :  { %v296_v4 = vrot.slane %v229_v6, 1  ;;  %v308_v52 = vadd.f32 %v229_v6, %v5938_v0  ;;  %10269 = vst [vmem:[#allocation43_spill] sm:$0xff] %v5952_v22 }
  0xa6   :  { %v249_v53 = vpop.f32.mrf.mxu1 }
  0xa7   :  { %v312_v48 = vadd.f32 %v296_v4, %v5940_v57  ;;  %v4436_v47 = vmul.f32 -1.442695, %v308_v52  ;;  %v297_v50 = vrot.slane %v249_v53, 1  ;;  %v309_v49 = vadd.f32 %v249_v53, %v5942_v63 }
  0xa8   :  { %v43_v53 = vperm.slane %v39_v1, 2 }
  0xa9   :  { %4535 = vpow2.f32 %v4436_v47  ;;  %v4437_v61 = vmul.f32 -1.442695, %v312_v48  ;;  %v313_v62 = vadd.f32 %v297_v50, %v5945_v54  ;;  %v4438_v3 = vmul.f32 -1.442695, %v309_v49 }
  0xaa   :  { %v5960_v58 = vadd.f32 %v119_v55, %v43_v53  ;;  %v5965_v1 = vadd.f32 %v122_v56, %v43_v53 }
  0xab   :  { %4537 = vpow2.f32 %v4437_v61  ;;  %v4439_v6 = vmul.f32 -1.442695, %v313_v62 }
  0xac   :  { %4539 = vpow2.f32 %v4438_v3  ;;  %v289_v60 = vpop.f32.mrf.mxu3  ;;  %10270 = vst [vmem:[#allocation44_spill] sm:$0xff] %v5960_v58 }
  0xad   :  { %4541 = vpow2.f32 %v4439_v6  ;;  %v299_v4 = vrot.slane %v289_v60, 1  ;;  %v311_v52 = vadd.f32 %v289_v60, %v5950_v44  ;;  %10271 = vst [vmem:[#allocation45_spill] sm:$0xff] %v5965_v1 }
  0xae   :  { %v269_v6 = vpop.f32.mrf.mxu2 }
  0xaf   :  { %v4536_v0 = vpop.eup %4535  ;;  %v315_v47 = vadd.f32 %v299_v4, %v5952_v22  ;;  %v4440_v48 = vmul.f32 -1.442695, %v311_v52 }
  0xb0   :  { %v322_v50 = vadd.f32 1.0, %v4536_v0  ;;  %v298_v0 = vrot.slane %v269_v6, 1 }
  0xb1   :  { %v4538_v49 = vpop.eup %4537  ;;  %4543 = vpow2.f32 %v4440_v48  ;;  %v4441_v59 = vmul.f32 -1.442695, %v315_v47  ;;  %v310_v48 = vadd.f32 %v269_v6, %v5960_v58 }
  0xb2   :  { %v4540_v63 = vpop.eup %4539  ;;  %v5956_v61 = vadd.f32 1.0, %v4538_v49  ;;  %4545 = vrcp.f32 %v322_v50  ;;  %v333_v60 = vand.u32 2147483647, %v322_v50  ;;  %v335_v4 = vand.u32 2147483648, %v322_v50 }
  0xb3   :  { %v4542_v62 = vpop.eup %4541  ;;  %v5958_v51 = vadd.f32 1.0, %v4540_v63  ;;  %4547 = vpow2.f32 %v4441_v59  ;;  %v314_v56 = vadd.f32 %v298_v0, %v5965_v1  ;;  %vm329_vm1 = vweird.f32 %v322_v50 }
  0xb4   :  { %4549 = vrcp.f32 %v5956_v61  ;;  %v5963_v3 = vadd.f32 1.0, %v4542_v62  ;;  %vm344_vm2 = vweird.f32 %v5956_v61  ;;  %vm5979_vm4 = vcmp.eq.f32.partialorder %v333_v60, 8.507059e+37 }
  0xb5   :  { %4551 = vrcp.f32 %v5958_v51  ;;  %v373_v47 = vand.u32 2147483648, %v5958_v51  ;;  %vm367_vm3 = vweird.f32 %v5958_v51  ;;  %v348_v1 = vand.u32 2147483647, %v5956_v61 }
  0xb6   :  { %4553 = vrcp.f32 %v5963_v3  ;;  %vm382_vm5 = vweird.f32 %v5963_v3  ;;  %v388_v0 = vand.u32 2147483648, %v5963_v3  ;;  %v350_v60 = vand.u32 2147483648, %v5956_v61 }
  0xb7   :  { %v4544_v52 = vpop.eup %4543  ;;  %v374_v57 = vor.u32 1.1754944e-38, %v373_v47  ;;  %v371_v45 = vand.u32 2147483647, %v5958_v51  ;;  %v386_v40 = vand.u32 2147483647, %v5963_v3  ;;  %vm349_vm12 = vcmp.eq.f32.partialorder %v348_v1, 8.507059e+37 }
  0xb8   :  { %v4546_v63 = vpop.eup %4545  ;;  %v5970_v55 = vadd.f32 1.0, %v4544_v52  ;;  %v336_v52 = vor.u32 1.1754944e-38, %v335_v4 }
  0xb9   :  { %v4548_v49 = vpop.eup %4547  ;;  %v325_v59 = vmul.f32 %v4546_v63, %v322_v50  ;;  %vm330_vm6 = vweird.f32 %v4546_v63  ;;  %vm372_vm14 = vcmp.eq.f32.partialorder %v371_v45, 8.507059e+37  ;;  %vm387_vm0 = vcmp.eq.f32.partialorder %v386_v40, 8.507059e+37 }
  0xba   :  { %v4550_v53 = vpop.eup %4549  ;;  %v5976_v62 = vadd.f32 1.0, %v4548_v49  ;;  %4555 = vrcp.f32 %v5970_v55  ;;  %vm5996_vm8 = vmor %vm329_vm1, %vm330_vm6 }
  0xbb   :  { %v4552_v6 = vpop.eup %4551  ;;  %v326_v58 = vsub.f32 1.0, %v325_v59  ;;  %v340_v22 = vmul.f32 %v4550_v53, %v5956_v61  ;;  %vm345_vm7 = vweird.f32 %v4550_v53 }
  0xbc   :  { %v4554_v54 = vpop.eup %4553  ;;  %v363_v49 = vmul.f32 %v4552_v6, %v5958_v51  ;;  %4557 = vrcp.f32 %v5976_v62  ;;  %vm368_vm9 = vweird.f32 %v4552_v6  ;;  %vm346_vm11 = vmor %vm344_vm2, %vm345_vm7 }
  0xbd   :  { %v341_v43 = vsub.f32 1.0, %v340_v22  ;;  %v378_v4 = vmul.f32 %v4554_v54, %v5963_v3  ;;  %v327_v59 = vmul.f32 %v4546_v63, %v326_v58  ;;  %4559 = vtanh.f32 %v310_v48  ;;  %vm369_vm13 = vmor %vm367_vm3, %vm368_vm9 }
  0xbe   :  { %v364_v46 = vsub.f32 1.0, %v363_v49  ;;  %vm383_vm10 = vweird.f32 %v4554_v54  ;;  %4561 = vtanh.f32 %v314_v56  ;;  %vm422_vm3 = vweird.f32 %v5976_v62 }
  0xbf   :  { %v379_v39 = vsub.f32 1.0, %v378_v4  ;;  %v328_v42 = vadd.f32 %v4546_v63, %v327_v59  ;;  %v342_v41 = vmul.f32 %v4550_v53, %v341_v43  ;;  %v389_v59 = vor.u32 1.1754944e-38, %v388_v0  ;;  %vm384_vm15 = vmor %vm382_vm5, %vm383_vm10 }
  0xc0   :  { %v5993_v47 = vpop.eup %4555  ;;  %v365_v36 = vmul.f32 %v4552_v6, %v364_v46  ;;  %v351_v46 = vor.u32 1.1754944e-38, %v350_v60  ;;  %vm407_vm5 = vweird.f32 %v5970_v55  ;;  %vm445_vm9 = vcmask 1041409  }
  0xc1   :  { %v380_v58 = vmul.f32 %v4554_v54, %v379_v39  ;;  %v403_v49 = vmul.f32 %v5993_v47, %v5970_v55  ;;  %v332_v48 = vsel %vm5996_vm8, %v4546_v63, %v328_v42  ;;  %v343_v43 = vadd.f32 %v4550_v53, %v342_v41 }
  0xc2   :  { %v4558_v4 = vpop.eup %4557  ;;  %v366_v50 = vadd.f32 %v4552_v6, %v365_v36  ;;  %v337_v39 = vsel %vm5979_vm4, %v336_v52, %v332_v48  ;;  %vm408_vm2 = vweird.f32 %v5993_v47 }
  0xc3   :  { %v418_v35 = vmul.f32 %v4558_v4, %v5976_v62  ;;  %v347_v56 = vsel %vm346_vm11, %v4550_v53, %v343_v43  ;;  %v381_v42 = vadd.f32 %v4554_v54, %v380_v58  ;;  %v4560_v41 = vpop.eup %4559  ;;  %v404_v63 = vsub.f32 1.0, %v403_v49  ;;  %vm409_vm6 = vmor %vm407_vm5, %vm408_vm2 }
  0xc4   :  { %v352_v0 = vsel %vm349_vm12, %v351_v46, %v347_v56  ;;  %v370_v22 = vsel %vm369_vm13, %v4552_v6, %v366_v50  ;;  %v4562_v44 = vpop.eup %4561  ;;  %v434_v60 = vmul.f32 %v4560_v41, %v337_v39  ;;  %vm423_vm1 = vweird.f32 %v4558_v4 }
  0xc5   :  { %v419_v36 = vsub.f32 1.0, %v418_v35  ;;  %v375_v61 = vsel %vm372_vm14, %v374_v57, %v370_v22  ;;  %v385_v1 = vsel %vm384_vm15, %v4554_v54, %v381_v42  ;;  %v435_v48 = vmul.f32 %v4562_v44, %v352_v0  ;;  %vm424_vm4 = vmor %vm422_vm3, %vm423_vm1  ;;  %v10309_v44 = vld [vmem:[#allocation39_spill] sm:$0xff] }
  0xc6   :  { %v390_v53 = vsel %vm387_vm0, %v389_v59, %v385_v1  ;;  %v432_v52 = vmul.f32 0.0, %v375_v61  ;;  %v405_v6 = vmul.f32 %v5993_v47, %v404_v63  ;;  %v428_v35 = vand.u32 2147483648, %v5976_v62 }
  0xc7   :  { %v433_v51 = vmul.f32 0.0, %v390_v53  ;;  %v420_v58 = vmul.f32 %v4558_v4, %v419_v36  ;;  %v426_v54 = vand.u32 2147483647, %v5976_v62  ;;  %v413_v57 = vand.u32 2147483648, %v5970_v55 }
  0xc8   :  { %v6015_v43 = vadd.f32 %v434_v60, %v432_v52  ;;  %v406_v40 = vadd.f32 %v5993_v47, %v405_v6  ;;  %v411_v49 = vand.u32 2147483647, %v5970_v55  ;;  %v429_v46 = vor.u32 1.1754944e-38, %v428_v35  ;;  %v10310_v60 = vld [vmem:[#allocation41_spill] sm:$0xff] }
  0xc9   :  { %v6018_v45 = vadd.f32 %v435_v48, %v433_v51  ;;  %v421_v3 = vadd.f32 %v4558_v4, %v420_v58  ;;  %vm427_vm7 = vcmp.eq.f32.partialorder %v426_v54, 8.507059e+37  ;;  %v414_v42 = vor.u32 1.1754944e-38, %v413_v57  ;;  %v10311_v48 = vld [vmem:[#allocation38_spill] sm:$0xff] }
  0xca   :  { %4563 = vtanh.f32 %v6015_v43  ;;  %v410_v39 = vsel %vm409_vm6, %v5993_v47, %v406_v40  ;;  %vm412_vm8 = vcmp.eq.f32.partialorder %v411_v49, 8.507059e+37  ;;  %v10307_v47 = vld [vmem:[#allocation37_spill] sm:$0xff] }
  0xcb   :  { %4565 = vtanh.f32 %v6018_v45  ;;  %v425_v59 = vsel %vm424_vm4, %v4558_v4, %v421_v3  ;;  %v415_v62 = vsel %vm412_vm8, %v414_v42, %v410_v39  ;;  %v10308_v4 = vld [vmem:[#allocation35_spill] sm:$0xff]  ;;  %v10312_v3 = vld [vmem:[#allocation40_spill] sm:$0xff]  ;;  %v10314_v42 = vld [vmem:[#allocation42_spill] sm:$0xff] }
  0xcc   :  { %v430_v41 = vsel %vm427_vm7, %v429_v46, %v425_v59 }
  0xd0   :  { %v4564_v50 = vpop.eup %4563 }
  0xd1   :  { %v4566_v56 = vpop.eup %4565  ;;  %v6033_v0 = vmul.f32 %v4564_v50, %v415_v62  ;;  %v10313_v50 = vld [vmem:[#allocation43_spill] sm:$0xff] }
  0xd2   :  { %v6031_v63 = vmul.f32 %v4566_v56, %v430_v41 }
  0xd4   :  { %v444_v22 = vrot.slane %v6031_v63, 7 }
  0xd6   :  { %v446_v55 = vsel %vm445_vm9, %v444_v22, %v6033_v0 }
  0xd7   :  { %464 = vmatmul.f32.vlgmr.msrb.gmra.mxu0 %v446_v55  ;;  %484 = vmatmul.f32.vlgmr.msrb.gmra.mxu1 %v446_v55 }
  0xd8   :  { %504 = vmatmul.f32.vlgmr.msra.gmra.mxu2 %v446_v55  ;;  %524 = vmatmul.f32.vlgmr.msra.gmra.mxu3 %v446_v55 }
  0xd9   :  { %935 = vmatpush.msrb.mxu0 %v5390_v2  ;;  %955 = vmatpush.msrb.mxu1 %v5419_v8  ;;  %v10276_v2 = vld [vmem:[#allocation5_spill] sm:$0xff]  ;;  %v10279_v8 = vld [vmem:[#allocation10_spill] sm:$0xff] }
  0xda   :  { %975 = vmatpush.msra.mxu2 %v5425_v9  ;;  %995 = vmatpush.msra.mxu3 %v5403_v5  ;;  %v10277_v5 = vld [vmem:[#allocation6_spill] sm:$0xff]  ;;  %v10280_v9 = vld [vmem:[#allocation7_spill] sm:$0xff] }
  0xdb   :  { %936 = vmatpush.msrb.mxu0 %v5414_v7  ;;  %956 = vmatpush.msrb.mxu1 %v5441_v12  ;;  %v10278_v7 = vld [vmem:[#allocation9_spill] sm:$0xff]  ;;  %v10283_v12 = vld [vmem:[#allocation14_spill] sm:$0xff] }
  0xdc   :  { %976 = vmatpush.msra.mxu2 %v5446_v13  ;;  %996 = vmatpush.msra.mxu3 %v5430_v10  ;;  %v10281_v10 = vld [vmem:[#allocation8_spill] sm:$0xff]  ;;  %v10284_v13 = vld [vmem:[#allocation11_spill] sm:$0xff] }
  0xdd   :  { %937 = vmatpush.msrb.mxu0 %v5435_v11  ;;  %957 = vmatpush.msrb.mxu1 %v5465_v16  ;;  %v10282_v11 = vld [vmem:[#allocation13_spill] sm:$0xff]  ;;  %v10287_v16 = vld [vmem:[#allocation18_spill] sm:$0xff] }
  0xde   :  { %977 = vmatpush.msra.mxu2 %v5470_v17  ;;  %997 = vmatpush.msra.mxu3 %v5453_v14  ;;  %v10285_v14 = vld [vmem:[#allocation12_spill] sm:$0xff]  ;;  %v10288_v17 = vld [vmem:[#allocation15_spill] sm:$0xff] }
  0xdf   :  { %938 = vmatpush.msrb.mxu0 %v5458_v15  ;;  %958 = vmatpush.msrb.mxu1 %v5489_v20  ;;  %v10286_v15 = vld [vmem:[#allocation17_spill] sm:$0xff]  ;;  %v10291_v20 = vld [vmem:[#allocation22_spill] sm:$0xff] }
  0xe0   :  { %978 = vmatpush.msra.mxu2 %v5494_v21  ;;  %998 = vmatpush.msra.mxu3 %v5477_v18  ;;  %v10289_v18 = vld [vmem:[#allocation16_spill] sm:$0xff]  ;;  %v10292_v21 = vld [vmem:[#allocation19_spill] sm:$0xff] }
  0xe1   :  { %939 = vmatpush.msrb.mxu0 %v5482_v19  ;;  %959 = vmatpush.msrb.mxu1 %v5518_v25  ;;  %v10290_v19 = vld [vmem:[#allocation21_spill] sm:$0xff]  ;;  %v10295_v25 = vld [vmem:[#allocation26_spill] sm:$0xff] }
  0xe2   :  { %979 = vmatpush.msra.mxu2 %v5525_v26  ;;  %999 = vmatpush.msra.mxu3 %v5506_v23  ;;  %v10293_v23 = vld [vmem:[#allocation20_spill] sm:$0xff]  ;;  %v10296_v26 = vld [vmem:[#allocation23_spill] sm:$0xff] }
  0xe3   :  { %940 = vmatpush.msrb.mxu0 %v5513_v24  ;;  %960 = vmatpush.msrb.mxu1 %v5543_v29  ;;  %v10294_v24 = vld [vmem:[#allocation25_spill] sm:$0xff]  ;;  %v10299_v29 = vld [vmem:[#allocation30_spill] sm:$0xff] }
  0xe4   :  { %980 = vmatpush.msra.mxu2 %v5550_v30  ;;  %1000 = vmatpush.msra.mxu3 %v5530_v27  ;;  %v10297_v27 = vld [vmem:[#allocation24_spill] sm:$0xff]  ;;  %v10300_v30 = vld [vmem:[#allocation27_spill] sm:$0xff] }
  0xe5   :  { %941 = vmatpush.msrb.mxu0 %v5538_v28  ;;  %961 = vmatpush.msrb.mxu1 %v5567_v33  ;;  %v10298_v28 = vld [vmem:[#allocation29_spill] sm:$0xff]  ;;  %v10303_v33 = vld [vmem:[#allocation34_spill] sm:$0xff] }
  0xe6   :  { %981 = vmatpush.msra.mxu2 %v5574_v34  ;;  %1001 = vmatpush.msra.mxu3 %v5555_v31  ;;  %v10301_v31 = vld [vmem:[#allocation28_spill] sm:$0xff]  ;;  %v10304_v34 = vld [vmem:[#allocation31_spill] sm:$0xff] }
  0xe7   :  { %942 = vmatpush.msrb.mxu0 %v5562_v32  ;;  %962 = vmatpush.msrb.mxu1 %v5593_v37  ;;  %v10302_v32 = vld [vmem:[#allocation33_spill] sm:$0xff]  ;;  %v10305_v37 = vld [vmem:[#allocation32_spill] sm:$0xff] }
  0xe8   :  { %982 = vmatpush.msra.mxu2 %v5598_v38  ;;  %1002 = vmatpush.msra.mxu3 %v10276_v2  ;;  %v10306_v38 = vld [vmem:[#allocation36_spill] sm:$0xff] }
  0xe9   :  { %943 = vmatpush.msrb.mxu0 %v10277_v5  ;;  %963 = vmatpush.msrb.mxu1 %v10278_v7 }
  0xea   :  { %983 = vmatpush.msra.mxu2 %v10279_v8  ;;  %1003 = vmatpush.msra.mxu3 %v10280_v9 }
  0xeb   :  { %944 = vmatpush.msrb.mxu0 %v10281_v10  ;;  %964 = vmatpush.msrb.mxu1 %v10282_v11  ;;  %v10315_v10 = vld [vmem:[#allocation45_spill] sm:$0xff] }
  0xec   :  { %984 = vmatpush.msra.mxu2 %v10283_v12  ;;  %1004 = vmatpush.msra.mxu3 %v10284_v13 }
  0xed   :  { %945 = vmatpush.msrb.mxu0 %v10285_v14  ;;  %965 = vmatpush.msrb.mxu1 %v10286_v15  ;;  %v10316_v14 = vld [vmem:[#allocation44_spill] sm:$0xff] }
  0xee   :  { %985 = vmatpush.msra.mxu2 %v10287_v16  ;;  %1005 = vmatpush.msra.mxu3 %v10288_v17 }
  0xef   :  { %946 = vmatpush.msrb.mxu0 %v10289_v18  ;;  %966 = vmatpush.msrb.mxu1 %v10290_v19  ;;  %v670_v18 = vrot.slane %v6015_v43, 7 }
  0xf0   :  { %986 = vmatpush.msra.mxu2 %v10291_v20  ;;  %1006 = vmatpush.msra.mxu3 %v10292_v21 }
  0xf1   :  { %947 = vmatpush.msrb.mxu0 %v10293_v23  ;;  %967 = vmatpush.msrb.mxu1 %v10294_v24  ;;  %v671_v24 = vrot.slane %v6018_v45, 7 }
  0xf2   :  { %987 = vmatpush.msra.mxu2 %v10295_v25  ;;  %1007 = vmatpush.msra.mxu3 %v10296_v26 }
  0xf3   :  { %948 = vmatpush.msrb.mxu0 %v10297_v27  ;;  %968 = vmatpush.msrb.mxu1 %v10298_v28 }
  0xf4   :  { %988 = vmatpush.msra.mxu2 %v10299_v29  ;;  %1008 = vmatpush.msra.mxu3 %v10300_v30 }
  0xf5   :  { %949 = vmatpush.msrb.mxu0 %v10301_v31  ;;  %969 = vmatpush.msrb.mxu1 %v10302_v32 }
  0xf6   :  { %989 = vmatpush.msra.mxu2 %v10303_v33  ;;  %1009 = vmatpush.msra.mxu3 %v10304_v34 }
  0xf7   :  { %950 = vmatpush.msrb.mxu0 %v10305_v37  ;;  %970 = vmatpush.msrb.mxu1 %v10306_v38 }
  0xf8   :  { %990 = vmatpush.msra.mxu2 %v10307_v47  ;;  %1010 = vmatpush.msra.mxu3 %v10308_v4 }
 0x154   :  { %v465_v36 = vpop.f32.mrf.mxu0  ;;  %v485_v61 = vpop.f32.mrf.mxu1 }
 0x155   :  { %v532_v1 = vrot.slane %v465_v36, 7  ;;  %v548_v53 = vadd.f32 %v465_v36, %v10309_v44  ;;  %v533_v52 = vrot.slane %v485_v61, 7  ;;  %v549_v51 = vadd.f32 %v485_v61, %v10310_v60 }
 0x157   :  { %v544_v58 = vadd.f32 %v532_v1, %v10311_v48  ;;  %v4443_v6 = vmul.f32 -1.442695, %v548_v53  ;;  %v545_v35 = vadd.f32 %v533_v52, %v10312_v3  ;;  %v4445_v40 = vmul.f32 -1.442695, %v549_v51 }
 0x159   :  { %v4442_v54 = vmul.f32 -1.442695, %v544_v58  ;;  %4567 = vpow2.f32 %v4443_v6  ;;  %v4444_v57 = vmul.f32 -1.442695, %v545_v35 }
 0x15a   :  { %4569 = vpow2.f32 %v4445_v40 }
 0x15b   :  { %4571 = vpow2.f32 %v4442_v54  ;;  %v525_v49 = vpop.f32.mrf.mxu3  ;;  %v505_v46 = vpop.f32.mrf.mxu2 }
 0x15c   :  { %4573 = vpow2.f32 %v4444_v57  ;;  %v535_v59 = vrot.slane %v525_v49, 7  ;;  %v551_v39 = vadd.f32 %v525_v49, %v10313_v50  ;;  %v534_v2 = vrot.slane %v505_v46, 7 }
 0x15d   :  { %v550_v11 = vadd.f32 %v505_v46, %v10315_v10 }
 0x15e   :  { %v547_v41 = vadd.f32 %v535_v59, %v10314_v42  ;;  %v4447_v62 = vmul.f32 -1.442695, %v551_v39  ;;  %v546_v15 = vadd.f32 %v534_v2, %v10316_v14 }
 0x15f   :  { %v4568_v56 = vpop.eup %4567 }
 0x160   :  { %v4570_v22 = vpop.eup %4569  ;;  %v6108_v55 = vadd.f32 1.0, %v4568_v56  ;;  %4575 = vpow2.f32 %v4447_v62  ;;  %v4446_v13 = vmul.f32 -1.442695, %v547_v41 }
 0x161   :  { %v4572_v5 = vpop.eup %4571  ;;  %v6110_v7 = vadd.f32 1.0, %v4570_v22 }
 0x162   :  { %v4574_v8 = vpop.eup %4573  ;;  %v6112_v9 = vadd.f32 1.0, %v4572_v5  ;;  %4577 = vrcp.f32 %v6108_v55  ;;  %v584_v23 = vand.u32 2147483647, %v6108_v55  ;;  %vm580_vm12 = vweird.f32 %v6108_v55 }
 0x163   :  { %v6116_v12 = vadd.f32 1.0, %v4574_v8  ;;  %4579 = vrcp.f32 %v6110_v7  ;;  %v624_v16 = vand.u32 2147483648, %v6110_v7  ;;  %vm618_vm10 = vweird.f32 %v6110_v7 }
 0x164   :  { %4581 = vrcp.f32 %v6112_v9  ;;  %v569_v19 = vand.u32 2147483647, %v6112_v9  ;;  %v571_v20 = vand.u32 2147483648, %v6112_v9  ;;  %vm565_vm11 = vweird.f32 %v6112_v9 }
 0x165   :  { %4583 = vrcp.f32 %v6116_v12  ;;  %vm603_vm13 = vweird.f32 %v6116_v12  ;;  %v609_v29 = vand.u32 2147483648, %v6116_v12  ;;  %v625_v31 = vor.u32 1.1754944e-38, %v624_v16 }
 0x166   :  { %4585 = vtanh.f32 %v550_v11  ;;  %v4576_v17 = vpop.eup %4575  ;;  %vm6139_vm14 = vcmp.eq.f32.partialorder %v569_v19, 8.507059e+37  ;;  %v572_v37 = vor.u32 1.1754944e-38, %v571_v20  ;;  %v586_v38 = vand.u32 2147483648, %v6108_v55 }
 0x167   :  { %4587 = vpow2.f32 %v4446_v13  ;;  %v6128_v25 = vadd.f32 1.0, %v4576_v17  ;;  %vm6145_vm15 = vcmp.eq.f32.partialorder %v584_v23, 8.507059e+37  ;;  %v607_v1 = vand.u32 2147483647, %v6116_v12 }
 0x168   :  { %v4578_v21 = vpop.eup %4577  ;;  %4589 = vtanh.f32 %v546_v15  ;;  %v622_v58 = vand.u32 2147483647, %v6110_v7  ;;  %v587_v59 = vor.u32 1.1754944e-38, %v586_v38  ;;  %v610_v41 = vor.u32 1.1754944e-38, %v609_v29 }
 0x169   :  { %v4580_v26 = vpop.eup %4579  ;;  %v576_v27 = vmul.f32 %v4578_v21, %v6108_v55  ;;  %4591 = vrcp.f32 %v6128_v25  ;;  %vm581_vm0 = vweird.f32 %v4578_v21  ;;  %v664_v43 = vand.u32 2147483648, %v6128_v25 }
 0x16a   :  { %v4582_v28 = vpop.eup %4581  ;;  %v614_v30 = vmul.f32 %v4580_v26, %v6110_v7  ;;  %vm619_vm1 = vweird.f32 %v4580_v26  ;;  %vm582_vm4 = vmor %vm580_vm12, %vm581_vm0  ;;  %vm623_vm7 = vcmp.eq.f32.partialorder %v622_v58, 8.507059e+37  ;;  %v6191_v58 = vld [vmem:[%s9937_s2 + $0x1e8] sm:$0xff] }
 0x16b   :  { %v4584_v45 = vpop.eup %4583  ;;  %v561_v32 = vmul.f32 %v4582_v28, %v6112_v9  ;;  %v577_v33 = vsub.f32 1.0, %v576_v27  ;;  %vm566_vm2 = vweird.f32 %v4582_v28  ;;  %vm620_vm5 = vmor %vm618_vm10, %vm619_vm1  ;;  %vm608_vm10 = vcmp.eq.f32.partialorder %v607_v1, 8.507059e+37 }
 0x16c   :  { %v4586_v47 = vpop.eup %4585  ;;  %v599_v4 = vmul.f32 %v4584_v45, %v6116_v12  ;;  %v615_v36 = vsub.f32 1.0, %v614_v30  ;;  %vm604_vm3 = vweird.f32 %v4584_v45  ;;  %vm567_vm6 = vmor %vm565_vm11, %vm566_vm2 }
 0x16d   :  { %v4588_v53 = vpop.eup %4587  ;;  %v562_v52 = vsub.f32 1.0, %v561_v32  ;;  %v578_v51 = vmul.f32 %v4578_v21, %v577_v33  ;;  %vm605_vm8 = vmor %vm603_vm13, %vm604_vm3  ;;  %vm658_vm13 = vweird.f32 %v6128_v25  ;;  %v662_v32 = vand.u32 2147483647, %v6128_v25 }
 0x16e   :  { %v4590_v6 = vpop.eup %4589  ;;  %v600_v35 = vsub.f32 1.0, %v599_v4  ;;  %v616_v40 = vmul.f32 %v4580_v26, %v615_v36  ;;  %v636_v54 = vadd.f32 1.0, %v4588_v53  ;;  %v665_v36 = vor.u32 1.1754944e-38, %v664_v43  ;;  %v6407_v43 = vld [vmem:[%s9937_s2 + $0xc8] sm:$0xff] }
 0x16f   :  { %v563_v57 = vmul.f32 %v4582_v28, %v562_v52  ;;  %v579_v49 = vadd.f32 %v4578_v21, %v578_v51  ;;  %v4592_v46 = vpop.eup %4591  ;;  %vm663_vm2 = vcmp.eq.f32.partialorder %v662_v32, 8.507059e+37  ;;  %v6185_v51 = vld [vmem:[%s9937_s2 + $0x1e0] sm:$0xff]  ;;  %10336 = vst [vmem:[#allocation22_spill] sm:$0xff] %v6407_v43  ;;  %v6419_v32 = vld [vmem:[%s9937_s2 + $0xd8] sm:$0xff] }
 0x170   :  { %v601_v39 = vmul.f32 %v4584_v45, %v600_v35  ;;  %v617_v56 = vadd.f32 %v4580_v26, %v616_v40  ;;  %4593 = vrcp.f32 %v636_v54  ;;  %v654_v2 = vmul.f32 %v4592_v46, %v6128_v25  ;;  %v6203_v35 = vld [vmem:[%s9937_s2 + $0x1f8] sm:$0xff]  ;;  %v6209_v40 = vld [vmem:[%s9937_s2 + $0x1c0] sm:$0xff]  ;;  %10338 = vst [vmem:[#allocation20_spill] sm:$0xff] %v6419_v32 }
 0x171   :  { %v564_v62 = vadd.f32 %v4582_v28, %v563_v57  ;;  %v583_v22 = vsel %vm582_vm4, %v4578_v21, %v579_v49  ;;  %v649_v30 = vand.u32 2147483648, %v636_v54  ;;  %vm659_vm11 = vweird.f32 %v4592_v46  ;;  %v6221_v57 = vld [vmem:[%s9937_s2 + $0x1d0] sm:$0xff]  ;;  %v6227_v49 = vld [vmem:[%s9937_s2 + $0x1d8] sm:$0xff] }
 0x172   :  { %v588_v5 = vsel %vm6145_vm15, %v587_v59, %v583_v22  ;;  %v602_v8 = vadd.f32 %v4584_v45, %v601_v39  ;;  %v621_v11 = vsel %vm620_vm5, %v4580_v26, %v617_v56  ;;  %v655_v15 = vsub.f32 1.0, %v654_v2  ;;  %vm660_vm15 = vmor %vm658_vm13, %vm659_vm11  ;;  %v6233_v59 = vld [vmem:[%s9937_s2 + $0x1a0] sm:$0xff]  ;;  %v6245_v39 = vld [vmem:[%s9937_s2 + $0x1b0] sm:$0xff] }
 0x173   :  { %v568_v55 = vsel %vm567_vm6, %v4582_v28, %v564_v62  ;;  %v626_v13 = vsel %vm623_vm7, %v625_v31, %v621_v11  ;;  %v677_v7 = vmul.f32 %v4586_v47, %v588_v5  ;;  %v647_v31 = vand.u32 2147483647, %v636_v54  ;;  %v6251_v56 = vld [vmem:[%s9937_s2 + $0x1b8] sm:$0xff]  ;;  %v6263_v62 = vld [vmem:[%s9937_s2 + $0x188] sm:$0xff]  ;;  %v6269_v22 = vld [vmem:[%s9937_s2 + $0x190] sm:$0xff] }
 0x174   :  { %v573_v16 = vsel %vm6139_vm14, %v572_v37, %v568_v55  ;;  %v606_v17 = vsel %vm605_vm8, %v4584_v45, %v602_v8  ;;  %v675_v9 = vmul.f32 %v671_v24, %v626_v13  ;;  %v656_v27 = vmul.f32 %v4592_v46, %v655_v15  ;;  %v6275_v2 = vld [vmem:[%s9937_s2 + $0x198] sm:$0xff]  ;;  %v6281_v5 = vld [vmem:[%s9937_s2 + $0x160] sm:$0xff]  ;;  %v6287_v8 = vld [vmem:[%s9937_s2 + $0x168] sm:$0xff] }
 0x175   :  { %v611_v19 = vsel %vm608_vm10, %v610_v41, %v606_v17  ;;  %v676_v20 = vmul.f32 %v4590_v6, %v573_v16  ;;  %vm643_vm14 = vweird.f32 %v636_v54  ;;  %v650_v33 = vor.u32 1.1754944e-38, %v649_v30  ;;  %v6197_v6 = vld [vmem:[%s9937_s2 + $0x1f0] sm:$0xff]  ;;  %v6257_v41 = vld [vmem:[%s9937_s2 + $0x180] sm:$0xff]  ;;  %v6299_v55 = vld [vmem:[%s9937_s2 + $0x178] sm:$0xff] }
 0x176   :  { %v4594_v21 = vpop.eup %4593  ;;  %v674_v23 = vmul.f32 %v670_v18, %v611_v19  ;;  %v6166_v26 = vadd.f32 %v677_v7, %v675_v9  ;;  %v657_v45 = vadd.f32 %v4592_v46, %v656_v27  ;;  %vm648_vm1 = vcmp.eq.f32.partialorder %v647_v31, 8.507059e+37  ;;  %v6293_v11 = vld [vmem:[%s9937_s2 + $0x170] sm:$0xff]  ;;  %v6305_v13 = vld [vmem:[%s9937_s2 + $0x140] sm:$0xff]  ;;  %v6311_v7 = vld [vmem:[%s9937_s2 + $0x148] sm:$0xff] }
 0x177   :  { %v639_v12 = vmul.f32 %v4594_v21, %v636_v54  ;;  %vm644_vm12 = vweird.f32 %v4594_v21  ;;  %v6215_v54 = vld [vmem:[%s9937_s2 + $0x1c8] sm:$0xff]  ;;  %v6317_v15 = vld [vmem:[%s9937_s2 + $0x150] sm:$0xff]  ;;  %v6323_v16 = vld [vmem:[%s9937_s2 + $0x158] sm:$0xff] }
 0x178   :  { %v6168_v28 = vadd.f32 %v676_v20, %v674_v23  ;;  %4595 = vtanh.f32 %v6166_v26  ;;  %vm645_vm0 = vmor %vm643_vm14, %vm644_vm12  ;;  %v661_v38 = vsel %vm660_vm15, %v4592_v46, %v657_v45  ;;  %v6239_v46 = vld [vmem:[%s9937_s2 + $0x1a8] sm:$0xff]  ;;  %10321 = vst [vmem:[#allocation5_spill] sm:$0xff] %v6317_v15  ;;  %v6329_v17 = vld [vmem:[%s9937_s2 + $0x120] sm:$0xff] }
 0x179   :  { %v640_v29 = vsub.f32 1.0, %v639_v12  ;;  %v666_v1 = vsel %vm663_vm2, %v665_v36, %v661_v38  ;;  %10322 = vst [vmem:[#allocation6_spill] sm:$0xff] %v6323_v16  ;;  %v6335_v9 = vld [vmem:[%s9937_s2 + $0x128] sm:$0xff]  ;;  %v6341_v19 = vld [vmem:[%s9937_s2 + $0x130] sm:$0xff]  ;;  %v6347_v20 = vld [vmem:[%s9937_s2 + $0x138] sm:$0xff] }
 0x17a   :  { %4597 = vtanh.f32 %v6168_v28  ;;  %10323 = vst [vmem:[#allocation9_spill] sm:$0xff] %v6329_v17  ;;  %v6359_v23 = vld [vmem:[%s9937_s2 + $0x108] sm:$0xff]  ;;  %v6365_v12 = vld [vmem:[%s9937_s2 + $0x110] sm:$0xff]  ;;  %v6371_v27 = vld [vmem:[%s9937_s2 + $0x118] sm:$0xff] }
 0x17b   :  { %v641_v24 = vmul.f32 %v4594_v21, %v640_v29  ;;  %10324 = vst [vmem:[#allocation10_spill] sm:$0xff] %v6335_v9  ;;  %v6377_v29 = vld [vmem:[%s9937_s2 + $0xe0] sm:$0xff]  ;;  %v6383_v30 = vld [vmem:[%s9937_s2 + $0xe8] sm:$0xff]  ;;  %v6395_v31 = vld [vmem:[%s9937_s2 + $0xf8] sm:$0xff] }
 0x17c   :  { %10325 = vst [vmem:[#allocation7_spill] sm:$0xff] %v6341_v19  ;;  %v6401_v45 = vld [vmem:[%s9937_s2 + $0xc0] sm:$0xff]  ;;  %v6443_v38 = vld [vmem:[%s9937_s2 + $0xb8] sm:$0xff]  ;;  %v6461_v36 = vld [vmem:[%s9937_s2 + $0x90] sm:$0xff] }
 0x17d   :  { %v642_v18 = vadd.f32 %v4594_v21, %v641_v24  ;;  %10326 = vst [vmem:[#allocation8_spill] sm:$0xff] %v6347_v20  ;;  %v6389_v24 = vld [vmem:[%s9937_s2 + $0xf0] sm:$0xff] }
 0x17e   :  { %v4596_v34 = vpop.eup %4595  ;;  %10328 = vst [vmem:[#allocation14_spill] sm:$0xff] %v6359_v23 }
 0x17f   :  { %v646_v37 = vsel %vm645_vm0, %v4594_v21, %v642_v18  ;;  %v6177_v53 = vmul.f32 %v4596_v34, %v666_v1  ;;  %v6353_v21 = vld [vmem:[%s9937_s2 + $0x100] sm:$0xff]  ;;  %10329 = vst [vmem:[#allocation11_spill] sm:$0xff] %v6365_v12  ;;  %v6413_v18 = vld [vmem:[%s9937_s2 + $0xd0] sm:$0xff]  ;;  %v6431_v34 = vld [vmem:[%s9937_s2 + $0xa8] sm:$0xff] }
 0x180   :  { %v4598_v47 = vpop.eup %4597  ;;  %v651_v4 = vsel %vm648_vm1, %v650_v33, %v646_v37  ;;  %10327 = vst [vmem:[#allocation13_spill] sm:$0xff] %v6353_v21  ;;  %v6425_v33 = vld [vmem:[%s9937_s2 + $0xa0] sm:$0xff]  ;;  %v6437_v37 = vld [vmem:[%s9937_s2 + $0xb0] sm:$0xff]  ;;  %v6467_v1 = vld [vmem:[%s9937_s2 + $0x98] sm:$0xff] }
 0x181   :  { %v6175_v61 = vmul.f32 %v4598_v47, %v651_v4  ;;  %10330 = vst [vmem:[#allocation12_spill] sm:$0xff] %v6371_v27  ;;  %v6449_v47 = vld [vmem:[%s9937_s2 + $0x80] sm:$0xff]  ;;  %v6455_v4 = vld [vmem:[%s9937_s2 + $0x88] sm:$0xff] }
 0x182   :  { %10331 = vst [vmem:[#allocation17_spill] sm:$0xff] %v6377_v29 }
 0x183   :  { %v686_v52 = vrot.slane %v6175_v61, 1  ;;  %10332 = vst [vmem:[#allocation18_spill] sm:$0xff] %v6383_v30 }
 0x184   :  { %10333 = vst [vmem:[#allocation15_spill] sm:$0xff] %v6389_v24 }
 0x185   :  { %v687_v25 = vsel %vm445_vm9, %v6177_v53, %v686_v52  ;;  %10334 = vst [vmem:[#allocation16_spill] sm:$0xff] %v6395_v31  ;;  %v6473_v52 = vld [vmem:[%s9937_s2 + $0x60] sm:$0xff] }
 0x186   :  { %705 = vmatmul.f32.vlgmr.msra.gmra.mxu0 %v687_v25  ;;  %725 = vmatmul.f32.vlgmr.msra.gmra.mxu1 %v687_v25  ;;  %10335 = vst [vmem:[#allocation21_spill] sm:$0xff] %v6401_v45 }
 0x187   :  { %745 = vmatmul.f32.vlgmr.msrb.gmra.mxu2 %v687_v25  ;;  %765 = vmatmul.f32.vlgmr.msrb.gmra.mxu3 %v687_v25  ;;  %10337 = vst [vmem:[#allocation19_spill] sm:$0xff] %v6413_v18  ;;  %v6479_v25 = vld [vmem:[%s9937_s2 + $0x68] sm:$0xff] }
 0x188   :  { %1181 = vmatpush.msra.mxu0 %v6185_v51  ;;  %1201 = vmatpush.msra.mxu1 %v6191_v58  ;;  %10339 = vst [vmem:[#allocation25_spill] sm:$0xff] %v6425_v33 }
 0x189   :  { %1221 = vmatpush.msrb.mxu2 %v6197_v6  ;;  %1241 = vmatpush.msrb.mxu3 %v6203_v35  ;;  %10340 = vst [vmem:[#allocation26_spill] sm:$0xff] %v6431_v34 }
 0x18a   :  { %1182 = vmatpush.msra.mxu0 %v6209_v40  ;;  %1202 = vmatpush.msra.mxu1 %v6215_v54  ;;  %10341 = vst [vmem:[#allocation23_spill] sm:$0xff] %v6437_v37 }
 0x18b   :  { %1222 = vmatpush.msrb.mxu2 %v6221_v57  ;;  %1242 = vmatpush.msrb.mxu3 %v6227_v49  ;;  %10342 = vst [vmem:[#allocation24_spill] sm:$0xff] %v6443_v38 }
 0x18c   :  { %1183 = vmatpush.msra.mxu0 %v6233_v59  ;;  %1203 = vmatpush.msra.mxu1 %v6239_v46  ;;  %10343 = vst [vmem:[#allocation29_spill] sm:$0xff] %v6449_v47 }
 0x18d   :  { %1223 = vmatpush.msrb.mxu2 %v6245_v39  ;;  %1243 = vmatpush.msrb.mxu3 %v6251_v56  ;;  %10344 = vst [vmem:[#allocation30_spill] sm:$0xff] %v6455_v4 }
 0x18e   :  { %1184 = vmatpush.msra.mxu0 %v6257_v41  ;;  %1204 = vmatpush.msra.mxu1 %v6263_v62  ;;  %10345 = vst [vmem:[#allocation27_spill] sm:$0xff] %v6461_v36 }
 0x18f   :  { %1224 = vmatpush.msrb.mxu2 %v6269_v22  ;;  %1244 = vmatpush.msrb.mxu3 %v6275_v2  ;;  %10346 = vst [vmem:[#allocation28_spill] sm:$0xff] %v6467_v1 }
 0x190   :  { %1185 = vmatpush.msra.mxu0 %v6281_v5  ;;  %1205 = vmatpush.msra.mxu1 %v6287_v8  ;;  %10347 = vst [vmem:[#allocation33_spill] sm:$0xff] %v6473_v52 }
 0x191   :  { %1225 = vmatpush.msrb.mxu2 %v6293_v11  ;;  %1245 = vmatpush.msrb.mxu3 %v6299_v55  ;;  %10348 = vst [vmem:[#allocation34_spill] sm:$0xff] %v6479_v25 }
 0x192   :  { %1186 = vmatpush.msra.mxu0 %v6305_v13  ;;  %1206 = vmatpush.msra.mxu1 %v6311_v7 }
 0x193   :  { %1226 = vmatpush.msrb.mxu2 %v6317_v15  ;;  %1246 = vmatpush.msrb.mxu3 %v6323_v16 }
 0x194   :  { %1187 = vmatpush.msra.mxu0 %v6329_v17  ;;  %1207 = vmatpush.msra.mxu1 %v6335_v9 }
 0x195   :  { %1227 = vmatpush.msrb.mxu2 %v6341_v19  ;;  %1247 = vmatpush.msrb.mxu3 %v6347_v20 }
 0x196   :  { %1188 = vmatpush.msra.mxu0 %v6353_v21  ;;  %1208 = vmatpush.msra.mxu1 %v6359_v23 }
 0x197   :  { %1228 = vmatpush.msrb.mxu2 %v6365_v12  ;;  %1248 = vmatpush.msrb.mxu3 %v6371_v27 }
 0x198   :  { %1189 = vmatpush.msra.mxu0 %v6377_v29  ;;  %1209 = vmatpush.msra.mxu1 %v6383_v30 }
 0x199   :  { %1229 = vmatpush.msrb.mxu2 %v6389_v24  ;;  %1249 = vmatpush.msrb.mxu3 %v6395_v31 }
 0x19a   :  { %1190 = vmatpush.msra.mxu0 %v6401_v45  ;;  %1210 = vmatpush.msra.mxu1 %v6407_v43 }
 0x19b   :  { %1230 = vmatpush.msrb.mxu2 %v6413_v18  ;;  %1250 = vmatpush.msrb.mxu3 %v6419_v32 }
 0x19c   :  { %1191 = vmatpush.msra.mxu0 %v6425_v33  ;;  %1211 = vmatpush.msra.mxu1 %v6431_v34 }
 0x19d   :  { %1231 = vmatpush.msrb.mxu2 %v6437_v37  ;;  %1251 = vmatpush.msrb.mxu3 %v6443_v38 }
 0x19e   :  { %1192 = vmatpush.msra.mxu0 %v6449_v47  ;;  %1212 = vmatpush.msra.mxu1 %v6455_v4 }
 0x19f   :  { %1232 = vmatpush.msrb.mxu2 %v6461_v36  ;;  %1252 = vmatpush.msrb.mxu3 %v6467_v1  ;;  %v6485_v36 = vld [vmem:[%s9937_s2 + $0x70] sm:$0xff]  ;;  %v6491_v1 = vld [vmem:[%s9937_s2 + $0x78] sm:$0xff] }
 0x1a0   :  { %1193 = vmatpush.msra.mxu0 %v6473_v52  ;;  %1213 = vmatpush.msra.mxu1 %v6479_v25  ;;  %10349 = vst [vmem:[#allocation31_spill] sm:$0xff] %v6485_v36  ;;  %v6497_v52 = vld [vmem:[%s9937_s2 + $0x40] sm:$0xff]  ;;  %v6503_v25 = vld [vmem:[%s9937_s2 + $0x48] sm:$0xff] }
 0x1a1   :  { %1233 = vmatpush.msrb.mxu2 %v6485_v36  ;;  %10350 = vst [vmem:[#allocation32_spill] sm:$0xff] %v6491_v1  ;;  %1253 = vmatpush.msrb.mxu3 %v6491_v1  ;;  %v6509_v36 = vld [vmem:[%s9937_s2 + $0x50] sm:$0xff]  ;;  %v6515_v1 = vld [vmem:[%s9937_s2 + $0x58] sm:$0xff] }
 0x1a2   :  { %10351 = vst [vmem:[#allocation36_spill] sm:$0xff] %v6497_v52  ;;  %1194 = vmatpush.msra.mxu0 %v6497_v52  ;;  %1214 = vmatpush.msra.mxu1 %v6503_v25  ;;  %v6521_v52 = vld [vmem:[%s9937_s2 + $0x20] sm:$0xff] }
 0x1a3   :  { %10352 = vst [vmem:[#allocation37_spill] sm:$0xff] %v6503_v25  ;;  %1234 = vmatpush.msrb.mxu2 %v6509_v36  ;;  %1254 = vmatpush.msrb.mxu3 %v6515_v1  ;;  %v6527_v25 = vld [vmem:[%s9937_s2 + $0x28] sm:$0xff] }
 0x1a4   :  { %10353 = vst [vmem:[#allocation35_spill] sm:$0xff] %v6509_v36  ;;  %1195 = vmatpush.msra.mxu0 %v6521_v52  ;;  %1215 = vmatpush.msra.mxu1 %v6527_v25  ;;  %v6533_v36 = vld [vmem:[%s9937_s2 + $0x30] sm:$0xff] }
 0x1a5   :  { %10354 = vst [vmem:[#allocation46_spill] sm:$0xff] %v6515_v1  ;;  %1235 = vmatpush.msrb.mxu2 %v6533_v36  ;;  %v6539_v1 = vld [vmem:[%s9937_s2 + $0x38] sm:$0xff] }
 0x1a6   :  { %10355 = vst [vmem:[#allocation47_spill] sm:$0xff] %v6521_v52  ;;  %1255 = vmatpush.msrb.mxu3 %v6539_v1  ;;  %v6545_v52 = vld [vmem:[%s9937_s2] sm:$0xff] }
 0x1a7   :  { %10356 = vst [vmem:[#allocation48_spill] sm:$0xff] %v6527_v25  ;;  %1196 = vmatpush.msra.mxu0 %v6545_v52  ;;  %v6551_v25 = vld [vmem:[%s9937_s2 + $0x8] sm:$0xff] }
 0x1a8   :  { %10357 = vst [vmem:[#allocation49_spill] sm:$0xff] %v6533_v36  ;;  %1216 = vmatpush.msra.mxu1 %v6551_v25  ;;  %v6557_v36 = vld [vmem:[%s9937_s2 + $0x10] sm:$0xff] }
 0x1a9   :  { %10358 = vst [vmem:[#allocation50_spill] sm:$0xff] %v6539_v1  ;;  %1236 = vmatpush.msrb.mxu2 %v6557_v36  ;;  %v6563_v1 = vld [vmem:[%s9937_s2 + $0x18] sm:$0xff] }
 0x1aa   :  { %10359 = vst [vmem:[#allocation51_spill] sm:$0xff] %v6545_v52  ;;  %1256 = vmatpush.msrb.mxu3 %v6563_v1 }
 0x1ab   :  { %10360 = vst [vmem:[#allocation52_spill] sm:$0xff] %v6551_v25 }
 0x1ac   :  { %10361 = vst [vmem:[#allocation53_spill] sm:$0xff] %v6557_v36 }
 0x1ad   :  { %10362 = vst [vmem:[#allocation54_spill] sm:$0xff] %v6563_v1 }
 0x203   :  { %v706_v52 = vpop.f32.mrf.mxu0  ;;  %v726_v4 = vpop.f32.mrf.mxu1 }
 0x204   :  { %v773_v47 = vrot.slane %v706_v52, 6  ;;  %v777_v38 = vrot.slane %v706_v52, 7  ;;  %v774_v37 = vrot.slane %v726_v4, 6  ;;  %v778_v25 = vrot.slane %v726_v4, 7 }
 0x206   :  { %v789_v34 = vadd.f32 %v773_v47, %v10311_v48  ;;  %v793_v33 = vadd.f32 %v777_v38, %v10309_v44  ;;  %v790_v32 = vadd.f32 %v774_v37, %v10312_v3  ;;  %v794_v36 = vadd.f32 %v778_v25, %v10310_v60 }
 0x208   :  { %v4448_v18 = vmul.f32 -1.442695, %v789_v34  ;;  %v4449_v43 = vmul.f32 -1.442695, %v793_v33  ;;  %v4450_v45 = vmul.f32 -1.442695, %v790_v32 }
 0x209   :  { %v4451_v31 = vmul.f32 -1.442695, %v794_v36 }
 0x20a   :  { %4599 = vpow2.f32 %v4448_v18  ;;  %v766_v1 = vpop.f32.mrf.mxu3  ;;  %v746_v52 = vpop.f32.mrf.mxu2 }
 0x20b   :  { %4601 = vpow2.f32 %v4449_v43  ;;  %v776_v24 = vrot.slane %v766_v1, 6  ;;  %v780_v30 = vrot.slane %v766_v1, 7  ;;  %v775_v4 = vrot.slane %v746_v52, 6 }
 0x20c   :  { %4603 = vpow2.f32 %v4450_v45  ;;  %v779_v25 = vrot.slane %v746_v52, 7 }
 0x20d   :  { %4605 = vpow2.f32 %v4451_v31  ;;  %v792_v47 = vadd.f32 %v776_v24, %v10314_v42  ;;  %v796_v38 = vadd.f32 %v780_v30, %v10313_v50  ;;  %v791_v30 = vadd.f32 %v775_v4, %v10316_v14 }
 0x20e   :  { %v795_v36 = vadd.f32 %v779_v25, %v10315_v10 }
 0x20f   :  { %v4452_v37 = vmul.f32 -1.442695, %v792_v47  ;;  %v4453_v34 = vmul.f32 -1.442695, %v796_v38 }
 0x210   :  { %v4600_v3 = vpop.eup %4599 }
 0x211   :  { %v4602_v33 = vpop.eup %4601  ;;  %v6572_v32 = vadd.f32 1.0, %v4600_v3  ;;  %4607 = vpow2.f32 %v4452_v37 }
 0x212   :  { %v4604_v18 = vpop.eup %4603  ;;  %v6574_v43 = vadd.f32 1.0, %v4602_v33  ;;  %4609 = vpow2.f32 %v4453_v34 }
 0x213   :  { %v4606_v45 = vpop.eup %4605  ;;  %4611 = vrcp.f32 %v6572_v32  ;;  %v6577_v31 = vadd.f32 1.0, %v4604_v18  ;;  %v814_v3 = vand.u32 2147483647, %v6572_v32  ;;  %v816_v47 = vand.u32 2147483648, %v6572_v32 }
 0x214   :  { %4613 = vrcp.f32 %v6574_v43  ;;  %v6581_v24 = vadd.f32 1.0, %v4606_v45  ;;  %vm810_vm3 = vweird.f32 %v6572_v32  ;;  %vm825_vm4 = vweird.f32 %v6574_v43 }
 0x215   :  { %4615 = vrcp.f32 %v6577_v31  ;;  %v854_v37 = vand.u32 2147483648, %v6577_v31  ;;  %vm848_vm5 = vweird.f32 %v6577_v31  ;;  %vm6600_vm6 = vcmp.eq.f32.partialorder %v814_v3, 8.507059e+37 }
 0x216   :  { %4617 = vrcp.f32 %v6581_v24  ;;  %v869_v33 = vand.u32 2147483648, %v6581_v24  ;;  %vm863_vm7 = vweird.f32 %v6581_v24  ;;  %v831_v10 = vand.u32 2147483648, %v6574_v43 }
 0x217   :  { %v4608_v1 = vpop.eup %4607  ;;  %4619 = vtanh.f32 %v791_v30  ;;  %v855_v42 = vor.u32 1.1754944e-38, %v854_v37  ;;  %v852_v60 = vand.u32 2147483647, %v6577_v31  ;;  %v867_v12 = vand.u32 2147483647, %v6581_v24 }
 0x218   :  { %v4610_v38 = vpop.eup %4609  ;;  %4621 = vtanh.f32 %v795_v36  ;;  %v6591_v34 = vadd.f32 1.0, %v4608_v1  ;;  %v829_v36 = vand.u32 2147483647, %v6574_v43  ;;  %v870_v27 = vor.u32 1.1754944e-38, %v869_v33 }
 0x219   :  { %v4612_v25 = vpop.eup %4611  ;;  %v6596_v18 = vadd.f32 1.0, %v4610_v38  ;;  %v817_v38 = vor.u32 1.1754944e-38, %v816_v47  ;;  %v832_v37 = vor.u32 1.1754944e-38, %v831_v10  ;;  %vm6618_vm13 = vcmp.eq.f32.partialorder %v852_v60, 8.507059e+37 }
 0x21a   :  { %v4614_v45 = vpop.eup %4613  ;;  %v806_v30 = vmul.f32 %v4612_v25, %v6572_v32  ;;  %4623 = vrcp.f32 %v6591_v34  ;;  %vm811_vm8 = vweird.f32 %v4612_v25  ;;  %vm6614_vm10 = vcmp.eq.f32.partialorder %v829_v36, 8.507059e+37 }
 0x21b   :  { %v4616_v1 = vpop.eup %4615  ;;  %v821_v4 = vmul.f32 %v4614_v45, %v6574_v43  ;;  %4625 = vrcp.f32 %v6596_v18  ;;  %vm826_vm11 = vweird.f32 %v4614_v45  ;;  %vm812_vm15 = vmor %vm810_vm3, %vm811_vm8  ;;  %vm6627_vm1 = vcmp.eq.f32.partialorder %v867_v12, 8.507059e+37 }
 0x21c   :  { %v4618_v14 = vpop.eup %4617  ;;  %v807_v50 = vsub.f32 1.0, %v806_v30  ;;  %v844_v3 = vmul.f32 %v4616_v1, %v6577_v31  ;;  %vm849_vm12 = vweird.f32 %v4616_v1  ;;  %vm827_vm0 = vmor %vm825_vm4, %vm826_vm11  ;;  %vm903_vm8 = vweird.f32 %v6596_v18 }
 0x21d   :  { %v4620_v44 = vpop.eup %4619  ;;  %v822_v48 = vsub.f32 1.0, %v821_v4  ;;  %v859_v29 = vmul.f32 %v4618_v14, %v6581_v24  ;;  %vm864_vm14 = vweird.f32 %v4618_v14  ;;  %vm850_vm2 = vmor %vm848_vm5, %vm849_vm12  ;;  %vm2159_vm12 = vcmask 1040384  }
 0x21e   :  { %v4622_v23 = vpop.eup %4621  ;;  %v845_v47 = vsub.f32 1.0, %v844_v3  ;;  %v808_v21 = vmul.f32 %v4612_v25, %v807_v50  ;;  %vm865_vm3 = vmor %vm863_vm7, %vm864_vm14  ;;  %vm10090_vm14 = vcmask 1041408  }
 0x21f   :  { %v860_v30 = vsub.f32 1.0, %v859_v29  ;;  %v823_v19 = vmul.f32 %v4614_v45, %v822_v48 }
 0x220   :  { %v4624_v9 = vpop.eup %4623  ;;  %v846_v17 = vmul.f32 %v4616_v1, %v845_v47  ;;  %v809_v4 = vadd.f32 %v4612_v25, %v808_v21 }
 0x221   :  { %v4626_v16 = vpop.eup %4625  ;;  %v861_v3 = vmul.f32 %v4618_v14, %v860_v30  ;;  %v824_v50 = vadd.f32 %v4614_v45, %v823_v19  ;;  %v884_v29 = vmul.f32 %v4624_v9, %v6591_v34  ;;  %vm889_vm4 = vweird.f32 %v4624_v9 }
 0x222   :  { %v813_v48 = vsel %vm812_vm15, %v4612_v25, %v809_v4  ;;  %v847_v10 = vadd.f32 %v4616_v1, %v846_v17  ;;  %v899_v60 = vmul.f32 %v4626_v16, %v6596_v18  ;;  %vm904_vm5 = vweird.f32 %v4626_v16 }
 0x223   :  { %v818_v32 = vsel %vm6600_vm6, %v817_v38, %v813_v48  ;;  %v828_v19 = vsel %vm827_vm0, %v4614_v45, %v824_v50  ;;  %v862_v36 = vadd.f32 %v4618_v14, %v861_v3  ;;  %v885_v47 = vsub.f32 1.0, %v884_v29 }
 0x224   :  { %v833_v17 = vsel %vm6614_vm10, %v832_v37, %v828_v19  ;;  %v851_v12 = vsel %vm850_vm2, %v4616_v1, %v847_v10  ;;  %v921_v43 = vmul.f32 %v4620_v44, %v818_v32  ;;  %v900_v25 = vsub.f32 1.0, %v899_v60  ;;  %vm905_vm10 = vmor %vm903_vm8, %vm904_vm5 }
 0x225   :  { %v856_v30 = vsel %vm6618_vm13, %v855_v42, %v851_v12  ;;  %v866_v31 = vsel %vm865_vm3, %v4618_v14, %v862_v36  ;;  %v922_v4 = vmul.f32 %v4622_v23, %v833_v17  ;;  %v886_v15 = vmul.f32 %v4624_v9, %v885_v47  ;;  %v10377_v17 = vld [vmem:[#allocation7_spill] sm:$0xff]  ;;  %v10378_v12 = vld [vmem:[#allocation8_spill] sm:$0xff] }
 0x226   :  { %v871_v52 = vsel %vm6627_vm1, %v870_v27, %v866_v31  ;;  %v10371_v45 = vrot.slane %v6168_v28, 7  ;;  %v901_v24 = vmul.f32 %v4626_v16, %v900_v25  ;;  %v10372_v3 = vrot.slane %v6166_v26, 7  ;;  %v10380_v25 = vld [vmem:[#allocation14_spill] sm:$0xff]  ;;  %v10382_v31 = vld [vmem:[#allocation12_spill] sm:$0xff] }
 0x227   :  { %v887_v1 = vadd.f32 %v4624_v9, %v886_v15  ;;  %v894_v42 = vand.u32 2147483648, %v6591_v34  ;;  %vm888_vm6 = vweird.f32 %v6591_v34  ;;  %v892_v28 = vand.u32 2147483647, %v6591_v34 }
 0x228   :  { %v919_v38 = vmul.f32 %v10371_v45, %v856_v30  ;;  %v920_v20 = vmul.f32 %v10372_v3, %v871_v52  ;;  %v902_v14 = vadd.f32 %v4626_v16, %v901_v24  ;;  %v909_v26 = vand.u32 2147483648, %v6596_v18  ;;  %vm890_vm7 = vmor %vm888_vm6, %vm889_vm4  ;;  %v10381_v30 = vld [vmem:[#allocation11_spill] sm:$0xff]  ;;  %v10384_v52 = vld [vmem:[#allocation18_spill] sm:$0xff] }
 0x229   :  { %v907_v15 = vand.u32 2147483647, %v6596_v18  ;;  %v891_v23 = vsel %vm890_vm7, %v4624_v9, %v887_v1  ;;  %v895_v27 = vor.u32 1.1754944e-38, %v894_v42  ;;  %vm893_vm11 = vcmp.eq.f32.partialorder %v892_v28, 8.507059e+37  ;;  %v10385_v45 = vld [vmem:[#allocation15_spill] sm:$0xff]  ;;  %v10387_v24 = vld [vmem:[#allocation21_spill] sm:$0xff] }
 0x22a   :  { %v6648_v37 = vadd.f32 %v921_v43, %v919_v38  ;;  %v6650_v44 = vadd.f32 %v922_v4, %v920_v20  ;;  %v906_v33 = vsel %vm905_vm10, %v4626_v16, %v902_v14  ;;  %v910_v50 = vor.u32 1.1754944e-38, %v909_v26  ;;  %v10379_v43 = vld [vmem:[#allocation13_spill] sm:$0xff]  ;;  %v10386_v38 = vld [vmem:[#allocation16_spill] sm:$0xff]  ;;  %v10388_v3 = vld [vmem:[#allocation22_spill] sm:$0xff] }
 0x22b   :  { %v896_v48 = vsel %vm893_vm11, %v895_v27, %v891_v23  ;;  %vm908_vm13 = vcmp.eq.f32.partialorder %v907_v15, 8.507059e+37  ;;  %v2160_v60 = vsel %vm2159_vm12, %v6033_v0, %v6175_v61  ;;  %v2161_v9 = vsel %vm2159_vm12, %v6031_v63, %v6177_v53  ;;  %v10373_v63 = vld [vmem:[#allocation5_spill] sm:$0xff]  ;;  %v10374_v0 = vld [vmem:[#allocation6_spill] sm:$0xff]  ;;  %v10389_v20 = vld [vmem:[#allocation19_spill] sm:$0xff] }
 0x22c   :  { %4627 = vtanh.f32 %v6648_v37  ;;  %v911_v34 = vsel %vm908_vm13, %v910_v50, %v906_v33  ;;  %v10375_v61 = vld [vmem:[#allocation9_spill] sm:$0xff]  ;;  %v10376_v53 = vld [vmem:[#allocation10_spill] sm:$0xff]  ;;  %v10390_v1 = vld [vmem:[#allocation20_spill] sm:$0xff] }
 0x22d   :  { %4629 = vtanh.f32 %v6650_v44  ;;  %v10383_v4 = vld [vmem:[#allocation17_spill] sm:$0xff]  ;;  %v10392_v14 = vld [vmem:[#allocation26_spill] sm:$0xff]  ;;  %v10393_v28 = vld [vmem:[#allocation23_spill] sm:$0xff] }
 0x22e   :  { %v10391_v42 = vld [vmem:[#allocation25_spill] sm:$0xff]  ;;  %v10394_v26 = vld [vmem:[#allocation24_spill] sm:$0xff]  ;;  %v10396_v23 = vld [vmem:[#allocation30_spill] sm:$0xff] }
 0x22f   :  { %v10395_v15 = vld [vmem:[#allocation29_spill] sm:$0xff]  ;;  %v10397_v27 = vld [vmem:[#allocation27_spill] sm:$0xff]  ;;  %v10398_v33 = vld [vmem:[#allocation28_spill] sm:$0xff] }
 0x230   :  { %v10399_v50 = vld [vmem:[#allocation33_spill] sm:$0xff] }
 0x232   :  { %v4628_v29 = vpop.eup %4627 }
 0x233   :  { %v4630_v10 = vpop.eup %4629  ;;  %v927_v21 = vmul.f32 %v4628_v29, %v896_v48  ;;  %v10400_v29 = vld [vmem:[#allocation34_spill] sm:$0xff]  ;;  %v10401_v48 = vld [vmem:[#allocation31_spill] sm:$0xff] }
 0x234   :  { %v928_v32 = vmul.f32 %v4630_v10, %v911_v34  ;;  %v10402_v10 = vld [vmem:[#allocation32_spill] sm:$0xff] }
 0x235   :  { %v931_v18 = vrot.slane %v927_v21, 2  ;;  %v6665_v16 = vsel %vm10090_vm14, %v2160_v60, %v927_v21  ;;  %v10403_v34 = vld [vmem:[#allocation36_spill] sm:$0xff]  ;;  %v10404_v21 = vld [vmem:[#allocation37_spill] sm:$0xff]  ;;  %v10405_v60 = vld [vmem:[#allocation35_spill] sm:$0xff] }
 0x236   :  { %v932_v19 = vrot.slane %v928_v32, 1  ;;  %v6668_v36 = vsel %vm10090_vm14, %v2161_v9, %v928_v32  ;;  %v10406_v32 = vld [vmem:[#allocation46_spill] sm:$0xff]  ;;  %v10407_v9 = vld [vmem:[#allocation47_spill] sm:$0xff] }
 0x238   :  { %v933_v47 = vsel %vm445_vm9, %v932_v19, %v931_v18  ;;  %v10408_v18 = vld [vmem:[#allocation48_spill] sm:$0xff]  ;;  %v10409_v19 = vld [vmem:[#allocation49_spill] sm:$0xff] }
 0x239   :  { %951 = vmatmul.f32.vlgmr.msrb.gmra.mxu0 %v933_v47  ;;  %971 = vmatmul.f32.vlgmr.msrb.gmra.mxu1 %v933_v47 }
 0x23a   :  { %991 = vmatmul.f32.vlgmr.msra.gmra.mxu2 %v933_v47  ;;  %1011 = vmatmul.f32.vlgmr.msra.gmra.mxu3 %v933_v47  ;;  %v10410_v47 = vld [vmem:[#allocation50_spill] sm:$0xff] }
 0x23b   :  { %1427 = vmatpush.msrb.mxu0 %v6185_v51  ;;  %1447 = vmatpush.msrb.mxu1 %v6191_v58 }
 0x23c   :  { %1467 = vmatpush.msra.mxu2 %v6197_v6  ;;  %1487 = vmatpush.msra.mxu3 %v6203_v35 }
 0x23d   :  { %1428 = vmatpush.msrb.mxu0 %v6209_v40  ;;  %1448 = vmatpush.msrb.mxu1 %v6215_v54 }
 0x23e   :  { %1468 = vmatpush.msra.mxu2 %v6221_v57  ;;  %1488 = vmatpush.msra.mxu3 %v6227_v49 }
 0x23f   :  { %1429 = vmatpush.msrb.mxu0 %v6233_v59  ;;  %1449 = vmatpush.msrb.mxu1 %v6239_v46 }
 0x240   :  { %1469 = vmatpush.msra.mxu2 %v6245_v39  ;;  %1489 = vmatpush.msra.mxu3 %v6251_v56 }
 0x241   :  { %1430 = vmatpush.msrb.mxu0 %v6257_v41  ;;  %1450 = vmatpush.msrb.mxu1 %v6263_v62 }
 0x242   :  { %1470 = vmatpush.msra.mxu2 %v6269_v22  ;;  %1490 = vmatpush.msra.mxu3 %v6275_v2 }
 0x243   :  { %1431 = vmatpush.msrb.mxu0 %v6281_v5  ;;  %1451 = vmatpush.msrb.mxu1 %v6287_v8 }
 0x244   :  { %1471 = vmatpush.msra.mxu2 %v6293_v11  ;;  %1491 = vmatpush.msra.mxu3 %v6299_v55 }
 0x245   :  { %1432 = vmatpush.msrb.mxu0 %v6305_v13  ;;  %1452 = vmatpush.msrb.mxu1 %v6311_v7 }
 0x246   :  { %1472 = vmatpush.msra.mxu2 %v10373_v63  ;;  %1492 = vmatpush.msra.mxu3 %v10374_v0 }
 0x247   :  { %1433 = vmatpush.msrb.mxu0 %v10375_v61  ;;  %1453 = vmatpush.msrb.mxu1 %v10376_v53 }
 0x248   :  { %1473 = vmatpush.msra.mxu2 %v10377_v17  ;;  %1493 = vmatpush.msra.mxu3 %v10378_v12 }
 0x249   :  { %1434 = vmatpush.msrb.mxu0 %v10379_v43  ;;  %1454 = vmatpush.msrb.mxu1 %v10380_v25 }
 0x24a   :  { %1474 = vmatpush.msra.mxu2 %v10381_v30  ;;  %1494 = vmatpush.msra.mxu3 %v10382_v31 }
 0x24b   :  { %1435 = vmatpush.msrb.mxu0 %v10383_v4  ;;  %1455 = vmatpush.msrb.mxu1 %v10384_v52 }
 0x24c   :  { %1475 = vmatpush.msra.mxu2 %v10385_v45  ;;  %1495 = vmatpush.msra.mxu3 %v10386_v38 }
 0x24d   :  { %1436 = vmatpush.msrb.mxu0 %v10387_v24  ;;  %1456 = vmatpush.msrb.mxu1 %v10388_v3 }
 0x24e   :  { %1476 = vmatpush.msra.mxu2 %v10389_v20  ;;  %1496 = vmatpush.msra.mxu3 %v10390_v1 }
 0x24f   :  { %1437 = vmatpush.msrb.mxu0 %v10391_v42  ;;  %1457 = vmatpush.msrb.mxu1 %v10392_v14 }
 0x250   :  { %1477 = vmatpush.msra.mxu2 %v10393_v28  ;;  %1497 = vmatpush.msra.mxu3 %v10394_v26  ;;  %v10418_v26 = vld [vmem:[#allocation41_spill] sm:$0xff] }
 0x251   :  { %1438 = vmatpush.msrb.mxu0 %v10395_v15  ;;  %1458 = vmatpush.msrb.mxu1 %v10396_v23  ;;  %v10416_v23 = vld [vmem:[#allocation39_spill] sm:$0xff]  ;;  %v10417_v15 = vld [vmem:[#allocation40_spill] sm:$0xff] }
 0x252   :  { %1478 = vmatpush.msra.mxu2 %v10397_v27  ;;  %1498 = vmatpush.msra.mxu3 %v10398_v33  ;;  %v10415_v27 = vld [vmem:[#allocation38_spill] sm:$0xff] }
 0x253   :  { %1439 = vmatpush.msrb.mxu0 %v10399_v50  ;;  %1459 = vmatpush.msrb.mxu1 %v10400_v29  ;;  %v10411_v29 = vld [vmem:[#allocation51_spill] sm:$0xff] }
 0x254   :  { %1479 = vmatpush.msra.mxu2 %v10401_v48  ;;  %1499 = vmatpush.msra.mxu3 %v10402_v10  ;;  %v10412_v48 = vld [vmem:[#allocation52_spill] sm:$0xff]  ;;  %v10413_v10 = vld [vmem:[#allocation53_spill] sm:$0xff] }
 0x255   :  { %1440 = vmatpush.msrb.mxu0 %v10403_v34  ;;  %1460 = vmatpush.msrb.mxu1 %v10404_v21  ;;  %v10414_v34 = vld [vmem:[#allocation54_spill] sm:$0xff] }
 0x256   :  { %1480 = vmatpush.msra.mxu2 %v10405_v60  ;;  %1500 = vmatpush.msra.mxu3 %v10406_v32 }
 0x257   :  { %1441 = vmatpush.msrb.mxu0 %v10407_v9  ;;  %1461 = vmatpush.msrb.mxu1 %v10408_v18 }
 0x258   :  { %1481 = vmatpush.msra.mxu2 %v10409_v19  ;;  %1501 = vmatpush.msra.mxu3 %v10410_v47 }
 0x259   :  { %1442 = vmatpush.msrb.mxu0 %v10411_v29  ;;  %1462 = vmatpush.msrb.mxu1 %v10412_v48 }
 0x25a   :  { %1482 = vmatpush.msra.mxu2 %v10413_v10  ;;  %1502 = vmatpush.msra.mxu3 %v10414_v34 }
 0x2b6   :  { %v952_v21 = vpop.f32.mrf.mxu0  ;;  %v972_v60 = vpop.f32.mrf.mxu1 }
 0x2b7   :  { %v1019_v50 = vrot.slane %v952_v21, 5  ;;  %v1023_v32 = vrot.slane %v952_v21, 6  ;;  %v1020_v33 = vrot.slane %v972_v60, 5  ;;  %v1024_v9 = vrot.slane %v972_v60, 6  ;;  %v10419_v60 = vld [vmem:[#allocation42_spill] sm:$0xff] }
 0x2b9   :  { %v1035_v18 = vadd.f32 %v1019_v50, %v10415_v27  ;;  %v1039_v19 = vadd.f32 %v1023_v32, %v10416_v23  ;;  %v1036_v47 = vadd.f32 %v1020_v33, %v10417_v15  ;;  %v1040_v29 = vadd.f32 %v1024_v9, %v10418_v26  ;;  %v10420_v27 = vld [vmem:[#allocation43_spill] sm:$0xff] }
 0x2bb   :  { %v4454_v28 = vmul.f32 -1.442695, %v1035_v18  ;;  %v4455_v48 = vmul.f32 -1.442695, %v1039_v19  ;;  %v4456_v14 = vmul.f32 -1.442695, %v1036_v47 }
 0x2bc   :  { %v4457_v10 = vmul.f32 -1.442695, %v1040_v29 }
 0x2bd   :  { %4631 = vpow2.f32 %v4454_v28  ;;  %v1012_v34 = vpop.f32.mrf.mxu3  ;;  %v992_v21 = vpop.f32.mrf.mxu2 }
 0x2be   :  { %4633 = vpow2.f32 %v4455_v48  ;;  %v1022_v42 = vrot.slane %v1012_v34, 5  ;;  %v1026_v1 = vrot.slane %v1012_v34, 6  ;;  %v1021_v23 = vrot.slane %v992_v21, 5  ;;  %v10422_v34 = vld [vmem:[#allocation45_spill] sm:$0xff] }
 0x2bf   :  { %4635 = vpow2.f32 %v4456_v14  ;;  %v1025_v9 = vrot.slane %v992_v21, 6 }
 0x2c0   :  { %4637 = vpow2.f32 %v4457_v10  ;;  %v1038_v50 = vadd.f32 %v1022_v42, %v10419_v60  ;;  %v1042_v32 = vadd.f32 %v1026_v1, %v10420_v27  ;;  %v10421_v42 = vld [vmem:[#allocation44_spill] sm:$0xff] }
 0x2c1   :  { %v1037_v1 = vadd.f32 %v1021_v23, %v10421_v42  ;;  %v1041_v21 = vadd.f32 %v1025_v9, %v10422_v34  ;;  %v10431_v23 = vrot.slane %v6648_v37, 7 }
 0x2c2   :  { %v4458_v33 = vmul.f32 -1.442695, %v1038_v50  ;;  %v4459_v18 = vmul.f32 -1.442695, %v1042_v32 }
 0x2c3   :  { %v4632_v15 = vpop.eup %4631 }
 0x2c4   :  { %v4634_v19 = vpop.eup %4633  ;;  %v6741_v47 = vadd.f32 1.0, %v4632_v15  ;;  %4639 = vpow2.f32 %v4458_v33 }
 0x2c5   :  { %v4636_v28 = vpop.eup %4635  ;;  %v6743_v29 = vadd.f32 1.0, %v4634_v19  ;;  %4641 = vpow2.f32 %v4459_v18 }
 0x2c6   :  { %v4638_v14 = vpop.eup %4637  ;;  %4643 = vrcp.f32 %v6741_v47  ;;  %v6746_v48 = vadd.f32 1.0, %v4636_v28  ;;  %v1060_v15 = vand.u32 2147483647, %v6741_v47  ;;  %v1062_v33 = vand.u32 2147483648, %v6741_v47 }
 0x2c7   :  { %4645 = vrcp.f32 %v6743_v29  ;;  %v6750_v10 = vadd.f32 1.0, %v4638_v14  ;;  %vm1056_vm15 = vweird.f32 %v6741_v47  ;;  %vm1071_vm0 = vweird.f32 %v6743_v29 }
 0x2c8   :  { %4647 = vrcp.f32 %v6746_v48  ;;  %v1100_v19 = vand.u32 2147483648, %v6746_v48  ;;  %vm1094_vm1 = vweird.f32 %v6746_v48  ;;  %vm6769_vm2 = vcmp.eq.f32.partialorder %v1060_v15, 8.507059e+37 }
 0x2c9   :  { %4649 = vrcp.f32 %v6750_v10  ;;  %v1115_v14 = vand.u32 2147483648, %v6750_v10  ;;  %vm1109_vm3 = vweird.f32 %v6750_v10  ;;  %v1077_v27 = vand.u32 2147483648, %v6743_v29 }
 0x2ca   :  { %v4640_v50 = vpop.eup %4639  ;;  %4651 = vtanh.f32 %v1037_v1  ;;  %v1101_v20 = vor.u32 1.1754944e-38, %v1100_v19  ;;  %v1098_v3 = vand.u32 2147483647, %v6746_v48  ;;  %v1113_v4 = vand.u32 2147483647, %v6750_v10 }
 0x2cb   :  { %v4642_v18 = vpop.eup %4641  ;;  %4653 = vtanh.f32 %v1041_v21  ;;  %v6760_v28 = vadd.f32 1.0, %v4640_v50  ;;  %v1075_v21 = vand.u32 2147483647, %v6743_v29  ;;  %v1116_v52 = vor.u32 1.1754944e-38, %v1115_v14 }
 0x2cc   :  { %v4644_v9 = vpop.eup %4643  ;;  %v6765_v34 = vadd.f32 1.0, %v4642_v18  ;;  %v1063_v18 = vor.u32 1.1754944e-38, %v1062_v33  ;;  %v1078_v19 = vor.u32 1.1754944e-38, %v1077_v27  ;;  %vm6787_vm8 = vcmp.eq.f32.partialorder %v1098_v3, 8.507059e+37 }
 0x2cd   :  { %v4646_v32 = vpop.eup %4645  ;;  %v1052_v1 = vmul.f32 %v4644_v9, %v6741_v47  ;;  %4655 = vrcp.f32 %v6760_v28  ;;  %vm1057_vm4 = vweird.f32 %v4644_v9  ;;  %vm6783_vm5 = vcmp.eq.f32.partialorder %v1075_v21, 8.507059e+37 }
 0x2ce   :  { %v4648_v50 = vpop.eup %4647  ;;  %v1067_v42 = vmul.f32 %v4646_v32, %v6743_v29  ;;  %4657 = vrcp.f32 %v6765_v34  ;;  %vm1072_vm6 = vweird.f32 %v4646_v32  ;;  %vm1058_vm11 = vmor %vm1056_vm15, %vm1057_vm4  ;;  %vm6796_vm13 = vcmp.eq.f32.partialorder %v1113_v4, 8.507059e+37 }
 0x2cf   :  { %v4650_v60 = vpop.eup %4649  ;;  %v1053_v26 = vsub.f32 1.0, %v1052_v1  ;;  %v1090_v15 = vmul.f32 %v4648_v50, %v6746_v48  ;;  %vm1095_vm7 = vweird.f32 %v4648_v50  ;;  %vm1073_vm12 = vmor %vm1071_vm0, %vm1072_vm6  ;;  %v1138_v37 = vand.u32 2147483647, %v6760_v28 }
 0x2d0   :  { %v4652_v24 = vpop.eup %4651  ;;  %v1068_v38 = vsub.f32 1.0, %v1067_v42  ;;  %v1105_v45 = vmul.f32 %v4650_v60, %v6750_v10  ;;  %vm1110_vm10 = vweird.f32 %v4650_v60  ;;  %vm1096_vm14 = vmor %vm1094_vm1, %vm1095_vm7  ;;  %vm1134_vm1 = vweird.f32 %v6760_v28 }
 0x2d1   :  { %v4654_v31 = vpop.eup %4653  ;;  %v1091_v33 = vsub.f32 1.0, %v1090_v15  ;;  %v1054_v30 = vmul.f32 %v4644_v9, %v1053_v26  ;;  %vm1111_vm15 = vmor %vm1109_vm3, %vm1110_vm10  ;;  %vm1149_vm3 = vweird.f32 %v6765_v34  ;;  %vm2165_vm7 = vcmask 1042432  }
 0x2d2   :  { %v1106_v1 = vsub.f32 1.0, %v1105_v45  ;;  %v1069_v43 = vmul.f32 %v4646_v32, %v1068_v38 }
 0x2d3   :  { %v4656_v12 = vpop.eup %4655  ;;  %v1092_v17 = vmul.f32 %v4648_v50, %v1091_v33  ;;  %v1055_v42 = vadd.f32 %v4644_v9, %v1054_v30 }
 0x2d4   :  { %v4658_v53 = vpop.eup %4657  ;;  %v1107_v15 = vmul.f32 %v4650_v60, %v1106_v1  ;;  %v1070_v26 = vadd.f32 %v4646_v32, %v1069_v43  ;;  %v1130_v45 = vmul.f32 %v4656_v12, %v6760_v28 }
 0x2d5   :  { %v1059_v38 = vsel %vm1058_vm11, %v4644_v9, %v1055_v42  ;;  %v1093_v27 = vadd.f32 %v4648_v50, %v1092_v17  ;;  %v1145_v3 = vmul.f32 %v4658_v53, %v6765_v34  ;;  %vm1150_vm0 = vweird.f32 %v4658_v53 }
 0x2d6   :  { %v1064_v47 = vsel %vm6769_vm2, %v1063_v18, %v1059_v38  ;;  %v1074_v43 = vsel %vm1073_vm12, %v4646_v32, %v1070_v26  ;;  %v1108_v21 = vadd.f32 %v4650_v60, %v1107_v15  ;;  %v1131_v33 = vsub.f32 1.0, %v1130_v45  ;;  %vm1151_vm4 = vmor %vm1149_vm3, %vm1150_vm0 }
 0x2d7   :  { %v1079_v17 = vsel %vm6783_vm5, %v1078_v19, %v1074_v43  ;;  %v1097_v4 = vsel %vm1096_vm14, %v4648_v50, %v1093_v27  ;;  %v1167_v29 = vmul.f32 %v4652_v24, %v1064_v47  ;;  %v1146_v9 = vsub.f32 1.0, %v1145_v3 }
 0x2d8   :  { %v1102_v1 = vsel %vm6787_vm8, %v1101_v20, %v1097_v4  ;;  %v1112_v48 = vsel %vm1111_vm15, %v4650_v60, %v1108_v21  ;;  %v1168_v42 = vmul.f32 %v4654_v31, %v1079_v17  ;;  %v1132_v61 = vmul.f32 %v4656_v12, %v1131_v33  ;;  %v10460_v33 = vld [vmem:[#allocation32_spill] sm:$0xff]  ;;  %v10462_v4 = vld [vmem:[#allocation37_spill] sm:$0xff] }
 0x2d9   :  { %v1117_v32 = vsel %vm6796_vm13, %v1116_v52, %v1112_v48  ;;  %v1165_v18 = vmul.f32 %v10431_v23, %v1102_v1  ;;  %v1147_v10 = vmul.f32 %v4658_v53, %v1146_v9  ;;  %v10432_v15 = vrot.slane %v6650_v44, 7  ;;  %v10461_v17 = vld [vmem:[#allocation36_spill] sm:$0xff]  ;;  %v10464_v9 = vld [vmem:[#allocation46_spill] sm:$0xff]  ;;  %v10465_v1 = vld [vmem:[#allocation47_spill] sm:$0xff] }
 0x2da   :  { %v1133_v50 = vadd.f32 %v4656_v12, %v1132_v61  ;;  %vm1135_vm14 = vweird.f32 %v4656_v12  ;;  %v1140_v31 = vand.u32 2147483648, %v6760_v28  ;;  %v1155_v44 = vand.u32 2147483648, %v6765_v34  ;;  %v10466_v48 = vld [vmem:[#allocation48_spill] sm:$0xff]  ;;  %v10469_v23 = vld [vmem:[#allocation51_spill] sm:$0xff] }
 0x2db   :  { %v1166_v25 = vmul.f32 %v10432_v15, %v1117_v32  ;;  %v6817_v19 = vadd.f32 %v1167_v29, %v1165_v18  ;;  %v1148_v20 = vadd.f32 %v4658_v53, %v1147_v10  ;;  %vm1136_vm2 = vmor %vm1134_vm1, %vm1135_vm14  ;;  %v1153_v61 = vand.u32 2147483647, %v6765_v34  ;;  %v10459_v34 = vld [vmem:[#allocation31_spill] sm:$0xff]  ;;  %v10468_v32 = vld [vmem:[#allocation50_spill] sm:$0xff] }
 0x2dc   :  { %v1137_v52 = vsel %vm1136_vm2, %v4656_v12, %v1133_v50  ;;  %v1141_v60 = vor.u32 1.1754944e-38, %v1140_v31  ;;  %vm1139_vm5 = vcmp.eq.f32.partialorder %v1138_v37, 8.507059e+37  ;;  %v1156_v26 = vor.u32 1.1754944e-38, %v1155_v44  ;;  %v10463_v29 = vld [vmem:[#allocation35_spill] sm:$0xff]  ;;  %v10470_v18 = vld [vmem:[#allocation52_spill] sm:$0xff]  ;;  %v10471_v10 = vld [vmem:[#allocation53_spill] sm:$0xff] }
 0x2dd   :  { %v6819_v24 = vadd.f32 %v1168_v42, %v1166_v25  ;;  %4659 = vtanh.f32 %v6817_v19  ;;  %v1152_v14 = vsel %vm1151_vm4, %v4658_v53, %v1148_v20  ;;  %vm1154_vm6 = vcmp.eq.f32.partialorder %v1153_v61, 8.507059e+37  ;;  %v10467_v42 = vld [vmem:[#allocation49_spill] sm:$0xff]  ;;  %v10472_v15 = vld [vmem:[#allocation54_spill] sm:$0xff] }
 0x2de   :  { %v1142_v38 = vsel %vm1139_vm5, %v1141_v60, %v1137_v52  ;;  %v1157_v30 = vsel %vm1154_vm6, %v1156_v26, %v1152_v14  ;;  %v10473_v61 = vld [vmem:[#allocation38_spill] sm:$0xff]  ;;  %v10474_v60 = vld [vmem:[#allocation39_spill] sm:$0xff]  ;;  %v10475_v26 = vld [vmem:[#allocation40_spill] sm:$0xff] }
 0x2df   :  { %4661 = vtanh.f32 %v6819_v24 }
 0x2e3   :  { %v4660_v45 = vpop.eup %4659 }
 0x2e4   :  { %v1173_v28 = vmul.f32 %v4660_v45, %v1142_v38  ;;  %v10476_v38 = vld [vmem:[#allocation41_spill] sm:$0xff] }
 0x2e5   :  { %v4662_v27 = vpop.eup %4661 }
 0x2e6   :  { %v1174_v3 = vmul.f32 %v4662_v27, %v1157_v30  ;;  %v1177_v47 = vrot.slane %v1173_v28, 3  ;;  %v6830_v43 = vsel %vm2165_vm7, %v6665_v16, %v1173_v28  ;;  %v10455_v16 = vld [vmem:[#allocation27_spill] sm:$0xff] }
 0x2e8   :  { %v1178_v21 = vrot.slane %v1174_v3, 2  ;;  %v6833_v12 = vsel %vm2165_vm7, %v6668_v36, %v1174_v3  ;;  %v10456_v36 = vld [vmem:[#allocation28_spill] sm:$0xff] }
 0x2ea   :  { %v1179_v53 = vsel %vm445_vm9, %v1178_v21, %v1177_v47 }
 0x2eb   :  { %1197 = vmatmul.f32.vlgmr.msra.gmra.mxu0 %v1179_v53  ;;  %1217 = vmatmul.f32.vlgmr.msra.gmra.mxu1 %v1179_v53 }
 0x2ec   :  { %1237 = vmatmul.f32.vlgmr.msrb.gmra.mxu2 %v1179_v53  ;;  %1257 = vmatmul.f32.vlgmr.msrb.gmra.mxu3 %v1179_v53 }
 0x2ed   :  { %1673 = vmatpush.msra.mxu0 %v6185_v51  ;;  %1693 = vmatpush.msra.mxu1 %v6191_v58  ;;  %v10433_v51 = vld [vmem:[#allocation9_spill] sm:$0xff]  ;;  %v10434_v58 = vld [vmem:[#allocation10_spill] sm:$0xff] }
 0x2ee   :  { %1713 = vmatpush.msrb.mxu2 %v6197_v6  ;;  %1733 = vmatpush.msrb.mxu3 %v6203_v35  ;;  %v10435_v6 = vld [vmem:[#allocation7_spill] sm:$0xff]  ;;  %v10436_v35 = vld [vmem:[#allocation8_spill] sm:$0xff] }
 0x2ef   :  { %1674 = vmatpush.msra.mxu0 %v6209_v40  ;;  %1694 = vmatpush.msra.mxu1 %v6215_v54  ;;  %v10437_v40 = vld [vmem:[#allocation13_spill] sm:$0xff]  ;;  %v10438_v54 = vld [vmem:[#allocation14_spill] sm:$0xff] }
 0x2f0   :  { %1714 = vmatpush.msrb.mxu2 %v6221_v57  ;;  %1734 = vmatpush.msrb.mxu3 %v6227_v49  ;;  %v10439_v57 = vld [vmem:[#allocation11_spill] sm:$0xff]  ;;  %v10440_v49 = vld [vmem:[#allocation12_spill] sm:$0xff] }
 0x2f1   :  { %1675 = vmatpush.msra.mxu0 %v6233_v59  ;;  %1695 = vmatpush.msra.mxu1 %v6239_v46  ;;  %v10441_v59 = vld [vmem:[#allocation17_spill] sm:$0xff]  ;;  %v10442_v46 = vld [vmem:[#allocation18_spill] sm:$0xff] }
 0x2f2   :  { %1715 = vmatpush.msrb.mxu2 %v6245_v39  ;;  %1735 = vmatpush.msrb.mxu3 %v6251_v56  ;;  %v10443_v39 = vld [vmem:[#allocation15_spill] sm:$0xff]  ;;  %v10444_v56 = vld [vmem:[#allocation16_spill] sm:$0xff] }
 0x2f3   :  { %1676 = vmatpush.msra.mxu0 %v6257_v41  ;;  %1696 = vmatpush.msra.mxu1 %v6263_v62  ;;  %v10445_v41 = vld [vmem:[#allocation21_spill] sm:$0xff]  ;;  %v10446_v62 = vld [vmem:[#allocation22_spill] sm:$0xff] }
 0x2f4   :  { %1716 = vmatpush.msrb.mxu2 %v6269_v22  ;;  %1736 = vmatpush.msrb.mxu3 %v6275_v2  ;;  %v10447_v22 = vld [vmem:[#allocation19_spill] sm:$0xff]  ;;  %v10448_v2 = vld [vmem:[#allocation20_spill] sm:$0xff] }
 0x2f5   :  { %1677 = vmatpush.msra.mxu0 %v6281_v5  ;;  %1697 = vmatpush.msra.mxu1 %v6287_v8  ;;  %v10449_v5 = vld [vmem:[#allocation25_spill] sm:$0xff]  ;;  %v10450_v8 = vld [vmem:[#allocation26_spill] sm:$0xff] }
 0x2f6   :  { %1717 = vmatpush.msrb.mxu2 %v6293_v11  ;;  %1737 = vmatpush.msrb.mxu3 %v6299_v55  ;;  %v10451_v11 = vld [vmem:[#allocation23_spill] sm:$0xff]  ;;  %v10452_v55 = vld [vmem:[#allocation24_spill] sm:$0xff] }
 0x2f7   :  { %1678 = vmatpush.msra.mxu0 %v6305_v13  ;;  %1698 = vmatpush.msra.mxu1 %v6311_v7  ;;  %v10453_v13 = vld [vmem:[#allocation29_spill] sm:$0xff]  ;;  %v10454_v7 = vld [vmem:[#allocation30_spill] sm:$0xff] }
 0x2f8   :  { %1718 = vmatpush.msrb.mxu2 %v10373_v63  ;;  %1738 = vmatpush.msrb.mxu3 %v10374_v0  ;;  %v10457_v63 = vld [vmem:[#allocation33_spill] sm:$0xff]  ;;  %v10458_v0 = vld [vmem:[#allocation34_spill] sm:$0xff] }
 0x2f9   :  { %1679 = vmatpush.msra.mxu0 %v10433_v51  ;;  %1699 = vmatpush.msra.mxu1 %v10434_v58 }
 0x2fa   :  { %1719 = vmatpush.msrb.mxu2 %v10435_v6  ;;  %1739 = vmatpush.msrb.mxu3 %v10436_v35  ;;  %v10477_v6 = vld [vmem:[#allocation42_spill] sm:$0xff] }
 0x2fb   :  { %1680 = vmatpush.msra.mxu0 %v10437_v40  ;;  %1700 = vmatpush.msra.mxu1 %v10438_v54  ;;  %v10478_v40 = vld [vmem:[#allocation43_spill] sm:$0xff] }
 0x2fc   :  { %1720 = vmatpush.msrb.mxu2 %v10439_v57  ;;  %1740 = vmatpush.msrb.mxu3 %v10440_v49 }
 0x2fd   :  { %1681 = vmatpush.msra.mxu0 %v10441_v59  ;;  %1701 = vmatpush.msra.mxu1 %v10442_v46 }
 0x2fe   :  { %1721 = vmatpush.msrb.mxu2 %v10443_v39  ;;  %1741 = vmatpush.msrb.mxu3 %v10444_v56 }
 0x2ff   :  { %1682 = vmatpush.msra.mxu0 %v10445_v41  ;;  %1702 = vmatpush.msra.mxu1 %v10446_v62 }
 0x300   :  { %1722 = vmatpush.msrb.mxu2 %v10447_v22  ;;  %1742 = vmatpush.msrb.mxu3 %v10448_v2 }
 0x301   :  { %1683 = vmatpush.msra.mxu0 %v10449_v5  ;;  %1703 = vmatpush.msra.mxu1 %v10450_v8  ;;  %v10479_v8 = vld [vmem:[#allocation44_spill] sm:$0xff] }
 0x302   :  { %1723 = vmatpush.msrb.mxu2 %v10451_v11  ;;  %1743 = vmatpush.msrb.mxu3 %v10452_v55 }
 0x303   :  { %1684 = vmatpush.msra.mxu0 %v10453_v13  ;;  %1704 = vmatpush.msra.mxu1 %v10454_v7  ;;  %v10480_v13 = vld [vmem:[#allocation45_spill] sm:$0xff] }
 0x304   :  { %1724 = vmatpush.msrb.mxu2 %v10455_v16  ;;  %1744 = vmatpush.msrb.mxu3 %v10456_v36 }
 0x305   :  { %1685 = vmatpush.msra.mxu0 %v10457_v63  ;;  %1705 = vmatpush.msra.mxu1 %v10458_v0  ;;  %v1407_v63 = vrot.slane %v6817_v19, 7 }
 0x306   :  { %1725 = vmatpush.msrb.mxu2 %v10459_v34  ;;  %1745 = vmatpush.msrb.mxu3 %v10460_v33  ;;  %v1408_v33 = vrot.slane %v6819_v24, 7 }
 0x307   :  { %1686 = vmatpush.msra.mxu0 %v10461_v17  ;;  %1706 = vmatpush.msra.mxu1 %v10462_v4 }
 0x308   :  { %1726 = vmatpush.msrb.mxu2 %v10463_v29  ;;  %1746 = vmatpush.msrb.mxu3 %v10464_v9 }
 0x309   :  { %1687 = vmatpush.msra.mxu0 %v10465_v1  ;;  %1707 = vmatpush.msra.mxu1 %v10466_v48 }
 0x30a   :  { %1727 = vmatpush.msrb.mxu2 %v10467_v42  ;;  %1747 = vmatpush.msrb.mxu3 %v10468_v32 }
 0x30b   :  { %1688 = vmatpush.msra.mxu0 %v10469_v23  ;;  %1708 = vmatpush.msra.mxu1 %v10470_v18 }
 0x30c   :  { %1728 = vmatpush.msrb.mxu2 %v10471_v10  ;;  %1748 = vmatpush.msrb.mxu3 %v10472_v15 }
 0x368   :  { %v1198_v25 = vpop.f32.mrf.mxu0  ;;  %v1218_v50 = vpop.f32.mrf.mxu1 }
 0x369   :  { %v1265_v31 = vrot.slane %v1198_v25, 4  ;;  %v1269_v20 = vrot.slane %v1198_v25, 5  ;;  %v1266_v37 = vrot.slane %v1218_v50, 4  ;;  %v1270_v44 = vrot.slane %v1218_v50, 5 }
 0x36b   :  { %v1281_v52 = vadd.f32 %v1265_v31, %v10473_v61  ;;  %v1285_v14 = vadd.f32 %v1269_v20, %v10474_v60  ;;  %v1282_v45 = vadd.f32 %v1266_v37, %v10475_v26  ;;  %v1286_v27 = vadd.f32 %v1270_v44, %v10476_v38 }
 0x36d   :  { %v4460_v30 = vmul.f32 -1.442695, %v1281_v52  ;;  %v4461_v28 = vmul.f32 -1.442695, %v1285_v14  ;;  %v4462_v3 = vmul.f32 -1.442695, %v1282_v45 }
 0x36e   :  { %v4463_v47 = vmul.f32 -1.442695, %v1286_v27 }
 0x36f   :  { %4663 = vpow2.f32 %v4460_v30  ;;  %v1258_v21 = vpop.f32.mrf.mxu3  ;;  %v1238_v51 = vpop.f32.mrf.mxu2 }
 0x370   :  { %4665 = vpow2.f32 %v4461_v28  ;;  %v1268_v53 = vrot.slane %v1258_v21, 4  ;;  %v1272_v58 = vrot.slane %v1258_v21, 5  ;;  %v1267_v57 = vrot.slane %v1238_v51, 4 }
 0x371   :  { %4667 = vpow2.f32 %v4462_v3  ;;  %v1271_v46 = vrot.slane %v1238_v51, 5 }
 0x372   :  { %4669 = vpow2.f32 %v4463_v47  ;;  %v1284_v35 = vadd.f32 %v1268_v53, %v10477_v6  ;;  %v1288_v54 = vadd.f32 %v1272_v58, %v10478_v40  ;;  %v1283_v11 = vadd.f32 %v1267_v57, %v10479_v8 }
 0x373   :  { %v1287_v7 = vadd.f32 %v1271_v46, %v10480_v13 }
 0x374   :  { %v4464_v49 = vmul.f32 -1.442695, %v1284_v35  ;;  %v4465_v39 = vmul.f32 -1.442695, %v1288_v54 }
 0x375   :  { %v4664_v59 = vpop.eup %4663 }
 0x376   :  { %v4666_v56 = vpop.eup %4665  ;;  %v6906_v41 = vadd.f32 1.0, %v4664_v59  ;;  %4671 = vpow2.f32 %v4464_v49  ;;  %v5119_v49 = vld [vmem:[%s9937_s2 + $0x1a0] sm:$0xff] }
 0x377   :  { %v4668_v62 = vpop.eup %4667  ;;  %v6908_v22 = vadd.f32 1.0, %v4666_v56  ;;  %4673 = vpow2.f32 %v4465_v39 }
 0x378   :  { %v4670_v2 = vpop.eup %4669  ;;  %4675 = vrcp.f32 %v6906_v41  ;;  %v6911_v5 = vadd.f32 1.0, %v4668_v62  ;;  %v1306_v16 = vand.u32 2147483647, %v6906_v41  ;;  %v1308_v0 = vand.u32 2147483648, %v6906_v41 }
 0x379   :  { %4677 = vrcp.f32 %v6908_v22  ;;  %v6915_v55 = vadd.f32 1.0, %v4670_v2  ;;  %vm1302_vm8 = vweird.f32 %v6906_v41  ;;  %vm1317_vm10 = vweird.f32 %v6908_v22 }
 0x37a   :  { %4679 = vrcp.f32 %v6911_v5  ;;  %v1346_v17 = vand.u32 2147483648, %v6911_v5  ;;  %vm1340_vm11 = vweird.f32 %v6911_v5  ;;  %vm6934_vm12 = vcmp.eq.f32.partialorder %v1306_v16, 8.507059e+37 }
 0x37b   :  { %4681 = vrcp.f32 %v6915_v55  ;;  %v1361_v9 = vand.u32 2147483648, %v6915_v55  ;;  %v1321_v23 = vand.u32 2147483647, %v6908_v22  ;;  %vm1355_vm13 = vweird.f32 %v6915_v55 }
 0x37c   :  { %v4672_v36 = vpop.eup %4671  ;;  %4683 = vtanh.f32 %v1283_v11  ;;  %v1309_v15 = vor.u32 1.1754944e-38, %v1308_v0  ;;  %v1323_v25 = vand.u32 2147483648, %v6908_v22  ;;  %v1347_v37 = vor.u32 1.1754944e-38, %v1346_v17  ;;  %v5126_v11 = vld [vmem:[%s9937_s2 + $0x198] sm:$0xff] }
 0x37d   :  { %v4674_v34 = vpop.eup %4673  ;;  %4685 = vtanh.f32 %v1287_v7  ;;  %v6925_v4 = vadd.f32 1.0, %v4672_v36  ;;  %v1344_v44 = vand.u32 2147483647, %v6911_v5  ;;  %v1362_v27 = vor.u32 1.1754944e-38, %v1361_v9 }
 0x37e   :  { %v4676_v29 = vpop.eup %4675  ;;  %v6930_v1 = vadd.f32 1.0, %v4674_v34  ;;  %v1359_v30 = vand.u32 2147483647, %v6915_v55  ;;  %vm6948_vm14 = vcmp.eq.f32.partialorder %v1321_v23, 8.507059e+37  ;;  %v1324_v58 = vor.u32 1.1754944e-38, %v1323_v25 }
 0x37f   :  { %v4678_v48 = vpop.eup %4677  ;;  %v1298_v42 = vmul.f32 %v4676_v29, %v6906_v41  ;;  %4687 = vrcp.f32 %v6925_v4  ;;  %vm1303_vm15 = vweird.f32 %v4676_v29  ;;  %vm6952_vm2 = vcmp.eq.f32.partialorder %v1344_v44, 8.507059e+37 }
 0x380   :  { %v4680_v18 = vpop.eup %4679  ;;  %v1313_v10 = vmul.f32 %v4678_v48, %v6908_v22  ;;  %4689 = vrcp.f32 %v6930_v1  ;;  %vm1318_vm0 = vweird.f32 %v4678_v48  ;;  %vm1304_vm4 = vmor %vm1302_vm8, %vm1303_vm15  ;;  %vm6961_vm6 = vcmp.eq.f32.partialorder %v1359_v30, 8.507059e+37 }
 0x381   :  { %v4682_v50 = vpop.eup %4681  ;;  %v1299_v31 = vsub.f32 1.0, %v1298_v42  ;;  %v1336_v20 = vmul.f32 %v4680_v18, %v6911_v5  ;;  %vm1341_vm1 = vweird.f32 %v4680_v18  ;;  %vm1319_vm5 = vmor %vm1317_vm10, %vm1318_vm0  ;;  %v1384_v19 = vand.u32 2147483647, %v6925_v4 }
 0x382   :  { %v4684_v52 = vpop.eup %4683  ;;  %v1314_v14 = vsub.f32 1.0, %v1313_v10  ;;  %v1351_v45 = vmul.f32 %v4682_v50, %v6915_v55  ;;  %vm1356_vm3 = vweird.f32 %v4682_v50  ;;  %vm1342_vm7 = vmor %vm1340_vm11, %vm1341_vm1  ;;  %v1401_v24 = vand.u32 2147483648, %v6930_v1 }
 0x383   :  { %v4686_v28 = vpop.eup %4685  ;;  %v1337_v3 = vsub.f32 1.0, %v1336_v20  ;;  %v1300_v47 = vmul.f32 %v4676_v29, %v1299_v31  ;;  %vm1357_vm8 = vmor %vm1355_vm13, %vm1356_vm3  ;;  %vm1395_vm15 = vweird.f32 %v6930_v1  ;;  %vm1385_vm0 = vcmp.eq.f32.partialorder %v1384_v19, 8.507059e+37  ;;  %v5147_v19 = vld [vmem:[%s9937_s2 + $0xc0] sm:$0xff] }
 0x384   :  { %v1352_v53 = vsub.f32 1.0, %v1351_v45  ;;  %v1315_v51 = vmul.f32 %v4678_v48, %v1314_v14  ;;  %v1402_v44 = vor.u32 1.1754944e-38, %v1401_v24  ;;  %v5148_v24 = vld [vmem:[%s9937_s2 + $0xc8] sm:$0xff] }
 0x385   :  { %v4688_v35 = vpop.eup %4687  ;;  %v1338_v54 = vmul.f32 %v4680_v18, %v1337_v3  ;;  %v1301_v57 = vadd.f32 %v4676_v29, %v1300_v47 }
 0x386   :  { %v4690_v59 = vpop.eup %4689  ;;  %v1353_v46 = vmul.f32 %v4682_v50, %v1352_v53  ;;  %v1316_v39 = vadd.f32 %v4678_v48, %v1315_v51  ;;  %v1376_v56 = vmul.f32 %v4688_v35, %v6925_v4  ;;  %vm1381_vm10 = vweird.f32 %v4688_v35  ;;  %v5111_v53 = vld [vmem:[%s9937_s2 + $0x1e0] sm:$0xff]  ;;  %v5114_v51 = vld [vmem:[%s9937_s2 + $0x1f8] sm:$0xff] }
 0x387   :  { %v1305_v62 = vsel %vm1304_vm4, %v4676_v29, %v1301_v57  ;;  %v1339_v2 = vadd.f32 %v4680_v18, %v1338_v54  ;;  %v1391_v7 = vmul.f32 %v4690_v59, %v6930_v1  ;;  %vm1396_vm11 = vweird.f32 %v4690_v59  ;;  %v5117_v54 = vld [vmem:[%s9937_s2 + $0x1d0] sm:$0xff]  ;;  %v5118_v57 = vld [vmem:[%s9937_s2 + $0x1d8] sm:$0xff] }
 0x388   :  { %v1310_v41 = vsel %vm6934_vm12, %v1309_v15, %v1305_v62  ;;  %v1320_v16 = vsel %vm1319_vm5, %v4678_v48, %v1316_v39  ;;  %v1354_v36 = vadd.f32 %v4682_v50, %v1353_v46  ;;  %v1377_v0 = vsub.f32 1.0, %v1376_v56  ;;  %v5121_v46 = vld [vmem:[%s9937_s2 + $0x1b0] sm:$0xff]  ;;  %v5122_v39 = vld [vmem:[%s9937_s2 + $0x1b8] sm:$0xff]  ;;  %v5123_v56 = vld [vmem:[%s9937_s2 + $0x180] sm:$0xff] }
 0x389   :  { %v1325_v22 = vsel %vm6948_vm14, %v1324_v58, %v1320_v16  ;;  %v1343_v34 = vsel %vm1342_vm7, %v4680_v18, %v1339_v2  ;;  %v1413_v17 = vmul.f32 %v4684_v52, %v1310_v41  ;;  %v1392_v29 = vsub.f32 1.0, %v1391_v7  ;;  %vm1397_vm14 = vmor %vm1395_vm15, %vm1396_vm11  ;;  %v5115_v58 = vld [vmem:[%s9937_s2 + $0x1c0] sm:$0xff]  ;;  %v5124_v62 = vld [vmem:[%s9937_s2 + $0x188] sm:$0xff] }
 0x38a   :  { %v1348_v9 = vsel %vm6952_vm2, %v1347_v37, %v1343_v34  ;;  %v1358_v5 = vsel %vm1357_vm8, %v4682_v50, %v1354_v36  ;;  %v1414_v42 = vmul.f32 %v4686_v28, %v1325_v22  ;;  %v1378_v23 = vmul.f32 %v4688_v35, %v1377_v0  ;;  %v5125_v2 = vld [vmem:[%s9937_s2 + $0x190] sm:$0xff]  ;;  %v5127_v7 = vld [vmem:[%s9937_s2 + $0x160] sm:$0xff]  ;;  %v5128_v41 = vld [vmem:[%s9937_s2 + $0x168] sm:$0xff] }
 0x38b   :  { %v1363_v48 = vsel %vm6961_vm6, %v1362_v27, %v1358_v5  ;;  %v1411_v32 = vmul.f32 %v1407_v63, %v1348_v9  ;;  %v1393_v55 = vmul.f32 %v4690_v59, %v1392_v29  ;;  %v1386_v50 = vand.u32 2147483648, %v6925_v4  ;;  %v5129_v16 = vld [vmem:[%s9937_s2 + $0x170] sm:$0xff]  ;;  %v5130_v36 = vld [vmem:[%s9937_s2 + $0x178] sm:$0xff]  ;;  %v5131_v0 = vld [vmem:[%s9937_s2 + $0x140] sm:$0xff] }
 0x38c   :  { %v1412_v10 = vmul.f32 %v1408_v33, %v1363_v48  ;;  %v1379_v25 = vadd.f32 %v4688_v35, %v1378_v23  ;;  %vm1380_vm12 = vweird.f32 %v6925_v4  ;;  %v1399_v63 = vand.u32 2147483647, %v6930_v1  ;;  %v5132_v22 = vld [vmem:[%s9937_s2 + $0x148] sm:$0xff]  ;;  %v5133_v34 = vld [vmem:[%s9937_s2 + $0x150] sm:$0xff]  ;;  %v5135_v29 = vld [vmem:[%s9937_s2 + $0x120] sm:$0xff] }
 0x38d   :  { %v6982_v15 = vadd.f32 %v1413_v17, %v1411_v32  ;;  %v1394_v31 = vadd.f32 %v4690_v59, %v1393_v55  ;;  %vm1382_vm13 = vmor %vm1380_vm12, %vm1381_vm10  ;;  %v1387_v20 = vor.u32 1.1754944e-38, %v1386_v50  ;;  %vm2168_vm2 = vcmask 1043456   ;;  %v5134_v17 = vld [vmem:[%s9937_s2 + $0x158] sm:$0xff]  ;;  %v5136_v9 = vld [vmem:[%s9937_s2 + $0x128] sm:$0xff] }
 0x38e   :  { %v6984_v18 = vadd.f32 %v1414_v42, %v1412_v10  ;;  %v1383_v33 = vsel %vm1382_vm13, %v4688_v35, %v1379_v25  ;;  %vm1400_vm1 = vcmp.eq.f32.partialorder %v1399_v63, 8.507059e+37  ;;  %v5116_v35 = vld [vmem:[%s9937_s2 + $0x1c8] sm:$0xff]  ;;  %v5137_v5 = vld [vmem:[%s9937_s2 + $0x130] sm:$0xff]  ;;  %v5138_v42 = vld [vmem:[%s9937_s2 + $0x138] sm:$0xff] }
 0x38f   :  { %4691 = vtanh.f32 %v6982_v15  ;;  %v1398_v37 = vsel %vm1397_vm14, %v4690_v59, %v1394_v31  ;;  %v1388_v14 = vsel %vm1385_vm0, %v1387_v20, %v1383_v33  ;;  %v5120_v59 = vld [vmem:[%s9937_s2 + $0x1a8] sm:$0xff]  ;;  %v5139_v23 = vld [vmem:[%s9937_s2 + $0x100] sm:$0xff]  ;;  %v5141_v32 = vld [vmem:[%s9937_s2 + $0x110] sm:$0xff] }
 0x390   :  { %4693 = vtanh.f32 %v6984_v18  ;;  %v1403_v27 = vsel %vm1400_vm1, %v1402_v44, %v1398_v37  ;;  %v5140_v48 = vld [vmem:[%s9937_s2 + $0x108] sm:$0xff]  ;;  %v5142_v55 = vld [vmem:[%s9937_s2 + $0x118] sm:$0xff]  ;;  %v5143_v10 = vld [vmem:[%s9937_s2 + $0xe0] sm:$0xff] }
 0x391   :  { %v5144_v25 = vld [vmem:[%s9937_s2 + $0xe8] sm:$0xff]  ;;  %v5145_v50 = vld [vmem:[%s9937_s2 + $0xf0] sm:$0xff]  ;;  %v5146_v31 = vld [vmem:[%s9937_s2 + $0xf8] sm:$0xff] }
 0x392   :  { %v5149_v63 = vld [vmem:[%s9937_s2 + $0xd0] sm:$0xff]  ;;  %v5150_v33 = vld [vmem:[%s9937_s2 + $0xd8] sm:$0xff]  ;;  %v5151_v20 = vld [vmem:[%s9937_s2 + $0xa0] sm:$0xff] }
 0x393   :  { %v5152_v37 = vld [vmem:[%s9937_s2 + $0xa8] sm:$0xff]  ;;  %v5153_v44 = vld [vmem:[%s9937_s2 + $0xb0] sm:$0xff] }
 0x395   :  { %v4692_v52 = vpop.eup %4691 }
 0x396   :  { %v4694_v45 = vpop.eup %4693  ;;  %v1419_v4 = vmul.f32 %v4692_v52, %v1388_v14  ;;  %v5154_v52 = vld [vmem:[%s9937_s2 + $0xb8] sm:$0xff]  ;;  %v5155_v14 = vld [vmem:[%s9937_s2 + $0x80] sm:$0xff] }
 0x397   :  { %v1420_v30 = vmul.f32 %v4694_v45, %v1403_v27  ;;  %v5156_v45 = vld [vmem:[%s9937_s2 + $0x88] sm:$0xff]  ;;  %v5157_v27 = vld [vmem:[%s9937_s2 + $0x90] sm:$0xff] }
 0x398   :  { %v1423_v28 = vrot.slane %v1419_v4, 4  ;;  %v6995_v3 = vsel %vm2168_vm2, %v6830_v43, %v1419_v4  ;;  %v5112_v43 = vld [vmem:[%s9937_s2 + $0x1e8] sm:$0xff]  ;;  %v5158_v4 = vld [vmem:[%s9937_s2 + $0x98] sm:$0xff] }
 0x399   :  { %v1424_v47 = vrot.slane %v1420_v30, 3  ;;  %v6998_v1 = vsel %vm2168_vm2, %v6833_v12, %v1420_v30  ;;  %v5113_v12 = vld [vmem:[%s9937_s2 + $0x1f0] sm:$0xff]  ;;  %v5159_v30 = vld [vmem:[%s9937_s2 + $0x60] sm:$0xff] }
 0x39b   :  { %v1425_v21 = vsel %vm445_vm9, %v1424_v47, %v1423_v28  ;;  %v5160_v28 = vld [vmem:[%s9937_s2 + $0x68] sm:$0xff]  ;;  %v5161_v47 = vld [vmem:[%s9937_s2 + $0x70] sm:$0xff] }
 0x39c   :  { %1443 = vmatmul.f32.vlgmr.msrb.gmra.mxu0 %v1425_v21  ;;  %1463 = vmatmul.f32.vlgmr.msrb.gmra.mxu1 %v1425_v21 }
 0x39d   :  { %1483 = vmatmul.f32.vlgmr.msra.gmra.mxu2 %v1425_v21  ;;  %1503 = vmatmul.f32.vlgmr.msra.gmra.mxu3 %v1425_v21  ;;  %v5162_v21 = vld [vmem:[%s9937_s2 + $0x78] sm:$0xff] }
 0x39e   :  { %1919 = vmatpush.msrb.mxu0 %v5111_v53  ;;  %1939 = vmatpush.msrb.mxu1 %v5112_v43  ;;  %v5163_v53 = vld [vmem:[%s9937_s2 + $0x40] sm:$0xff]  ;;  %v5164_v43 = vld [vmem:[%s9937_s2 + $0x48] sm:$0xff] }
 0x39f   :  { %1959 = vmatpush.msra.mxu2 %v5113_v12  ;;  %1979 = vmatpush.msra.mxu3 %v5114_v51  ;;  %v5165_v12 = vld [vmem:[%s9937_s2 + $0x50] sm:$0xff]  ;;  %v5166_v51 = vld [vmem:[%s9937_s2 + $0x58] sm:$0xff] }
 0x3a0   :  { %1920 = vmatpush.msrb.mxu0 %v5115_v58  ;;  %1940 = vmatpush.msrb.mxu1 %v5116_v35  ;;  %v5167_v58 = vld [vmem:[%s9937_s2 + $0x20] sm:$0xff]  ;;  %v5168_v35 = vld [vmem:[%s9937_s2 + $0x28] sm:$0xff] }
 0x3a1   :  { %1960 = vmatpush.msra.mxu2 %v5117_v54  ;;  %1980 = vmatpush.msra.mxu3 %v5118_v57  ;;  %v5169_v54 = vld [vmem:[%s9937_s2 + $0x30] sm:$0xff]  ;;  %v5170_v57 = vld [vmem:[%s9937_s2 + $0x38] sm:$0xff] }
 0x3a2   :  { %1921 = vmatpush.msrb.mxu0 %v5119_v49  ;;  %1941 = vmatpush.msrb.mxu1 %v5120_v59  ;;  %v5171_v49 = vld [vmem:[%s9937_s2] sm:$0xff]  ;;  %v5172_v59 = vld [vmem:[%s9937_s2 + $0x8] sm:$0xff] }
 0x3a3   :  { %1961 = vmatpush.msra.mxu2 %v5121_v46  ;;  %1981 = vmatpush.msra.mxu3 %v5122_v39  ;;  %v5173_v46 = vld [vmem:[%s9937_s2 + $0x10] sm:$0xff]  ;;  %v5174_v39 = vld [vmem:[%s9937_s2 + $0x18] sm:$0xff] }
 0x3a4   :  { %1922 = vmatpush.msrb.mxu0 %v5123_v56  ;;  %1942 = vmatpush.msrb.mxu1 %v5124_v62 }
 0x3a5   :  { %1962 = vmatpush.msra.mxu2 %v5125_v2  ;;  %1982 = vmatpush.msra.mxu3 %v5126_v11 }
 0x3a6   :  { %1923 = vmatpush.msrb.mxu0 %v5127_v7  ;;  %1943 = vmatpush.msrb.mxu1 %v5128_v41 }
 0x3a7   :  { %1963 = vmatpush.msra.mxu2 %v5129_v16  ;;  %1983 = vmatpush.msra.mxu3 %v5130_v36 }
 0x3a8   :  { %1924 = vmatpush.msrb.mxu0 %v5131_v0  ;;  %1944 = vmatpush.msrb.mxu1 %v5132_v22 }
 0x3a9   :  { %1964 = vmatpush.msra.mxu2 %v5133_v34  ;;  %1984 = vmatpush.msra.mxu3 %v5134_v17 }
 0x3aa   :  { %1925 = vmatpush.msrb.mxu0 %v5135_v29  ;;  %1945 = vmatpush.msrb.mxu1 %v5136_v9 }
 0x3ab   :  { %1965 = vmatpush.msra.mxu2 %v5137_v5  ;;  %1985 = vmatpush.msra.mxu3 %v5138_v42 }
 0x3ac   :  { %1926 = vmatpush.msrb.mxu0 %v5139_v23  ;;  %1946 = vmatpush.msrb.mxu1 %v5140_v48 }
 0x3ad   :  { %1966 = vmatpush.msra.mxu2 %v5141_v32  ;;  %1986 = vmatpush.msra.mxu3 %v5142_v55 }
 0x3ae   :  { %1927 = vmatpush.msrb.mxu0 %v5143_v10  ;;  %1947 = vmatpush.msrb.mxu1 %v5144_v25 }
 0x3af   :  { %1967 = vmatpush.msra.mxu2 %v5145_v50  ;;  %1987 = vmatpush.msra.mxu3 %v5146_v31 }
 0x3b0   :  { %1928 = vmatpush.msrb.mxu0 %v5147_v19  ;;  %1948 = vmatpush.msrb.mxu1 %v5148_v24 }
 0x3b1   :  { %1968 = vmatpush.msra.mxu2 %v5149_v63  ;;  %1988 = vmatpush.msra.mxu3 %v5150_v33 }
 0x3b2   :  { %1929 = vmatpush.msrb.mxu0 %v5151_v20  ;;  %1949 = vmatpush.msrb.mxu1 %v5152_v37 }
 0x3b3   :  { %1969 = vmatpush.msra.mxu2 %v5153_v44  ;;  %1989 = vmatpush.msra.mxu3 %v5154_v52 }
 0x3b4   :  { %1930 = vmatpush.msrb.mxu0 %v5155_v14  ;;  %1950 = vmatpush.msrb.mxu1 %v5156_v45 }
 0x3b5   :  { %1970 = vmatpush.msra.mxu2 %v5157_v27  ;;  %1990 = vmatpush.msra.mxu3 %v5158_v4 }
 0x3b6   :  { %1931 = vmatpush.msrb.mxu0 %v5159_v30  ;;  %1951 = vmatpush.msrb.mxu1 %v5160_v28  ;;  %v1653_v30 = vrot.slane %v6982_v15, 7 }
 0x3b7   :  { %1971 = vmatpush.msra.mxu2 %v5161_v47  ;;  %1991 = vmatpush.msra.mxu3 %v5162_v21  ;;  %v1654_v21 = vrot.slane %v6984_v18, 7 }
 0x3b8   :  { %1932 = vmatpush.msrb.mxu0 %v5163_v53  ;;  %1952 = vmatpush.msrb.mxu1 %v5164_v43 }
 0x3b9   :  { %1972 = vmatpush.msra.mxu2 %v5165_v12  ;;  %1992 = vmatpush.msra.mxu3 %v5166_v51 }
 0x3ba   :  { %1933 = vmatpush.msrb.mxu0 %v5167_v58  ;;  %1953 = vmatpush.msrb.mxu1 %v5168_v35 }
 0x3bb   :  { %1973 = vmatpush.msra.mxu2 %v5169_v54  ;;  %1993 = vmatpush.msra.mxu3 %v5170_v57 }
 0x3bc   :  { %1934 = vmatpush.msrb.mxu0 %v5171_v49  ;;  %1954 = vmatpush.msrb.mxu1 %v5172_v59 }
 0x3bd   :  { %1974 = vmatpush.msra.mxu2 %v5173_v46  ;;  %1994 = vmatpush.msra.mxu3 %v5174_v39 }
 0x419   :  { %v1444_v56 = vpop.f32.mrf.mxu0  ;;  %v1464_v62 = vpop.f32.mrf.mxu1 }
 0x41a   :  { %v1511_v2 = vrot.slane %v1444_v56, 3  ;;  %v1515_v11 = vrot.slane %v1444_v56, 4  ;;  %v1512_v7 = vrot.slane %v1464_v62, 3  ;;  %v1516_v41 = vrot.slane %v1464_v62, 4 }
 0x41c   :  { %v1527_v16 = vadd.f32 %v1511_v2, %v10473_v61  ;;  %v1531_v36 = vadd.f32 %v1515_v11, %v10474_v60  ;;  %v1528_v0 = vadd.f32 %v1512_v7, %v10475_v26  ;;  %v1532_v22 = vadd.f32 %v1516_v41, %v10476_v38 }
 0x41e   :  { %v4466_v34 = vmul.f32 -1.442695, %v1527_v16  ;;  %v4467_v17 = vmul.f32 -1.442695, %v1531_v36  ;;  %v4468_v29 = vmul.f32 -1.442695, %v1528_v0 }
 0x41f   :  { %v4469_v9 = vmul.f32 -1.442695, %v1532_v22 }
 0x420   :  { %4695 = vpow2.f32 %v4466_v34  ;;  %v1504_v5 = vpop.f32.mrf.mxu3  ;;  %v1484_v23 = vpop.f32.mrf.mxu2 }
 0x421   :  { %4697 = vpow2.f32 %v4467_v17  ;;  %v1514_v42 = vrot.slane %v1504_v5, 3  ;;  %v1518_v48 = vrot.slane %v1504_v5, 4  ;;  %v1513_v10 = vrot.slane %v1484_v23, 3 }
 0x422   :  { %4699 = vpow2.f32 %v4468_v29  ;;  %v1517_v31 = vrot.slane %v1484_v23, 4 }
 0x423   :  { %4701 = vpow2.f32 %v4469_v9  ;;  %v1530_v32 = vadd.f32 %v1514_v42, %v10477_v6  ;;  %v1534_v55 = vadd.f32 %v1518_v48, %v10478_v40  ;;  %v1529_v52 = vadd.f32 %v1513_v10, %v10479_v8 }
 0x424   :  { %v1533_v45 = vadd.f32 %v1517_v31, %v10480_v13 }
 0x425   :  { %v4470_v25 = vmul.f32 -1.442695, %v1530_v32  ;;  %v4471_v19 = vmul.f32 -1.442695, %v1534_v55 }
 0x426   :  { %v4696_v50 = vpop.eup %4695 }
 0x427   :  { %v4698_v24 = vpop.eup %4697  ;;  %v7199_v63 = vadd.f32 1.0, %v4696_v50  ;;  %4703 = vpow2.f32 %v4470_v25 }
 0x428   :  { %v4700_v33 = vpop.eup %4699  ;;  %v7201_v20 = vadd.f32 1.0, %v4698_v24  ;;  %4705 = vpow2.f32 %v4471_v19 }
 0x429   :  { %v4702_v37 = vpop.eup %4701  ;;  %4707 = vrcp.f32 %v7199_v63  ;;  %v7204_v44 = vadd.f32 1.0, %v4700_v33  ;;  %v1552_v27 = vand.u32 2147483647, %v7199_v63  ;;  %v1554_v28 = vand.u32 2147483648, %v7199_v63 }
 0x42a   :  { %4709 = vrcp.f32 %v7201_v20  ;;  %v7208_v14 = vadd.f32 1.0, %v4702_v37  ;;  %vm1548_vm3 = vweird.f32 %v7199_v63  ;;  %vm1563_vm4 = vweird.f32 %v7201_v20 }
 0x42b   :  { %4711 = vrcp.f32 %v7204_v44  ;;  %v1592_v53 = vand.u32 2147483648, %v7204_v44  ;;  %vm1586_vm5 = vweird.f32 %v7204_v44  ;;  %vm7227_vm6 = vcmp.eq.f32.partialorder %v1552_v27, 8.507059e+37 }
 0x42c   :  { %4713 = vrcp.f32 %v7208_v14  ;;  %v1607_v51 = vand.u32 2147483648, %v7208_v14  ;;  %v1567_v49 = vand.u32 2147483647, %v7201_v20  ;;  %vm1601_vm7 = vweird.f32 %v7208_v14 }
 0x42d   :  { %v4704_v4 = vpop.eup %4703  ;;  %4715 = vtanh.f32 %v1529_v52  ;;  %v1555_v39 = vor.u32 1.1754944e-38, %v1554_v28  ;;  %v1569_v56 = vand.u32 2147483648, %v7201_v20  ;;  %v1593_v7 = vor.u32 1.1754944e-38, %v1592_v53 }
 0x42e   :  { %v4706_v47 = vpop.eup %4705  ;;  %4717 = vtanh.f32 %v1533_v45  ;;  %v7218_v43 = vadd.f32 1.0, %v4704_v4  ;;  %v1590_v41 = vand.u32 2147483647, %v7204_v44  ;;  %v1608_v22 = vor.u32 1.1754944e-38, %v1607_v51 }
 0x42f   :  { %v4708_v12 = vpop.eup %4707  ;;  %v7223_v58 = vadd.f32 1.0, %v4706_v47  ;;  %v1605_v34 = vand.u32 2147483647, %v7208_v14  ;;  %vm7241_vm10 = vcmp.eq.f32.partialorder %v1567_v49, 8.507059e+37  ;;  %v1570_v48 = vor.u32 1.1754944e-38, %v1569_v56 }
 0x430   :  { %v4710_v35 = vpop.eup %4709  ;;  %v1544_v54 = vmul.f32 %v4708_v12, %v7199_v63  ;;  %4719 = vrcp.f32 %v7218_v43  ;;  %vm1549_vm8 = vweird.f32 %v4708_v12  ;;  %vm7245_vm13 = vcmp.eq.f32.partialorder %v1590_v41, 8.507059e+37 }
 0x431   :  { %v4712_v59 = vpop.eup %4711  ;;  %v1559_v46 = vmul.f32 %v4710_v35, %v7201_v20  ;;  %4721 = vrcp.f32 %v7223_v58  ;;  %vm1564_vm11 = vweird.f32 %v4710_v35  ;;  %vm1550_vm14 = vmor %vm1548_vm3, %vm1549_vm8  ;;  %vm7254_vm1 = vcmp.eq.f32.partialorder %v1605_v34, 8.507059e+37 }
 0x432   :  { %v4714_v62 = vpop.eup %4713  ;;  %v1545_v2 = vsub.f32 1.0, %v1544_v54  ;;  %v1582_v11 = vmul.f32 %v4712_v59, %v7204_v44  ;;  %vm1587_vm12 = vweird.f32 %v4712_v59  ;;  %vm1565_vm0 = vmor %vm1563_vm4, %vm1564_vm11  ;;  %v1630_v15 = vand.u32 2147483647, %v7218_v43 }
 0x433   :  { %v4716_v16 = vpop.eup %4715  ;;  %v1560_v36 = vsub.f32 1.0, %v1559_v46  ;;  %v1597_v0 = vmul.f32 %v4714_v62, %v7208_v14  ;;  %vm1602_vm15 = vweird.f32 %v4714_v62  ;;  %vm1588_vm2 = vmor %vm1586_vm5, %vm1587_vm12  ;;  %v1647_v18 = vand.u32 2147483648, %v7223_v58 }
 0x434   :  { %v4718_v17 = vpop.eup %4717  ;;  %v1583_v29 = vsub.f32 1.0, %v1582_v11  ;;  %v1546_v9 = vmul.f32 %v4708_v12, %v1545_v2  ;;  %vm1603_vm3 = vmor %vm1601_vm7, %vm1602_vm15  ;;  %vm1641_vm8 = vweird.f32 %v7223_v58  ;;  %vm1631_vm11 = vcmp.eq.f32.partialorder %v1630_v15, 8.507059e+37 }
 0x435   :  { %v1598_v42 = vsub.f32 1.0, %v1597_v0  ;;  %v1561_v23 = vmul.f32 %v4710_v35, %v1560_v36  ;;  %v1648_v41 = vor.u32 1.1754944e-38, %v1647_v18 }
 0x436   :  { %v4720_v32 = vpop.eup %4719  ;;  %v1584_v55 = vmul.f32 %v4712_v59, %v1583_v29  ;;  %v1547_v10 = vadd.f32 %v4708_v12, %v1546_v9 }
 0x437   :  { %v4722_v50 = vpop.eup %4721  ;;  %v1599_v31 = vmul.f32 %v4714_v62, %v1598_v42  ;;  %v1562_v19 = vadd.f32 %v4710_v35, %v1561_v23  ;;  %v1622_v24 = vmul.f32 %v4720_v32, %v7218_v43  ;;  %vm1627_vm4 = vweird.f32 %v4720_v32 }
 0x438   :  { %v1551_v33 = vsel %vm1550_vm14, %v4708_v12, %v1547_v10  ;;  %v1585_v37 = vadd.f32 %v4712_v59, %v1584_v55  ;;  %v1637_v45 = vmul.f32 %v4722_v50, %v7223_v58  ;;  %vm1642_vm5 = vweird.f32 %v4722_v50 }
 0x439   :  { %v1556_v63 = vsel %vm7227_vm6, %v1555_v39, %v1551_v33  ;;  %v1566_v27 = vsel %vm1565_vm0, %v4710_v35, %v1562_v19  ;;  %v1600_v4 = vadd.f32 %v4714_v62, %v1599_v31  ;;  %v1623_v28 = vsub.f32 1.0, %v1622_v24 }
 0x43a   :  { %v1571_v20 = vsel %vm7241_vm10, %v1570_v48, %v1566_v27  ;;  %v1589_v47 = vsel %vm1588_vm2, %v4712_v59, %v1585_v37  ;;  %v1659_v53 = vmul.f32 %v4716_v16, %v1556_v63  ;;  %v1638_v12 = vsub.f32 1.0, %v1637_v45  ;;  %vm1643_vm10 = vmor %vm1641_vm8, %vm1642_vm5 }
 0x43b   :  { %v1594_v51 = vsel %vm7245_vm13, %v1593_v7, %v1589_v47  ;;  %v1604_v44 = vsel %vm1603_vm3, %v4714_v62, %v1600_v4  ;;  %v1660_v54 = vmul.f32 %v4718_v17, %v1571_v20  ;;  %v1624_v49 = vmul.f32 %v4720_v32, %v1623_v28 }
 0x43c   :  { %v1609_v35 = vsel %vm7254_vm1, %v1608_v22, %v1604_v44  ;;  %v1657_v57 = vmul.f32 %v1653_v30, %v1594_v51  ;;  %v1639_v14 = vmul.f32 %v4722_v50, %v1638_v12  ;;  %v1632_v62 = vand.u32 2147483648, %v7218_v43 }
 0x43d   :  { %v1658_v46 = vmul.f32 %v1654_v21, %v1609_v35  ;;  %v1625_v56 = vadd.f32 %v4720_v32, %v1624_v49  ;;  %vm1626_vm6 = vweird.f32 %v7218_v43  ;;  %v1645_v30 = vand.u32 2147483647, %v7223_v58 }
 0x43e   :  { %v7275_v39 = vadd.f32 %v1659_v53, %v1657_v57  ;;  %v1640_v2 = vadd.f32 %v4722_v50, %v1639_v14  ;;  %vm1628_vm7 = vmor %vm1626_vm6, %vm1627_vm4  ;;  %v1633_v11 = vor.u32 1.1754944e-38, %v1632_v62  ;;  %vm2171_vm13 = vcmask 1044480  }
 0x43f   :  { %v7277_v59 = vadd.f32 %v1660_v54, %v1658_v46  ;;  %v1629_v21 = vsel %vm1628_vm7, %v4720_v32, %v1625_v56  ;;  %vm1646_vm12 = vcmp.eq.f32.partialorder %v1645_v30, 8.507059e+37 }
 0x440   :  { %4723 = vtanh.f32 %v7275_v39  ;;  %v1644_v7 = vsel %vm1643_vm10, %v4722_v50, %v1640_v2  ;;  %v1634_v36 = vsel %vm1631_vm11, %v1633_v11, %v1629_v21  ;;  %v1899_v15 = vrot.slane %v7275_v39, 7 }
 0x441   :  { %4725 = vtanh.f32 %v7277_v59  ;;  %v1649_v22 = vsel %vm1646_vm12, %v1648_v41, %v1644_v7  ;;  %v1900_v21 = vrot.slane %v7277_v59, 7 }
 0x446   :  { %v4724_v16 = vpop.eup %4723 }
 0x447   :  { %v4726_v0 = vpop.eup %4725  ;;  %v1665_v43 = vmul.f32 %v4724_v16, %v1634_v36 }
 0x448   :  { %v1666_v34 = vmul.f32 %v4726_v0, %v1649_v22 }
 0x449   :  { %v1669_v17 = vrot.slane %v1665_v43, 5  ;;  %v7288_v29 = vsel %vm2171_vm13, %v6995_v3, %v1665_v43 }
 0x44a   :  { %v1670_v9 = vrot.slane %v1666_v34, 4  ;;  %v7291_v58 = vsel %vm2171_vm13, %v6998_v1, %v1666_v34 }
 0x44c   :  { %v1671_v5 = vsel %vm445_vm9, %v1670_v9, %v1669_v17 }
 0x44d   :  { %1689 = vmatmul.f32.vlgmr.msra.gmra.mxu0 %v1671_v5  ;;  %1709 = vmatmul.f32.vlgmr.msra.gmra.mxu1 %v1671_v5 }
 0x44e   :  { %1729 = vmatmul.f32.vlgmr.msrb.gmra.mxu2 %v1671_v5  ;;  %1749 = vmatmul.f32.vlgmr.msrb.gmra.mxu3 %v1671_v5 }
 0x4ca   :  { %v1690_v42 = vpop.f32.mrf.mxu0  ;;  %v1710_v23 = vpop.f32.mrf.mxu1 }
 0x4cb   :  { %v1757_v48 = vrot.slane %v1690_v42, 2  ;;  %v1761_v32 = vrot.slane %v1690_v42, 3  ;;  %v1758_v55 = vrot.slane %v1710_v23, 2  ;;  %v1762_v10 = vrot.slane %v1710_v23, 3 }
 0x4cd   :  { %v1773_v25 = vadd.f32 %v1757_v48, %v10473_v61  ;;  %v1777_v3 = vadd.f32 %v1761_v32, %v10474_v60  ;;  %v1774_v50 = vadd.f32 %v1758_v55, %v10475_v26  ;;  %v1778_v1 = vadd.f32 %v1762_v10, %v10476_v38 }
 0x4cf   :  { %v4472_v31 = vmul.f32 -1.442695, %v1773_v25  ;;  %v4473_v19 = vmul.f32 -1.442695, %v1777_v3  ;;  %v4474_v24 = vmul.f32 -1.442695, %v1774_v50 }
 0x4d0   :  { %v4475_v33 = vmul.f32 -1.442695, %v1778_v1 }
 0x4d1   :  { %4727 = vpow2.f32 %v4472_v31  ;;  %v1750_v37 = vpop.f32.mrf.mxu3  ;;  %v1730_v45 = vpop.f32.mrf.mxu2 }
 0x4d2   :  { %4729 = vpow2.f32 %v4473_v19  ;;  %v1760_v52 = vrot.slane %v1750_v37, 2  ;;  %v1764_v63 = vrot.slane %v1750_v37, 3  ;;  %v1759_v28 = vrot.slane %v1730_v45, 2 }
 0x4d3   :  { %4731 = vpow2.f32 %v4474_v24  ;;  %v1763_v53 = vrot.slane %v1730_v45, 3 }
 0x4d4   :  { %4733 = vpow2.f32 %v4475_v33  ;;  %v1776_v27 = vadd.f32 %v1760_v52, %v10477_v6  ;;  %v1780_v4 = vadd.f32 %v1764_v63, %v10478_v40  ;;  %v1775_v14 = vadd.f32 %v1759_v28, %v10479_v8 }
 0x4d5   :  { %v1779_v56 = vadd.f32 %v1763_v53, %v10480_v13 }
 0x4d6   :  { %v4476_v20 = vmul.f32 -1.442695, %v1776_v27  ;;  %v4477_v12 = vmul.f32 -1.442695, %v1780_v4 }
 0x4d7   :  { %v4728_v47 = vpop.eup %4727 }
 0x4d8   :  { %v4730_v51 = vpop.eup %4729  ;;  %v7300_v44 = vadd.f32 1.0, %v4728_v47  ;;  %4735 = vpow2.f32 %v4476_v20  ;;  %v2232_v20 = vld [vmem:[%s9939_s4 + $0x1a0] sm:$0xff] }
 0x4d9   :  { %v4732_v54 = vpop.eup %4731  ;;  %v7302_v49 = vadd.f32 1.0, %v4730_v51  ;;  %4737 = vpow2.f32 %v4477_v12 }
 0x4da   :  { %v4734_v35 = vpop.eup %4733  ;;  %4739 = vrcp.f32 %v7300_v44  ;;  %v7305_v57 = vadd.f32 1.0, %v4732_v54  ;;  %v1798_v62 = vand.u32 2147483647, %v7300_v44  ;;  %v1800_v18 = vand.u32 2147483648, %v7300_v44 }
 0x4db   :  { %4741 = vrcp.f32 %v7302_v49  ;;  %v7309_v46 = vadd.f32 1.0, %v4734_v35  ;;  %vm1794_vm15 = vweird.f32 %v7300_v44  ;;  %vm1809_vm14 = vweird.f32 %v7302_v49 }
 0x4dc   :  { %4743 = vrcp.f32 %v7305_v57  ;;  %v1838_v11 = vand.u32 2147483648, %v7305_v57  ;;  %vm1832_vm0 = vweird.f32 %v7305_v57  ;;  %vm7328_vm1 = vcmp.eq.f32.partialorder %v1798_v62, 8.507059e+37 }
 0x4dd   :  { %4745 = vrcp.f32 %v7309_v46  ;;  %v1853_v16 = vand.u32 2147483648, %v7309_v46  ;;  %v1813_v34 = vand.u32 2147483647, %v7302_v49  ;;  %vm1847_vm2 = vweird.f32 %v7309_v46 }
 0x4de   :  { %v4736_v2 = vpop.eup %4735  ;;  %4747 = vtanh.f32 %v1775_v14  ;;  %v1801_v5 = vor.u32 1.1754944e-38, %v1800_v18  ;;  %v1815_v42 = vand.u32 2147483648, %v7302_v49  ;;  %v1839_v55 = vor.u32 1.1754944e-38, %v1838_v11  ;;  %v2231_v14 = vld [vmem:[%s9939_s4 + $0x198] sm:$0xff] }
 0x4df   :  { %v4738_v30 = vpop.eup %4737  ;;  %4749 = vtanh.f32 %v1779_v56  ;;  %v7319_v7 = vadd.f32 1.0, %v4736_v2  ;;  %v1836_v10 = vand.u32 2147483647, %v7305_v57  ;;  %v1854_v1 = vor.u32 1.1754944e-38, %v1853_v16 }
 0x4e0   :  { %v4740_v41 = vpop.eup %4739  ;;  %v7324_v36 = vadd.f32 1.0, %v4738_v30  ;;  %v1851_v31 = vand.u32 2147483647, %v7309_v46  ;;  %vm7342_vm4 = vcmp.eq.f32.partialorder %v1813_v34, 8.507059e+37  ;;  %v1816_v63 = vor.u32 1.1754944e-38, %v1815_v42 }
 0x4e1   :  { %v4742_v0 = vpop.eup %4741  ;;  %v1790_v22 = vmul.f32 %v4740_v41, %v7300_v44  ;;  %4751 = vrcp.f32 %v7319_v7  ;;  %vm1795_vm3 = vweird.f32 %v4740_v41  ;;  %vm7346_vm7 = vcmp.eq.f32.partialorder %v1836_v10, 8.507059e+37 }
 0x4e2   :  { %v4744_v17 = vpop.eup %4743  ;;  %v1805_v9 = vmul.f32 %v4742_v0, %v7302_v49  ;;  %4753 = vrcp.f32 %v7324_v36  ;;  %vm1810_vm5 = vweird.f32 %v4742_v0  ;;  %vm1796_vm10 = vmor %vm1794_vm15, %vm1795_vm3  ;;  %vm7355_vm12 = vcmp.eq.f32.partialorder %v1851_v31, 8.507059e+37 }
 0x4e3   :  { %v4746_v23 = vpop.eup %4745  ;;  %v1791_v48 = vsub.f32 1.0, %v1790_v22  ;;  %v1828_v32 = vmul.f32 %v4744_v17, %v7305_v57  ;;  %vm1833_vm6 = vweird.f32 %v4744_v17  ;;  %vm1811_vm11 = vmor %vm1809_vm14, %vm1810_vm5  ;;  %v1876_v39 = vand.u32 2147483647, %v7319_v7 }
 0x4e4   :  { %v4748_v25 = vpop.eup %4747  ;;  %v1806_v3 = vsub.f32 1.0, %v1805_v9  ;;  %v1843_v50 = vmul.f32 %v4746_v23, %v7309_v46  ;;  %vm1848_vm8 = vweird.f32 %v4746_v23  ;;  %vm1834_vm13 = vmor %vm1832_vm0, %vm1833_vm6  ;;  %v1893_v59 = vand.u32 2147483648, %v7324_v36 }
 0x4e5   :  { %v4750_v19 = vpop.eup %4749  ;;  %v1829_v24 = vsub.f32 1.0, %v1828_v32  ;;  %v1792_v33 = vmul.f32 %v4740_v41, %v1791_v48  ;;  %vm1849_vm15 = vmor %vm1847_vm2, %vm1848_vm8  ;;  %vm1887_vm3 = vweird.f32 %v7324_v36  ;;  %vm1877_vm5 = vcmp.eq.f32.partialorder %v1876_v39, 8.507059e+37  ;;  %v2204_v39 = vld [vmem:[%s9939_s4 + $0xc0] sm:$0xff] }
 0x4e6   :  { %v1844_v52 = vsub.f32 1.0, %v1843_v50  ;;  %v1807_v45 = vmul.f32 %v4742_v0, %v1806_v3  ;;  %v1894_v10 = vor.u32 1.1754944e-38, %v1893_v59  ;;  %v2205_v59 = vld [vmem:[%s9939_s4 + $0xc8] sm:$0xff] }
 0x4e7   :  { %v4752_v27 = vpop.eup %4751  ;;  %v1830_v4 = vmul.f32 %v4744_v17, %v1829_v24  ;;  %v1793_v28 = vadd.f32 %v4740_v41, %v1792_v33 }
 0x4e8   :  { %v4754_v47 = vpop.eup %4753  ;;  %v1845_v53 = vmul.f32 %v4746_v23, %v1844_v52  ;;  %v1808_v12 = vadd.f32 %v4742_v0, %v1807_v45  ;;  %v1868_v51 = vmul.f32 %v4752_v27, %v7319_v7  ;;  %vm1873_vm14 = vweird.f32 %v4752_v27  ;;  %v2240_v52 = vld [vmem:[%s9939_s4 + $0x1e0] sm:$0xff]  ;;  %v2241_v45 = vld [vmem:[%s9939_s4 + $0x1e8] sm:$0xff] }
 0x4e9   :  { %v1797_v54 = vsel %vm1796_vm10, %v4740_v41, %v1793_v28  ;;  %v1831_v35 = vadd.f32 %v4744_v17, %v1830_v4  ;;  %v1883_v56 = vmul.f32 %v4754_v47, %v7324_v36  ;;  %vm1888_vm0 = vweird.f32 %v4754_v47  ;;  %2254 = vmatpush.msra.mxu0 %v2240_v52  ;;  %2277 = vmatpush.msra.mxu1 %v2241_v45  ;;  %v2238_v4 = vld [vmem:[%s9939_s4 + $0x1d0] sm:$0xff]  ;;  %v2239_v28 = vld [vmem:[%s9939_s4 + $0x1d8] sm:$0xff] }
 0x4ea   :  { %v1802_v44 = vsel %vm7328_vm1, %v1801_v5, %v1797_v54  ;;  %v1812_v62 = vsel %vm1811_vm11, %v4742_v0, %v1808_v12  ;;  %v1846_v2 = vadd.f32 %v4746_v23, %v1845_v53  ;;  %v1869_v18 = vsub.f32 1.0, %v1868_v51  ;;  %v2234_v53 = vld [vmem:[%s9939_s4 + $0x1b0] sm:$0xff]  ;;  %v2235_v12 = vld [vmem:[%s9939_s4 + $0x1b8] sm:$0xff]  ;;  %v2228_v51 = vld [vmem:[%s9939_s4 + $0x180] sm:$0xff] }
 0x4eb   :  { %v1817_v49 = vsel %vm7342_vm4, %v1816_v63, %v1812_v62  ;;  %v1835_v30 = vsel %vm1834_vm13, %v4744_v17, %v1831_v35  ;;  %v1905_v11 = vmul.f32 %v4748_v25, %v1802_v44  ;;  %v1884_v41 = vsub.f32 1.0, %v1883_v56  ;;  %vm1889_vm4 = vmor %vm1887_vm3, %vm1888_vm0  ;;  %v2236_v63 = vld [vmem:[%s9939_s4 + $0x1c0] sm:$0xff]  ;;  %v2229_v54 = vld [vmem:[%s9939_s4 + $0x188] sm:$0xff] }
 0x4ec   :  { %v1840_v16 = vsel %vm7346_vm7, %v1839_v55, %v1835_v30  ;;  %v1850_v57 = vsel %vm1849_vm15, %v4746_v23, %v1846_v2  ;;  %v1906_v22 = vmul.f32 %v4750_v19, %v1817_v49  ;;  %v1870_v34 = vmul.f32 %v4752_v27, %v1869_v18  ;;  %2255 = vmatpush.msra.mxu0 %v2236_v63  ;;  %v2230_v35 = vld [vmem:[%s9939_s4 + $0x190] sm:$0xff]  ;;  %v2224_v56 = vld [vmem:[%s9939_s4 + $0x160] sm:$0xff]  ;;  %v2225_v44 = vld [vmem:[%s9939_s4 + $0x168] sm:$0xff] }
 0x4ed   :  { %v1855_v0 = vsel %vm7355_vm12, %v1854_v1, %v1850_v57  ;;  %v1903_v43 = vmul.f32 %v1899_v15, %v1840_v16  ;;  %v1885_v46 = vmul.f32 %v4754_v47, %v1884_v41  ;;  %v1878_v23 = vand.u32 2147483648, %v7319_v7  ;;  %v2226_v62 = vld [vmem:[%s9939_s4 + $0x170] sm:$0xff]  ;;  %v2227_v2 = vld [vmem:[%s9939_s4 + $0x178] sm:$0xff]  ;;  %v2220_v18 = vld [vmem:[%s9939_s4 + $0x140] sm:$0xff] }
 0x4ee   :  { %v1904_v9 = vmul.f32 %v1900_v21, %v1855_v0  ;;  %v1871_v42 = vadd.f32 %v4752_v27, %v1870_v34  ;;  %vm1872_vm1 = vweird.f32 %v7319_v7  ;;  %v1891_v15 = vand.u32 2147483647, %v7324_v36  ;;  %2256 = vmatpush.msra.mxu0 %v2232_v20  ;;  %v2221_v49 = vld [vmem:[%s9939_s4 + $0x148] sm:$0xff]  ;;  %v2222_v30 = vld [vmem:[%s9939_s4 + $0x150] sm:$0xff]  ;;  %v2216_v41 = vld [vmem:[%s9939_s4 + $0x120] sm:$0xff] }
 0x4ef   :  { %v7376_v5 = vadd.f32 %v1905_v11, %v1903_v43  ;;  %v1886_v48 = vadd.f32 %v4754_v47, %v1885_v46  ;;  %vm1874_vm2 = vmor %vm1872_vm1, %vm1873_vm14  ;;  %v1879_v32 = vor.u32 1.1754944e-38, %v1878_v23  ;;  %vm2174_vm7 = vcmask 1045504   ;;  %v2223_v11 = vld [vmem:[%s9939_s4 + $0x158] sm:$0xff]  ;;  %v2217_v16 = vld [vmem:[%s9939_s4 + $0x128] sm:$0xff] }
 0x4f0   :  { %v7378_v17 = vadd.f32 %v1906_v22, %v1904_v9  ;;  %v1875_v21 = vsel %vm1874_vm2, %v4752_v27, %v1871_v42  ;;  %vm1892_vm6 = vcmp.eq.f32.partialorder %v1891_v15, 8.507059e+37  ;;  %v2237_v27 = vld [vmem:[%s9939_s4 + $0x1c8] sm:$0xff]  ;;  %2257 = vmatpush.msra.mxu0 %v2228_v51  ;;  %v2218_v57 = vld [vmem:[%s9939_s4 + $0x130] sm:$0xff]  ;;  %v2219_v22 = vld [vmem:[%s9939_s4 + $0x138] sm:$0xff] }
 0x4f1   :  { %4755 = vtanh.f32 %v7376_v5  ;;  %v1890_v55 = vsel %vm1889_vm4, %v4754_v47, %v1886_v48  ;;  %v1880_v3 = vsel %vm1877_vm5, %v1879_v32, %v1875_v21  ;;  %2278 = vmatpush.msra.mxu1 %v2237_v27  ;;  %v2233_v47 = vld [vmem:[%s9939_s4 + $0x1a8] sm:$0xff]  ;;  %v2212_v34 = vld [vmem:[%s9939_s4 + $0x100] sm:$0xff]  ;;  %v2214_v43 = vld [vmem:[%s9939_s4 + $0x110] sm:$0xff] }
 0x4f2   :  { %4757 = vtanh.f32 %v7378_v17  ;;  %v1895_v1 = vsel %vm1892_vm6, %v1894_v10, %v1890_v55  ;;  %2258 = vmatpush.msra.mxu0 %v2224_v56  ;;  %v2213_v0 = vld [vmem:[%s9939_s4 + $0x108] sm:$0xff]  ;;  %v2215_v46 = vld [vmem:[%s9939_s4 + $0x118] sm:$0xff]  ;;  %v2208_v9 = vld [vmem:[%s9939_s4 + $0xe0] sm:$0xff] }
 0x4f3   :  { %2279 = vmatpush.msra.mxu1 %v2233_v47  ;;  %v2209_v42 = vld [vmem:[%s9939_s4 + $0xe8] sm:$0xff]  ;;  %v2210_v23 = vld [vmem:[%s9939_s4 + $0xf0] sm:$0xff]  ;;  %v2211_v48 = vld [vmem:[%s9939_s4 + $0xf8] sm:$0xff] }
 0x4f4   :  { %2259 = vmatpush.msra.mxu0 %v2220_v18  ;;  %v2206_v15 = vld [vmem:[%s9939_s4 + $0xd0] sm:$0xff]  ;;  %v2207_v21 = vld [vmem:[%s9939_s4 + $0xd8] sm:$0xff]  ;;  %v2200_v32 = vld [vmem:[%s9939_s4 + $0xa0] sm:$0xff] }
 0x4f5   :  { %2280 = vmatpush.msra.mxu1 %v2229_v54  ;;  %v2201_v55 = vld [vmem:[%s9939_s4 + $0xa8] sm:$0xff]  ;;  %v2202_v10 = vld [vmem:[%s9939_s4 + $0xb0] sm:$0xff]  ;;  %v2195_v27 = vld [vmem:[%s9939_s4 + $0x78] sm:$0xff] }
 0x4f6   :  { %2260 = vmatpush.msra.mxu0 %v2216_v41  ;;  %v2194_v63 = vld [vmem:[%s9939_s4 + $0x70] sm:$0xff]  ;;  %v2181_v18 = vld [vmem:[%s9939_s4 + $0x8] sm:$0xff]  ;;  %v7594_v41 = vld [vmem:[%s9940_s5 + $0x1e0] sm:$0xff] }
 0x4f7   :  { %v4756_v25 = vpop.eup %4755  ;;  %2281 = vmatpush.msra.mxu1 %v2225_v44  ;;  %v2190_v51 = vld [vmem:[%s9939_s4 + $0x50] sm:$0xff] }
 0x4f8   :  { %v4758_v50 = vpop.eup %4757  ;;  %v1911_v7 = vmul.f32 %v4756_v25, %v1880_v3  ;;  %2261 = vmatpush.msra.mxu0 %v2212_v34  ;;  %v2203_v25 = vld [vmem:[%s9939_s4 + $0xb8] sm:$0xff]  ;;  %v2196_v3 = vld [vmem:[%s9939_s4 + $0x80] sm:$0xff]  ;;  %v2186_v56 = vld [vmem:[%s9939_s4 + $0x30] sm:$0xff] }
 0x4f9   :  { %v1912_v31 = vmul.f32 %v4758_v50, %v1895_v1  ;;  %2282 = vmatpush.msra.mxu1 %v2221_v49  ;;  %v2197_v50 = vld [vmem:[%s9939_s4 + $0x88] sm:$0xff]  ;;  %v2198_v1 = vld [vmem:[%s9939_s4 + $0x90] sm:$0xff] }
 0x4fa   :  { %v1915_v19 = vrot.slane %v1911_v7, 6  ;;  %v7389_v24 = vsel %vm2174_vm7, %v7288_v29, %v1911_v7  ;;  %v2242_v29 = vld [vmem:[%s9939_s4 + $0x1f0] sm:$0xff]  ;;  %2262 = vmatpush.msra.mxu0 %v2208_v9  ;;  %v7620_v9 = vld [vmem:[%s9940_s5 + $0x1c8] sm:$0xff] }
 0x4fb   :  { %v1916_v33 = vrot.slane %v1912_v31, 5  ;;  %v7392_v36 = vsel %vm2174_vm7, %v7291_v58, %v1912_v31  ;;  %v2243_v58 = vld [vmem:[%s9939_s4 + $0x1f8] sm:$0xff]  ;;  %2300 = vmatpush.msrb.mxu2 %v2242_v29  ;;  %2283 = vmatpush.msra.mxu1 %v2217_v16  ;;  %v2192_v29 = vld [vmem:[%s9939_s4 + $0x60] sm:$0xff]  ;;  %v7604_v34 = vld [vmem:[%s9940_s5 + $0x1f0] sm:$0xff] }
 0x4fc   :  { %2323 = vmatpush.msrb.mxu3 %v2243_v58  ;;  %2263 = vmatpush.msra.mxu0 %v2204_v39  ;;  %v2193_v58 = vld [vmem:[%s9939_s4 + $0x68] sm:$0xff] }
 0x4fd   :  { %v1917_v37 = vsel %vm445_vm9, %v1916_v33, %v1915_v19  ;;  %2301 = vmatpush.msrb.mxu2 %v2238_v4  ;;  %2284 = vmatpush.msra.mxu1 %v2213_v0  ;;  %v2199_v19 = vld [vmem:[%s9939_s4 + $0x98] sm:$0xff] }
 0x4fe   :  { %1935 = vmatmul.f32.vlgmr.msrb.gmra.mxu0 %v1917_v37  ;;  %1955 = vmatmul.f32.vlgmr.msrb.gmra.mxu1 %v1917_v37  ;;  %v7609_v0 = vld [vmem:[%s9940_s5 + $0x1f8] sm:$0xff] }
 0x4ff   :  { %1975 = vmatmul.f32.vlgmr.msra.gmra.mxu2 %v1917_v37  ;;  %1995 = vmatmul.f32.vlgmr.msra.gmra.mxu3 %v1917_v37 }
 0x500   :  { %2324 = vmatpush.msrb.mxu3 %v2239_v28  ;;  %2302 = vmatpush.msrb.mxu2 %v2234_v53  ;;  %v2188_v53 = vld [vmem:[%s9939_s4 + $0x40] sm:$0xff] }
 0x501   :  { %2285 = vmatpush.msra.mxu1 %v2209_v42  ;;  %2264 = vmatpush.msra.mxu0 %v2200_v32 }
 0x502   :  { %2325 = vmatpush.msrb.mxu3 %v2235_v12  ;;  %2303 = vmatpush.msrb.mxu2 %v2230_v35  ;;  %v2189_v12 = vld [vmem:[%s9939_s4 + $0x48] sm:$0xff]  ;;  %v2184_v35 = vld [vmem:[%s9939_s4 + $0x20] sm:$0xff] }
 0x503   :  { %2286 = vmatpush.msra.mxu1 %v2205_v59  ;;  %2265 = vmatpush.msra.mxu0 %v2196_v3  ;;  %v7645_v59 = vld [vmem:[%s9940_s5 + $0x1a8] sm:$0xff] }
 0x504   :  { %2326 = vmatpush.msrb.mxu3 %v2231_v14  ;;  %2304 = vmatpush.msrb.mxu2 %v2226_v62  ;;  %v2185_v14 = vld [vmem:[%s9939_s4 + $0x28] sm:$0xff]  ;;  %v2187_v62 = vld [vmem:[%s9939_s4 + $0x38] sm:$0xff] }
 0x505   :  { %2287 = vmatpush.msra.mxu1 %v2201_v55  ;;  %2266 = vmatpush.msra.mxu0 %v2192_v29  ;;  %v7652_v55 = vld [vmem:[%s9940_s5 + $0x1b0] sm:$0xff]  ;;  %v7696_v29 = vld [vmem:[%s9940_s5 + $0x160] sm:$0xff] }
 0x506   :  { %2327 = vmatpush.msrb.mxu3 %v2227_v2  ;;  %2305 = vmatpush.msrb.mxu2 %v2222_v30  ;;  %v2180_v2 = vld [vmem:[%s9939_s4] sm:$0xff]  ;;  %v2182_v30 = vld [vmem:[%s9939_s4 + $0x10] sm:$0xff] }
 0x507   :  { %2288 = vmatpush.msra.mxu1 %v2197_v50  ;;  %2267 = vmatpush.msra.mxu0 %v2188_v53  ;;  %v7666_v50 = vld [vmem:[%s9940_s5 + $0x180] sm:$0xff]  ;;  %v7744_v53 = vld [vmem:[%s9940_s5 + $0x158] sm:$0xff] }
 0x508   :  { %2328 = vmatpush.msrb.mxu3 %v2223_v11  ;;  %2306 = vmatpush.msrb.mxu2 %v2218_v57  ;;  %v2183_v11 = vld [vmem:[%s9939_s4 + $0x18] sm:$0xff]  ;;  %10506 = vst [vmem:[#allocation6_spill] sm:$0xff] %v7744_v53 }
 0x509   :  { %2289 = vmatpush.msra.mxu1 %v2193_v58  ;;  %2268 = vmatpush.msra.mxu0 %v2184_v35  ;;  %v7701_v58 = vld [vmem:[%s9940_s5 + $0x168] sm:$0xff] }
 0x50a   :  { %2329 = vmatpush.msrb.mxu3 %v2219_v22  ;;  %2307 = vmatpush.msrb.mxu2 %v2214_v43  ;;  %v7599_v22 = vld [vmem:[%s9940_s5 + $0x1e8] sm:$0xff] }
 0x50b   :  { %2290 = vmatpush.msra.mxu1 %v2189_v12  ;;  %2269 = vmatpush.msra.mxu0 %v2180_v2 }
 0x50c   :  { %2330 = vmatpush.msrb.mxu3 %v2215_v46  ;;  %2308 = vmatpush.msrb.mxu2 %v2210_v23  ;;  %v7615_v46 = vld [vmem:[%s9940_s5 + $0x1c0] sm:$0xff]  ;;  %v7633_v23 = vld [vmem:[%s9940_s5 + $0x1d8] sm:$0xff] }
 0x50d   :  { %2291 = vmatpush.msra.mxu1 %v2185_v14  ;;  %2410 = vmatpush.msrb.mxu0 %v7594_v41 }
 0x50e   :  { %2331 = vmatpush.msrb.mxu3 %v2211_v48  ;;  %2309 = vmatpush.msrb.mxu2 %v2206_v15 }
 0x50f   :  { %2292 = vmatpush.msra.mxu1 %v2181_v18  ;;  %2411 = vmatpush.msrb.mxu0 %v7615_v46 }
 0x510   :  { %2332 = vmatpush.msrb.mxu3 %v2207_v21  ;;  %2310 = vmatpush.msrb.mxu2 %v2202_v10  ;;  %v7657_v10 = vld [vmem:[%s9940_s5 + $0x1b8] sm:$0xff] }
 0x511   :  { %2430 = vmatpush.msrb.mxu1 %v7599_v22 }
 0x512   :  { %2333 = vmatpush.msrb.mxu3 %v2203_v25  ;;  %2311 = vmatpush.msrb.mxu2 %v2198_v1  ;;  %v7671_v1 = vld [vmem:[%s9940_s5 + $0x188] sm:$0xff] }
 0x513   :  { %2431 = vmatpush.msrb.mxu1 %v7620_v9 }
 0x514   :  { %2334 = vmatpush.msrb.mxu3 %v2199_v19  ;;  %2312 = vmatpush.msrb.mxu2 %v2194_v63  ;;  %v7680_v19 = vld [vmem:[%s9940_s5 + $0x190] sm:$0xff] }
 0x515   :  { %2432 = vmatpush.msrb.mxu1 %v7645_v59 }
 0x516   :  { %2335 = vmatpush.msrb.mxu3 %v2195_v27  ;;  %2313 = vmatpush.msrb.mxu2 %v2190_v51  ;;  %v7712_v27 = vld [vmem:[%s9940_s5 + $0x170] sm:$0xff] }
 0x517   :  { %2433 = vmatpush.msrb.mxu1 %v7671_v1 }
 0x518   :  { %2314 = vmatpush.msrb.mxu2 %v2186_v56  ;;  %v7769_v56 = vld [vmem:[%s9940_s5 + $0x130] sm:$0xff] }
 0x519   :  { %2434 = vmatpush.msrb.mxu1 %v7701_v58  ;;  %10509 = vst [vmem:[#allocation7_spill] sm:$0xff] %v7769_v56 }
 0x51a   :  { %2315 = vmatpush.msrb.mxu2 %v2182_v30  ;;  %v7793_v30 = vld [vmem:[%s9940_s5 + $0x108] sm:$0xff] }
 0x51b   :  { %10512 = vst [vmem:[#allocation14_spill] sm:$0xff] %v7793_v30 }
 0x51c   :  { %2450 = vmatpush.msra.mxu2 %v7604_v34 }
 0x57b   :  { %v1936_v7 = vpop.f32.mrf.mxu0  ;;  %v1956_v31 = vpop.f32.mrf.mxu1 }
 0x57c   :  { %v2003_v33 = vrot.slane %v1936_v7, 1  ;;  %v2007_v37 = vrot.slane %v1936_v7, 2  ;;  %v2004_v52 = vrot.slane %v1956_v31, 1  ;;  %v2008_v45 = vrot.slane %v1956_v31, 2 }
 0x57e   :  { %v2019_v4 = vadd.f32 %v2003_v33, %v10473_v61  ;;  %v2023_v28 = vadd.f32 %v2007_v37, %v10474_v60  ;;  %v2020_v20 = vadd.f32 %v2004_v52, %v10475_v26  ;;  %v2024_v47 = vadd.f32 %v2008_v45, %v10476_v38  ;;  %v2191_v61 = vld [vmem:[%s9939_s4 + $0x58] sm:$0xff] }
 0x57f   :  { %2336 = vmatpush.msrb.mxu3 %v2191_v61  ;;  %v7685_v33 = vld [vmem:[%s9940_s5 + $0x198] sm:$0xff] }
 0x580   :  { %v4478_v60 = vmul.f32 -1.442695, %v2019_v4  ;;  %v4479_v26 = vmul.f32 -1.442695, %v2023_v28  ;;  %v4480_v38 = vmul.f32 -1.442695, %v2020_v20 }
 0x581   :  { %v4481_v54 = vmul.f32 -1.442695, %v2024_v47  ;;  %2337 = vmatpush.msrb.mxu3 %v2187_v62  ;;  %v7717_v4 = vld [vmem:[%s9940_s5 + $0x178] sm:$0xff]  ;;  %v7730_v28 = vld [vmem:[%s9940_s5 + $0x148] sm:$0xff]  ;;  %v7739_v47 = vld [vmem:[%s9940_s5 + $0x150] sm:$0xff] }
 0x582   :  { %4759 = vpow2.f32 %v4478_v60  ;;  %v1996_v44 = vpop.f32.mrf.mxu3  ;;  %v1976_v16 = vpop.f32.mrf.mxu2  ;;  %10505 = vst [vmem:[#allocation5_spill] sm:$0xff] %v7739_v47  ;;  %v7753_v60 = vld [vmem:[%s9940_s5 + $0x120] sm:$0xff]  ;;  %2435 = vmatpush.msrb.mxu1 %v7730_v28 }
 0x583   :  { %4761 = vpow2.f32 %v4479_v26  ;;  %v2006_v49 = vrot.slane %v1996_v44, 1  ;;  %v2010_v57 = vrot.slane %v1996_v44, 2  ;;  %2338 = vmatpush.msrb.mxu3 %v2183_v11  ;;  %v2005_v48 = vrot.slane %v1976_v16, 1  ;;  %10507 = vst [vmem:[#allocation9_spill] sm:$0xff] %v7753_v60  ;;  %v7758_v26 = vld [vmem:[%s9940_s5 + $0x128] sm:$0xff]  ;;  %v7774_v44 = vld [vmem:[%s9940_s5 + $0x138] sm:$0xff] }
 0x584   :  { %4763 = vpow2.f32 %v4480_v38  ;;  %v2009_v21 = vrot.slane %v1976_v16, 2  ;;  %10508 = vst [vmem:[#allocation10_spill] sm:$0xff] %v7758_v26  ;;  %2436 = vmatpush.msrb.mxu1 %v7758_v26 }
 0x585   :  { %4765 = vpow2.f32 %v4481_v54  ;;  %v2022_v43 = vadd.f32 %v2006_v49, %v10477_v6  ;;  %v2026_v42 = vadd.f32 %v2010_v57, %v10478_v40  ;;  %v7628_v6 = vld [vmem:[%s9940_s5 + $0x1d0] sm:$0xff]  ;;  %2470 = vmatpush.msra.mxu3 %v7609_v0  ;;  %v7640_v40 = vld [vmem:[%s9940_s5 + $0x1a0] sm:$0xff]  ;;  %v2021_v45 = vadd.f32 %v2005_v48, %v10479_v8  ;;  %10510 = vst [vmem:[#allocation8_spill] sm:$0xff] %v7774_v44  ;;  %v7816_v48 = vld [vmem:[%s9940_s5 + $0x118] sm:$0xff] }
 0x586   :  { %2451 = vmatpush.msra.mxu2 %v7628_v6  ;;  %2412 = vmatpush.msrb.mxu0 %v7640_v40  ;;  %v2025_v8 = vadd.f32 %v2009_v21, %v10480_v13  ;;  %v7725_v13 = vld [vmem:[%s9940_s5 + $0x140] sm:$0xff]  ;;  %10516 = vst [vmem:[#allocation12_spill] sm:$0xff] %v7816_v48 }
 0x587   :  { %v4482_v39 = vmul.f32 -1.442695, %v2022_v43  ;;  %v4483_v32 = vmul.f32 -1.442695, %v2026_v42  ;;  %2471 = vmatpush.msra.mxu3 %v7633_v23  ;;  %v7788_v49 = vld [vmem:[%s9940_s5 + $0x100] sm:$0xff]  ;;  %v7811_v42 = vld [vmem:[%s9940_s5 + $0x110] sm:$0xff]  ;;  %2437 = vmatpush.msrb.mxu1 %v7793_v30 }
 0x588   :  { %v4760_v15 = vpop.eup %4759  ;;  %2452 = vmatpush.msra.mxu2 %v7652_v55  ;;  %2413 = vmatpush.msrb.mxu0 %v7666_v50  ;;  %10511 = vst [vmem:[#allocation13_spill] sm:$0xff] %v7788_v49  ;;  %v8009_v57 = vld [vmem:[%s9940_s5 + $0x60] sm:$0xff] }
 0x589   :  { %v4762_v25 = vpop.eup %4761  ;;  %v7659_v3 = vadd.f32 1.0, %v4760_v15  ;;  %4767 = vpow2.f32 %v4482_v39  ;;  %2472 = vmatpush.msra.mxu3 %v7657_v10  ;;  %10515 = vst [vmem:[#allocation11_spill] sm:$0xff] %v7811_v42 }
 0x58a   :  { %v4764_v7 = vpop.eup %4763  ;;  %v7673_v31 = vadd.f32 1.0, %v4762_v25  ;;  %4769 = vpow2.f32 %v4483_v32  ;;  %2453 = vmatpush.msra.mxu2 %v7680_v19  ;;  %2414 = vmatpush.msrb.mxu0 %v7696_v29  ;;  %v7832_v25 = vld [vmem:[%s9940_s5 + $0xe0] sm:$0xff] }
 0x58b   :  { %v4766_v37 = vpop.eup %4765  ;;  %4771 = vrcp.f32 %v7659_v3  ;;  %v7688_v52 = vadd.f32 1.0, %v4764_v7  ;;  %2473 = vmatpush.msra.mxu3 %v7685_v33  ;;  %v2044_v20 = vand.u32 2147483647, %v7659_v3  ;;  %v2046_v61 = vand.u32 2147483648, %v7659_v3  ;;  %10517 = vst [vmem:[#allocation17_spill] sm:$0xff] %v7832_v25  ;;  %v7837_v7 = vld [vmem:[%s9940_s5 + $0xe8] sm:$0xff] }
 0x58c   :  { %4773 = vrcp.f32 %v7673_v31  ;;  %v7704_v63 = vadd.f32 1.0, %v4766_v37  ;;  %2454 = vmatpush.msra.mxu2 %v7712_v27  ;;  %2415 = vmatpush.msrb.mxu0 %v7725_v13  ;;  %vm2040_vm8 = vweird.f32 %v7659_v3  ;;  %vm2055_vm10 = vweird.f32 %v7673_v31  ;;  %10518 = vst [vmem:[#allocation18_spill] sm:$0xff] %v7837_v7 }
 0x58d   :  { %4775 = vrcp.f32 %v7688_v52  ;;  %2474 = vmatpush.msra.mxu3 %v7717_v4  ;;  %v2084_v35 = vand.u32 2147483648, %v7688_v52  ;;  %vm2078_vm11 = vweird.f32 %v7688_v52  ;;  %vm7800_vm12 = vcmp.eq.f32.partialorder %v2044_v20, 8.507059e+37  ;;  %2438 = vmatpush.msrb.mxu1 %v7837_v7  ;;  %v7904_v7 = vld [vmem:[%s9940_s5 + $0xa0] sm:$0xff] }
 0x58e   :  { %4777 = vrcp.f32 %v7704_v63  ;;  %v2099_v2 = vand.u32 2147483648, %v7704_v63  ;;  %2455 = vmatpush.msra.mxu2 %v7739_v47  ;;  %v2059_v43 = vand.u32 2147483647, %v7673_v31  ;;  %2416 = vmatpush.msrb.mxu0 %v7753_v60  ;;  %vm2093_vm13 = vweird.f32 %v7704_v63 }
 0x58f   :  { %v4768_v12 = vpop.eup %4767  ;;  %4779 = vtanh.f32 %v2021_v45  ;;  %2475 = vmatpush.msra.mxu3 %v7744_v53  ;;  %v7823_v21 = vor.u32 1.1754944e-38, %v2046_v61  ;;  %v2061_v32 = vand.u32 2147483648, %v7673_v31  ;;  %v7843_v20 = vor.u32 1.1754944e-38, %v2084_v35  ;;  %v7851_v61 = vld [vmem:[%s9940_s5 + $0xf0] sm:$0xff] }
 0x590   :  { %v4770_v38 = vpop.eup %4769  ;;  %4781 = vtanh.f32 %v2025_v8  ;;  %v7762_v14 = vadd.f32 1.0, %v4768_v12  ;;  %2456 = vmatpush.msra.mxu2 %v7769_v56  ;;  %v2082_v12 = vand.u32 2147483647, %v7688_v52  ;;  %2417 = vmatpush.msrb.mxu0 %v7788_v49  ;;  %10519 = vst [vmem:[#allocation15_spill] sm:$0xff] %v7851_v61  ;;  %v7862_v51 = vor.u32 1.1754944e-38, %v2099_v2  ;;  %v7870_v49 = vld [vmem:[%s9940_s5 + $0xc0] sm:$0xff] }
 0x591   :  { %v7776_v62 = vpop.eup %4771  ;;  %v7781_v18 = vadd.f32 1.0, %v4770_v38  ;;  %2476 = vmatpush.msra.mxu3 %v7774_v44  ;;  %v7856_v38 = vld [vmem:[%s9940_s5 + $0xf8] sm:$0xff]  ;;  %v2097_v30 = vand.u32 2147483647, %v7704_v63  ;;  %10521 = vst [vmem:[#allocation21_spill] sm:$0xff] %v7870_v49  ;;  %vm7881_vm14 = vcmp.eq.f32.partialorder %v2059_v43, 8.507059e+37 }
 0x592   :  { %v7795_v11 = vpop.eup %4773  ;;  %v2036_v16 = vmul.f32 %v7776_v62, %v7659_v3  ;;  %4783 = vrcp.f32 %v7762_v14  ;;  %10520 = vst [vmem:[#allocation16_spill] sm:$0xff] %v7856_v38  ;;  %2457 = vmatpush.msra.mxu2 %v7811_v42  ;;  %vm2041_vm15 = vweird.f32 %v7776_v62  ;;  %2418 = vmatpush.msrb.mxu0 %v7832_v25  ;;  %v2062_v26 = vor.u32 1.1754944e-38, %v2061_v32  ;;  %v7909_v25 = vld [vmem:[%s9940_s5 + $0xa8] sm:$0xff] }
 0x593   :  { %v7818_v39 = vpop.eup %4775  ;;  %v2051_v15 = vmul.f32 %v7795_v11, %v7673_v31  ;;  %4785 = vrcp.f32 %v7781_v18  ;;  %2477 = vmatpush.msra.mxu3 %v7816_v48  ;;  %v7890_v48 = vld [vmem:[%s9940_s5 + $0xd0] sm:$0xff]  ;;  %vm2056_vm0 = vweird.f32 %v7795_v11  ;;  %vm7916_vm2 = vcmp.eq.f32.partialorder %v2082_v12, 8.507059e+37  ;;  %vm7940_vm4 = vmor %vm2040_vm8, %vm2041_vm15  ;;  %v7957_v3 = vld [vmem:[%s9940_s5 + $0x88] sm:$0xff] }
 0x594   :  { %v7839_v37 = vpop.eup %4777  ;;  %v2037_v45 = vsub.f32 1.0, %v2036_v16  ;;  %v2074_v8 = vmul.f32 %v7818_v39, %v7688_v52  ;;  %10525 = vst [vmem:[#allocation19_spill] sm:$0xff] %v7890_v48  ;;  %2458 = vmatpush.msra.mxu2 %v7851_v61  ;;  %vm2079_vm1 = vweird.f32 %v7818_v39  ;;  %2419 = vmatpush.msrb.mxu0 %v7870_v49  ;;  %v7925_v61 = vld [vmem:[%s9940_s5 + $0xb0] sm:$0xff]  ;;  %vm7966_vm5 = vmor %vm2055_vm10, %vm2056_vm0  ;;  %vm7971_vm6 = vcmp.eq.f32.partialorder %v2097_v30, 8.507059e+37  ;;  %v8004_v52 = vld [vmem:[%s9940_s5 + $0x98] sm:$0xff] }
 0x595   :  { %v7858_v16 = vpop.eup %4779  ;;  %v2052_v35 = vsub.f32 1.0, %v2051_v15  ;;  %v2089_v54 = vmul.f32 %v7839_v37, %v7704_v63  ;;  %v7875_v15 = vld [vmem:[%s9940_s5 + $0xc8] sm:$0xff]  ;;  %2478 = vmatpush.msra.mxu3 %v7856_v38  ;;  %vm2094_vm3 = vweird.f32 %v7839_v37  ;;  %v7982_v31 = vld [vmem:[%s9940_s5 + $0x90] sm:$0xff]  ;;  %vm7988_vm7 = vmor %vm2078_vm11, %vm2079_vm1  ;;  %v10540_v53 = vrot.slane %v7378_v17, 7 }
 0x596   :  { %10522 = vst [vmem:[#allocation22_spill] sm:$0xff] %v7875_v15  ;;  %v7877_v44 = vpop.eup %4781  ;;  %v2075_v2 = vsub.f32 1.0, %v2074_v8  ;;  %v2038_v56 = vmul.f32 %v7776_v62, %v2037_v45  ;;  %v7895_v8 = vld [vmem:[%s9940_s5 + $0xd8] sm:$0xff]  ;;  %2439 = vmatpush.msrb.mxu1 %v7875_v15  ;;  %2459 = vmatpush.msra.mxu2 %v7890_v48  ;;  %vm8015_vm8 = vmor %vm2093_vm13, %vm2094_vm3  ;;  %v8030_v63 = vld [vmem:[%s9940_s5 + $0x68] sm:$0xff]  ;;  %vm2133_vm15 = vweird.f32 %v7781_v18  ;;  %vm2177_vm1 = vcmask 1046528  }
 0x597   :  { %10526 = vst [vmem:[#allocation20_spill] sm:$0xff] %v7895_v8  ;;  %v2090_v45 = vsub.f32 1.0, %v2089_v54  ;;  %v2053_v43 = vmul.f32 %v7795_v11, %v2052_v35  ;;  %2479 = vmatpush.msra.mxu3 %v7895_v8  ;;  %2420 = vmatpush.msrb.mxu0 %v7904_v7  ;;  %v8054_v38 = vld [vmem:[%s9940_s5 + $0x40] sm:$0xff]  ;;  %v8093_v17 = vld [vmem:[%s9940_s5 + $0x28] sm:$0xff] }
 0x598   :  { %v7911_v54 = vpop.eup %4783  ;;  %v2076_v35 = vmul.f32 %v7818_v39, %v2075_v2  ;;  %v2039_v32 = vadd.f32 %v7776_v62, %v2038_v56  ;;  %v7930_v2 = vld [vmem:[%s9940_s5 + $0xb8] sm:$0xff]  ;;  %2440 = vmatpush.msrb.mxu1 %v7909_v25  ;;  %2460 = vmatpush.msra.mxu2 %v7925_v61 }
 0x599   :  { %v7932_v60 = vpop.eup %4785  ;;  %v2091_v56 = vmul.f32 %v7839_v37, %v2090_v45  ;;  %v2054_v15 = vadd.f32 %v7795_v11, %v2053_v43  ;;  %v2114_v49 = vmul.f32 %v7911_v54, %v7762_v14  ;;  %v7952_v45 = vld [vmem:[%s9940_s5 + $0x80] sm:$0xff]  ;;  %2480 = vmatpush.msra.mxu3 %v7930_v2  ;;  %vm2119_vm10 = vweird.f32 %v7911_v54 }
 0x59a   :  { %v2043_v43 = vsel %vm7940_vm4, %v7776_v62, %v2039_v32  ;;  %v2077_v48 = vadd.f32 %v7818_v39, %v2076_v35  ;;  %v2129_v47 = vmul.f32 %v7932_v60, %v7781_v18  ;;  %2421 = vmatpush.msrb.mxu0 %v7952_v45  ;;  %2441 = vmatpush.msrb.mxu1 %v7957_v3  ;;  %v8072_v62 = vld [vmem:[%s9940_s5 + $0x50] sm:$0xff]  ;;  %vm2134_vm11 = vweird.f32 %v7932_v60 }
 0x59b   :  { %v2048_v30 = vsel %vm7800_vm12, %v7823_v21, %v2043_v43  ;;  %v2058_v35 = vsel %vm7966_vm5, %v7795_v11, %v2054_v15  ;;  %v2092_v32 = vadd.f32 %v7839_v37, %v2091_v56  ;;  %v2115_v12 = vsub.f32 1.0, %v2114_v49  ;;  %2461 = vmatpush.msra.mxu2 %v7982_v31  ;;  %2481 = vmatpush.msra.mxu3 %v8004_v52  ;;  %v8067_v43 = vld [vmem:[%s9940_s5 + $0x48] sm:$0xff] }
 0x59c   :  { %v2063_v11 = vsel %vm7881_vm14, %v2062_v26, %v2058_v35  ;;  %v2081_v21 = vsel %vm7988_vm7, %v7818_v39, %v2077_v48  ;;  %v2151_v15 = vmul.f32 %v7858_v16, %v2048_v30  ;;  %v2130_v8 = vsub.f32 1.0, %v2129_v47  ;;  %v8035_v26 = vld [vmem:[%s9940_s5 + $0x70] sm:$0xff]  ;;  %v8049_v16 = vld [vmem:[%s9940_s5 + $0x78] sm:$0xff]  ;;  %2422 = vmatpush.msrb.mxu0 %v8009_v57  ;;  %2442 = vmatpush.msrb.mxu1 %v8030_v63  ;;  %v8086_v30 = vld [vmem:[%s9940_s5 + $0x20] sm:$0xff] }
 0x59d   :  { %v2086_v42 = vsel %vm7916_vm2, %v7843_v20, %v2081_v21  ;;  %v2096_v47 = vsel %vm8015_vm8, %v7839_v37, %v2092_v32  ;;  %v2152_v48 = vmul.f32 %v7877_v44, %v2063_v11  ;;  %v2116_v39 = vmul.f32 %v7911_v54, %v2115_v12  ;;  %2462 = vmatpush.msra.mxu2 %v8035_v26  ;;  %v8098_v32 = vld [vmem:[%s9940_s5 + $0x30] sm:$0xff]  ;;  %v8107_v11 = vld [vmem:[%s9940_s5 + $0x38] sm:$0xff]  ;;  %v8112_v21 = vld [vmem:[%s9940_s5] sm:$0xff] }
 0x59e   :  { %v2101_v37 = vsel %vm7971_vm6, %v7862_v51, %v2096_v47  ;;  %v10539_v44 = vrot.slane %v7376_v5, 7  ;;  %v2131_v56 = vmul.f32 %v7932_v60, %v2130_v8  ;;  %v8081_v51 = vld [vmem:[%s9940_s5 + $0x58] sm:$0xff]  ;;  %2482 = vmatpush.msra.mxu3 %v8049_v16  ;;  %2423 = vmatpush.msrb.mxu0 %v8054_v38  ;;  %10541 = vst [vmem:[#allocation25_spill] sm:$0xff] %v8107_v11  ;;  %v8127_v47 = vld [vmem:[%s9940_s5 + $0x10] sm:$0xff]  ;;  %vm2118_vm12 = vweird.f32 %v7762_v14  ;;  %vm2135_vm14 = vmor %vm2133_vm15, %vm2134_vm11 }
 0x59f   :  { %v2150_v5 = vmul.f32 %v10540_v53, %v2101_v37  ;;  %v2117_v49 = vadd.f32 %v7911_v54, %v2116_v39  ;;  %2443 = vmatpush.msrb.mxu1 %v8067_v43  ;;  %2463 = vmatpush.msra.mxu2 %v8072_v62  ;;  %10542 = vst [vmem:[#allocation26_spill] sm:$0xff] %v8112_v21  ;;  %v2139_v39 = vand.u32 2147483648, %v7781_v18  ;;  %v8137_v37 = vld [vmem:[%s9940_s5 + $0x18] sm:$0xff]  ;;  %vm8141_vm13 = vmor %vm2118_vm12, %vm2119_vm10 }
 0x5a0   :  { %v2149_v20 = vmul.f32 %v10539_v44, %v2086_v42  ;;  %v2132_v8 = vadd.f32 %v7932_v60, %v2131_v56  ;;  %2483 = vmatpush.msra.mxu3 %v8081_v51  ;;  %2424 = vmatpush.msrb.mxu0 %v8086_v30  ;;  %v8122_v42 = vld [vmem:[%s9940_s5 + $0x8] sm:$0xff]  ;;  %10544 = vst [vmem:[#allocation24_spill] sm:$0xff] %v8127_v47 }
 0x5a1   :  { %v2154_v12 = vadd.f32 %v2152_v48, %v2150_v5  ;;  %10543 = vst [vmem:[#allocation23_spill] sm:$0xff] %v8122_v42  ;;  %v2122_v48 = vand.u32 2147483647, %v7762_v14  ;;  %2444 = vmatpush.msrb.mxu1 %v8093_v17  ;;  %2464 = vmatpush.msra.mxu2 %v8098_v32 }
 0x5a2   :  { %v2153_v35 = vadd.f32 %v2151_v15, %v2149_v20  ;;  %v2124_v15 = vand.u32 2147483648, %v7762_v14  ;;  %10545 = vst [vmem:[#allocation29_spill] sm:$0xff] %v8137_v37  ;;  %v2137_v14 = vand.u32 2147483647, %v7781_v18  ;;  %2484 = vmatpush.msra.mxu3 %v8107_v11  ;;  %2425 = vmatpush.msrb.mxu0 %v8112_v21  ;;  %v2121_v20 = vsel %vm8141_vm13, %v7911_v54, %v2117_v49 }
 0x5a3   :  { %2445 = vmatpush.msrb.mxu1 %v8122_v42  ;;  %2465 = vmatpush.msra.mxu2 %v8127_v47  ;;  %v2136_v53 = vsel %vm2135_vm14, %v7932_v60, %v2132_v8  ;;  %vm2123_vm0 = vcmp.eq.f32.partialorder %v2122_v48, 8.507059e+37  ;;  %v2140_v18 = vor.u32 1.1754944e-38, %v2139_v39  ;;  %v10553_v48 = vld [vmem:[#allocation10_spill] sm:$0xff]  ;;  %v10554_v39 = vld [vmem:[#allocation7_spill] sm:$0xff] }
 0x5a4   :  { %4787 = vtanh.f32 %v2153_v35  ;;  %v2125_v56 = vor.u32 1.1754944e-38, %v2124_v15  ;;  %2485 = vmatpush.msra.mxu3 %v8137_v37  ;;  %vm2138_vm2 = vcmp.eq.f32.partialorder %v2137_v14, 8.507059e+37  ;;  %v10555_v14 = vld [vmem:[#allocation8_spill] sm:$0xff] }
 0x5a5   :  { %4789 = vtanh.f32 %v2154_v12  ;;  %v2141_v49 = vsel %vm2138_vm2, %v2140_v18, %v2136_v53  ;;  %v10558_v53 = vld [vmem:[#allocation11_spill] sm:$0xff]  ;;  %v10559_v18 = vld [vmem:[#allocation12_spill] sm:$0xff] }
 0x5a6   :  { %v2126_v35 = vsel %vm2123_vm0, %v2125_v56, %v2121_v20  ;;  %v10556_v20 = vld [vmem:[#allocation13_spill] sm:$0xff]  ;;  %v10557_v56 = vld [vmem:[#allocation14_spill] sm:$0xff] }
 0x5aa   :  { %v4788_v5 = vpop.eup %4787 }
 0x5ab   :  { %v4790_v12 = vpop.eup %4789  ;;  %v2157_v54 = vmul.f32 %v4788_v5, %v2126_v35  ;;  %v10560_v5 = vld [vmem:[#allocation17_spill] sm:$0xff]  ;;  %v10561_v35 = vld [vmem:[#allocation18_spill] sm:$0xff] }
 0x5ac   :  { %v2158_v44 = vmul.f32 %v4790_v12, %v2141_v49  ;;  %v10562_v12 = vld [vmem:[#allocation15_spill] sm:$0xff]  ;;  %v10564_v49 = vld [vmem:[#allocation21_spill] sm:$0xff] }
 0x5ad   :  { %v2178_v21 = vsel %vm2177_vm1, %v7389_v24, %v2157_v54  ;;  %v4358_v42 = vrot.slane %v2157_v54, 7  ;;  %v10549_v24 = vld [vmem:[#allocation5_spill] sm:$0xff]  ;;  %v10563_v54 = vld [vmem:[#allocation16_spill] sm:$0xff] }
 0x5ae   :  { %2270 = vmatmul.f32.vlgmr.msra.gmra.mxu0 %v2178_v21  ;;  %2293 = vmatmul.f32.vlgmr.msra.gmra.mxu1 %v2178_v21  ;;  %v2179_v15 = vsel %vm2177_vm1, %v7392_v36, %v2158_v44  ;;  %v4359_v60 = vrot.slane %v2158_v44, 6  ;;  %v10550_v36 = vld [vmem:[#allocation6_spill] sm:$0xff] }
 0x5af   :  { %2316 = vmatmul.f32.vlgmr.msrb.gmra.mxu2 %v2178_v21  ;;  %2339 = vmatmul.f32.vlgmr.msrb.gmra.mxu3 %v2178_v21  ;;  %v10551_v21 = vmov 0.0   ;;  %v10565_v44 = vld [vmem:[#allocation22_spill] sm:$0xff] }
 0x5b0   :  { %2645 = vmatpush.msra.mxu0 %v7594_v41  ;;  %2665 = vmatpush.msra.mxu1 %v7599_v22  ;;  %v8163_v8 = vsel %vm445_vm9, %v4359_v60, %v4358_v42  ;;  %v10552_v42 = vld [vmem:[#allocation9_spill] sm:$0xff]  ;;  %v10567_v60 = vld [vmem:[#allocation20_spill] sm:$0xff] }
 0x5b1   :  { %10548 = vst [vmem:[#allocation30_spill] sm:$0xff] %v8163_v8  ;;  %2685 = vmatpush.msrb.mxu2 %v7604_v34  ;;  %2705 = vmatpush.msrb.mxu3 %v7609_v0  ;;  %v10569_v8 = vld [vmem:[#allocation23_spill] sm:$0xff] }
 0x5b2   :  { %2646 = vmatpush.msra.mxu0 %v7615_v46  ;;  %2666 = vmatpush.msra.mxu1 %v7620_v9 }
 0x5b3   :  { %2686 = vmatpush.msrb.mxu2 %v7628_v6  ;;  %2706 = vmatpush.msrb.mxu3 %v7633_v23 }
 0x5b4   :  { %2647 = vmatpush.msra.mxu0 %v7640_v40  ;;  %2667 = vmatpush.msra.mxu1 %v7645_v59 }
 0x5b5   :  { %2687 = vmatpush.msrb.mxu2 %v7652_v55  ;;  %2707 = vmatpush.msrb.mxu3 %v7657_v10 }
 0x5b6   :  { %2273 = vmatmul.f32.gmra.mxu0 %v2179_v15  ;;  %2296 = vmatmul.f32.gmra.mxu1 %v2179_v15 }
 0x5b7   :  { %2319 = vmatmul.f32.gmra.mxu2 %v2179_v15  ;;  %2342 = vmatmul.f32.gmra.mxu3 %v2179_v15  ;;  %v10566_v15 = vld [vmem:[#allocation19_spill] sm:$0xff] }
 0x5b8   :  { %2648 = vmatpush.msra.mxu0 %v7666_v50  ;;  %2668 = vmatpush.msra.mxu1 %v7671_v1 }
 0x5b9   :  { %2688 = vmatpush.msrb.mxu2 %v7680_v19  ;;  %2708 = vmatpush.msrb.mxu3 %v7685_v33 }
 0x5ba   :  { %2649 = vmatpush.msra.mxu0 %v7696_v29  ;;  %2669 = vmatpush.msra.mxu1 %v7701_v58 }
 0x5bb   :  { %2689 = vmatpush.msrb.mxu2 %v7712_v27  ;;  %2709 = vmatpush.msrb.mxu3 %v7717_v4 }
 0x5bc   :  { %2650 = vmatpush.msra.mxu0 %v7725_v13  ;;  %2670 = vmatpush.msra.mxu1 %v7730_v28 }
 0x5bd   :  { %2690 = vmatpush.msrb.mxu2 %v10549_v24  ;;  %2710 = vmatpush.msrb.mxu3 %v10550_v36 }
 0x5be   :  { %2426 = vmatmul.f32.vlgmr.msrb.gmra.mxu0 %v10551_v21  ;;  %2446 = vmatmul.f32.vlgmr.msrb.gmra.mxu1 %v10551_v21 }
 0x5bf   :  { %2466 = vmatmul.f32.vlgmr.msra.gmra.mxu2 %v10551_v21  ;;  %2486 = vmatmul.f32.vlgmr.msra.gmra.mxu3 %v10551_v21  ;;  %v10568_v21 = vld [vmem:[#allocation26_spill] sm:$0xff] }
 0x5c0   :  { %2651 = vmatpush.msra.mxu0 %v10552_v42  ;;  %2671 = vmatpush.msra.mxu1 %v10553_v48 }
 0x5c1   :  { %2691 = vmatpush.msrb.mxu2 %v10554_v39  ;;  %2711 = vmatpush.msrb.mxu3 %v10555_v14 }
 0x5c2   :  { %2652 = vmatpush.msra.mxu0 %v10556_v20  ;;  %2672 = vmatpush.msra.mxu1 %v10557_v56 }
 0x5c3   :  { %2692 = vmatpush.msrb.mxu2 %v10558_v53  ;;  %2712 = vmatpush.msrb.mxu3 %v10559_v18 }
 0x5c4   :  { %2653 = vmatpush.msra.mxu0 %v10560_v5  ;;  %2673 = vmatpush.msra.mxu1 %v10561_v35 }
 0x5c5   :  { %2693 = vmatpush.msrb.mxu2 %v10562_v12  ;;  %2713 = vmatpush.msrb.mxu3 %v10563_v54 }
 0x5c6   :  { %2654 = vmatpush.msra.mxu0 %v10564_v49  ;;  %2674 = vmatpush.msra.mxu1 %v10565_v44 }
 0x5c7   :  { %2694 = vmatpush.msrb.mxu2 %v10566_v15  ;;  %2714 = vmatpush.msrb.mxu3 %v10567_v60 }
 0x5c8   :  { %2655 = vmatpush.msra.mxu0 %v7904_v7  ;;  %2675 = vmatpush.msra.mxu1 %v7909_v25 }
 0x5c9   :  { %2695 = vmatpush.msrb.mxu2 %v7925_v61  ;;  %2715 = vmatpush.msrb.mxu3 %v7930_v2 }
 0x5ca   :  { %2656 = vmatpush.msra.mxu0 %v7952_v45  ;;  %2676 = vmatpush.msra.mxu1 %v7957_v3 }
 0x5cb   :  { %2696 = vmatpush.msrb.mxu2 %v7982_v31  ;;  %2716 = vmatpush.msrb.mxu3 %v8004_v52 }
 0x5cc   :  { %2657 = vmatpush.msra.mxu0 %v8009_v57  ;;  %2677 = vmatpush.msra.mxu1 %v8030_v63 }
 0x5cd   :  { %2697 = vmatpush.msrb.mxu2 %v8035_v26  ;;  %2717 = vmatpush.msrb.mxu3 %v8049_v16 }
 0x5ce   :  { %2658 = vmatpush.msra.mxu0 %v8054_v38  ;;  %2678 = vmatpush.msra.mxu1 %v8067_v43 }
 0x5cf   :  { %2698 = vmatpush.msrb.mxu2 %v8072_v62  ;;  %2718 = vmatpush.msrb.mxu3 %v8081_v51 }
 0x5d0   :  { %2659 = vmatpush.msra.mxu0 %v8086_v30  ;;  %2679 = vmatpush.msra.mxu1 %v8093_v17 }
 0x5d1   :  { %2699 = vmatpush.msrb.mxu2 %v8098_v32  ;;  %2719 = vmatpush.msrb.mxu3 %v8107_v11 }
 0x5d2   :  { %2660 = vmatpush.msra.mxu0 %v10568_v21  ;;  %2680 = vmatpush.msra.mxu1 %v10569_v8 }
 0x5d3   :  { %2700 = vmatpush.msrb.mxu2 %v8127_v47  ;;  %2720 = vmatpush.msrb.mxu3 %v8137_v37 }
 0x5d4   :  { %2886 = vmatpush.msrb.mxu0 %v7594_v41  ;;  %2906 = vmatpush.msrb.mxu1 %v7599_v22 }
 0x5d5   :  { %2926 = vmatpush.msra.mxu2 %v7604_v34  ;;  %2946 = vmatpush.msra.mxu3 %v7609_v0 }
 0x5d6   :  { %2887 = vmatpush.msrb.mxu0 %v7615_v46  ;;  %2907 = vmatpush.msrb.mxu1 %v7620_v9  ;;  %v2244_v46 = vld [vmem:[%s9941_s6] sm:$0xf] }
 0x5d7   :  { %2927 = vmatpush.msra.mxu2 %v7628_v6  ;;  %2947 = vmatpush.msra.mxu3 %v7633_v23  ;;  %v2246_v23 = vperm.slane %v2244_v46, 0 }
 0x5d8   :  { %2888 = vmatpush.msrb.mxu0 %v7640_v40  ;;  %2908 = vmatpush.msrb.mxu1 %v7645_v59  ;;  %v2247_v40 = vperm.slane %v2244_v46, 1 }
 0x5d9   :  { %2928 = vmatpush.msra.mxu2 %v7652_v55  ;;  %2948 = vmatpush.msra.mxu3 %v7657_v10 }
 0x5da   :  { %2889 = vmatpush.msrb.mxu0 %v7666_v50  ;;  %2909 = vmatpush.msrb.mxu1 %v7671_v1 }
 0x5db   :  { %2929 = vmatpush.msra.mxu2 %v7680_v19  ;;  %2949 = vmatpush.msra.mxu3 %v7685_v33 }
 0x5dc   :  { %2890 = vmatpush.msrb.mxu0 %v7696_v29  ;;  %2910 = vmatpush.msrb.mxu1 %v7701_v58 }
 0x5dd   :  { %2930 = vmatpush.msra.mxu2 %v7712_v27  ;;  %2950 = vmatpush.msra.mxu3 %v7717_v4 }
 0x5de   :  { %2891 = vmatpush.msrb.mxu0 %v7725_v13  ;;  %2911 = vmatpush.msrb.mxu1 %v7730_v28  ;;  %v2248_v28 = vperm.slane %v2244_v46, 2 }
 0x5df   :  { %2931 = vmatpush.msra.mxu2 %v10549_v24  ;;  %2951 = vmatpush.msra.mxu3 %v10550_v36  ;;  %v2249_v24 = vperm.slane %v2244_v46, 3 }
 0x5e0   :  { %2892 = vmatpush.msrb.mxu0 %v10552_v42  ;;  %2912 = vmatpush.msrb.mxu1 %v10553_v48 }
 0x5e1   :  { %2932 = vmatpush.msra.mxu2 %v10554_v39  ;;  %2952 = vmatpush.msra.mxu3 %v10555_v14 }
 0x5e2   :  { %2893 = vmatpush.msrb.mxu0 %v10556_v20  ;;  %2913 = vmatpush.msrb.mxu1 %v10557_v56 }
 0x5e3   :  { %2933 = vmatpush.msra.mxu2 %v10558_v53  ;;  %2953 = vmatpush.msra.mxu3 %v10559_v18 }
 0x5e4   :  { %2894 = vmatpush.msrb.mxu0 %v10560_v5  ;;  %2914 = vmatpush.msrb.mxu1 %v10561_v35 }
 0x5e5   :  { %2934 = vmatpush.msra.mxu2 %v10562_v12  ;;  %2954 = vmatpush.msra.mxu3 %v10563_v54 }
 0x5e6   :  { %2895 = vmatpush.msrb.mxu0 %v10564_v49  ;;  %2915 = vmatpush.msrb.mxu1 %v10565_v44 }
 0x5e7   :  { %2935 = vmatpush.msra.mxu2 %v10566_v15  ;;  %2955 = vmatpush.msra.mxu3 %v10567_v60 }
 0x5e8   :  { %2896 = vmatpush.msrb.mxu0 %v7904_v7  ;;  %2916 = vmatpush.msrb.mxu1 %v7909_v25 }
 0x5e9   :  { %2936 = vmatpush.msra.mxu2 %v7925_v61  ;;  %2956 = vmatpush.msra.mxu3 %v7930_v2 }
 0x5ea   :  { %2897 = vmatpush.msrb.mxu0 %v7952_v45  ;;  %2917 = vmatpush.msrb.mxu1 %v7957_v3 }
 0x5eb   :  { %2937 = vmatpush.msra.mxu2 %v7982_v31  ;;  %2957 = vmatpush.msra.mxu3 %v8004_v52 }
 0x5ec   :  { %2898 = vmatpush.msrb.mxu0 %v8009_v57  ;;  %2918 = vmatpush.msrb.mxu1 %v8030_v63 }
 0x5ed   :  { %2938 = vmatpush.msra.mxu2 %v8035_v26  ;;  %2958 = vmatpush.msra.mxu3 %v8049_v16 }
 0x5ee   :  { %2899 = vmatpush.msrb.mxu0 %v8054_v38  ;;  %2919 = vmatpush.msrb.mxu1 %v8067_v43 }
 0x5ef   :  { %2939 = vmatpush.msra.mxu2 %v8072_v62  ;;  %2959 = vmatpush.msra.mxu3 %v8081_v51 }
 0x5f0   :  { %2900 = vmatpush.msrb.mxu0 %v8086_v30  ;;  %2920 = vmatpush.msrb.mxu1 %v8093_v17 }
 0x5f1   :  { %2940 = vmatpush.msra.mxu2 %v8098_v32  ;;  %2960 = vmatpush.msra.mxu3 %v8107_v11 }
 0x5f2   :  { %2901 = vmatpush.msrb.mxu0 %v10568_v21  ;;  %2921 = vmatpush.msrb.mxu1 %v10569_v8 }
 0x5f3   :  { %2941 = vmatpush.msra.mxu2 %v8127_v47  ;;  %2961 = vmatpush.msra.mxu3 %v8137_v37 }
 0x62b   :  { %v2271_v41 = vpop.f32.mrf.mxu0  ;;  %v2294_v22 = vpop.f32.mrf.mxu1 }
 0x62c   :  { %v8298_v59 = vadd.f32 %v2271_v41, %v2246_v23  ;;  %v8300_v55 = vadd.f32 %v2294_v22, %v2247_v40 }
 0x62e   :  { %10570 = vst [vmem:[#allocation27_spill] sm:$0xff] %v8298_v59 }
 0x62f   :  { %10571 = vst [vmem:[#allocation28_spill] sm:$0xff] %v8300_v55 }
 0x632   :  { %v2317_v34 = vpop.f32.mrf.mxu2  ;;  %v2340_v0 = vpop.f32.mrf.mxu3 }
 0x633   :  { %v2274_v9 = vpop.f32.mrf.mxu0  ;;  %v2297_v6 = vpop.f32.mrf.mxu1  ;;  %v8310_v56 = vadd.f32 %v2317_v34, %v2248_v28  ;;  %v8312_v41 = vadd.f32 %v2340_v0, %v2249_v24 }
 0x634   :  { %v8302_v1 = vadd.f32 %v2274_v9, %v2246_v23  ;;  %v8304_v19 = vadd.f32 %v2297_v6, %v2247_v40 }
 0x635   :  { %10574 = vst [vmem:[#allocation31_spill] sm:$0xff] %v8310_v56 }
 0x636   :  { %10572 = vst [vmem:[#allocation33_spill] sm:$0xff] %v8302_v1 }
 0x637   :  { %10573 = vst [vmem:[#allocation34_spill] sm:$0xff] %v8304_v19 }
 0x638   :  { %10575 = vst [vmem:[#allocation32_spill] sm:$0xff] %v8312_v41 }
 0x63a   :  { %v2320_v10 = vpop.f32.mrf.mxu2  ;;  %v2343_v50 = vpop.f32.mrf.mxu3 }
 0x63b   :  { %v2427_v33 = vpop.f32.mrf.mxu0  ;;  %v2447_v29 = vpop.f32.mrf.mxu1  ;;  %v8315_v23 = vadd.f32 %v2343_v50, %v2249_v24 }
 0x63c   :  { %v2494_v58 = vrot.slane %v2427_v33, 1  ;;  %v2506_v27 = vadd.f32 %v2427_v33, %v8298_v59  ;;  %v2495_v4 = vrot.slane %v2447_v29, 1  ;;  %v2507_v13 = vadd.f32 %v2447_v29, %v8300_v55 }
 0x63d   :  { %10576 = vst [vmem:[#allocation36_spill] sm:$0xff] %v8315_v23 }
 0x63e   :  { %v2510_v36 = vadd.f32 %v2494_v58, %v8302_v1  ;;  %v4484_v42 = vmul.f32 -1.442695, %v2506_v27  ;;  %v2511_v48 = vadd.f32 %v2495_v4, %v8304_v19  ;;  %v4486_v39 = vmul.f32 -1.442695, %v2507_v13 }
 0x63f   :  { %v8319_v4 = vadd.f32 %v2320_v10, %v2248_v28 }
 0x640   :  { %4791 = vpow2.f32 %v4484_v42  ;;  %v4485_v14 = vmul.f32 -1.442695, %v2510_v36  ;;  %v4487_v20 = vmul.f32 -1.442695, %v2511_v48 }
 0x641   :  { %4793 = vpow2.f32 %v4486_v39  ;;  %10577 = vst [vmem:[#allocation37_spill] sm:$0xff] %v8319_v4 }
 0x642   :  { %4795 = vpow2.f32 %v4485_v14  ;;  %v2467_v22 = vpop.f32.mrf.mxu2  ;;  %v2487_v9 = vpop.f32.mrf.mxu3 }
 0x643   :  { %4797 = vpow2.f32 %v4487_v20  ;;  %v2508_v46 = vadd.f32 %v2467_v22, %v8310_v56  ;;  %v2497_v6 = vrot.slane %v2487_v9, 1  ;;  %v2509_v40 = vadd.f32 %v2487_v9, %v8312_v41 }
 0x644   :  { %v2496_v33 = vrot.slane %v2467_v22, 1 }
 0x645   :  { %v2513_v58 = vadd.f32 %v2497_v6, %v8315_v23  ;;  %v4488_v34 = vmul.f32 -1.442695, %v2509_v40  ;;  %4799 = vtanh.f32 %v2508_v46 }
 0x646   :  { %v4792_v29 = vpop.eup %4791  ;;  %v2512_v50 = vadd.f32 %v2496_v33, %v8319_v4 }
 0x647   :  { %v4794_v27 = vpop.eup %4793  ;;  %v2520_v0 = vadd.f32 1.0, %v4792_v29  ;;  %4801 = vpow2.f32 %v4488_v34  ;;  %v4489_v39 = vmul.f32 -1.442695, %v2513_v58 }
 0x648   :  { %v4796_v13 = vpop.eup %4795  ;;  %v8321_v36 = vadd.f32 1.0, %v4794_v27 }
 0x649   :  { %v4798_v42 = vpop.eup %4797  ;;  %v8323_v48 = vadd.f32 1.0, %v4796_v13  ;;  %4803 = vrcp.f32 %v2520_v0  ;;  %v2531_v28 = vand.u32 2147483647, %v2520_v0  ;;  %v2533_v20 = vand.u32 2147483648, %v2520_v0 }
 0x64a   :  { %v8326_v24 = vadd.f32 1.0, %v4798_v42  ;;  %4805 = vrcp.f32 %v8321_v36  ;;  %v2571_v10 = vand.u32 2147483648, %v8321_v36  ;;  %vm2565_vm3 = vweird.f32 %v8321_v36 }
 0x64b   :  { %4807 = vrcp.f32 %v8323_v48  ;;  %v4800_v14 = vpop.eup %4799  ;;  %vm2527_vm4 = vweird.f32 %v2520_v0  ;;  %vm8336_vm5 = vcmp.eq.f32.partialorder %v2531_v28, 8.507059e+37  ;;  %vm2542_vm6 = vweird.f32 %v8323_v48 }
 0x64c   :  { %4809 = vrcp.f32 %v8326_v24  ;;  %v2586_v46 = vand.u32 2147483648, %v8326_v24  ;;  %v2572_v29 = vor.u32 1.1754944e-38, %v2571_v10  ;;  %vm2580_vm7 = vweird.f32 %v8326_v24 }
 0x64d   :  { %4811 = vtanh.f32 %v2512_v50  ;;  %v4802_v22 = vpop.eup %4801  ;;  %v2534_v13 = vor.u32 1.1754944e-38, %v2533_v20  ;;  %v2546_v10 = vand.u32 2147483647, %v8323_v48  ;;  %v2548_v28 = vand.u32 2147483648, %v8323_v48 }
 0x64e   :  { %4813 = vpow2.f32 %v4489_v39  ;;  %v8334_v6 = vadd.f32 1.0, %v4802_v22  ;;  %v2587_v41 = vor.u32 1.1754944e-38, %v2586_v46  ;;  %v2569_v23 = vand.u32 2147483647, %v8321_v36 }
 0x64f   :  { %v4804_v9 = vpop.eup %4803  ;;  %v2584_v19 = vand.u32 2147483647, %v8326_v24  ;;  %vm8350_vm12 = vcmp.eq.f32.partialorder %v2546_v10, 8.507059e+37 }
 0x650   :  { %v4806_v40 = vpop.eup %4805  ;;  %v2523_v33 = vmul.f32 %v4804_v9, %v2520_v0  ;;  %4815 = vrcp.f32 %v8334_v6  ;;  %vm2528_vm8 = vweird.f32 %v4804_v9  ;;  %vm2570_vm1 = vcmp.eq.f32.partialorder %v2569_v23, 8.507059e+37 }
 0x651   :  { %v4808_v34 = vpop.eup %4807  ;;  %v2561_v27 = vmul.f32 %v4806_v40, %v8321_v36  ;;  %vm2566_vm10 = vweird.f32 %v4806_v40  ;;  %vm2529_vm13 = vmor %vm2527_vm4, %vm2528_vm8 }
 0x652   :  { %v4810_v42 = vpop.eup %4809  ;;  %v2524_v50 = vsub.f32 1.0, %v2523_v33  ;;  %v2538_v39 = vmul.f32 %v4808_v34, %v8323_v48  ;;  %vm2543_vm11 = vweird.f32 %v4808_v34  ;;  %vm2567_vm14 = vmor %vm2565_vm3, %vm2566_vm10  ;;  %vm2585_vm3 = vcmp.eq.f32.partialorder %v2584_v19, 8.507059e+37 }
 0x653   :  { %v4812_v22 = vpop.eup %4811  ;;  %v2562_v56 = vsub.f32 1.0, %v2561_v27  ;;  %v2576_v4 = vmul.f32 %v4810_v42, %v8326_v24  ;;  %vm2581_vm15 = vweird.f32 %v4810_v42  ;;  %vm2544_vm0 = vmor %vm2542_vm6, %vm2543_vm11  ;;  %vm2605_vm6 = vweird.f32 %v8334_v6 }
 0x654   :  { %v4814_v55 = vpop.eup %4813  ;;  %v2539_v59 = vsub.f32 1.0, %v2538_v39  ;;  %v2525_v20 = vmul.f32 %v4804_v9, %v2524_v50  ;;  %vm2582_vm2 = vmor %vm2580_vm7, %vm2581_vm15 }
 0x655   :  { %v2563_v33 = vmul.f32 %v4806_v40, %v2562_v56  ;;  %v2577_v1 = vsub.f32 1.0, %v2576_v4  ;;  %v2599_v37 = vadd.f32 1.0, %v4814_v55  ;;  %v2549_v56 = vor.u32 1.1754944e-38, %v2548_v28 }
 0x656   :  { %v2526_v47 = vadd.f32 %v4804_v9, %v2525_v20  ;;  %v2540_v8 = vmul.f32 %v4808_v34, %v2539_v59  ;;  %v4816_v46 = vpop.eup %4815 }
 0x657   :  { %v2578_v21 = vmul.f32 %v4810_v42, %v2577_v1  ;;  %v2564_v39 = vadd.f32 %v4806_v40, %v2563_v33  ;;  %4817 = vrcp.f32 %v2599_v37  ;;  %v2601_v59 = vmul.f32 %v4816_v46, %v8334_v6 }
 0x658   :  { %v2530_v50 = vsel %vm2529_vm13, %v4804_v9, %v2526_v47  ;;  %v2541_v11 = vadd.f32 %v4808_v34, %v2540_v8  ;;  %vm2606_vm4 = vweird.f32 %v4816_v46  ;;  %vm2620_vm8 = vweird.f32 %v2599_v37 }
 0x659   :  { %v2535_v55 = vsel %vm8336_vm5, %v2534_v13, %v2530_v50  ;;  %v2568_v1 = vsel %vm2567_vm14, %v4806_v40, %v2564_v39  ;;  %v2579_v4 = vadd.f32 %v4810_v42, %v2578_v21  ;;  %v2602_v8 = vsub.f32 1.0, %v2601_v59  ;;  %vm8375_vm7 = vmor %vm2605_vm6, %vm2606_vm4 }
 0x65a   :  { %v2545_v0 = vsel %vm2544_vm0, %v4808_v34, %v2541_v11  ;;  %v2573_v10 = vsel %vm2570_vm1, %v2572_v29, %v2568_v1  ;;  %v2632_v47 = vmul.f32 %v4800_v14, %v2535_v55  ;;  %v2626_v14 = vand.u32 2147483648, %v2599_v37 }
 0x65b   :  { %v2550_v36 = vsel %vm8350_vm12, %v2549_v56, %v2545_v0  ;;  %v2583_v9 = vsel %vm2582_vm2, %v4810_v42, %v2579_v4  ;;  %v2630_v58 = vmul.f32 0.0, %v2573_v10  ;;  %v2603_v11 = vmul.f32 %v4816_v46, %v2602_v8  ;;  %v8398_v8 = vld [vmem:[%s9940_s5 + $0x1f0] sm:$0xff] }
 0x65c   :  { %v2588_v13 = vsel %vm2585_vm3, %v2587_v41, %v2583_v9  ;;  %v2633_v28 = vmul.f32 %v4812_v22, %v2550_v36  ;;  %v2624_v41 = vand.u32 2147483647, %v2599_v37  ;;  %v2611_v34 = vand.u32 2147483648, %v8334_v6  ;;  %v8404_v36 = vld [vmem:[%s9940_s5 + $0x1f8] sm:$0xff]  ;;  %v8410_v9 = vld [vmem:[%s9940_s5 + $0x1c0] sm:$0xff]  ;;  %v8494_v42 = vld [vmem:[%s9940_s5 + $0x170] sm:$0xff] }
 0x65d   :  { %v4818_v48 = vpop.eup %4817  ;;  %v2631_v20 = vmul.f32 0.0, %v2588_v13  ;;  %v8367_v40 = vadd.f32 %v2632_v47, %v2630_v58  ;;  %v2604_v29 = vadd.f32 %v4816_v46, %v2603_v11  ;;  %v2609_v22 = vand.u32 2147483647, %v8334_v6  ;;  %v8416_v58 = vld [vmem:[%s9940_s5 + $0x1c8] sm:$0xff]  ;;  %v8422_v13 = vld [vmem:[%s9940_s5 + $0x1d0] sm:$0xff]  ;;  %v8452_v11 = vld [vmem:[%s9940_s5 + $0x1b8] sm:$0xff] }
 0x65e   :  { %v2616_v21 = vmul.f32 %v4818_v48, %v2599_v37  ;;  %vm2621_vm5 = vweird.f32 %v4818_v48  ;;  %v2627_v27 = vor.u32 1.1754944e-38, %v2626_v14  ;;  %vm2625_vm11 = vcmp.eq.f32.partialorder %v2624_v41, 8.507059e+37  ;;  %v8386_v37 = vld [vmem:[%s9940_s5 + $0x1e0] sm:$0xff]  ;;  %v8464_v14 = vld [vmem:[%s9940_s5 + $0x188] sm:$0xff] }
 0x65f   :  { %v8369_v23 = vadd.f32 %v2633_v28, %v2631_v20  ;;  %4819 = vtanh.f32 %v8367_v40  ;;  %vm2622_vm10 = vmor %vm2620_vm8, %vm2621_vm5  ;;  %v2608_v50 = vsel %vm8375_vm7, %v4816_v46, %v2604_v29  ;;  %v2612_v55 = vor.u32 1.1754944e-38, %v2611_v34  ;;  %v8392_v46 = vld [vmem:[%s9940_s5 + $0x1e8] sm:$0xff]  ;;  %v8428_v28 = vld [vmem:[%s9940_s5 + $0x1d8] sm:$0xff] }
 0x660   :  { %v2617_v24 = vsub.f32 1.0, %v2616_v21  ;;  %vm2610_vm12 = vcmp.eq.f32.partialorder %v2609_v22, 8.507059e+37  ;;  %v8440_v20 = vld [vmem:[%s9940_s5 + $0x1a8] sm:$0xff]  ;;  %v8446_v21 = vld [vmem:[%s9940_s5 + $0x1b0] sm:$0xff]  ;;  %v8482_v41 = vld [vmem:[%s9940_s5 + $0x160] sm:$0xff] }
 0x661   :  { %4821 = vtanh.f32 %v8369_v23  ;;  %v2613_v0 = vsel %vm2610_vm12, %v2612_v55, %v2608_v50  ;;  %v8470_v29 = vld [vmem:[%s9940_s5 + $0x190] sm:$0xff]  ;;  %v8488_v34 = vld [vmem:[%s9940_s5 + $0x168] sm:$0xff]  ;;  %v8500_v22 = vld [vmem:[%s9940_s5 + $0x178] sm:$0xff] }
 0x662   :  { %v2618_v19 = vmul.f32 %v4818_v48, %v2617_v24  ;;  %v8458_v24 = vld [vmem:[%s9940_s5 + $0x180] sm:$0xff]  ;;  %v8524_v50 = vld [vmem:[%s9940_s5 + $0x158] sm:$0xff]  ;;  %v8542_v55 = vld [vmem:[%s9940_s5 + $0x130] sm:$0xff] }
 0x663   :  { %10584 = vst [vmem:[#allocation35_spill] sm:$0xff] %v8542_v55 }
 0x664   :  { %v2619_v33 = vadd.f32 %v4818_v48, %v2618_v19  ;;  %v8476_v19 = vld [vmem:[%s9940_s5 + $0x198] sm:$0xff] }
 0x665   :  { %v4820_v39 = vpop.eup %4819 }
 0x666   :  { %v2623_v56 = vsel %vm2622_vm10, %v4818_v48, %v2619_v33  ;;  %v2638_v10 = vmul.f32 %v4820_v39, %v2613_v0  ;;  %v8434_v48 = vld [vmem:[%s9940_s5 + $0x1a0] sm:$0xff]  ;;  %v8518_v39 = vld [vmem:[%s9940_s5 + $0x150] sm:$0xff]  ;;  %v8560_v0 = vld [vmem:[%s9940_s5 + $0x108] sm:$0xff] }
 0x667   :  { %v4822_v59 = vpop.eup %4821  ;;  %v2628_v1 = vsel %vm2625_vm11, %v2627_v27, %v2623_v56  ;;  %v8506_v33 = vld [vmem:[%s9940_s5 + $0x140] sm:$0xff]  ;;  %v8512_v27 = vld [vmem:[%s9940_s5 + $0x148] sm:$0xff]  ;;  %10587 = vst [vmem:[#allocation48_spill] sm:$0xff] %v8560_v0 }
 0x668   :  { %v2639_v4 = vmul.f32 %v4822_v59, %v2628_v1  ;;  %v8530_v56 = vld [vmem:[%s9940_s5 + $0x120] sm:$0xff]  ;;  %v8536_v59 = vld [vmem:[%s9940_s5 + $0x128] sm:$0xff]  ;;  %v8548_v1 = vld [vmem:[%s9940_s5 + $0x138] sm:$0xff] }
 0x669   :  { %10585 = vst [vmem:[#allocation46_spill] sm:$0xff] %v8548_v1 }
 0x66a   :  { %v2642_v47 = vrot.slane %v2639_v4, 7  ;;  %v8554_v4 = vld [vmem:[%s9940_s5 + $0x100] sm:$0xff] }
 0x66b   :  { %10586 = vst [vmem:[#allocation47_spill] sm:$0xff] %v8554_v4 }
 0x66c   :  { %v2643_v6 = vsel %vm445_vm9, %v2642_v47, %v2638_v10 }
 0x66d   :  { %2661 = vmatmul.f32.vlgmr.msra.gmra.mxu0 %v2643_v6  ;;  %2681 = vmatmul.f32.vlgmr.msra.gmra.mxu1 %v2643_v6 }
 0x66e   :  { %2701 = vmatmul.f32.vlgmr.msrb.gmra.mxu2 %v2643_v6  ;;  %2721 = vmatmul.f32.vlgmr.msrb.gmra.mxu3 %v2643_v6 }
 0x66f   :  { %3132 = vmatpush.msra.mxu0 %v8386_v37  ;;  %3152 = vmatpush.msra.mxu1 %v8392_v46 }
 0x670   :  { %3172 = vmatpush.msrb.mxu2 %v8398_v8  ;;  %3192 = vmatpush.msrb.mxu3 %v8404_v36 }
 0x671   :  { %3133 = vmatpush.msra.mxu0 %v8410_v9  ;;  %3153 = vmatpush.msra.mxu1 %v8416_v58 }
 0x672   :  { %3173 = vmatpush.msrb.mxu2 %v8422_v13  ;;  %3193 = vmatpush.msrb.mxu3 %v8428_v28 }
 0x673   :  { %3134 = vmatpush.msra.mxu0 %v8434_v48  ;;  %3154 = vmatpush.msra.mxu1 %v8440_v20 }
 0x674   :  { %3174 = vmatpush.msrb.mxu2 %v8446_v21  ;;  %3194 = vmatpush.msrb.mxu3 %v8452_v11 }
 0x675   :  { %3135 = vmatpush.msra.mxu0 %v8458_v24  ;;  %3155 = vmatpush.msra.mxu1 %v8464_v14 }
 0x676   :  { %3175 = vmatpush.msrb.mxu2 %v8470_v29  ;;  %3195 = vmatpush.msrb.mxu3 %v8476_v19 }
 0x677   :  { %3136 = vmatpush.msra.mxu0 %v8482_v41  ;;  %3156 = vmatpush.msra.mxu1 %v8488_v34 }
 0x678   :  { %3176 = vmatpush.msrb.mxu2 %v8494_v42  ;;  %3196 = vmatpush.msrb.mxu3 %v8500_v22 }
 0x679   :  { %3137 = vmatpush.msra.mxu0 %v8506_v33  ;;  %3157 = vmatpush.msra.mxu1 %v8512_v27 }
 0x67a   :  { %3177 = vmatpush.msrb.mxu2 %v8518_v39  ;;  %3197 = vmatpush.msrb.mxu3 %v8524_v50 }
 0x67b   :  { %3138 = vmatpush.msra.mxu0 %v8530_v56  ;;  %3158 = vmatpush.msra.mxu1 %v8536_v59 }
 0x67c   :  { %3178 = vmatpush.msrb.mxu2 %v8542_v55  ;;  %3198 = vmatpush.msrb.mxu3 %v8548_v1 }
 0x67d   :  { %3139 = vmatpush.msra.mxu0 %v8554_v4  ;;  %3159 = vmatpush.msra.mxu1 %v8560_v0 }
 0x67e   :  { %3179 = vmatpush.msrb.mxu2 %v10558_v53  ;;  %3199 = vmatpush.msrb.mxu3 %v10559_v18 }
 0x67f   :  { %3140 = vmatpush.msra.mxu0 %v10560_v5  ;;  %3160 = vmatpush.msra.mxu1 %v10561_v35 }
 0x680   :  { %3180 = vmatpush.msrb.mxu2 %v10562_v12  ;;  %3200 = vmatpush.msrb.mxu3 %v10563_v54  ;;  %v10597_v54 = vld [vmem:[#allocation36_spill] sm:$0xff] }
 0x681   :  { %3141 = vmatpush.msra.mxu0 %v10564_v49  ;;  %3161 = vmatpush.msra.mxu1 %v10565_v44 }
 0x682   :  { %3181 = vmatpush.msrb.mxu2 %v10566_v15  ;;  %3201 = vmatpush.msrb.mxu3 %v10567_v60  ;;  %v10598_v15 = vld [vmem:[#allocation32_spill] sm:$0xff] }
 0x683   :  { %3142 = vmatpush.msra.mxu0 %v7904_v7  ;;  %3162 = vmatpush.msra.mxu1 %v7909_v25  ;;  %v10588_v25 = vld [vmem:[#allocation25_spill] sm:$0xff]  ;;  %v10589_v7 = vld [vmem:[#allocation26_spill] sm:$0xff] }
 0x684   :  { %3182 = vmatpush.msrb.mxu2 %v7925_v61  ;;  %3202 = vmatpush.msrb.mxu3 %v7930_v2  ;;  %v10590_v61 = vld [vmem:[#allocation23_spill] sm:$0xff]  ;;  %v10591_v2 = vld [vmem:[#allocation24_spill] sm:$0xff] }
 0x685   :  { %3143 = vmatpush.msra.mxu0 %v7952_v45  ;;  %3163 = vmatpush.msra.mxu1 %v7957_v3  ;;  %v10592_v45 = vld [vmem:[#allocation29_spill] sm:$0xff] }
 0x686   :  { %3183 = vmatpush.msrb.mxu2 %v7982_v31  ;;  %3203 = vmatpush.msrb.mxu3 %v8004_v52 }
 0x687   :  { %3144 = vmatpush.msra.mxu0 %v8009_v57  ;;  %3164 = vmatpush.msra.mxu1 %v8030_v63  ;;  %v10593_v57 = vld [vmem:[#allocation33_spill] sm:$0xff] }
 0x688   :  { %3184 = vmatpush.msrb.mxu2 %v8035_v26  ;;  %3204 = vmatpush.msrb.mxu3 %v8049_v16  ;;  %v10594_v16 = vld [vmem:[#allocation34_spill] sm:$0xff] }
 0x689   :  { %3145 = vmatpush.msra.mxu0 %v8054_v38  ;;  %3165 = vmatpush.msra.mxu1 %v8067_v43  ;;  %v10595_v43 = vld [vmem:[#allocation27_spill] sm:$0xff] }
 0x68a   :  { %3185 = vmatpush.msrb.mxu2 %v8072_v62  ;;  %3205 = vmatpush.msrb.mxu3 %v8081_v51 }
 0x68b   :  { %3146 = vmatpush.msra.mxu0 %v8086_v30  ;;  %3166 = vmatpush.msra.mxu1 %v8093_v17  ;;  %v10596_v30 = vld [vmem:[#allocation28_spill] sm:$0xff] }
 0x68c   :  { %3186 = vmatpush.msrb.mxu2 %v8098_v32  ;;  %3206 = vmatpush.msrb.mxu3 %v10588_v25 }
 0x68d   :  { %3147 = vmatpush.msra.mxu0 %v10589_v7  ;;  %3167 = vmatpush.msra.mxu1 %v10590_v61 }
 0x68e   :  { %3187 = vmatpush.msrb.mxu2 %v10591_v2  ;;  %3207 = vmatpush.msrb.mxu3 %v10592_v45 }
 0x6ea   :  { %v2662_v3 = vpop.f32.mrf.mxu0  ;;  %v2682_v31 = vpop.f32.mrf.mxu1 }
 0x6eb   :  { %v2729_v52 = vrot.slane %v2662_v3, 7  ;;  %v2745_v63 = vadd.f32 %v2662_v3, %v10593_v57  ;;  %v2730_v26 = vrot.slane %v2682_v31, 7  ;;  %v2746_v38 = vadd.f32 %v2682_v31, %v10594_v16  ;;  %v10599_v3 = vld [vmem:[#allocation37_spill] sm:$0xff] }
 0x6ed   :  { %v2741_v62 = vadd.f32 %v2729_v52, %v10595_v43  ;;  %v4491_v51 = vmul.f32 -1.442695, %v2745_v63  ;;  %v2742_v17 = vadd.f32 %v2730_v26, %v10596_v30  ;;  %v4493_v32 = vmul.f32 -1.442695, %v2746_v38  ;;  %v10600_v26 = vld [vmem:[#allocation31_spill] sm:$0xff] }
 0x6ef   :  { %v4490_v53 = vmul.f32 -1.442695, %v2741_v62  ;;  %4823 = vpow2.f32 %v4491_v51  ;;  %v4492_v18 = vmul.f32 -1.442695, %v2742_v17 }
 0x6f0   :  { %4825 = vpow2.f32 %v4493_v32 }
 0x6f1   :  { %4827 = vpow2.f32 %v4490_v53  ;;  %v2722_v5 = vpop.f32.mrf.mxu3  ;;  %v2702_v12 = vpop.f32.mrf.mxu2 }
 0x6f2   :  { %4829 = vpow2.f32 %v4492_v18  ;;  %v2732_v35 = vrot.slane %v2722_v5, 7  ;;  %v2748_v49 = vadd.f32 %v2722_v5, %v10597_v54  ;;  %v2731_v25 = vrot.slane %v2702_v12, 7 }
 0x6f3   :  { %v2747_v31 = vadd.f32 %v2702_v12, %v10599_v3 }
 0x6f4   :  { %v2744_v60 = vadd.f32 %v2732_v35, %v10598_v15  ;;  %v4495_v10 = vmul.f32 -1.442695, %v2748_v49  ;;  %v2743_v38 = vadd.f32 %v2731_v25, %v10600_v26  ;;  %v2868_v35 = vrot.slane %v8369_v23, 7 }
 0x6f5   :  { %v4824_v44 = vpop.eup %4823 }
 0x6f6   :  { %v4826_v47 = vpop.eup %4825  ;;  %v8603_v6 = vadd.f32 1.0, %v4824_v44  ;;  %4831 = vpow2.f32 %v4495_v10  ;;  %v4494_v63 = vmul.f32 -1.442695, %v2744_v60 }
 0x6f7   :  { %v4828_v7 = vpop.eup %4827  ;;  %v8605_v61 = vadd.f32 1.0, %v4826_v47 }
 0x6f8   :  { %v4830_v2 = vpop.eup %4829  ;;  %v8607_v45 = vadd.f32 1.0, %v4828_v7  ;;  %4833 = vrcp.f32 %v8603_v6  ;;  %v2781_v5 = vand.u32 2147483647, %v8603_v6  ;;  %vm2777_vm14 = vweird.f32 %v8603_v6 }
 0x6f9   :  { %v8611_v52 = vadd.f32 1.0, %v4830_v2  ;;  %4835 = vrcp.f32 %v8605_v61  ;;  %v2821_v62 = vand.u32 2147483648, %v8605_v61  ;;  %vm2815_vm13 = vweird.f32 %v8605_v61 }
 0x6fa   :  { %4837 = vrcp.f32 %v8607_v45  ;;  %v2766_v32 = vand.u32 2147483647, %v8607_v45  ;;  %v2768_v53 = vand.u32 2147483648, %v8607_v45  ;;  %vm2762_vm15 = vweird.f32 %v8607_v45 }
 0x6fb   :  { %4839 = vrcp.f32 %v8611_v52  ;;  %vm2800_vm0 = vweird.f32 %v8611_v52  ;;  %v2806_v10 = vand.u32 2147483648, %v8611_v52  ;;  %v2822_v25 = vor.u32 1.1754944e-38, %v2821_v62 }
 0x6fc   :  { %4841 = vtanh.f32 %v2747_v31  ;;  %v4832_v51 = vpop.eup %4831  ;;  %vm8634_vm1 = vcmp.eq.f32.partialorder %v2766_v32, 8.507059e+37  ;;  %vm8640_vm2 = vcmp.eq.f32.partialorder %v2781_v5, 8.507059e+37  ;;  %v2804_v62 = vand.u32 2147483647, %v8611_v52 }
 0x6fd   :  { %4843 = vpow2.f32 %v4494_v63  ;;  %v8623_v12 = vadd.f32 1.0, %v4832_v51  ;;  %v2769_v63 = vor.u32 1.1754944e-38, %v2768_v53  ;;  %v2819_v32 = vand.u32 2147483647, %v8605_v61 }
 0x6fe   :  { %v4834_v18 = vpop.eup %4833  ;;  %4845 = vtanh.f32 %v2743_v38  ;;  %v2783_v38 = vand.u32 2147483648, %v8603_v6 }
 0x6ff   :  { %v4836_v49 = vpop.eup %4835  ;;  %v2773_v44 = vmul.f32 %v4834_v18, %v8603_v6  ;;  %4847 = vrcp.f32 %v8623_v12  ;;  %vm2778_vm3 = vweird.f32 %v4834_v18  ;;  %vm2820_vm11 = vcmp.eq.f32.partialorder %v2819_v32, 8.507059e+37 }
 0x700   :  { %v4838_v60 = vpop.eup %4837  ;;  %v2811_v47 = vmul.f32 %v4836_v49, %v8605_v61  ;;  %vm2816_vm4 = vweird.f32 %v4836_v49  ;;  %v2784_v5 = vor.u32 1.1754944e-38, %v2783_v38  ;;  %vm2779_vm7 = vmor %vm2777_vm14, %vm2778_vm3 }
 0x701   :  { %v4840_v23 = vpop.eup %4839  ;;  %v2758_v7 = vmul.f32 %v4838_v60, %v8607_v45  ;;  %v2774_v2 = vsub.f32 1.0, %v2773_v44  ;;  %vm2763_vm5 = vweird.f32 %v4838_v60  ;;  %vm2817_vm8 = vmor %vm2815_vm13, %vm2816_vm4  ;;  %vm2805_vm13 = vcmp.eq.f32.partialorder %v2804_v62, 8.507059e+37 }
 0x702   :  { %v4842_v51 = vpop.eup %4841  ;;  %v2796_v17 = vmul.f32 %v4840_v23, %v8611_v52  ;;  %v2812_v3 = vsub.f32 1.0, %v2811_v47  ;;  %vm2801_vm6 = vweird.f32 %v4840_v23  ;;  %vm2764_vm10 = vmor %vm2762_vm15, %vm2763_vm5 }
 0x703   :  { %v4844_v54 = vpop.eup %4843  ;;  %v2759_v15 = vsub.f32 1.0, %v2758_v7  ;;  %v2775_v44 = vmul.f32 %v4834_v18, %v2774_v2  ;;  %v2807_v2 = vor.u32 1.1754944e-38, %v2806_v10  ;;  %vm2802_vm12 = vmor %vm2800_vm0, %vm2801_vm6  ;;  %vm2855_vm0 = vweird.f32 %v8623_v12 }
 0x704   :  { %v4846_v16 = vpop.eup %4845  ;;  %v2797_v53 = vsub.f32 1.0, %v2796_v17  ;;  %v2813_v30 = vmul.f32 %v4836_v49, %v2812_v3  ;;  %v2833_v57 = vadd.f32 1.0, %v4844_v54 }
 0x705   :  { %v2760_v43 = vmul.f32 %v4838_v60, %v2759_v15  ;;  %v2776_v47 = vadd.f32 %v4834_v18, %v2775_v44  ;;  %v4848_v0 = vpop.eup %4847 }
 0x706   :  { %v2798_v4 = vmul.f32 %v4840_v23, %v2797_v53  ;;  %v2814_v7 = vadd.f32 %v4836_v49, %v2813_v30  ;;  %4849 = vrcp.f32 %v2833_v57  ;;  %v2851_v54 = vmul.f32 %v4848_v0, %v8623_v12 }
 0x707   :  { %v2761_v17 = vadd.f32 %v4838_v60, %v2760_v43  ;;  %v2780_v3 = vsel %vm2779_vm7, %v4834_v18, %v2776_v47  ;;  %vm2856_vm15 = vweird.f32 %v4848_v0 }
 0x708   :  { %v2785_v15 = vsel %vm8640_vm2, %v2784_v5, %v2780_v3  ;;  %v2799_v38 = vadd.f32 %v4840_v23, %v2798_v4  ;;  %v2818_v44 = vsel %vm2817_vm8, %v4836_v49, %v2814_v7  ;;  %v2852_v10 = vsub.f32 1.0, %v2851_v54  ;;  %vm2857_vm2 = vmor %vm2855_vm0, %vm2856_vm15 }
 0x709   :  { %v2765_v30 = vsel %vm2764_vm10, %v4838_v60, %v2761_v17  ;;  %v2823_v6 = vsel %vm2820_vm11, %v2822_v25, %v2818_v44  ;;  %v2874_v61 = vmul.f32 %v4842_v51, %v2785_v15  ;;  %v10605_v4 = vrot.slane %v8367_v40, 7 }
 0x70a   :  { %v2770_v43 = vsel %vm8634_vm1, %v2769_v63, %v2765_v30  ;;  %v2803_v18 = vsel %vm2802_vm12, %v4840_v23, %v2799_v38  ;;  %v2872_v45 = vmul.f32 %v2868_v35, %v2823_v6  ;;  %v2853_v5 = vmul.f32 %v4848_v0, %v2852_v10  ;;  %v8710_v10 = vld [vmem:[%s9940_s5 + $0x118] sm:$0xff] }
 0x70b   :  { %v2808_v53 = vsel %vm2805_vm13, %v2807_v2, %v2803_v18  ;;  %v2873_v47 = vmul.f32 %v4846_v16, %v2770_v43  ;;  %v2846_v23 = vand.u32 2147483648, %v2833_v57  ;;  %v2844_v16 = vand.u32 2147483647, %v2833_v57  ;;  %10609 = vst [vmem:[#allocation50_spill] sm:$0xff] %v8710_v10  ;;  %v8716_v43 = vld [vmem:[%s9940_s5 + $0xe0] sm:$0xff]  ;;  %v8722_v18 = vld [vmem:[%s9940_s5 + $0xe8] sm:$0xff] }
 0x70c   :  { %v4850_v26 = vpop.eup %4849  ;;  %v2871_v49 = vmul.f32 %v10605_v4, %v2808_v53  ;;  %v8661_v32 = vadd.f32 %v2874_v61, %v2872_v45  ;;  %v2854_v31 = vadd.f32 %v4848_v0, %v2853_v5  ;;  %v2861_v40 = vand.u32 2147483648, %v8623_v12  ;;  %10610 = vst [vmem:[#allocation51_spill] sm:$0xff] %v8716_v43  ;;  %v8728_v45 = vld [vmem:[%s9940_s5 + $0xf0] sm:$0xff]  ;;  %v8734_v53 = vld [vmem:[%s9940_s5 + $0xf8] sm:$0xff]  ;;  %v8770_v5 = vld [vmem:[%s9940_s5 + $0xa8] sm:$0xff] }
 0x70d   :  { %v2836_v52 = vmul.f32 %v4850_v26, %v2833_v57  ;;  %vm2841_vm14 = vweird.f32 %v4850_v26  ;;  %vm2840_vm1 = vweird.f32 %v2833_v57  ;;  %v2859_v51 = vand.u32 2147483647, %v8623_v12  ;;  %v10607_v57 = vld [vmem:[#allocation48_spill] sm:$0xff]  ;;  %v8704_v12 = vld [vmem:[%s9940_s5 + $0x110] sm:$0xff]  ;;  %10611 = vst [vmem:[#allocation52_spill] sm:$0xff] %v8722_v18 }
 0x70e   :  { %v8663_v60 = vadd.f32 %v2873_v47, %v2871_v49  ;;  %4851 = vtanh.f32 %v8661_v32  ;;  %vm2842_vm3 = vmor %vm2840_vm1, %vm2841_vm14  ;;  %v2847_v62 = vor.u32 1.1754944e-38, %v2846_v23  ;;  %vm2845_vm4 = vcmp.eq.f32.partialorder %v2844_v16, 8.507059e+37  ;;  %10608 = vst [vmem:[#allocation49_spill] sm:$0xff] %v8704_v12  ;;  %v8740_v47 = vld [vmem:[%s9940_s5 + $0xc0] sm:$0xff]  ;;  %v8752_v4 = vld [vmem:[%s9940_s5 + $0xd0] sm:$0xff] }
 0x70f   :  { %v2837_v25 = vsub.f32 1.0, %v2836_v52  ;;  %v2858_v17 = vsel %vm2857_vm2, %v4848_v0, %v2854_v31  ;;  %v2862_v15 = vor.u32 1.1754944e-38, %v2861_v40  ;;  %vm2860_vm5 = vcmp.eq.f32.partialorder %v2859_v51, 8.507059e+37  ;;  %v10606_v0 = vld [vmem:[#allocation47_spill] sm:$0xff]  ;;  %10612 = vst [vmem:[#allocation53_spill] sm:$0xff] %v8728_v45  ;;  %v8764_v52 = vld [vmem:[%s9940_s5 + $0xa0] sm:$0xff] }
 0x710   :  { %4853 = vtanh.f32 %v8663_v60  ;;  %10613 = vst [vmem:[#allocation54_spill] sm:$0xff] %v8734_v53  ;;  %v8758_v49 = vld [vmem:[%s9940_s5 + $0xd8] sm:$0xff]  ;;  %v8794_v16 = vld [vmem:[%s9940_s5 + $0x88] sm:$0xff]  ;;  %v8800_v31 = vld [vmem:[%s9940_s5 + $0x90] sm:$0xff] }
 0x711   :  { %v2838_v35 = vmul.f32 %v4850_v26, %v2837_v25  ;;  %v2863_v44 = vsel %vm2860_vm5, %v2862_v15, %v2858_v17  ;;  %10614 = vst [vmem:[#allocation38_spill] sm:$0xff] %v8740_v47  ;;  %v8776_v25 = vld [vmem:[%s9940_s5 + $0xb0] sm:$0xff]  ;;  %v8782_v23 = vld [vmem:[%s9940_s5 + $0xb8] sm:$0xff]  ;;  %v8818_v51 = vld [vmem:[%s9940_s5 + $0x68] sm:$0xff] }
 0x712   :  { %10616 = vst [vmem:[#allocation40_spill] sm:$0xff] %v8752_v4  ;;  %v8806_v40 = vld [vmem:[%s9940_s5 + $0x98] sm:$0xff]  ;;  %v8842_v17 = vld [vmem:[%s9940_s5 + $0x48] sm:$0xff]  ;;  %v8860_v15 = vld [vmem:[%s9940_s5 + $0x20] sm:$0xff] }
 0x713   :  { %v2839_v63 = vadd.f32 %v4850_v26, %v2838_v35  ;;  %10617 = vst [vmem:[#allocation41_spill] sm:$0xff] %v8758_v49  ;;  %v8788_v35 = vld [vmem:[%s9940_s5 + $0x80] sm:$0xff] }
 0x714   :  { %v4852_v7 = vpop.eup %4851  ;;  %10618 = vst [vmem:[#allocation42_spill] sm:$0xff] %v8764_v52 }
 0x715   :  { %v2843_v2 = vsel %vm2842_vm3, %v4850_v26, %v2839_v63  ;;  %v2880_v30 = vmul.f32 %v4852_v7, %v2863_v44  ;;  %v8746_v26 = vld [vmem:[%s9940_s5 + $0xc8] sm:$0xff]  ;;  %10619 = vst [vmem:[#allocation43_spill] sm:$0xff] %v8770_v5  ;;  %v8812_v63 = vld [vmem:[%s9940_s5 + $0x60] sm:$0xff]  ;;  %v8830_v7 = vld [vmem:[%s9940_s5 + $0x78] sm:$0xff] }
 0x716   :  { %v4854_v3 = vpop.eup %4853  ;;  %v2848_v54 = vsel %vm2845_vm4, %v2847_v62, %v2843_v2  ;;  %10615 = vst [vmem:[#allocation39_spill] sm:$0xff] %v8746_v26  ;;  %v8824_v62 = vld [vmem:[%s9940_s5 + $0x70] sm:$0xff]  ;;  %v8836_v2 = vld [vmem:[%s9940_s5 + $0x40] sm:$0xff] }
 0x717   :  { %v2879_v38 = vmul.f32 %v4854_v3, %v2848_v54  ;;  %10620 = vst [vmem:[#allocation44_spill] sm:$0xff] %v8776_v25  ;;  %v8848_v3 = vld [vmem:[%s9940_s5 + $0x50] sm:$0xff]  ;;  %v8854_v54 = vld [vmem:[%s9940_s5 + $0x58] sm:$0xff] }
 0x718   :  { %10621 = vst [vmem:[#allocation45_spill] sm:$0xff] %v8782_v23  ;;  %v8872_v44 = vld [vmem:[%s9940_s5 + $0x30] sm:$0xff] }
 0x719   :  { %v2883_v6 = vrot.slane %v2879_v38, 1  ;;  %10622 = vst [vmem:[#allocation5_spill] sm:$0xff] %v8788_v35  ;;  %v8866_v38 = vld [vmem:[%s9940_s5 + $0x28] sm:$0xff] }
 0x71a   :  { %10623 = vst [vmem:[#allocation6_spill] sm:$0xff] %v8794_v16 }
 0x71b   :  { %v2884_v61 = vsel %vm445_vm9, %v2880_v30, %v2883_v6  ;;  %10624 = vst [vmem:[#allocation9_spill] sm:$0xff] %v8800_v31  ;;  %v8878_v30 = vld [vmem:[%s9940_s5 + $0x38] sm:$0xff]  ;;  %v8884_v6 = vld [vmem:[%s9940_s5] sm:$0xff] }
 0x71c   :  { %2902 = vmatmul.f32.vlgmr.msrb.gmra.mxu0 %v2884_v61  ;;  %2922 = vmatmul.f32.vlgmr.msrb.gmra.mxu1 %v2884_v61  ;;  %10625 = vst [vmem:[#allocation10_spill] sm:$0xff] %v8806_v40 }
 0x71d   :  { %2942 = vmatmul.f32.vlgmr.msra.gmra.mxu2 %v2884_v61  ;;  %2962 = vmatmul.f32.vlgmr.msra.gmra.mxu3 %v2884_v61  ;;  %10626 = vst [vmem:[#allocation7_spill] sm:$0xff] %v8812_v63  ;;  %v8890_v61 = vld [vmem:[%s9940_s5 + $0x8] sm:$0xff] }
 0x71e   :  { %3378 = vmatpush.msrb.mxu0 %v8386_v37  ;;  %3398 = vmatpush.msrb.mxu1 %v8392_v46  ;;  %10627 = vst [vmem:[#allocation8_spill] sm:$0xff] %v8818_v51 }
 0x71f   :  { %3418 = vmatpush.msra.mxu2 %v8398_v8  ;;  %3438 = vmatpush.msra.mxu3 %v8404_v36  ;;  %10628 = vst [vmem:[#allocation13_spill] sm:$0xff] %v8824_v62 }
 0x720   :  { %3379 = vmatpush.msrb.mxu0 %v8410_v9  ;;  %3399 = vmatpush.msrb.mxu1 %v8416_v58  ;;  %10629 = vst [vmem:[#allocation14_spill] sm:$0xff] %v8830_v7 }
 0x721   :  { %3419 = vmatpush.msra.mxu2 %v8422_v13  ;;  %3439 = vmatpush.msra.mxu3 %v8428_v28  ;;  %10630 = vst [vmem:[#allocation11_spill] sm:$0xff] %v8836_v2 }
 0x722   :  { %3380 = vmatpush.msrb.mxu0 %v8434_v48  ;;  %3400 = vmatpush.msrb.mxu1 %v8440_v20  ;;  %10631 = vst [vmem:[#allocation12_spill] sm:$0xff] %v8842_v17 }
 0x723   :  { %3420 = vmatpush.msra.mxu2 %v8446_v21  ;;  %3440 = vmatpush.msra.mxu3 %v8452_v11  ;;  %10632 = vst [vmem:[#allocation17_spill] sm:$0xff] %v8848_v3 }
 0x724   :  { %3381 = vmatpush.msrb.mxu0 %v8458_v24  ;;  %3401 = vmatpush.msrb.mxu1 %v8464_v14  ;;  %10633 = vst [vmem:[#allocation18_spill] sm:$0xff] %v8854_v54 }
 0x725   :  { %3421 = vmatpush.msra.mxu2 %v8470_v29  ;;  %3441 = vmatpush.msra.mxu3 %v8476_v19  ;;  %10634 = vst [vmem:[#allocation15_spill] sm:$0xff] %v8860_v15 }
 0x726   :  { %3382 = vmatpush.msrb.mxu0 %v8482_v41  ;;  %3402 = vmatpush.msrb.mxu1 %v8488_v34  ;;  %10635 = vst [vmem:[#allocation16_spill] sm:$0xff] %v8866_v38 }
 0x727   :  { %3422 = vmatpush.msra.mxu2 %v8494_v42  ;;  %3442 = vmatpush.msra.mxu3 %v8500_v22  ;;  %10636 = vst [vmem:[#allocation21_spill] sm:$0xff] %v8872_v44 }
 0x728   :  { %3383 = vmatpush.msrb.mxu0 %v8506_v33  ;;  %3403 = vmatpush.msrb.mxu1 %v8512_v27  ;;  %10637 = vst [vmem:[#allocation22_spill] sm:$0xff] %v8878_v30 }
 0x729   :  { %3423 = vmatpush.msra.mxu2 %v8518_v39  ;;  %3443 = vmatpush.msra.mxu3 %v8524_v50  ;;  %10638 = vst [vmem:[#allocation19_spill] sm:$0xff] %v8884_v6 }
 0x72a   :  { %3384 = vmatpush.msrb.mxu0 %v8530_v56  ;;  %3404 = vmatpush.msrb.mxu1 %v8536_v59  ;;  %10639 = vst [vmem:[#allocation20_spill] sm:$0xff] %v8890_v61 }
 0x72b   :  { %3424 = vmatpush.msra.mxu2 %v8542_v55  ;;  %3444 = vmatpush.msra.mxu3 %v8548_v1 }
 0x72c   :  { %3385 = vmatpush.msrb.mxu0 %v10606_v0  ;;  %3405 = vmatpush.msrb.mxu1 %v10607_v57 }
 0x72d   :  { %3425 = vmatpush.msra.mxu2 %v8704_v12  ;;  %3445 = vmatpush.msra.mxu3 %v8710_v10 }
 0x72e   :  { %3386 = vmatpush.msrb.mxu0 %v8716_v43  ;;  %3406 = vmatpush.msrb.mxu1 %v8722_v18 }
 0x72f   :  { %3426 = vmatpush.msra.mxu2 %v8728_v45  ;;  %3446 = vmatpush.msra.mxu3 %v8734_v53 }
 0x730   :  { %3387 = vmatpush.msrb.mxu0 %v8740_v47  ;;  %3407 = vmatpush.msrb.mxu1 %v8746_v26 }
 0x731   :  { %3427 = vmatpush.msra.mxu2 %v8752_v4  ;;  %3447 = vmatpush.msra.mxu3 %v8758_v49 }
 0x732   :  { %3388 = vmatpush.msrb.mxu0 %v8764_v52  ;;  %3408 = vmatpush.msrb.mxu1 %v8770_v5 }
 0x733   :  { %3428 = vmatpush.msra.mxu2 %v8776_v25  ;;  %3448 = vmatpush.msra.mxu3 %v8782_v23 }
 0x734   :  { %3389 = vmatpush.msrb.mxu0 %v8788_v35  ;;  %3409 = vmatpush.msrb.mxu1 %v8794_v16 }
 0x735   :  { %3429 = vmatpush.msra.mxu2 %v8800_v31  ;;  %3449 = vmatpush.msra.mxu3 %v8806_v40 }
 0x736   :  { %3390 = vmatpush.msrb.mxu0 %v8812_v63  ;;  %3410 = vmatpush.msrb.mxu1 %v8818_v51  ;;  %v10644_v51 = vld [vmem:[#allocation28_spill] sm:$0xff] }
 0x737   :  { %3430 = vmatpush.msra.mxu2 %v8824_v62  ;;  %3450 = vmatpush.msra.mxu3 %v8830_v7  ;;  %v10643_v7 = vld [vmem:[#allocation33_spill] sm:$0xff] }
 0x738   :  { %3391 = vmatpush.msrb.mxu0 %v8836_v2  ;;  %3411 = vmatpush.msrb.mxu1 %v8842_v17  ;;  %v10642_v17 = vld [vmem:[#allocation27_spill] sm:$0xff] }
 0x739   :  { %3431 = vmatpush.msra.mxu2 %v8848_v3  ;;  %3451 = vmatpush.msra.mxu3 %v8854_v54 }
 0x73a   :  { %3392 = vmatpush.msrb.mxu0 %v8860_v15  ;;  %3412 = vmatpush.msrb.mxu1 %v8866_v38 }
 0x73b   :  { %3432 = vmatpush.msra.mxu2 %v8872_v44  ;;  %3452 = vmatpush.msra.mxu3 %v8878_v30  ;;  %v8896_v44 = vld [vmem:[%s9940_s5 + $0x10] sm:$0xff]  ;;  %v8902_v30 = vld [vmem:[%s9940_s5 + $0x18] sm:$0xff] }
 0x73c   :  { %3393 = vmatpush.msrb.mxu0 %v8884_v6  ;;  %3413 = vmatpush.msrb.mxu1 %v8890_v61  ;;  %10640 = vst [vmem:[#allocation25_spill] sm:$0xff] %v8896_v44 }
 0x73d   :  { %3433 = vmatpush.msra.mxu2 %v8896_v44  ;;  %10641 = vst [vmem:[#allocation26_spill] sm:$0xff] %v8902_v30  ;;  %3453 = vmatpush.msra.mxu3 %v8902_v30  ;;  %v10645_v44 = vld [vmem:[#allocation34_spill] sm:$0xff] }
 0x799   :  { %v2903_v6 = vpop.f32.mrf.mxu0  ;;  %v2923_v38 = vpop.f32.mrf.mxu1 }
 0x79a   :  { %v2970_v15 = vrot.slane %v2903_v6, 6  ;;  %v2974_v54 = vrot.slane %v2903_v6, 7  ;;  %v2971_v3 = vrot.slane %v2923_v38, 6  ;;  %v2975_v61 = vrot.slane %v2923_v38, 7  ;;  %v10646_v38 = vld [vmem:[#allocation32_spill] sm:$0xff] }
 0x79c   :  { %v2986_v2 = vadd.f32 %v2970_v15, %v10642_v17  ;;  %v2990_v62 = vadd.f32 %v2974_v54, %v10643_v7  ;;  %v2987_v63 = vadd.f32 %v2971_v3, %v10644_v51  ;;  %v2991_v40 = vadd.f32 %v2975_v61, %v10645_v44  ;;  %v10647_v17 = vld [vmem:[#allocation36_spill] sm:$0xff] }
 0x79e   :  { %v4496_v31 = vmul.f32 -1.442695, %v2986_v2  ;;  %v4497_v16 = vmul.f32 -1.442695, %v2990_v62  ;;  %v4498_v35 = vmul.f32 -1.442695, %v2987_v63 }
 0x79f   :  { %v4499_v23 = vmul.f32 -1.442695, %v2991_v40 }
 0x7a0   :  { %4855 = vpow2.f32 %v4496_v31  ;;  %v2963_v30 = vpop.f32.mrf.mxu3  ;;  %v2943_v6 = vpop.f32.mrf.mxu2 }
 0x7a1   :  { %4857 = vpow2.f32 %v4497_v16  ;;  %v2973_v25 = vrot.slane %v2963_v30, 6  ;;  %v2977_v5 = vrot.slane %v2963_v30, 7  ;;  %v2972_v7 = vrot.slane %v2943_v6, 6  ;;  %v10649_v30 = vld [vmem:[#allocation37_spill] sm:$0xff] }
 0x7a2   :  { %4859 = vpow2.f32 %v4498_v35  ;;  %v2976_v61 = vrot.slane %v2943_v6, 7 }
 0x7a3   :  { %4861 = vpow2.f32 %v4499_v23  ;;  %v2989_v15 = vadd.f32 %v2973_v25, %v10646_v38  ;;  %v2993_v54 = vadd.f32 %v2977_v5, %v10647_v17  ;;  %v10648_v25 = vld [vmem:[#allocation31_spill] sm:$0xff] }
 0x7a4   :  { %v2988_v5 = vadd.f32 %v2972_v7, %v10648_v25  ;;  %v2992_v6 = vadd.f32 %v2976_v61, %v10649_v30  ;;  %v10658_v7 = vrot.slane %v8663_v60, 7 }
 0x7a5   :  { %v4500_v3 = vmul.f32 -1.442695, %v2989_v15  ;;  %v4501_v2 = vmul.f32 -1.442695, %v2993_v54 }
 0x7a6   :  { %v4856_v51 = vpop.eup %4855 }
 0x7a7   :  { %v4858_v62 = vpop.eup %4857  ;;  %v8911_v63 = vadd.f32 1.0, %v4856_v51  ;;  %4863 = vpow2.f32 %v4500_v3 }
 0x7a8   :  { %v4860_v31 = vpop.eup %4859  ;;  %v8913_v16 = vadd.f32 1.0, %v4858_v62  ;;  %4865 = vpow2.f32 %v4501_v2 }
 0x7a9   :  { %v4862_v35 = vpop.eup %4861  ;;  %4867 = vrcp.f32 %v8911_v63  ;;  %v8916_v23 = vadd.f32 1.0, %v4860_v31  ;;  %v3011_v51 = vand.u32 2147483647, %v8911_v63  ;;  %v3013_v3 = vand.u32 2147483648, %v8911_v63 }
 0x7aa   :  { %4869 = vrcp.f32 %v8913_v16  ;;  %v8920_v40 = vadd.f32 1.0, %v4862_v35  ;;  %vm3007_vm6 = vweird.f32 %v8911_v63  ;;  %vm3022_vm7 = vweird.f32 %v8913_v16 }
 0x7ab   :  { %4871 = vrcp.f32 %v8916_v23  ;;  %v3051_v62 = vand.u32 2147483648, %v8916_v23  ;;  %vm3045_vm8 = vweird.f32 %v8916_v23  ;;  %vm8939_vm10 = vcmp.eq.f32.partialorder %v3011_v51, 8.507059e+37 }
 0x7ac   :  { %4873 = vrcp.f32 %v8920_v40  ;;  %v3066_v35 = vand.u32 2147483648, %v8920_v40  ;;  %vm3060_vm11 = vweird.f32 %v8920_v40  ;;  %v3028_v17 = vand.u32 2147483648, %v8913_v16 }
 0x7ad   :  { %v4864_v15 = vpop.eup %4863  ;;  %4875 = vtanh.f32 %v2988_v5  ;;  %v3052_v52 = vor.u32 1.1754944e-38, %v3051_v62  ;;  %v3049_v49 = vand.u32 2147483647, %v8916_v23  ;;  %v3064_v45 = vand.u32 2147483647, %v8920_v40 }
 0x7ae   :  { %v4866_v2 = vpop.eup %4865  ;;  %4877 = vtanh.f32 %v2992_v6  ;;  %v8930_v31 = vadd.f32 1.0, %v4864_v15  ;;  %v3026_v6 = vand.u32 2147483647, %v8913_v16  ;;  %v3067_v53 = vor.u32 1.1754944e-38, %v3066_v35 }
 0x7af   :  { %v4868_v61 = vpop.eup %4867  ;;  %v8935_v30 = vadd.f32 1.0, %v4866_v2  ;;  %v3014_v2 = vor.u32 1.1754944e-38, %v3013_v3  ;;  %v3029_v62 = vor.u32 1.1754944e-38, %v3028_v17  ;;  %vm8957_vm0 = vcmp.eq.f32.partialorder %v3049_v49, 8.507059e+37 }
 0x7b0   :  { %v4870_v54 = vpop.eup %4869  ;;  %v3003_v5 = vmul.f32 %v4868_v61, %v8911_v63  ;;  %4879 = vrcp.f32 %v8930_v31  ;;  %vm3008_vm12 = vweird.f32 %v4868_v61  ;;  %vm8953_vm13 = vcmp.eq.f32.partialorder %v3026_v6, 8.507059e+37 }
 0x7b1   :  { %v4872_v15 = vpop.eup %4871  ;;  %v3018_v25 = vmul.f32 %v4870_v54, %v8913_v16  ;;  %4881 = vrcp.f32 %v8935_v30  ;;  %vm3023_vm15 = vweird.f32 %v4870_v54  ;;  %vm3009_vm2 = vmor %vm3007_vm6, %vm3008_vm12  ;;  %vm8966_vm4 = vcmp.eq.f32.partialorder %v3064_v45, 8.507059e+37 }
 0x7b2   :  { %v4874_v38 = vpop.eup %4873  ;;  %v3004_v44 = vsub.f32 1.0, %v3003_v5  ;;  %v3041_v51 = vmul.f32 %v4872_v15, %v8916_v23  ;;  %vm3046_vm14 = vweird.f32 %v4872_v15  ;;  %vm3024_vm3 = vmor %vm3022_vm7, %vm3023_vm15  ;;  %v3089_v60 = vand.u32 2147483647, %v8930_v31 }
 0x7b3   :  { %v4876_v4 = vpop.eup %4875  ;;  %v3019_v26 = vsub.f32 1.0, %v3018_v25  ;;  %v3056_v47 = vmul.f32 %v4874_v38, %v8920_v40  ;;  %vm3061_vm1 = vweird.f32 %v4874_v38  ;;  %vm3047_vm5 = vmor %vm3045_vm8, %vm3046_vm14  ;;  %vm3100_vm12 = vweird.f32 %v8935_v30 }
 0x7b4   :  { %v4878_v18 = vpop.eup %4877  ;;  %v3042_v3 = vsub.f32 1.0, %v3041_v51  ;;  %v3005_v43 = vmul.f32 %v4868_v61, %v3004_v44  ;;  %vm3062_vm6 = vmor %vm3060_vm11, %vm3061_vm1  ;;  %vm3090_vm15 = vcmp.eq.f32.partialorder %v3089_v60, 8.507059e+37  ;;  %v10699_v60 = vld [vmem:[#allocation33_spill] sm:$0xff] }
 0x7b5   :  { %v3057_v5 = vsub.f32 1.0, %v3056_v47  ;;  %v3020_v12 = vmul.f32 %v4870_v54, %v3019_v26 }
 0x7b6   :  { %v4880_v57 = vpop.eup %4879  ;;  %v3043_v0 = vmul.f32 %v4872_v15, %v3042_v3  ;;  %v3006_v25 = vadd.f32 %v4868_v61, %v3005_v43 }
 0x7b7   :  { %v4882_v1 = vpop.eup %4881  ;;  %v3058_v51 = vmul.f32 %v4874_v38, %v3057_v5  ;;  %v3021_v44 = vadd.f32 %v4870_v54, %v3020_v12  ;;  %v3081_v47 = vmul.f32 %v4880_v57, %v8930_v31  ;;  %vm3086_vm7 = vweird.f32 %v4880_v57 }
 0x7b8   :  { %v3010_v26 = vsel %vm3009_vm2, %v4868_v61, %v3006_v25  ;;  %v3044_v17 = vadd.f32 %v4872_v15, %v3043_v0  ;;  %v3096_v49 = vmul.f32 %v4882_v1, %v8935_v30  ;;  %vm3101_vm8 = vweird.f32 %v4882_v1 }
 0x7b9   :  { %v3015_v63 = vsel %vm8939_vm10, %v3014_v2, %v3010_v26  ;;  %v3025_v12 = vsel %vm3024_vm3, %v4870_v54, %v3021_v44  ;;  %v3059_v6 = vadd.f32 %v4874_v38, %v3058_v51  ;;  %v3082_v3 = vsub.f32 1.0, %v3081_v47 }
 0x7ba   :  { %v3030_v0 = vsel %vm8953_vm13, %v3029_v62, %v3025_v12  ;;  %v3048_v45 = vsel %vm3047_vm5, %v4872_v15, %v3044_v17  ;;  %v3118_v16 = vmul.f32 %v4876_v4, %v3015_v63  ;;  %v3097_v61 = vsub.f32 1.0, %v3096_v49  ;;  %vm3102_vm13 = vmor %vm3100_vm12, %vm3101_vm8 }
 0x7bb   :  { %v3053_v5 = vsel %vm8957_vm0, %v3052_v52, %v3048_v45  ;;  %v3063_v23 = vsel %vm3062_vm6, %v4874_v38, %v3059_v6  ;;  %v3119_v25 = vmul.f32 %v4878_v18, %v3030_v0  ;;  %v3083_v55 = vmul.f32 %v4880_v57, %v3082_v3  ;;  %v10689_v3 = vld [vmem:[#allocation18_spill] sm:$0xff]  ;;  %v10690_v0 = vld [vmem:[#allocation15_spill] sm:$0xff]  ;;  %v10691_v45 = vld [vmem:[#allocation16_spill] sm:$0xff] }
 0x7bc   :  { %v3068_v54 = vsel %vm8966_vm4, %v3067_v53, %v3063_v23  ;;  %v3116_v2 = vmul.f32 %v10658_v7, %v3053_v5  ;;  %v3098_v40 = vmul.f32 %v4882_v1, %v3097_v61  ;;  %v10659_v51 = vrot.slane %v8661_v32, 7  ;;  %v10693_v61 = vld [vmem:[#allocation22_spill] sm:$0xff]  ;;  %v10694_v5 = vld [vmem:[#allocation19_spill] sm:$0xff]  ;;  %v10695_v23 = vld [vmem:[#allocation20_spill] sm:$0xff] }
 0x7bd   :  { %v3084_v15 = vadd.f32 %v4880_v57, %v3083_v55  ;;  %v3091_v18 = vand.u32 2147483648, %v8930_v31  ;;  %vm3085_vm10 = vweird.f32 %v8930_v31  ;;  %v3106_v32 = vand.u32 2147483648, %v8935_v30 }
 0x7be   :  { %v3117_v10 = vmul.f32 %v10659_v51, %v3068_v54  ;;  %v8987_v62 = vadd.f32 %v3118_v16, %v3116_v2  ;;  %v3099_v52 = vadd.f32 %v4882_v1, %v3098_v40  ;;  %vm3087_vm11 = vmor %vm3085_vm10, %vm3086_vm7  ;;  %v3104_v55 = vand.u32 2147483647, %v8935_v30  ;;  %v10688_v30 = vld [vmem:[#allocation17_spill] sm:$0xff]  ;;  %v10697_v54 = vld [vmem:[#allocation26_spill] sm:$0xff] }
 0x7bf   :  { %v3088_v53 = vsel %vm3087_vm11, %v4880_v57, %v3084_v15  ;;  %v3092_v38 = vor.u32 1.1754944e-38, %v3091_v18  ;;  %v3107_v44 = vor.u32 1.1754944e-38, %v3106_v32  ;;  %v10687_v57 = vld [vmem:[#allocation12_spill] sm:$0xff]  ;;  %v10692_v16 = vld [vmem:[#allocation21_spill] sm:$0xff]  ;;  %v10698_v18 = vld [vmem:[#allocation27_spill] sm:$0xff] }
 0x7c0   :  { %v8989_v4 = vadd.f32 %v3119_v25, %v3117_v10  ;;  %4883 = vtanh.f32 %v8987_v62  ;;  %v3103_v35 = vsel %vm3102_vm13, %v4882_v1, %v3099_v52  ;;  %vm3105_vm14 = vcmp.eq.f32.partialorder %v3104_v55, 8.507059e+37  ;;  %v10686_v1 = vld [vmem:[#allocation11_spill] sm:$0xff]  ;;  %v10696_v25 = vld [vmem:[#allocation25_spill] sm:$0xff]  ;;  %v10700_v55 = vld [vmem:[#allocation28_spill] sm:$0xff] }
 0x7c1   :  { %v3093_v26 = vsel %vm3090_vm15, %v3092_v38, %v3088_v53  ;;  %v3108_v43 = vsel %vm3105_vm14, %v3107_v44, %v3103_v35  ;;  %v10701_v38 = vld [vmem:[#allocation34_spill] sm:$0xff] }
 0x7c2   :  { %4885 = vtanh.f32 %v8989_v4 }
 0x7c6   :  { %v4884_v47 = vpop.eup %4883 }
 0x7c7   :  { %v3124_v49 = vmul.f32 %v4884_v47, %v3093_v26 }
 0x7c8   :  { %v4886_v17 = vpop.eup %4885 }
 0x7c9   :  { %v3125_v31 = vmul.f32 %v4886_v17, %v3108_v43  ;;  %v3128_v63 = vrot.slane %v3124_v49, 2 }
 0x7cb   :  { %v3129_v12 = vrot.slane %v3125_v31, 1 }
 0x7cd   :  { %v3130_v6 = vsel %vm445_vm9, %v3129_v12, %v3128_v63  ;;  %v10702_v12 = vld [vmem:[#allocation32_spill] sm:$0xff] }
 0x7ce   :  { %3148 = vmatmul.f32.vlgmr.msra.gmra.mxu0 %v3130_v6  ;;  %3168 = vmatmul.f32.vlgmr.msra.gmra.mxu1 %v3130_v6 }
 0x7cf   :  { %3188 = vmatmul.f32.vlgmr.msrb.gmra.mxu2 %v3130_v6  ;;  %3208 = vmatmul.f32.vlgmr.msrb.gmra.mxu3 %v3130_v6 }
 0x7d0   :  { %3624 = vmatpush.msra.mxu0 %v8386_v37  ;;  %3644 = vmatpush.msra.mxu1 %v8392_v46  ;;  %v10660_v37 = vld [vmem:[#allocation35_spill] sm:$0xff]  ;;  %v10661_v46 = vld [vmem:[#allocation46_spill] sm:$0xff] }
 0x7d1   :  { %3664 = vmatpush.msrb.mxu2 %v8398_v8  ;;  %3684 = vmatpush.msrb.mxu3 %v8404_v36  ;;  %v10662_v8 = vld [vmem:[#allocation47_spill] sm:$0xff]  ;;  %v10663_v36 = vld [vmem:[#allocation48_spill] sm:$0xff] }
 0x7d2   :  { %3625 = vmatpush.msra.mxu0 %v8410_v9  ;;  %3645 = vmatpush.msra.mxu1 %v8416_v58  ;;  %v10664_v9 = vld [vmem:[#allocation49_spill] sm:$0xff]  ;;  %v10665_v58 = vld [vmem:[#allocation50_spill] sm:$0xff] }
 0x7d3   :  { %3665 = vmatpush.msrb.mxu2 %v8422_v13  ;;  %3685 = vmatpush.msrb.mxu3 %v8428_v28  ;;  %v10666_v13 = vld [vmem:[#allocation51_spill] sm:$0xff]  ;;  %v10667_v28 = vld [vmem:[#allocation52_spill] sm:$0xff] }
 0x7d4   :  { %3626 = vmatpush.msra.mxu0 %v8434_v48  ;;  %3646 = vmatpush.msra.mxu1 %v8440_v20  ;;  %v10668_v48 = vld [vmem:[#allocation53_spill] sm:$0xff]  ;;  %v10669_v20 = vld [vmem:[#allocation54_spill] sm:$0xff] }
 0x7d5   :  { %3666 = vmatpush.msrb.mxu2 %v8446_v21  ;;  %3686 = vmatpush.msrb.mxu3 %v8452_v11  ;;  %v10670_v21 = vld [vmem:[#allocation38_spill] sm:$0xff]  ;;  %v10671_v11 = vld [vmem:[#allocation39_spill] sm:$0xff] }
 0x7d6   :  { %3627 = vmatpush.msra.mxu0 %v8458_v24  ;;  %3647 = vmatpush.msra.mxu1 %v8464_v14  ;;  %v10672_v24 = vld [vmem:[#allocation40_spill] sm:$0xff]  ;;  %v10673_v14 = vld [vmem:[#allocation41_spill] sm:$0xff] }
 0x7d7   :  { %3667 = vmatpush.msrb.mxu2 %v8470_v29  ;;  %3687 = vmatpush.msrb.mxu3 %v8476_v19  ;;  %v10674_v29 = vld [vmem:[#allocation42_spill] sm:$0xff]  ;;  %v10675_v19 = vld [vmem:[#allocation43_spill] sm:$0xff] }
 0x7d8   :  { %3628 = vmatpush.msra.mxu0 %v8482_v41  ;;  %3648 = vmatpush.msra.mxu1 %v8488_v34  ;;  %v10676_v41 = vld [vmem:[#allocation44_spill] sm:$0xff]  ;;  %v10677_v34 = vld [vmem:[#allocation45_spill] sm:$0xff] }
 0x7d9   :  { %3668 = vmatpush.msrb.mxu2 %v8494_v42  ;;  %3688 = vmatpush.msrb.mxu3 %v8500_v22  ;;  %v10678_v42 = vld [vmem:[#allocation5_spill] sm:$0xff]  ;;  %v10679_v22 = vld [vmem:[#allocation6_spill] sm:$0xff] }
 0x7da   :  { %3629 = vmatpush.msra.mxu0 %v8506_v33  ;;  %3649 = vmatpush.msra.mxu1 %v8512_v27  ;;  %v10680_v33 = vld [vmem:[#allocation9_spill] sm:$0xff]  ;;  %v10681_v27 = vld [vmem:[#allocation10_spill] sm:$0xff] }
 0x7db   :  { %3669 = vmatpush.msrb.mxu2 %v8518_v39  ;;  %3689 = vmatpush.msrb.mxu3 %v8524_v50  ;;  %v10682_v39 = vld [vmem:[#allocation7_spill] sm:$0xff]  ;;  %v10683_v50 = vld [vmem:[#allocation8_spill] sm:$0xff] }
 0x7dc   :  { %3630 = vmatpush.msra.mxu0 %v8530_v56  ;;  %3650 = vmatpush.msra.mxu1 %v8536_v59  ;;  %v10684_v56 = vld [vmem:[#allocation13_spill] sm:$0xff]  ;;  %v10685_v59 = vld [vmem:[#allocation14_spill] sm:$0xff] }
 0x7dd   :  { %3670 = vmatpush.msrb.mxu2 %v10660_v37  ;;  %3690 = vmatpush.msrb.mxu3 %v10661_v46  ;;  %v10703_v37 = vld [vmem:[#allocation36_spill] sm:$0xff] }
 0x7de   :  { %3631 = vmatpush.msra.mxu0 %v10662_v8  ;;  %3651 = vmatpush.msra.mxu1 %v10663_v36 }
 0x7df   :  { %3671 = vmatpush.msrb.mxu2 %v10664_v9  ;;  %3691 = vmatpush.msrb.mxu3 %v10665_v58 }
 0x7e0   :  { %3632 = vmatpush.msra.mxu0 %v10666_v13  ;;  %3652 = vmatpush.msra.mxu1 %v10667_v28 }
 0x7e1   :  { %3672 = vmatpush.msrb.mxu2 %v10668_v48  ;;  %3692 = vmatpush.msrb.mxu3 %v10669_v20 }
 0x7e2   :  { %3633 = vmatpush.msra.mxu0 %v10670_v21  ;;  %3653 = vmatpush.msra.mxu1 %v10671_v11 }
 0x7e3   :  { %3673 = vmatpush.msrb.mxu2 %v10672_v24  ;;  %3693 = vmatpush.msrb.mxu3 %v10673_v14 }
 0x7e4   :  { %3634 = vmatpush.msra.mxu0 %v10674_v29  ;;  %3654 = vmatpush.msra.mxu1 %v10675_v19 }
 0x7e5   :  { %3674 = vmatpush.msrb.mxu2 %v10676_v41  ;;  %3694 = vmatpush.msrb.mxu3 %v10677_v34 }
 0x7e6   :  { %3635 = vmatpush.msra.mxu0 %v10678_v42  ;;  %3655 = vmatpush.msra.mxu1 %v10679_v22 }
 0x7e7   :  { %3675 = vmatpush.msrb.mxu2 %v10680_v33  ;;  %3695 = vmatpush.msrb.mxu3 %v10681_v27 }
 0x7e8   :  { %3636 = vmatpush.msra.mxu0 %v10682_v39  ;;  %3656 = vmatpush.msra.mxu1 %v10683_v50 }
 0x7e9   :  { %3676 = vmatpush.msrb.mxu2 %v10684_v56  ;;  %3696 = vmatpush.msrb.mxu3 %v10685_v59 }
 0x7ea   :  { %3637 = vmatpush.msra.mxu0 %v10686_v1  ;;  %3657 = vmatpush.msra.mxu1 %v10687_v57 }
 0x7eb   :  { %3677 = vmatpush.msrb.mxu2 %v10688_v30  ;;  %3697 = vmatpush.msrb.mxu3 %v10689_v3 }
 0x7ec   :  { %3638 = vmatpush.msra.mxu0 %v10690_v0  ;;  %3658 = vmatpush.msra.mxu1 %v10691_v45 }
 0x7ed   :  { %3678 = vmatpush.msrb.mxu2 %v10692_v16  ;;  %3698 = vmatpush.msrb.mxu3 %v10693_v61 }
 0x7ee   :  { %3639 = vmatpush.msra.mxu0 %v10694_v5  ;;  %3659 = vmatpush.msra.mxu1 %v10695_v23 }
 0x7ef   :  { %3679 = vmatpush.msrb.mxu2 %v10696_v25  ;;  %3699 = vmatpush.msrb.mxu3 %v10697_v54 }
 0x84b   :  { %v3149_v7 = vpop.f32.mrf.mxu0  ;;  %v3169_v2 = vpop.f32.mrf.mxu1 }
 0x84c   :  { %v3216_v40 = vrot.slane %v3149_v7, 5  ;;  %v3220_v51 = vrot.slane %v3149_v7, 6  ;;  %v3217_v10 = vrot.slane %v3169_v2, 5  ;;  %v3221_v15 = vrot.slane %v3169_v2, 6 }
 0x84e   :  { %v3232_v52 = vadd.f32 %v3216_v40, %v10698_v18  ;;  %v3236_v32 = vadd.f32 %v3220_v51, %v10699_v60  ;;  %v3233_v53 = vadd.f32 %v3217_v10, %v10700_v55  ;;  %v3237_v35 = vadd.f32 %v3221_v15, %v10701_v38 }
 0x850   :  { %v4502_v44 = vmul.f32 -1.442695, %v3232_v52  ;;  %v4503_v47 = vmul.f32 -1.442695, %v3236_v32  ;;  %v4504_v26 = vmul.f32 -1.442695, %v3233_v53 }
 0x851   :  { %v4505_v17 = vmul.f32 -1.442695, %v3237_v35  ;;  %v10704_v35 = vld [vmem:[#allocation31_spill] sm:$0xff] }
 0x852   :  { %4887 = vpow2.f32 %v4502_v44  ;;  %v3209_v43 = vpop.f32.mrf.mxu3  ;;  %v3189_v31 = vpop.f32.mrf.mxu2 }
 0x853   :  { %4889 = vpow2.f32 %v4503_v47  ;;  %v3219_v49 = vrot.slane %v3209_v43, 5  ;;  %v3223_v63 = vrot.slane %v3209_v43, 6  ;;  %v3218_v8 = vrot.slane %v3189_v31, 5 }
 0x854   :  { %4891 = vpow2.f32 %v4504_v26  ;;  %v3222_v2 = vrot.slane %v3189_v31, 6  ;;  %v10705_v26 = vld [vmem:[#allocation37_spill] sm:$0xff] }
 0x855   :  { %4893 = vpow2.f32 %v4505_v17  ;;  %v3235_v6 = vadd.f32 %v3219_v49, %v10702_v12  ;;  %v3239_v46 = vadd.f32 %v3223_v63, %v10703_v37  ;;  %v3234_v44 = vadd.f32 %v3218_v8, %v10704_v35 }
 0x856   :  { %v3238_v17 = vadd.f32 %v3222_v2, %v10705_v26 }
 0x857   :  { %v4506_v36 = vmul.f32 -1.442695, %v3235_v6  ;;  %v4507_v40 = vmul.f32 -1.442695, %v3239_v46 }
 0x858   :  { %v4888_v7 = vpop.eup %4887 }
 0x859   :  { %v4890_v51 = vpop.eup %4889  ;;  %v9070_v10 = vadd.f32 1.0, %v4888_v7  ;;  %4895 = vpow2.f32 %v4506_v36 }
 0x85a   :  { %v4892_v15 = vpop.eup %4891  ;;  %v9072_v52 = vadd.f32 1.0, %v4890_v51  ;;  %4897 = vpow2.f32 %v4507_v40 }
 0x85b   :  { %v4894_v32 = vpop.eup %4893  ;;  %4899 = vrcp.f32 %v9070_v10  ;;  %v9075_v53 = vadd.f32 1.0, %v4892_v15  ;;  %v3257_v43 = vand.u32 2147483647, %v9070_v10  ;;  %v3259_v63 = vand.u32 2147483648, %v9070_v10 }
 0x85c   :  { %4901 = vrcp.f32 %v9072_v52  ;;  %v9079_v47 = vadd.f32 1.0, %v4894_v32  ;;  %vm3253_vm0 = vweird.f32 %v9070_v10  ;;  %vm3268_vm1 = vweird.f32 %v9072_v52 }
 0x85d   :  { %4903 = vrcp.f32 %v9075_v53  ;;  %v3297_v8 = vand.u32 2147483648, %v9075_v53  ;;  %vm3291_vm2 = vweird.f32 %v9075_v53  ;;  %vm9098_vm3 = vcmp.eq.f32.partialorder %v3257_v43, 8.507059e+37 }
 0x85e   :  { %4905 = vrcp.f32 %v9079_v47  ;;  %v3312_v2 = vand.u32 2147483648, %v9079_v47  ;;  %vm3306_vm4 = vweird.f32 %v9079_v47  ;;  %v3274_v46 = vand.u32 2147483648, %v9072_v52 }
 0x85f   :  { %v4896_v49 = vpop.eup %4895  ;;  %4907 = vtanh.f32 %v3234_v44  ;;  %v3272_v44 = vand.u32 2147483647, %v9072_v52  ;;  %v3298_v35 = vor.u32 1.1754944e-38, %v3297_v8  ;;  %v3295_v37 = vand.u32 2147483647, %v9075_v53 }
 0x860   :  { %v4898_v6 = vpop.eup %4897  ;;  %4909 = vtanh.f32 %v3238_v17  ;;  %v9089_v36 = vadd.f32 1.0, %v4896_v49  ;;  %v3313_v60 = vor.u32 1.1754944e-38, %v3312_v2  ;;  %v3310_v18 = vand.u32 2147483647, %v9079_v47 }
 0x861   :  { %v4900_v7 = vpop.eup %4899  ;;  %v9094_v40 = vadd.f32 1.0, %v4898_v6  ;;  %v3260_v6 = vor.u32 1.1754944e-38, %v3259_v63  ;;  %vm9112_vm6 = vcmp.eq.f32.partialorder %v3272_v44, 8.507059e+37  ;;  %v3275_v8 = vor.u32 1.1754944e-38, %v3274_v46 }
 0x862   :  { %v4902_v51 = vpop.eup %4901  ;;  %v3249_v15 = vmul.f32 %v4900_v7, %v9070_v10  ;;  %4911 = vrcp.f32 %v9089_v36  ;;  %vm3254_vm5 = vweird.f32 %v4900_v7  ;;  %vm9116_vm10 = vcmp.eq.f32.partialorder %v3295_v37, 8.507059e+37 }
 0x863   :  { %v4904_v17 = vpop.eup %4903  ;;  %v3264_v49 = vmul.f32 %v4902_v51, %v9072_v52  ;;  %4913 = vrcp.f32 %v9094_v40  ;;  %vm3269_vm7 = vweird.f32 %v4902_v51  ;;  %vm3255_vm12 = vmor %vm3253_vm0, %vm3254_vm5  ;;  %vm9125_vm15 = vcmp.eq.f32.partialorder %v3310_v18, 8.507059e+37 }
 0x864   :  { %v4906_v31 = vpop.eup %4905  ;;  %v3250_v26 = vsub.f32 1.0, %v3249_v15  ;;  %v3287_v43 = vmul.f32 %v4904_v17, %v9075_v53  ;;  %vm3292_vm8 = vweird.f32 %v4904_v17  ;;  %vm3270_vm13 = vmor %vm3268_vm1, %vm3269_vm7  ;;  %v10714_v32 = vrot.slane %v8987_v62, 7 }
 0x865   :  { %v4908_v12 = vpop.eup %4907  ;;  %v3265_v38 = vsub.f32 1.0, %v3264_v49  ;;  %v3302_v55 = vmul.f32 %v4906_v31, %v9079_v47  ;;  %vm3307_vm11 = vweird.f32 %v4906_v31  ;;  %vm3293_vm14 = vmor %vm3291_vm2, %vm3292_vm8  ;;  %v3335_v62 = vand.u32 2147483647, %v9089_v36 }
 0x866   :  { %v4910_v54 = vpop.eup %4909  ;;  %v3288_v63 = vsub.f32 1.0, %v3287_v43  ;;  %v3251_v25 = vmul.f32 %v4900_v7, %v3250_v26  ;;  %vm3308_vm0 = vmor %vm3306_vm4, %vm3307_vm11  ;;  %vm3346_vm5 = vweird.f32 %v9094_v40 }
 0x867   :  { %v3303_v15 = vsub.f32 1.0, %v3302_v55  ;;  %v3266_v5 = vmul.f32 %v4902_v51, %v3265_v38  ;;  %vm3336_vm7 = vcmp.eq.f32.partialorder %v3335_v62, 8.507059e+37  ;;  %v9282_v62 = vld [vmem:[%s9940_s5 + $0x140] sm:$0xff] }
 0x868   :  { %v4912_v61 = vpop.eup %4911  ;;  %v3289_v16 = vmul.f32 %v4904_v17, %v3288_v63  ;;  %v3252_v49 = vadd.f32 %v4900_v7, %v3251_v25 }
 0x869   :  { %v4914_v45 = vpop.eup %4913  ;;  %v3304_v43 = vmul.f32 %v4906_v31, %v3303_v15  ;;  %v3267_v26 = vadd.f32 %v4902_v51, %v3266_v5  ;;  %v3327_v55 = vmul.f32 %v4912_v61, %v9089_v36  ;;  %vm3332_vm1 = vweird.f32 %v4912_v61 }
 0x86a   :  { %v3256_v38 = vsel %vm3255_vm12, %v4900_v7, %v3252_v49  ;;  %v3290_v46 = vadd.f32 %v4904_v17, %v3289_v16  ;;  %v3342_v37 = vmul.f32 %v4914_v45, %v9094_v40  ;;  %vm3347_vm2 = vweird.f32 %v4914_v45 }
 0x86b   :  { %v3261_v10 = vsel %vm9098_vm3, %v3260_v6, %v3256_v38  ;;  %v3271_v5 = vsel %vm3270_vm13, %v4902_v51, %v3267_v26  ;;  %v3305_v44 = vadd.f32 %v4906_v31, %v3304_v43  ;;  %v3328_v63 = vsub.f32 1.0, %v3327_v55 }
 0x86c   :  { %v3276_v16 = vsel %vm9112_vm6, %v3275_v8, %v3271_v5  ;;  %v3294_v18 = vsel %vm3293_vm14, %v4904_v17, %v3290_v46  ;;  %v3364_v52 = vmul.f32 %v4908_v12, %v3261_v10  ;;  %v3343_v7 = vsub.f32 1.0, %v3342_v37  ;;  %vm3348_vm6 = vmor %vm3346_vm5, %vm3347_vm2 }
 0x86d   :  { %v3299_v15 = vsel %vm9116_vm10, %v3298_v35, %v3294_v18  ;;  %v3309_v53 = vsel %vm3308_vm0, %v4906_v31, %v3305_v44  ;;  %v3365_v49 = vmul.f32 %v4910_v54, %v3276_v16  ;;  %v3329_v0 = vmul.f32 %v4912_v61, %v3328_v63  ;;  %v9180_v63 = vld [vmem:[%s9940_s5 + $0x1f8] sm:$0xff]  ;;  %v9186_v16 = vld [vmem:[%s9940_s5 + $0x1c0] sm:$0xff]  ;;  %v9192_v18 = vld [vmem:[%s9940_s5 + $0x1c8] sm:$0xff] }
 0x86e   :  { %v3314_v51 = vsel %vm9125_vm15, %v3313_v60, %v3309_v53  ;;  %v3362_v6 = vmul.f32 %v10714_v32, %v3299_v15  ;;  %v3344_v47 = vmul.f32 %v4914_v45, %v3343_v7  ;;  %v10715_v43 = vrot.slane %v8989_v4, 7  ;;  %v9204_v7 = vld [vmem:[%s9940_s5 + $0x1d8] sm:$0xff]  ;;  %v9210_v15 = vld [vmem:[%s9940_s5 + $0x1a0] sm:$0xff]  ;;  %v9216_v53 = vld [vmem:[%s9940_s5 + $0x1a8] sm:$0xff] }
 0x86f   :  { %v3330_v17 = vadd.f32 %v4912_v61, %v3329_v0  ;;  %v3337_v54 = vand.u32 2147483648, %v9089_v36  ;;  %vm3331_vm3 = vweird.f32 %v9089_v36  ;;  %v3352_v4 = vand.u32 2147483648, %v9094_v40  ;;  %v9234_v32 = vld [vmem:[%s9940_s5 + $0x180] sm:$0xff] }
 0x870   :  { %v3363_v23 = vmul.f32 %v10715_v43, %v3314_v51  ;;  %v9146_v8 = vadd.f32 %v3364_v52, %v3362_v6  ;;  %v3345_v35 = vadd.f32 %v4914_v45, %v3344_v47  ;;  %vm3333_vm4 = vmor %vm3331_vm3, %vm3332_vm1  ;;  %v3350_v0 = vand.u32 2147483647, %v9094_v40  ;;  %v9174_v40 = vld [vmem:[%s9940_s5 + $0x1f0] sm:$0xff]  ;;  %v9228_v51 = vld [vmem:[%s9940_s5 + $0x1b8] sm:$0xff] }
 0x871   :  { %v3334_v60 = vsel %vm3333_vm4, %v4912_v61, %v3330_v17  ;;  %v3338_v31 = vor.u32 1.1754944e-38, %v3337_v54  ;;  %v3353_v26 = vor.u32 1.1754944e-38, %v3352_v4  ;;  %v9168_v61 = vld [vmem:[%s9940_s5 + $0x1e8] sm:$0xff]  ;;  %v9198_v52 = vld [vmem:[%s9940_s5 + $0x1d0] sm:$0xff]  ;;  %v9252_v43 = vld [vmem:[%s9940_s5 + $0x198] sm:$0xff] }
 0x872   :  { %v9148_v12 = vadd.f32 %v3365_v49, %v3363_v23  ;;  %4915 = vtanh.f32 %v9146_v8  ;;  %v3349_v2 = vsel %vm3348_vm6, %v4914_v45, %v3345_v35  ;;  %vm3351_vm8 = vcmp.eq.f32.partialorder %v3350_v0, 8.507059e+37  ;;  %v9162_v45 = vld [vmem:[%s9940_s5 + $0x1e0] sm:$0xff]  ;;  %v9222_v49 = vld [vmem:[%s9940_s5 + $0x1b0] sm:$0xff]  ;;  %v9240_v6 = vld [vmem:[%s9940_s5 + $0x188] sm:$0xff] }
 0x873   :  { %v3339_v38 = vsel %vm3336_vm7, %v3338_v31, %v3334_v60  ;;  %v3354_v25 = vsel %vm3351_vm8, %v3353_v26, %v3349_v2  ;;  %v9246_v47 = vld [vmem:[%s9940_s5 + $0x190] sm:$0xff]  ;;  %v9258_v23 = vld [vmem:[%s9940_s5 + $0x160] sm:$0xff]  ;;  %v9264_v17 = vld [vmem:[%s9940_s5 + $0x168] sm:$0xff] }
 0x874   :  { %4917 = vtanh.f32 %v9148_v12  ;;  %v9270_v54 = vld [vmem:[%s9940_s5 + $0x170] sm:$0xff]  ;;  %v9276_v35 = vld [vmem:[%s9940_s5 + $0x178] sm:$0xff]  ;;  %v9288_v4 = vld [vmem:[%s9940_s5 + $0x148] sm:$0xff] }
 0x875   :  { %v9294_v0 = vld [vmem:[%s9940_s5 + $0x150] sm:$0xff]  ;;  %v9300_v60 = vld [vmem:[%s9940_s5 + $0x158] sm:$0xff]  ;;  %v9306_v31 = vld [vmem:[%s9940_s5 + $0x120] sm:$0xff] }
 0x876   :  { %v9312_v2 = vld [vmem:[%s9940_s5 + $0x128] sm:$0xff]  ;;  %v9318_v26 = vld [vmem:[%s9940_s5 + $0x130] sm:$0xff] }
 0x877   :  { %10716 = vst [vmem:[#allocation23_spill] sm:$0xff] %v9318_v26 }
 0x878   :  { %v4916_v55 = vpop.eup %4915 }
 0x879   :  { %v3370_v37 = vmul.f32 %v4916_v55, %v3339_v38  ;;  %v9324_v55 = vld [vmem:[%s9940_s5 + $0x138] sm:$0xff]  ;;  %v9330_v38 = vld [vmem:[%s9940_s5 + $0x100] sm:$0xff] }
 0x87a   :  { %v4918_v46 = vpop.eup %4917  ;;  %10717 = vst [vmem:[#allocation24_spill] sm:$0xff] %v9324_v55 }
 0x87b   :  { %v3371_v36 = vmul.f32 %v4918_v46, %v3354_v25  ;;  %v3374_v10 = vrot.slane %v3370_v37, 3  ;;  %10718 = vst [vmem:[#allocation29_spill] sm:$0xff] %v9330_v38  ;;  %v9336_v46 = vld [vmem:[%s9940_s5 + $0x108] sm:$0xff] }
 0x87c   :  { %10719 = vst [vmem:[#allocation35_spill] sm:$0xff] %v9336_v46 }
 0x87d   :  { %v3375_v5 = vrot.slane %v3371_v36, 2 }
 0x87f   :  { %v3376_v44 = vsel %vm445_vm9, %v3375_v5, %v3374_v10  ;;  %v10732_v5 = vld [vmem:[#allocation32_spill] sm:$0xff] }
 0x880   :  { %3394 = vmatmul.f32.vlgmr.msrb.gmra.mxu0 %v3376_v44  ;;  %3414 = vmatmul.f32.vlgmr.msrb.gmra.mxu1 %v3376_v44 }
 0x881   :  { %3434 = vmatmul.f32.vlgmr.msra.gmra.mxu2 %v3376_v44  ;;  %3454 = vmatmul.f32.vlgmr.msra.gmra.mxu3 %v3376_v44 }
 0x882   :  { %3870 = vmatpush.msrb.mxu0 %v9162_v45  ;;  %3890 = vmatpush.msrb.mxu1 %v9168_v61 }
 0x883   :  { %3910 = vmatpush.msra.mxu2 %v9174_v40  ;;  %3930 = vmatpush.msra.mxu3 %v9180_v63 }
 0x884   :  { %3871 = vmatpush.msrb.mxu0 %v9186_v16  ;;  %3891 = vmatpush.msrb.mxu1 %v9192_v18 }
 0x885   :  { %3911 = vmatpush.msra.mxu2 %v9198_v52  ;;  %3931 = vmatpush.msra.mxu3 %v9204_v7 }
 0x886   :  { %3872 = vmatpush.msrb.mxu0 %v9210_v15  ;;  %3892 = vmatpush.msrb.mxu1 %v9216_v53 }
 0x887   :  { %3912 = vmatpush.msra.mxu2 %v9222_v49  ;;  %3932 = vmatpush.msra.mxu3 %v9228_v51 }
 0x888   :  { %3873 = vmatpush.msrb.mxu0 %v9234_v32  ;;  %3893 = vmatpush.msrb.mxu1 %v9240_v6 }
 0x889   :  { %3913 = vmatpush.msra.mxu2 %v9246_v47  ;;  %3933 = vmatpush.msra.mxu3 %v9252_v43 }
 0x88a   :  { %3874 = vmatpush.msrb.mxu0 %v9258_v23  ;;  %3894 = vmatpush.msrb.mxu1 %v9264_v17 }
 0x88b   :  { %3914 = vmatpush.msra.mxu2 %v9270_v54  ;;  %3934 = vmatpush.msra.mxu3 %v9276_v35 }
 0x88c   :  { %3875 = vmatpush.msrb.mxu0 %v9282_v62  ;;  %3895 = vmatpush.msrb.mxu1 %v9288_v4 }
 0x88d   :  { %3915 = vmatpush.msra.mxu2 %v9294_v0  ;;  %3935 = vmatpush.msra.mxu3 %v9300_v60 }
 0x88e   :  { %3876 = vmatpush.msrb.mxu0 %v9306_v31  ;;  %3896 = vmatpush.msrb.mxu1 %v9312_v2 }
 0x88f   :  { %3916 = vmatpush.msra.mxu2 %v9318_v26  ;;  %3936 = vmatpush.msra.mxu3 %v9324_v55 }
 0x890   :  { %3877 = vmatpush.msrb.mxu0 %v9330_v38  ;;  %3897 = vmatpush.msrb.mxu1 %v9336_v46 }
 0x891   :  { %3917 = vmatpush.msra.mxu2 %v10664_v9  ;;  %3937 = vmatpush.msra.mxu3 %v10665_v58  ;;  %v10720_v9 = vld [vmem:[#allocation15_spill] sm:$0xff]  ;;  %v10721_v58 = vld [vmem:[#allocation16_spill] sm:$0xff] }
 0x892   :  { %3878 = vmatpush.msrb.mxu0 %v10666_v13  ;;  %3898 = vmatpush.msrb.mxu1 %v10667_v28  ;;  %v10722_v13 = vld [vmem:[#allocation21_spill] sm:$0xff]  ;;  %v10723_v28 = vld [vmem:[#allocation22_spill] sm:$0xff] }
 0x893   :  { %3918 = vmatpush.msra.mxu2 %v10668_v48  ;;  %3938 = vmatpush.msra.mxu3 %v10669_v20  ;;  %v10724_v48 = vld [vmem:[#allocation19_spill] sm:$0xff]  ;;  %v10725_v20 = vld [vmem:[#allocation20_spill] sm:$0xff] }
 0x894   :  { %3879 = vmatpush.msrb.mxu0 %v10670_v21  ;;  %3899 = vmatpush.msrb.mxu1 %v10671_v11  ;;  %v10726_v21 = vld [vmem:[#allocation25_spill] sm:$0xff]  ;;  %v10727_v11 = vld [vmem:[#allocation26_spill] sm:$0xff] }
 0x895   :  { %3919 = vmatpush.msra.mxu2 %v10672_v24  ;;  %3939 = vmatpush.msra.mxu3 %v10673_v14 }
 0x896   :  { %3880 = vmatpush.msrb.mxu0 %v10674_v29  ;;  %3900 = vmatpush.msrb.mxu1 %v10675_v19 }
 0x897   :  { %3920 = vmatpush.msra.mxu2 %v10676_v41  ;;  %3940 = vmatpush.msra.mxu3 %v10677_v34 }
 0x898   :  { %3881 = vmatpush.msrb.mxu0 %v10678_v42  ;;  %3901 = vmatpush.msrb.mxu1 %v10679_v22  ;;  %v10728_v42 = vld [vmem:[#allocation27_spill] sm:$0xff] }
 0x899   :  { %3921 = vmatpush.msra.mxu2 %v10680_v33  ;;  %3941 = vmatpush.msra.mxu3 %v10681_v27  ;;  %v10729_v33 = vld [vmem:[#allocation33_spill] sm:$0xff] }
 0x89a   :  { %3882 = vmatpush.msrb.mxu0 %v10682_v39  ;;  %3902 = vmatpush.msrb.mxu1 %v10683_v50  ;;  %v10730_v39 = vld [vmem:[#allocation28_spill] sm:$0xff] }
 0x89b   :  { %3922 = vmatpush.msra.mxu2 %v10684_v56  ;;  %3942 = vmatpush.msra.mxu3 %v10685_v59  ;;  %v10731_v56 = vld [vmem:[#allocation34_spill] sm:$0xff] }
 0x89c   :  { %3883 = vmatpush.msrb.mxu0 %v10686_v1  ;;  %3903 = vmatpush.msrb.mxu1 %v10687_v57 }
 0x89d   :  { %3923 = vmatpush.msra.mxu2 %v10688_v30  ;;  %3943 = vmatpush.msra.mxu3 %v10689_v3 }
 0x89e   :  { %3884 = vmatpush.msrb.mxu0 %v10720_v9  ;;  %3904 = vmatpush.msrb.mxu1 %v10721_v58  ;;  %v10733_v9 = vld [vmem:[#allocation36_spill] sm:$0xff] }
 0x89f   :  { %3924 = vmatpush.msra.mxu2 %v10722_v13  ;;  %3944 = vmatpush.msra.mxu3 %v10723_v28 }
 0x8a0   :  { %3885 = vmatpush.msrb.mxu0 %v10724_v48  ;;  %3905 = vmatpush.msrb.mxu1 %v10725_v20 }
 0x8a1   :  { %3925 = vmatpush.msra.mxu2 %v10726_v21  ;;  %3945 = vmatpush.msra.mxu3 %v10727_v11 }
 0x8fd   :  { %v3395_v24 = vpop.f32.mrf.mxu0  ;;  %v3415_v14 = vpop.f32.mrf.mxu1 }
 0x8fe   :  { %v3462_v29 = vrot.slane %v3395_v24, 4  ;;  %v3466_v19 = vrot.slane %v3395_v24, 5  ;;  %v3463_v41 = vrot.slane %v3415_v14, 4  ;;  %v3467_v34 = vrot.slane %v3415_v14, 5 }
 0x900   :  { %v3478_v22 = vadd.f32 %v3462_v29, %v10728_v42  ;;  %v3482_v27 = vadd.f32 %v3466_v19, %v10729_v33  ;;  %v3479_v50 = vadd.f32 %v3463_v41, %v10730_v39  ;;  %v3483_v59 = vadd.f32 %v3467_v34, %v10731_v56  ;;  %v10734_v34 = vld [vmem:[#allocation31_spill] sm:$0xff] }
 0x902   :  { %v4508_v1 = vmul.f32 -1.442695, %v3478_v22  ;;  %v4509_v57 = vmul.f32 -1.442695, %v3482_v27  ;;  %v4510_v30 = vmul.f32 -1.442695, %v3479_v50 }
 0x903   :  { %v4511_v3 = vmul.f32 -1.442695, %v3483_v59  ;;  %v10735_v50 = vld [vmem:[#allocation37_spill] sm:$0xff] }
 0x904   :  { %4919 = vpow2.f32 %v4508_v1  ;;  %v3455_v25 = vpop.f32.mrf.mxu3  ;;  %v3435_v36 = vpop.f32.mrf.mxu2 }
 0x905   :  { %4921 = vpow2.f32 %v4509_v57  ;;  %v3465_v37 = vrot.slane %v3455_v25, 4  ;;  %v3469_v10 = vrot.slane %v3455_v25, 5  ;;  %v3464_v13 = vrot.slane %v3435_v36, 4 }
 0x906   :  { %4923 = vpow2.f32 %v4510_v30  ;;  %v3468_v20 = vrot.slane %v3435_v36, 5 }
 0x907   :  { %4925 = vpow2.f32 %v4511_v3  ;;  %v3481_v44 = vadd.f32 %v3465_v37, %v10732_v5  ;;  %v3485_v58 = vadd.f32 %v3469_v10, %v10733_v9  ;;  %v3480_v22 = vadd.f32 %v3464_v13, %v10734_v34 }
 0x908   :  { %v3484_v59 = vadd.f32 %v3468_v20, %v10735_v50  ;;  %v10744_v20 = vrot.slane %v9146_v8, 7 }
 0x909   :  { %v4512_v28 = vmul.f32 -1.442695, %v3481_v44  ;;  %v4513_v21 = vmul.f32 -1.442695, %v3485_v58 }
 0x90a   :  { %v4920_v48 = vpop.eup %4919 }
 0x90b   :  { %v4922_v11 = vpop.eup %4921  ;;  %v9379_v24 = vadd.f32 1.0, %v4920_v48  ;;  %4927 = vpow2.f32 %v4512_v28 }
 0x90c   :  { %v4924_v14 = vpop.eup %4923  ;;  %v9381_v29 = vadd.f32 1.0, %v4922_v11  ;;  %4929 = vpow2.f32 %v4513_v21 }
 0x90d   :  { %v4926_v19 = vpop.eup %4925  ;;  %4931 = vrcp.f32 %v9379_v24  ;;  %v9384_v41 = vadd.f32 1.0, %v4924_v14  ;;  %v3503_v1 = vand.u32 2147483647, %v9379_v24  ;;  %v3505_v3 = vand.u32 2147483648, %v9379_v24 }
 0x90e   :  { %4933 = vrcp.f32 %v9381_v29  ;;  %v9388_v27 = vadd.f32 1.0, %v4926_v19  ;;  %vm3499_vm10 = vweird.f32 %v9379_v24  ;;  %vm3514_vm11 = vweird.f32 %v9381_v29 }
 0x90f   :  { %4935 = vrcp.f32 %v9384_v41  ;;  %v3543_v36 = vand.u32 2147483648, %v9384_v41  ;;  %vm3537_vm12 = vweird.f32 %v9384_v41  ;;  %vm9407_vm13 = vcmp.eq.f32.partialorder %v3503_v1, 8.507059e+37 }
 0x910   :  { %4937 = vrcp.f32 %v9388_v27  ;;  %v3558_v58 = vand.u32 2147483648, %v9388_v27  ;;  %v3518_v21 = vand.u32 2147483647, %v9381_v29  ;;  %vm3552_vm15 = vweird.f32 %v9388_v27 }
 0x911   :  { %v4928_v57 = vpop.eup %4927  ;;  %4939 = vtanh.f32 %v3480_v22  ;;  %v3506_v19 = vor.u32 1.1754944e-38, %v3505_v3  ;;  %v3520_v22 = vand.u32 2147483648, %v9381_v29  ;;  %v3541_v37 = vand.u32 2147483647, %v9384_v41 }
 0x912   :  { %v4930_v25 = vpop.eup %4929  ;;  %4941 = vtanh.f32 %v3484_v59  ;;  %v9398_v10 = vadd.f32 1.0, %v4928_v57  ;;  %v3559_v9 = vor.u32 1.1754944e-38, %v3558_v58  ;;  %v3556_v5 = vand.u32 2147483647, %v9388_v27 }
 0x913   :  { %v4932_v44 = vpop.eup %4931  ;;  %v9403_v13 = vadd.f32 1.0, %v4930_v25  ;;  %v3544_v25 = vor.u32 1.1754944e-38, %v3543_v36  ;;  %vm9421_vm0 = vcmp.eq.f32.partialorder %v3518_v21, 8.507059e+37  ;;  %v3521_v36 = vor.u32 1.1754944e-38, %v3520_v22 }
 0x914   :  { %v4934_v28 = vpop.eup %4933  ;;  %v3495_v48 = vmul.f32 %v4932_v44, %v9379_v24  ;;  %4943 = vrcp.f32 %v9398_v10  ;;  %vm3500_vm14 = vweird.f32 %v4932_v44  ;;  %vm9425_vm3 = vcmp.eq.f32.partialorder %v3541_v37, 8.507059e+37 }
 0x915   :  { %v4936_v11 = vpop.eup %4935  ;;  %v3510_v14 = vmul.f32 %v4934_v28, %v9381_v29  ;;  %4945 = vrcp.f32 %v9403_v13  ;;  %vm3515_vm1 = vweird.f32 %v4934_v28  ;;  %vm3501_vm5 = vmor %vm3499_vm10, %vm3500_vm14  ;;  %vm9434_vm7 = vcmp.eq.f32.partialorder %v3556_v5, 8.507059e+37 }
 0x916   :  { %v4938_v59 = vpop.eup %4937  ;;  %v3496_v57 = vsub.f32 1.0, %v3495_v48  ;;  %v3533_v1 = vmul.f32 %v4936_v11, %v9384_v41  ;;  %vm3538_vm2 = vweird.f32 %v4936_v11  ;;  %vm3516_vm6 = vmor %vm3514_vm11, %vm3515_vm1  ;;  %v3581_v8 = vand.u32 2147483647, %v9398_v10 }
 0x917   :  { %v4940_v30 = vpop.eup %4939  ;;  %v3511_v50 = vsub.f32 1.0, %v3510_v14  ;;  %v3548_v34 = vmul.f32 %v4938_v59, %v9388_v27  ;;  %vm3553_vm4 = vweird.f32 %v4938_v59  ;;  %vm3539_vm8 = vmor %vm3537_vm12, %vm3538_vm2  ;;  %vm3592_vm14 = vweird.f32 %v9403_v13 }
 0x918   :  { %v4942_v56 = vpop.eup %4941  ;;  %v3534_v3 = vsub.f32 1.0, %v3533_v1  ;;  %v3497_v39 = vmul.f32 %v4932_v44, %v3496_v57  ;;  %vm3554_vm10 = vmor %vm3552_vm15, %vm3553_vm4  ;;  %vm3582_vm1 = vcmp.eq.f32.partialorder %v3581_v8, 8.507059e+37  ;;  %v10751_v8 = vld [vmem:[#allocation33_spill] sm:$0xff] }
 0x919   :  { %v3549_v48 = vsub.f32 1.0, %v3548_v34  ;;  %v3512_v42 = vmul.f32 %v4934_v28, %v3511_v50 }
 0x91a   :  { %v4944_v46 = vpop.eup %4943  ;;  %v3535_v38 = vmul.f32 %v4936_v11, %v3534_v3  ;;  %v3498_v14 = vadd.f32 %v4932_v44, %v3497_v39 }
 0x91b   :  { %v4946_v55 = vpop.eup %4945  ;;  %v3550_v1 = vmul.f32 %v4938_v59, %v3549_v48  ;;  %v3513_v21 = vadd.f32 %v4934_v28, %v3512_v42  ;;  %v3573_v34 = vmul.f32 %v4944_v46, %v9398_v10  ;;  %vm3578_vm11 = vweird.f32 %v4944_v46 }
 0x91c   :  { %v3502_v50 = vsel %vm3501_vm5, %v4932_v44, %v3498_v14  ;;  %v3536_v22 = vadd.f32 %v4936_v11, %v3535_v38  ;;  %v3588_v37 = vmul.f32 %v4946_v55, %v9403_v13  ;;  %vm3593_vm12 = vweird.f32 %v4946_v55 }
 0x91d   :  { %v3507_v24 = vsel %vm9407_vm13, %v3506_v19, %v3502_v50  ;;  %v3517_v42 = vsel %vm3516_vm6, %v4934_v28, %v3513_v21  ;;  %v3551_v57 = vadd.f32 %v4938_v59, %v3550_v1  ;;  %v3574_v3 = vsub.f32 1.0, %v3573_v34 }
 0x91e   :  { %v3522_v38 = vsel %vm9421_vm0, %v3521_v36, %v3517_v42  ;;  %v3540_v5 = vsel %vm3539_vm8, %v4936_v11, %v3536_v22  ;;  %v3610_v29 = vmul.f32 %v4940_v30, %v3507_v24  ;;  %v3589_v44 = vsub.f32 1.0, %v3588_v37  ;;  %vm3594_vm0 = vmor %vm3592_vm14, %vm3593_vm12 }
 0x91f   :  { %v3545_v48 = vsel %vm9425_vm3, %v3544_v25, %v3540_v5  ;;  %v3555_v41 = vsel %vm3554_vm10, %v4938_v59, %v3551_v57  ;;  %v3611_v14 = vmul.f32 %v4942_v56, %v3522_v38  ;;  %v3575_v26 = vmul.f32 %v4944_v46, %v3574_v3  ;;  %v5294_v3 = vld [vmem:[%s9940_s5 + $0x58] sm:$0xff]  ;;  %v5295_v38 = vld [vmem:[%s9940_s5 + $0x20] sm:$0xff]  ;;  %v5296_v5 = vld [vmem:[%s9940_s5 + $0x28] sm:$0xff] }
 0x920   :  { %v3560_v28 = vsel %vm9434_vm7, %v3559_v9, %v3555_v41  ;;  %v3608_v19 = vmul.f32 %v10744_v20, %v3545_v48  ;;  %v3590_v27 = vmul.f32 %v4946_v55, %v3589_v44  ;;  %v10745_v1 = vrot.slane %v9148_v12, 7  ;;  %v5298_v44 = vld [vmem:[%s9940_s5 + $0x38] sm:$0xff]  ;;  %v5299_v48 = vld [vmem:[%s9940_s5] sm:$0xff]  ;;  %v5300_v41 = vld [vmem:[%s9940_s5 + $0x8] sm:$0xff] }
 0x921   :  { %v3576_v11 = vadd.f32 %v4944_v46, %v3575_v26  ;;  %v3583_v56 = vand.u32 2147483648, %v9398_v10  ;;  %vm3577_vm13 = vweird.f32 %v9398_v10  ;;  %v3598_v12 = vand.u32 2147483648, %v9403_v13 }
 0x922   :  { %v3609_v33 = vmul.f32 %v10745_v1, %v3560_v28  ;;  %v9455_v36 = vadd.f32 %v3610_v29, %v3608_v19  ;;  %v3591_v59 = vadd.f32 %v4946_v55, %v3590_v27  ;;  %vm3579_vm15 = vmor %vm3577_vm13, %vm3578_vm11  ;;  %v3596_v26 = vand.u32 2147483647, %v9403_v13  ;;  %v5293_v13 = vld [vmem:[%s9940_s5 + $0x50] sm:$0xff]  ;;  %v5302_v28 = vld [vmem:[%s9940_s5 + $0x18] sm:$0xff] }
 0x923   :  { %v3580_v9 = vsel %vm3579_vm15, %v4944_v46, %v3576_v11  ;;  %v3584_v25 = vor.u32 1.1754944e-38, %v3583_v56  ;;  %v3599_v21 = vor.u32 1.1754944e-38, %v3598_v12  ;;  %v5292_v46 = vld [vmem:[%s9940_s5 + $0x48] sm:$0xff]  ;;  %v5297_v29 = vld [vmem:[%s9940_s5 + $0x30] sm:$0xff] }
 0x924   :  { %v9457_v30 = vadd.f32 %v3611_v14, %v3609_v33  ;;  %4947 = vtanh.f32 %v9455_v36  ;;  %v3595_v58 = vsel %vm3594_vm0, %v4946_v55, %v3591_v59  ;;  %vm3597_vm2 = vcmp.eq.f32.partialorder %v3596_v26, 8.507059e+37  ;;  %v5291_v55 = vld [vmem:[%s9940_s5 + $0x40] sm:$0xff]  ;;  %v5301_v14 = vld [vmem:[%s9940_s5 + $0x10] sm:$0xff] }
 0x925   :  { %v3585_v50 = vsel %vm3582_vm1, %v3584_v25, %v3580_v9  ;;  %v3600_v39 = vsel %vm3597_vm2, %v3599_v21, %v3595_v58  ;;  %v10750_v56 = vld [vmem:[#allocation27_spill] sm:$0xff]  ;;  %v10752_v26 = vld [vmem:[#allocation28_spill] sm:$0xff]  ;;  %v10753_v25 = vld [vmem:[#allocation34_spill] sm:$0xff] }
 0x926   :  { %4949 = vtanh.f32 %v9457_v30 }
 0x92a   :  { %v4948_v34 = vpop.eup %4947 }
 0x92b   :  { %v3616_v37 = vmul.f32 %v4948_v34, %v3585_v50 }
 0x92c   :  { %v4950_v22 = vpop.eup %4949 }
 0x92d   :  { %v3617_v10 = vmul.f32 %v4950_v22, %v3600_v39  ;;  %v3620_v24 = vrot.slane %v3616_v37, 4 }
 0x92f   :  { %v3621_v42 = vrot.slane %v3617_v10, 3 }
 0x931   :  { %v3622_v57 = vsel %vm445_vm9, %v3621_v42, %v3620_v24  ;;  %v10754_v42 = vld [vmem:[#allocation32_spill] sm:$0xff] }
 0x932   :  { %3640 = vmatmul.f32.vlgmr.msra.gmra.mxu0 %v3622_v57  ;;  %3660 = vmatmul.f32.vlgmr.msra.gmra.mxu1 %v3622_v57 }
 0x933   :  { %3680 = vmatmul.f32.vlgmr.msrb.gmra.mxu2 %v3622_v57  ;;  %3700 = vmatmul.f32.vlgmr.msrb.gmra.mxu3 %v3622_v57 }
 0x934   :  { %4116 = vmatpush.msra.mxu0 %v9162_v45  ;;  %4136 = vmatpush.msra.mxu1 %v9168_v61  ;;  %v10746_v45 = vld [vmem:[#allocation23_spill] sm:$0xff]  ;;  %v10747_v61 = vld [vmem:[#allocation24_spill] sm:$0xff] }
 0x935   :  { %4156 = vmatpush.msrb.mxu2 %v9174_v40  ;;  %4176 = vmatpush.msrb.mxu3 %v9180_v63  ;;  %v10748_v40 = vld [vmem:[#allocation29_spill] sm:$0xff]  ;;  %v10749_v63 = vld [vmem:[#allocation35_spill] sm:$0xff] }
 0x936   :  { %4117 = vmatpush.msra.mxu0 %v9186_v16  ;;  %4137 = vmatpush.msra.mxu1 %v9192_v18  ;;  %v5269_v16 = vld [vmem:[%s9940_s5 + $0x110] sm:$0xff]  ;;  %v5270_v18 = vld [vmem:[%s9940_s5 + $0x118] sm:$0xff] }
 0x937   :  { %4157 = vmatpush.msrb.mxu2 %v9198_v52  ;;  %4177 = vmatpush.msrb.mxu3 %v9204_v7  ;;  %v5271_v52 = vld [vmem:[%s9940_s5 + $0xe0] sm:$0xff]  ;;  %v5272_v7 = vld [vmem:[%s9940_s5 + $0xe8] sm:$0xff] }
 0x938   :  { %4118 = vmatpush.msra.mxu0 %v9210_v15  ;;  %4138 = vmatpush.msra.mxu1 %v9216_v53  ;;  %v5273_v15 = vld [vmem:[%s9940_s5 + $0xf0] sm:$0xff]  ;;  %v5274_v53 = vld [vmem:[%s9940_s5 + $0xf8] sm:$0xff] }
 0x939   :  { %4158 = vmatpush.msrb.mxu2 %v9222_v49  ;;  %4178 = vmatpush.msrb.mxu3 %v9228_v51  ;;  %v5275_v49 = vld [vmem:[%s9940_s5 + $0xc0] sm:$0xff]  ;;  %v5276_v51 = vld [vmem:[%s9940_s5 + $0xc8] sm:$0xff] }
 0x93a   :  { %4119 = vmatpush.msra.mxu0 %v9234_v32  ;;  %4139 = vmatpush.msra.mxu1 %v9240_v6  ;;  %v5277_v32 = vld [vmem:[%s9940_s5 + $0xd0] sm:$0xff]  ;;  %v5278_v6 = vld [vmem:[%s9940_s5 + $0xd8] sm:$0xff] }
 0x93b   :  { %4159 = vmatpush.msrb.mxu2 %v9246_v47  ;;  %4179 = vmatpush.msrb.mxu3 %v9252_v43  ;;  %v5279_v47 = vld [vmem:[%s9940_s5 + $0xa0] sm:$0xff]  ;;  %v5280_v43 = vld [vmem:[%s9940_s5 + $0xa8] sm:$0xff] }
 0x93c   :  { %4120 = vmatpush.msra.mxu0 %v9258_v23  ;;  %4140 = vmatpush.msra.mxu1 %v9264_v17  ;;  %v5281_v23 = vld [vmem:[%s9940_s5 + $0xb0] sm:$0xff]  ;;  %v5282_v17 = vld [vmem:[%s9940_s5 + $0xb8] sm:$0xff] }
 0x93d   :  { %4160 = vmatpush.msrb.mxu2 %v9270_v54  ;;  %4180 = vmatpush.msrb.mxu3 %v9276_v35  ;;  %v5283_v54 = vld [vmem:[%s9940_s5 + $0x80] sm:$0xff]  ;;  %v5284_v35 = vld [vmem:[%s9940_s5 + $0x88] sm:$0xff] }
 0x93e   :  { %4121 = vmatpush.msra.mxu0 %v9282_v62  ;;  %4141 = vmatpush.msra.mxu1 %v9288_v4  ;;  %v5285_v62 = vld [vmem:[%s9940_s5 + $0x90] sm:$0xff]  ;;  %v5286_v4 = vld [vmem:[%s9940_s5 + $0x98] sm:$0xff] }
 0x93f   :  { %4161 = vmatpush.msrb.mxu2 %v9294_v0  ;;  %4181 = vmatpush.msrb.mxu3 %v9300_v60  ;;  %v5287_v0 = vld [vmem:[%s9940_s5 + $0x60] sm:$0xff]  ;;  %v5288_v60 = vld [vmem:[%s9940_s5 + $0x68] sm:$0xff] }
 0x940   :  { %4122 = vmatpush.msra.mxu0 %v9306_v31  ;;  %4142 = vmatpush.msra.mxu1 %v9312_v2  ;;  %v5289_v31 = vld [vmem:[%s9940_s5 + $0x70] sm:$0xff]  ;;  %v5290_v2 = vld [vmem:[%s9940_s5 + $0x78] sm:$0xff] }
 0x941   :  { %4162 = vmatpush.msrb.mxu2 %v10746_v45  ;;  %4182 = vmatpush.msrb.mxu3 %v10747_v61  ;;  %v10755_v45 = vld [vmem:[#allocation36_spill] sm:$0xff] }
 0x942   :  { %4123 = vmatpush.msra.mxu0 %v10748_v40  ;;  %4143 = vmatpush.msra.mxu1 %v10749_v63 }
 0x943   :  { %4163 = vmatpush.msrb.mxu2 %v5269_v16  ;;  %4183 = vmatpush.msrb.mxu3 %v5270_v18 }
 0x944   :  { %4124 = vmatpush.msra.mxu0 %v5271_v52  ;;  %4144 = vmatpush.msra.mxu1 %v5272_v7 }
 0x945   :  { %4164 = vmatpush.msrb.mxu2 %v5273_v15  ;;  %4184 = vmatpush.msrb.mxu3 %v5274_v53 }
 0x946   :  { %4125 = vmatpush.msra.mxu0 %v5275_v49  ;;  %4145 = vmatpush.msra.mxu1 %v5276_v51 }
 0x947   :  { %4165 = vmatpush.msrb.mxu2 %v5277_v32  ;;  %4185 = vmatpush.msrb.mxu3 %v5278_v6  ;;  %v10756_v6 = vld [vmem:[#allocation31_spill] sm:$0xff] }
 0x948   :  { %4126 = vmatpush.msra.mxu0 %v5279_v47  ;;  %4146 = vmatpush.msra.mxu1 %v5280_v43 }
 0x949   :  { %4166 = vmatpush.msrb.mxu2 %v5281_v23  ;;  %4186 = vmatpush.msrb.mxu3 %v5282_v17  ;;  %v10757_v23 = vld [vmem:[#allocation37_spill] sm:$0xff] }
 0x94a   :  { %4127 = vmatpush.msra.mxu0 %v5283_v54  ;;  %4147 = vmatpush.msra.mxu1 %v5284_v35 }
 0x94b   :  { %4167 = vmatpush.msrb.mxu2 %v5285_v62  ;;  %4187 = vmatpush.msrb.mxu3 %v5286_v4  ;;  %v3850_v62 = vrot.slane %v9455_v36, 7 }
 0x94c   :  { %4128 = vmatpush.msra.mxu0 %v5287_v0  ;;  %4148 = vmatpush.msra.mxu1 %v5288_v60  ;;  %v3851_v60 = vrot.slane %v9457_v30, 7 }
 0x94d   :  { %4168 = vmatpush.msrb.mxu2 %v5289_v31  ;;  %4188 = vmatpush.msrb.mxu3 %v5290_v2 }
 0x94e   :  { %4129 = vmatpush.msra.mxu0 %v5291_v55  ;;  %4149 = vmatpush.msra.mxu1 %v5292_v46 }
 0x94f   :  { %4169 = vmatpush.msrb.mxu2 %v5293_v13  ;;  %4189 = vmatpush.msrb.mxu3 %v5294_v3 }
 0x950   :  { %4130 = vmatpush.msra.mxu0 %v5295_v38  ;;  %4150 = vmatpush.msra.mxu1 %v5296_v5 }
 0x951   :  { %4170 = vmatpush.msrb.mxu2 %v5297_v29  ;;  %4190 = vmatpush.msrb.mxu3 %v5298_v44 }
 0x952   :  { %4131 = vmatpush.msra.mxu0 %v5299_v48  ;;  %4151 = vmatpush.msra.mxu1 %v5300_v41 }
 0x953   :  { %4171 = vmatpush.msrb.mxu2 %v5301_v14  ;;  %4191 = vmatpush.msrb.mxu3 %v5302_v28 }
 0x9af   :  { %v3641_v20 = vpop.f32.mrf.mxu0  ;;  %v3661_v19 = vpop.f32.mrf.mxu1 }
 0x9b0   :  { %v3708_v27 = vrot.slane %v3641_v20, 3  ;;  %v3712_v1 = vrot.slane %v3641_v20, 4  ;;  %v3709_v33 = vrot.slane %v3661_v19, 3  ;;  %v3713_v11 = vrot.slane %v3661_v19, 4 }
 0x9b2   :  { %v3724_v59 = vadd.f32 %v3708_v27, %v10750_v56  ;;  %v3728_v12 = vadd.f32 %v3712_v1, %v10751_v8  ;;  %v3725_v9 = vadd.f32 %v3709_v33, %v10752_v26  ;;  %v3729_v58 = vadd.f32 %v3713_v11, %v10753_v25 }
 0x9b4   :  { %v4514_v21 = vmul.f32 -1.442695, %v3724_v59  ;;  %v4515_v34 = vmul.f32 -1.442695, %v3728_v12  ;;  %v4516_v50 = vmul.f32 -1.442695, %v3725_v9 }
 0x9b5   :  { %v4517_v22 = vmul.f32 -1.442695, %v3729_v58 }
 0x9b6   :  { %4951 = vpow2.f32 %v4514_v21  ;;  %v3701_v39 = vpop.f32.mrf.mxu3  ;;  %v3681_v10 = vpop.f32.mrf.mxu2 }
 0x9b7   :  { %4953 = vpow2.f32 %v4515_v34  ;;  %v3711_v37 = vrot.slane %v3701_v39, 3  ;;  %v3715_v24 = vrot.slane %v3701_v39, 4  ;;  %v3710_v40 = vrot.slane %v3681_v10, 3 }
 0x9b8   :  { %4955 = vpow2.f32 %v4516_v50  ;;  %v3714_v18 = vrot.slane %v3681_v10, 4 }
 0x9b9   :  { %4957 = vpow2.f32 %v4517_v22  ;;  %v3727_v57 = vadd.f32 %v3711_v37, %v10754_v42  ;;  %v3731_v61 = vadd.f32 %v3715_v24, %v10755_v45  ;;  %v3726_v47 = vadd.f32 %v3710_v40, %v10756_v6 }
 0x9ba   :  { %v3730_v17 = vadd.f32 %v3714_v18, %v10757_v23 }
 0x9bb   :  { %v4518_v63 = vmul.f32 -1.442695, %v3727_v57  ;;  %v4519_v52 = vmul.f32 -1.442695, %v3731_v61 }
 0x9bc   :  { %v4952_v16 = vpop.eup %4951 }
 0x9bd   :  { %v4954_v7 = vpop.eup %4953  ;;  %v9606_v15 = vadd.f32 1.0, %v4952_v16  ;;  %4959 = vpow2.f32 %v4518_v63 }
 0x9be   :  { %v4956_v53 = vpop.eup %4955  ;;  %v9608_v49 = vadd.f32 1.0, %v4954_v7  ;;  %4961 = vpow2.f32 %v4519_v52 }
 0x9bf   :  { %v4958_v51 = vpop.eup %4957  ;;  %4963 = vrcp.f32 %v9606_v15  ;;  %v9611_v32 = vadd.f32 1.0, %v4956_v53  ;;  %v3749_v54 = vand.u32 2147483647, %v9606_v15  ;;  %v3751_v4 = vand.u32 2147483648, %v9606_v15 }
 0x9c0   :  { %4965 = vrcp.f32 %v9608_v49  ;;  %v9615_v43 = vadd.f32 1.0, %v4958_v51  ;;  %vm3745_vm3 = vweird.f32 %v9606_v15  ;;  %vm3760_vm4 = vweird.f32 %v9608_v49 }
 0x9c1   :  { %4967 = vrcp.f32 %v9611_v32  ;;  %v3789_v31 = vand.u32 2147483648, %v9611_v32  ;;  %vm3783_vm5 = vweird.f32 %v9611_v32  ;;  %vm9634_vm6 = vcmp.eq.f32.partialorder %v3749_v54, 8.507059e+37 }
 0x9c2   :  { %4969 = vrcp.f32 %v9615_v43  ;;  %v3804_v46 = vand.u32 2147483648, %v9615_v43  ;;  %v3764_v29 = vand.u32 2147483647, %v9608_v49  ;;  %vm3798_vm7 = vweird.f32 %v9615_v43 }
 0x9c3   :  { %v4960_v35 = vpop.eup %4959  ;;  %4971 = vtanh.f32 %v3726_v47  ;;  %v3752_v41 = vor.u32 1.1754944e-38, %v3751_v4  ;;  %v3766_v14 = vand.u32 2147483648, %v9608_v49  ;;  %v3790_v27 = vor.u32 1.1754944e-38, %v3789_v31 }
 0x9c4   :  { %v4962_v0 = vpop.eup %4961  ;;  %4973 = vtanh.f32 %v3730_v17  ;;  %v9625_v2 = vadd.f32 1.0, %v4960_v35  ;;  %v3787_v1 = vand.u32 2147483647, %v9611_v32  ;;  %v3805_v12 = vor.u32 1.1754944e-38, %v3804_v46 }
 0x9c5   :  { %v4964_v55 = vpop.eup %4963  ;;  %v9630_v13 = vadd.f32 1.0, %v4962_v0  ;;  %v3802_v9 = vand.u32 2147483647, %v9615_v43  ;;  %vm9648_vm10 = vcmp.eq.f32.partialorder %v3764_v29, 8.507059e+37  ;;  %v3767_v37 = vor.u32 1.1754944e-38, %v3766_v14 }
 0x9c6   :  { %v4966_v3 = vpop.eup %4965  ;;  %v3741_v38 = vmul.f32 %v4964_v55, %v9606_v15  ;;  %4975 = vrcp.f32 %v9625_v2  ;;  %vm3746_vm8 = vweird.f32 %v4964_v55  ;;  %vm9652_vm13 = vcmp.eq.f32.partialorder %v3787_v1, 8.507059e+37 }
 0x9c7   :  { %v4968_v44 = vpop.eup %4967  ;;  %v3756_v48 = vmul.f32 %v4966_v3, %v9608_v49  ;;  %4977 = vrcp.f32 %v9630_v13  ;;  %vm3761_vm11 = vweird.f32 %v4966_v3  ;;  %vm3747_vm14 = vmor %vm3745_vm3, %vm3746_vm8  ;;  %vm9661_vm1 = vcmp.eq.f32.partialorder %v3802_v9, 8.507059e+37 }
 0x9c8   :  { %v4970_v28 = vpop.eup %4969  ;;  %v3742_v20 = vsub.f32 1.0, %v3741_v38  ;;  %v3779_v19 = vmul.f32 %v4968_v44, %v9611_v32  ;;  %vm3784_vm12 = vweird.f32 %v4968_v44  ;;  %vm3762_vm0 = vmor %vm3760_vm4, %vm3761_vm11  ;;  %v3827_v36 = vand.u32 2147483647, %v9625_v2 }
 0x9c9   :  { %v4972_v33 = vpop.eup %4971  ;;  %v3757_v11 = vsub.f32 1.0, %v3756_v48  ;;  %v3794_v59 = vmul.f32 %v4970_v28, %v9615_v43  ;;  %vm3799_vm15 = vweird.f32 %v4970_v28  ;;  %vm3785_vm2 = vmor %vm3783_vm5, %vm3784_vm12  ;;  %v3844_v30 = vand.u32 2147483648, %v9630_v13 }
 0x9ca   :  { %v4974_v58 = vpop.eup %4973  ;;  %v3780_v21 = vsub.f32 1.0, %v3779_v19  ;;  %v3743_v34 = vmul.f32 %v4964_v55, %v3742_v20  ;;  %vm3800_vm3 = vmor %vm3798_vm7, %vm3799_vm15  ;;  %vm3838_vm8 = vweird.f32 %v9630_v13  ;;  %vm3828_vm11 = vcmp.eq.f32.partialorder %v3827_v36, 8.507059e+37 }
 0x9cb   :  { %v3795_v22 = vsub.f32 1.0, %v3794_v59  ;;  %v3758_v39 = vmul.f32 %v4966_v3, %v3757_v11  ;;  %v3845_v19 = vor.u32 1.1754944e-38, %v3844_v30 }
 0x9cc   :  { %v4976_v10 = vpop.eup %4975  ;;  %v3781_v24 = vmul.f32 %v4968_v44, %v3780_v21  ;;  %v3744_v57 = vadd.f32 %v4964_v55, %v3743_v34 }
 0x9cd   :  { %v4978_v40 = vpop.eup %4977  ;;  %v3796_v63 = vmul.f32 %v4970_v28, %v3795_v22  ;;  %v3759_v16 = vadd.f32 %v4966_v3, %v3758_v39  ;;  %v3819_v18 = vmul.f32 %v4976_v10, %v9625_v2  ;;  %vm3824_vm4 = vweird.f32 %v4976_v10 }
 0x9ce   :  { %v3748_v52 = vsel %vm3747_vm14, %v4964_v55, %v3744_v57  ;;  %v3782_v7 = vadd.f32 %v4968_v44, %v3781_v24  ;;  %v3834_v51 = vmul.f32 %v4978_v40, %v9630_v13  ;;  %vm3839_vm5 = vweird.f32 %v4978_v40 }
 0x9cf   :  { %v3753_v15 = vsel %vm9634_vm6, %v3752_v41, %v3748_v52  ;;  %v3763_v47 = vsel %vm3762_vm0, %v4966_v3, %v3759_v16  ;;  %v3797_v17 = vadd.f32 %v4970_v28, %v3796_v63  ;;  %v3820_v54 = vsub.f32 1.0, %v3819_v18 }
 0x9d0   :  { %v3768_v49 = vsel %vm9648_vm10, %v3767_v37, %v3763_v47  ;;  %v3786_v35 = vsel %vm3785_vm2, %v4968_v44, %v3782_v7  ;;  %v3856_v4 = vmul.f32 %v4972_v33, %v3753_v15  ;;  %v3835_v0 = vsub.f32 1.0, %v3834_v51  ;;  %vm3840_vm10 = vmor %vm3838_vm8, %vm3839_vm5 }
 0x9d1   :  { %v3791_v31 = vsel %vm9652_vm13, %v3790_v27, %v3786_v35  ;;  %v3801_v32 = vsel %vm3800_vm3, %v4970_v28, %v3797_v17  ;;  %v3857_v55 = vmul.f32 %v4974_v58, %v3768_v49  ;;  %v3821_v46 = vmul.f32 %v4976_v10, %v3820_v54 }
 0x9d2   :  { %v3806_v3 = vsel %vm9661_vm1, %v3805_v12, %v3801_v32  ;;  %v3854_v38 = vmul.f32 %v3850_v62, %v3791_v31  ;;  %v3836_v43 = vmul.f32 %v4978_v40, %v3835_v0  ;;  %v3829_v41 = vand.u32 2147483648, %v9625_v2 }
 0x9d3   :  { %v3855_v5 = vmul.f32 %v3851_v60, %v3806_v3  ;;  %v3822_v48 = vadd.f32 %v4976_v10, %v3821_v46  ;;  %vm3823_vm6 = vweird.f32 %v9625_v2  ;;  %v3842_v62 = vand.u32 2147483647, %v9630_v13 }
 0x9d4   :  { %v9682_v29 = vadd.f32 %v3856_v4, %v3854_v38  ;;  %v3837_v14 = vadd.f32 %v4978_v40, %v3836_v43  ;;  %vm3825_vm7 = vmor %vm3823_vm6, %vm3824_vm4  ;;  %v3830_v28 = vor.u32 1.1754944e-38, %v3829_v41 }
 0x9d5   :  { %v9684_v44 = vadd.f32 %v3857_v55, %v3855_v5  ;;  %v3826_v60 = vsel %vm3825_vm7, %v4976_v10, %v3822_v48  ;;  %vm3843_vm12 = vcmp.eq.f32.partialorder %v3842_v62, 8.507059e+37 }
 0x9d6   :  { %4979 = vtanh.f32 %v9682_v29  ;;  %v3841_v20 = vsel %vm3840_vm10, %v4978_v40, %v3837_v14  ;;  %v3831_v1 = vsel %vm3828_vm11, %v3830_v28, %v3826_v60  ;;  %v4096_v41 = vrot.slane %v9682_v29, 7 }
 0x9d7   :  { %4981 = vtanh.f32 %v9684_v44  ;;  %v3846_v11 = vsel %vm3843_vm12, %v3845_v19, %v3841_v20  ;;  %v4097_v30 = vrot.slane %v9684_v44, 7 }
 0x9dc   :  { %v4980_v27 = vpop.eup %4979 }
 0x9dd   :  { %v4982_v33 = vpop.eup %4981  ;;  %v3862_v59 = vmul.f32 %v4980_v27, %v3831_v1 }
 0x9de   :  { %v3863_v2 = vmul.f32 %v4982_v33, %v3846_v11 }
 0x9df   :  { %v3866_v12 = vrot.slane %v3862_v59, 5 }
 0x9e0   :  { %v3867_v9 = vrot.slane %v3863_v2, 4 }
 0x9e2   :  { %v3868_v58 = vsel %vm445_vm9, %v3867_v9, %v3866_v12 }
 0x9e3   :  { %3886 = vmatmul.f32.vlgmr.msrb.gmra.mxu0 %v3868_v58  ;;  %3906 = vmatmul.f32.vlgmr.msrb.gmra.mxu1 %v3868_v58 }
 0x9e4   :  { %3926 = vmatmul.f32.vlgmr.msra.gmra.mxu2 %v3868_v58  ;;  %3946 = vmatmul.f32.vlgmr.msra.gmra.mxu3 %v3868_v58 }
 0xa60   :  { %v3887_v13 = vpop.f32.mrf.mxu0  ;;  %v3907_v21 = vpop.f32.mrf.mxu1 }
 0xa61   :  { %v3954_v34 = vrot.slane %v3887_v13, 2  ;;  %v3958_v50 = vrot.slane %v3887_v13, 3  ;;  %v3955_v22 = vrot.slane %v3907_v21, 2  ;;  %v3959_v39 = vrot.slane %v3907_v21, 3 }
 0xa63   :  { %v3970_v37 = vadd.f32 %v3954_v34, %v10750_v56  ;;  %v3974_v10 = vadd.f32 %v3958_v50, %v10751_v8  ;;  %v3971_v24 = vadd.f32 %v3955_v22, %v10752_v26  ;;  %v3975_v57 = vadd.f32 %v3959_v39, %v10753_v25 }
 0xa65   :  { %v4520_v61 = vmul.f32 -1.442695, %v3970_v37  ;;  %v4521_v40 = vmul.f32 -1.442695, %v3974_v10  ;;  %v4522_v63 = vmul.f32 -1.442695, %v3971_v24 }
 0xa66   :  { %v4523_v16 = vmul.f32 -1.442695, %v3975_v57 }
 0xa67   :  { %4983 = vpow2.f32 %v4520_v61  ;;  %v3947_v18 = vpop.f32.mrf.mxu3  ;;  %v3927_v7 = vpop.f32.mrf.mxu2 }
 0xa68   :  { %4985 = vpow2.f32 %v4521_v40  ;;  %v3957_v52 = vrot.slane %v3947_v18, 2  ;;  %v3961_v53 = vrot.slane %v3947_v18, 3  ;;  %v3956_v47 = vrot.slane %v3927_v7, 2 }
 0xa69   :  { %4987 = vpow2.f32 %v4522_v63  ;;  %v3960_v49 = vrot.slane %v3927_v7, 3 }
 0xa6a   :  { %4989 = vpow2.f32 %v4523_v16  ;;  %v3973_v51 = vadd.f32 %v3957_v52, %v10754_v42  ;;  %v3977_v15 = vadd.f32 %v3961_v53, %v10755_v45  ;;  %v3972_v3 = vadd.f32 %v3956_v47, %v10756_v6 }
 0xa6b   :  { %v3976_v43 = vadd.f32 %v3960_v49, %v10757_v23 }
 0xa6c   :  { %v4524_v17 = vmul.f32 -1.442695, %v3973_v51  ;;  %v4525_v35 = vmul.f32 -1.442695, %v3977_v15 }
 0xa6d   :  { %v4984_v54 = vpop.eup %4983 }
 0xa6e   :  { %v4986_v4 = vpop.eup %4985  ;;  %v9701_v0 = vadd.f32 1.0, %v4984_v54  ;;  %4991 = vpow2.f32 %v4524_v17 }
 0xa6f   :  { %v4988_v31 = vpop.eup %4987  ;;  %v9703_v32 = vadd.f32 1.0, %v4986_v4  ;;  %4993 = vpow2.f32 %v4525_v35 }
 0xa70   :  { %v4990_v55 = vpop.eup %4989  ;;  %4995 = vrcp.f32 %v9701_v0  ;;  %v9706_v46 = vadd.f32 1.0, %v4988_v31  ;;  %v3995_v5 = vand.u32 2147483647, %v9701_v0  ;;  %v3997_v14 = vand.u32 2147483648, %v9701_v0 }
 0xa71   :  { %4997 = vrcp.f32 %v9703_v32  ;;  %v9710_v38 = vadd.f32 1.0, %v4990_v55  ;;  %vm3991_vm13 = vweird.f32 %v9701_v0  ;;  %vm4006_vm15 = vweird.f32 %v9703_v32 }
 0xa72   :  { %4999 = vrcp.f32 %v9706_v46  ;;  %v4035_v62 = vand.u32 2147483648, %v9706_v46  ;;  %vm4029_vm14 = vweird.f32 %v9706_v46  ;;  %vm9729_vm0 = vcmp.eq.f32.partialorder %v3995_v5, 8.507059e+37 }
 0xa73   :  { %5001 = vrcp.f32 %v9710_v38  ;;  %v4050_v20 = vand.u32 2147483648, %v9710_v38  ;;  %v4010_v11 = vand.u32 2147483647, %v9703_v32  ;;  %vm4044_vm1 = vweird.f32 %v9710_v38 }
 0xa74   :  { %v4992_v48 = vpop.eup %4991  ;;  %5003 = vtanh.f32 %v3972_v3  ;;  %v3998_v12 = vor.u32 1.1754944e-38, %v3997_v14  ;;  %v4012_v9 = vand.u32 2147483648, %v9703_v32  ;;  %v4036_v34 = vor.u32 1.1754944e-38, %v4035_v62 }
 0xa75   :  { %v4994_v36 = vpop.eup %4993  ;;  %5005 = vtanh.f32 %v3976_v43  ;;  %v9720_v60 = vadd.f32 1.0, %v4992_v48  ;;  %v4033_v50 = vand.u32 2147483647, %v9706_v46  ;;  %v4051_v10 = vor.u32 1.1754944e-38, %v4050_v20 }
 0xa76   :  { %v4996_v28 = vpop.eup %4995  ;;  %v9725_v19 = vadd.f32 1.0, %v4994_v36  ;;  %v4048_v24 = vand.u32 2147483647, %v9710_v38  ;;  %vm9743_vm3 = vcmp.eq.f32.partialorder %v4010_v11, 8.507059e+37  ;;  %v4013_v52 = vor.u32 1.1754944e-38, %v4012_v9 }
 0xa77   :  { %v4998_v27 = vpop.eup %4997  ;;  %v3987_v1 = vmul.f32 %v4996_v28, %v9701_v0  ;;  %5007 = vrcp.f32 %v9720_v60  ;;  %vm3992_vm2 = vweird.f32 %v4996_v28  ;;  %vm9747_vm6 = vcmp.eq.f32.partialorder %v4033_v50, 8.507059e+37 }
 0xa78   :  { %v5000_v59 = vpop.eup %4999  ;;  %v4002_v2 = vmul.f32 %v4998_v27, %v9703_v32  ;;  %5009 = vrcp.f32 %v9725_v19  ;;  %vm4007_vm4 = vweird.f32 %v4998_v27  ;;  %vm3993_vm8 = vmor %vm3991_vm13, %vm3992_vm2  ;;  %vm9756_vm11 = vcmp.eq.f32.partialorder %v4048_v24, 8.507059e+37 }
 0xa79   :  { %v5002_v58 = vpop.eup %5001  ;;  %v3988_v13 = vsub.f32 1.0, %v3987_v1  ;;  %v4025_v21 = vmul.f32 %v5000_v59, %v9706_v46  ;;  %vm4030_vm5 = vweird.f32 %v5000_v59  ;;  %vm4008_vm10 = vmor %vm4006_vm15, %vm4007_vm4  ;;  %v4073_v29 = vand.u32 2147483647, %v9720_v60 }
 0xa7a   :  { %v5004_v22 = vpop.eup %5003  ;;  %v4003_v39 = vsub.f32 1.0, %v4002_v2  ;;  %v4040_v37 = vmul.f32 %v5002_v58, %v9710_v38  ;;  %vm4045_vm7 = vweird.f32 %v5002_v58  ;;  %vm4031_vm12 = vmor %vm4029_vm14, %vm4030_vm5  ;;  %v4090_v44 = vand.u32 2147483648, %v9725_v19 }
 0xa7b   :  { %v5006_v57 = vpop.eup %5005  ;;  %v4026_v61 = vsub.f32 1.0, %v4025_v21  ;;  %v3989_v40 = vmul.f32 %v4996_v28, %v3988_v13  ;;  %vm4046_vm13 = vmor %vm4044_vm1, %vm4045_vm7  ;;  %vm4084_vm2 = vweird.f32 %v9725_v19  ;;  %vm4074_vm4 = vcmp.eq.f32.partialorder %v4073_v29, 8.507059e+37 }
 0xa7c   :  { %v4041_v16 = vsub.f32 1.0, %v4040_v37  ;;  %v4004_v18 = vmul.f32 %v4998_v27, %v4003_v39  ;;  %v4091_v21 = vor.u32 1.1754944e-38, %v4090_v44 }
 0xa7d   :  { %v5008_v7 = vpop.eup %5007  ;;  %v4027_v53 = vmul.f32 %v5000_v59, %v4026_v61  ;;  %v3990_v51 = vadd.f32 %v4996_v28, %v3989_v40  ;;  %v4384_v61 = vld [vmem:[%s9942_s7 + $0x70] sm:$0xff]  ;;  %v4383_v40 = vld [vmem:[%s9942_s7 + $0x68] sm:$0xff] }
 0xa7e   :  { %v5010_v47 = vpop.eup %5009  ;;  %v4042_v17 = vmul.f32 %v5002_v58, %v4041_v16  ;;  %v4005_v54 = vadd.f32 %v4998_v27, %v4004_v18  ;;  %v4065_v49 = vmul.f32 %v5008_v7, %v9720_v60  ;;  %vm4070_vm15 = vweird.f32 %v5008_v7 }
 0xa7f   :  { %v3994_v35 = vsel %vm3993_vm8, %v4996_v28, %v3990_v51  ;;  %v4028_v4 = vadd.f32 %v5000_v59, %v4027_v53  ;;  %v4080_v55 = vmul.f32 %v5010_v47, %v9725_v19  ;;  %vm4085_vm14 = vweird.f32 %v5010_v47  ;;  %v4382_v51 = vld [vmem:[%s9942_s7 + $0x60] sm:$0xff] }
 0xa80   :  { %v3999_v0 = vsel %vm9729_vm0, %v3998_v12, %v3994_v35  ;;  %v4009_v3 = vsel %vm4008_vm10, %v4998_v27, %v4005_v54  ;;  %v4043_v43 = vadd.f32 %v5002_v58, %v4042_v17  ;;  %v4066_v5 = vsub.f32 1.0, %v4065_v49  ;;  %v4381_v49 = vld [vmem:[%s9942_s7 + $0x58] sm:$0xff] }
 0xa81   :  { %v4014_v32 = vsel %vm9743_vm3, %v4013_v52, %v4009_v3  ;;  %v4032_v48 = vsel %vm4031_vm12, %v5000_v59, %v4028_v4  ;;  %v4102_v14 = vmul.f32 %v5004_v22, %v3999_v0  ;;  %v4081_v36 = vsub.f32 1.0, %v4080_v55  ;;  %vm4086_vm3 = vmor %vm4084_vm2, %vm4085_vm14  ;;  %v4380_v0 = vld [vmem:[%s9942_s7 + $0x50] sm:$0xff] }
 0xa82   :  { %v4037_v62 = vsel %vm9747_vm6, %v4036_v34, %v4032_v48  ;;  %v4047_v46 = vsel %vm4046_vm13, %v5002_v58, %v4043_v43  ;;  %v4103_v28 = vmul.f32 %v5006_v57, %v4014_v32  ;;  %v4067_v20 = vmul.f32 %v5008_v7, %v4066_v5  ;;  %v4377_v32 = vld [vmem:[%s9942_s7 + $0x38] sm:$0xff] }
 0xa83   :  { %v4052_v27 = vsel %vm9756_vm11, %v4051_v10, %v4047_v46  ;;  %v4100_v1 = vmul.f32 %v4096_v41, %v4037_v62  ;;  %v4082_v38 = vmul.f32 %v5010_v47, %v4081_v36  ;;  %v4075_v12 = vand.u32 2147483648, %v9720_v60  ;;  %v4376_v62 = vld [vmem:[%s9942_s7 + $0x30] sm:$0xff] }
 0xa84   :  { %v4101_v33 = vmul.f32 %v4097_v30, %v4052_v27  ;;  %v4068_v2 = vadd.f32 %v5008_v7, %v4067_v20  ;;  %vm4069_vm0 = vweird.f32 %v9720_v60  ;;  %v4088_v41 = vand.u32 2147483647, %v9725_v19  ;;  %v4385_v19 = vld [vmem:[%s9942_s7 + $0x78] sm:$0xff] }
 0xa85   :  { %v9777_v11 = vadd.f32 %v4102_v14, %v4100_v1  ;;  %v4083_v9 = vadd.f32 %v5010_v47, %v4082_v38  ;;  %vm4071_vm1 = vmor %vm4069_vm0, %vm4070_vm15  ;;  %v4076_v58 = vor.u32 1.1754944e-38, %v4075_v12  ;;  %4390 = vmatpush.msrb.mxu0 %v4385_v19 }
 0xa86   :  { %v9779_v59 = vadd.f32 %v4103_v28, %v4101_v33  ;;  %v4072_v30 = vsel %vm4071_vm1, %v5008_v7, %v4068_v2  ;;  %vm4089_vm5 = vcmp.eq.f32.partialorder %v4088_v41, 8.507059e+37  ;;  %v4373_v41 = vld [vmem:[%s9942_s7 + $0x18] sm:$0xff] }
 0xa87   :  { %5011 = vtanh.f32 %v9777_v11  ;;  %v4087_v13 = vsel %vm4086_vm3, %v5010_v47, %v4083_v9  ;;  %v4077_v50 = vsel %vm4074_vm4, %v4076_v58, %v4072_v30  ;;  %4391 = vmatpush.msrb.mxu0 %v4384_v61  ;;  %v4374_v9 = vld [vmem:[%s9942_s7 + $0x20] sm:$0xff]  ;;  %v4342_v58 = vrot.slane %v9777_v11, 7 }
 0xa88   :  { %5013 = vtanh.f32 %v9779_v59  ;;  %v4092_v39 = vsel %vm4089_vm5, %v4091_v21, %v4087_v13 }
 0xa89   :  { %4392 = vmatpush.msrb.mxu0 %v4383_v40 }
 0xa8b   :  { %4393 = vmatpush.msrb.mxu0 %v4382_v51 }
 0xa8d   :  { %v5012_v34 = vpop.eup %5011  ;;  %4394 = vmatpush.msrb.mxu0 %v4381_v49 }
 0xa8e   :  { %v5014_v22 = vpop.eup %5013  ;;  %v4108_v37 = vmul.f32 %v5012_v34, %v4077_v50  ;;  %v4343_v34 = vrot.slane %v9779_v59, 7 }
 0xa8f   :  { %v4109_v60 = vmul.f32 %v5014_v22, %v4092_v39  ;;  %4395 = vmatpush.msrb.mxu0 %v4380_v0 }
 0xa90   :  { %v4112_v10 = vrot.slane %v4108_v37, 6 }
 0xa91   :  { %v4113_v24 = vrot.slane %v4109_v60, 5 }
 0xa93   :  { %v4114_v57 = vsel %vm445_vm9, %v4113_v24, %v4112_v10  ;;  %v4371_v10 = vld [vmem:[%s9942_s7 + $0x8] sm:$0xff] }
 0xa94   :  { %4132 = vmatmul.f32.vlgmr.msra.gmra.mxu0 %v4114_v57  ;;  %4152 = vmatmul.f32.vlgmr.msra.gmra.mxu1 %v4114_v57 }
 0xa95   :  { %4172 = vmatmul.f32.vlgmr.msrb.gmra.mxu2 %v4114_v57  ;;  %4192 = vmatmul.f32.vlgmr.msrb.gmra.mxu3 %v4114_v57 }
 0xb11   :  { %v4133_v63 = vpop.f32.mrf.mxu0  ;;  %v4153_v16 = vpop.f32.mrf.mxu1 }
 0xb12   :  { %v4200_v18 = vrot.slane %v4133_v63, 1  ;;  %v4204_v52 = vrot.slane %v4133_v63, 2  ;;  %v4201_v7 = vrot.slane %v4153_v16, 1  ;;  %v4205_v53 = vrot.slane %v4153_v16, 2 }
 0xb14   :  { %v4216_v15 = vadd.f32 %v4200_v18, %v10750_v56  ;;  %v4220_v47 = vadd.f32 %v4204_v52, %v10751_v8  ;;  %v4217_v17 = vadd.f32 %v4201_v7, %v10752_v26  ;;  %v4221_v54 = vadd.f32 %v4205_v53, %v10753_v25  ;;  %v4379_v8 = vld [vmem:[%s9942_s7 + $0x48] sm:$0xff]  ;;  %v4378_v25 = vld [vmem:[%s9942_s7 + $0x40] sm:$0xff] }
 0xb15   :  { %4396 = vmatpush.msrb.mxu0 %v4379_v8  ;;  %v4370_v52 = vld [vmem:[%s9942_s7] sm:$0xff] }
 0xb16   :  { %v4526_v35 = vmul.f32 -1.442695, %v4216_v15  ;;  %v4527_v4 = vmul.f32 -1.442695, %v4220_v47  ;;  %v4528_v31 = vmul.f32 -1.442695, %v4217_v17 }
 0xb17   :  { %v4529_v55 = vmul.f32 -1.442695, %v4221_v54  ;;  %4397 = vmatpush.msrb.mxu0 %v4378_v25 }
 0xb18   :  { %5015 = vpow2.f32 %v4526_v35  ;;  %v4193_v56 = vpop.f32.mrf.mxu3  ;;  %v4173_v3 = vpop.f32.mrf.mxu2 }
 0xb19   :  { %5017 = vpow2.f32 %v4527_v4  ;;  %v4203_v26 = vrot.slane %v4193_v56, 1  ;;  %v4207_v43 = vrot.slane %v4193_v56, 2  ;;  %v4202_v14 = vrot.slane %v4173_v3, 1  ;;  %4398 = vmatpush.msrb.mxu0 %v4377_v32 }
 0xb1a   :  { %5019 = vpow2.f32 %v4528_v31  ;;  %v4206_v28 = vrot.slane %v4173_v3, 2 }
 0xb1b   :  { %5021 = vpow2.f32 %v4529_v55  ;;  %v4219_v5 = vadd.f32 %v4203_v26, %v10754_v42  ;;  %v4223_v48 = vadd.f32 %v4207_v43, %v10755_v45  ;;  %v4375_v42 = vld [vmem:[%s9942_s7 + $0x28] sm:$0xff]  ;;  %4399 = vmatpush.msrb.mxu0 %v4376_v62  ;;  %v4218_v12 = vadd.f32 %v4202_v14, %v10756_v6 }
 0xb1c   :  { %v4222_v44 = vadd.f32 %v4206_v28, %v10757_v23  ;;  %v4372_v23 = vld [vmem:[%s9942_s7 + $0x10] sm:$0xff] }
 0xb1d   :  { %v4530_v36 = vmul.f32 -1.442695, %v4219_v5  ;;  %v4531_v20 = vmul.f32 -1.442695, %v4223_v48  ;;  %4400 = vmatpush.msrb.mxu0 %v4375_v42 }
 0xb1e   :  { %v5016_v46 = vpop.eup %5015 }
 0xb1f   :  { %v5018_v27 = vpop.eup %5017  ;;  %v9826_v1 = vadd.f32 1.0, %v5016_v46  ;;  %5023 = vpow2.f32 %v4530_v36  ;;  %4401 = vmatpush.msrb.mxu0 %v4374_v9 }
 0xb20   :  { %v5020_v45 = vpop.eup %5019  ;;  %v9831_v38 = vadd.f32 1.0, %v5018_v27  ;;  %5025 = vpow2.f32 %v4531_v20 }
 0xb21   :  { %v5022_v33 = vpop.eup %5021  ;;  %5027 = vrcp.f32 %v9826_v1  ;;  %v9834_v2 = vadd.f32 1.0, %v5020_v45  ;;  %v4241_v6 = vand.u32 2147483647, %v9826_v1  ;;  %v4243_v13 = vand.u32 2147483648, %v9826_v1  ;;  %4402 = vmatpush.msrb.mxu0 %v4373_v41 }
 0xb22   :  { %5029 = vrcp.f32 %v9831_v38  ;;  %v9841_v29 = vadd.f32 1.0, %v5022_v33  ;;  %vm4237_vm9 = vweird.f32 %v9826_v1  ;;  %vm4252_vm6 = vweird.f32 %v9831_v38 }
 0xb23   :  { %5031 = vrcp.f32 %v9834_v2  ;;  %v4281_v50 = vand.u32 2147483648, %v9834_v2  ;;  %vm4275_vm7 = vweird.f32 %v9834_v2  ;;  %vm9869_vm8 = vcmp.eq.f32.partialorder %v4241_v6, 8.507059e+37  ;;  %4403 = vmatpush.msrb.mxu0 %v4372_v23 }
 0xb24   :  { %5033 = vrcp.f32 %v9841_v29  ;;  %v4296_v37 = vand.u32 2147483648, %v9841_v29  ;;  %v4256_v61 = vand.u32 2147483647, %v9831_v38  ;;  %vm4290_vm10 = vweird.f32 %v9841_v29 }
 0xb25   :  { %v5024_v30 = vpop.eup %5023  ;;  %5035 = vtanh.f32 %v4218_v12  ;;  %v4244_v16 = vor.u32 1.1754944e-38, %v4243_v13  ;;  %v4258_v18 = vand.u32 2147483648, %v9831_v38  ;;  %v4282_v15 = vor.u32 1.1754944e-38, %v4281_v50  ;;  %4404 = vmatpush.msrb.mxu0 %v4371_v10 }
 0xb26   :  { %v5026_v21 = vpop.eup %5025  ;;  %5037 = vtanh.f32 %v4222_v44  ;;  %v9857_v22 = vadd.f32 1.0, %v5024_v30  ;;  %v4279_v47 = vand.u32 2147483647, %v9834_v2  ;;  %v4297_v35 = vor.u32 1.1754944e-38, %v4296_v37 }
 0xb27   :  { %v5028_v39 = vpop.eup %5027  ;;  %v9862_v60 = vadd.f32 1.0, %v5026_v21  ;;  %v4294_v4 = vand.u32 2147483647, %v9841_v29  ;;  %vm9886_vm12 = vcmp.eq.f32.partialorder %v4256_v61, 8.507059e+37  ;;  %4405 = vmatpush.msrb.mxu0 %v4370_v52  ;;  %v4259_v25 = vor.u32 1.1754944e-38, %v4258_v18 }
 0xb28   :  { %v5030_v24 = vpop.eup %5029  ;;  %v4233_v57 = vmul.f32 %v5028_v39, %v9826_v1  ;;  %5039 = vrcp.f32 %v9857_v22  ;;  %vm4238_vm11 = vweird.f32 %v5028_v39  ;;  %vm9890_vm14 = vcmp.eq.f32.partialorder %v4279_v47, 8.507059e+37  ;;  %v4534_v47 = vld [vmem:[%s9943_s8] ss:$0 sm:$0xff] }
 0xb29   :  { %v5032_v40 = vpop.eup %5031  ;;  %v4248_v63 = vmul.f32 %v5030_v24, %v9831_v38  ;;  %5041 = vrcp.f32 %v9862_v60  ;;  %vm4253_vm13 = vweird.f32 %v5030_v24  ;;  %vm4239_vm1 = vmor %vm4237_vm9, %vm4238_vm11  ;;  %vm9900_vm3 = vcmp.eq.f32.partialorder %v4294_v4, 8.507059e+37 }
 0xb2a   :  { %v5034_v7 = vpop.eup %5033  ;;  %v4234_v53 = vsub.f32 1.0, %v4233_v57  ;;  %v4271_v51 = vmul.f32 %v5032_v40, %v9834_v2  ;;  %vm4276_vm15 = vweird.f32 %v5032_v40  ;;  %vm4254_vm2 = vmor %vm4252_vm6, %vm4253_vm13  ;;  %v4321_v10 = vand.u32 2147483648, %v9857_v22 }
 0xb2b   :  { %v5036_v17 = vpop.eup %5035  ;;  %v4249_v54 = vsub.f32 1.0, %v4248_v63  ;;  %v4286_v49 = vmul.f32 %v5034_v7, %v9841_v29  ;;  %vm4291_vm0 = vweird.f32 %v5034_v7  ;;  %vm4277_vm4 = vmor %vm4275_vm7, %vm4276_vm15  ;;  %vm4315_vm7 = vweird.f32 %v9857_v22 }
 0xb2c   :  { %v5038_v31 = vpop.eup %5037  ;;  %v4272_v55 = vsub.f32 1.0, %v4271_v51  ;;  %v4235_v0 = vmul.f32 %v5028_v39, %v4234_v53  ;;  %vm4292_vm5 = vmor %vm4290_vm10, %vm4291_vm0  ;;  %v4319_v57 = vand.u32 2147483647, %v9857_v22  ;;  %v4336_v11 = vand.u32 2147483648, %v9862_v60 }
 0xb2d   :  { %v4287_v8 = vsub.f32 1.0, %v4286_v49  ;;  %v4250_v26 = vmul.f32 %v5030_v24, %v4249_v54  ;;  %vm4330_vm10 = vweird.f32 %v9862_v60  ;;  %v4334_v59 = vand.u32 2147483647, %v9862_v60 }
 0xb2e   :  { %v5040_v3 = vpop.eup %5039  ;;  %v4273_v43 = vmul.f32 %v5032_v40, %v4272_v55  ;;  %v4236_v5 = vadd.f32 %v5028_v39, %v4235_v0  ;;  %v4337_v61 = vor.u32 1.1754944e-38, %v4336_v11  ;;  %vm4366_vm15 = vcmask 1043459  }
 0xb2f   :  { %v5042_v48 = vpop.eup %5041  ;;  %v4288_v14 = vmul.f32 %v5034_v7, %v4287_v8  ;;  %v4251_v36 = vadd.f32 %v5030_v24, %v4250_v26  ;;  %v4311_v62 = vmul.f32 %v5040_v3, %v9857_v22  ;;  %vm4316_vm9 = vweird.f32 %v5040_v3 }
 0xb30   :  { %v4240_v46 = vsel %vm4239_vm1, %v5028_v39, %v4236_v5  ;;  %v4274_v28 = vadd.f32 %v5032_v40, %v4273_v43  ;;  %v4326_v27 = vmul.f32 %v5042_v48, %v9862_v60  ;;  %vm4331_vm6 = vweird.f32 %v5042_v48 }
 0xb31   :  { %v4245_v1 = vsel %vm9869_vm8, %v4244_v16, %v4240_v46  ;;  %v4255_v42 = vsel %vm4254_vm2, %v5030_v24, %v4251_v36  ;;  %v4289_v45 = vadd.f32 %v5034_v7, %v4288_v14  ;;  %v4312_v33 = vsub.f32 1.0, %v4311_v62  ;;  %vm4317_vm8 = vmor %vm4315_vm7, %vm4316_vm9 }
 0xb32   :  { %v4260_v38 = vsel %vm9886_vm12, %v4259_v25, %v4255_v42  ;;  %v4278_v12 = vsel %vm4277_vm4, %v5032_v40, %v4274_v28  ;;  %v4348_v9 = vmul.f32 %v5036_v17, %v4245_v1  ;;  %v4327_v44 = vsub.f32 1.0, %v4326_v27  ;;  %vm4332_vm11 = vmor %vm4330_vm10, %vm4331_vm6 }
 0xb33   :  { %v4283_v41 = vsel %vm9890_vm14, %v4282_v15, %v4278_v12  ;;  %v4293_v2 = vsel %vm4292_vm5, %v5034_v7, %v4289_v45  ;;  %v4349_v6 = vmul.f32 %v5038_v31, %v4260_v38  ;;  %v4313_v30 = vmul.f32 %v5040_v3, %v4312_v33  ;;  %v10782_v15 = vld [vmem:[#allocation30_spill] sm:$0xff] }
 0xb34   :  { %v4298_v13 = vsel %vm9900_vm3, %v4297_v35, %v4293_v2  ;;  %v4346_v23 = vmul.f32 %v4342_v58, %v4283_v41  ;;  %v4328_v29 = vmul.f32 %v5042_v48, %v4327_v44  ;;  %vm4320_vm12 = vcmp.eq.f32.partialorder %v4319_v57, 8.507059e+37 }
 0xb35   :  { %v4347_v21 = vmul.f32 %v4343_v34, %v4298_v13  ;;  %v4314_v37 = vadd.f32 %v5040_v3, %v4313_v30  ;;  %v4322_v34 = vor.u32 1.1754944e-38, %v4321_v10  ;;  %vm4335_vm13 = vcmp.eq.f32.partialorder %v4334_v59, 8.507059e+37 }
 0xb36   :  { %v4350_v50 = vadd.f32 %v4348_v9, %v4346_v23  ;;  %v4329_v24 = vadd.f32 %v5042_v48, %v4328_v29  ;;  %vm10783_vm14 = vcmask 1041408   ;;  %vm4410_vm0 = vcmask 27648  }
 0xb37   :  { %v4351_v39 = vadd.f32 %v4349_v6, %v4347_v21  ;;  %v4318_v58 = vsel %vm4317_vm8, %v5040_v3, %v4314_v37 }
 0xb38   :  { %5043 = vtanh.f32 %v4350_v50  ;;  %v4333_v19 = vsel %vm4332_vm11, %v5042_v48, %v4329_v24  ;;  %v4323_v63 = vsel %vm4320_vm12, %v4322_v34, %v4318_v58 }
 0xb39   :  { %5045 = vtanh.f32 %v4351_v39  ;;  %v4338_v18 = vsel %vm4335_vm13, %v4337_v61, %v4333_v19 }
 0xb3e   :  { %v5044_v40 = vpop.eup %5043 }
 0xb3f   :  { %v5046_v16 = vpop.eup %5045  ;;  %v4354_v52 = vmul.f32 %v5044_v40, %v4323_v63 }
 0xb40   :  { %v4355_v22 = vmul.f32 %v5046_v16, %v4338_v18 }
 0xb41   :  { %v4364_v7 = vrot.slane %v4354_v52, 5 }
 0xb42   :  { %v4365_v53 = vrot.slane %v4355_v22, 4 }
 0xb44   :  { %v4367_v51 = vsel %vm4366_vm15, %v4365_v53, %v4364_v7 }
 0xb45   :  { %v4369_v60 = vsel %vm10783_vm14, %v10782_v15, %v4367_v51 }
 0xb46   :  { %4406 = vmatmul.f32.vlgmr.msrb.gmra.mxu0 %v4369_v60 }
 0xbc3   :  { %v4407_v17 = vpop.f32.mrf.mxu0 }
 0xbc4   :  { %v4408_v54 = vadd.f32 %v4534_v47, %v4407_v17 }
 0xbc6   :  { %4411 = vst.msk [vmem:[#allocation2] sm:$0xf] %vm4410_vm0, %v4408_v54 }
 0xbc7   :  { %4422 = dma.vmem_to_hbm [thread:$0]  %s4418_s23, 64, %s4420_s26, [#allocation3]  }
 0xbc8   :  { %5327 = dma.done.wait [#allocation3], 64  }
 0xbc9   :  { %5328 = vsyncadd [#allocation3], 4294967232 }
 0xbca   :  { %4427 = vsyncpa [#allocation3], 1 }

</bundles_post_ra>
